<compile_context>
chip_gen: v7x
topology: tpu7x:2x2x1
jax: 0.10.0
libtpu: 0.0.40
codegen_flags: <defaults>
</compile_context>

<pallas_src>
import numpy as np
import jax
import jax.numpy as jnp
from jax.experimental import pallas as pl
from jax.experimental.pallas import tpu as pltpu

# ------------------------- small, module-consistent config -------------------------
B = 2            # batch
NP = 32          # n_protein (padded, divisible by TILE_P)
NC = 16          # n_compound (padded)
E = 128          # embedding_channels  (lane-dense minor dim)
HEADS = 4        # num_attention_heads
HEAD_DIM = E // HEADS
TILE_P = 16      # protein rows per grid step -> projection matmul M = TILE_P*NC = 256
EPS = 1e-5
SCALE = 1.0 / float(HEAD_DIM) ** 0.5


# ---------------------------------- kernel body -------------------------------------
def fast_attn_kernel(z_ref, bias_ref, zm_ref,
                     ln_g_ref, wqkvg_ref, bg_ref, wout_ref, bout_ref,
                     o_ref, qkv_ref, gated_ref):
    # z_ref     : [TILE_P, NC, E]   f32
    # bias_ref  : [TILE_P, NC, NC]  bf16  (head-invariant additive attention bias)
    # zm_ref    : [TILE_P, NC]      f32
    # qkv_ref   : [TILE_P*NC, 3E]   bf16 VMEM scratch (deliberate spill of the qkv projection)
    # gated_ref : [TILE_P*NC, E]    bf16 VMEM scratch (per-head slices at lane offset h*D)
    z = z_ref[...]
    gamma = ln_g_ref[...]                                    # [1, E]

    # LayerNorm(embedding_channels, bias=False) -- f32 VPU math
    mu = jnp.mean(z, axis=-1, keepdims=True)
    zc = z - mu
    var = jnp.mean(zc * zc, axis=-1, keepdims=True)
    zl = zc * jax.lax.rsqrt(var + EPS) * gamma               # [TILE_P, NC, E]
    zl_b = zl.reshape(TILE_P * NC, E).astype(jnp.bfloat16)

    # Fused projection (one MXU pass): cols [0:3E) = linear_qkv (no bias), [3E:4E) = g pre-act.
    proj = jnp.dot(zl_b, wqkvg_ref[...],
                   preferred_element_type=jnp.float32)       # [TILE_P*NC, 4E] f32

    # q|k|v go straight to a bf16 scratch (one cast pass); only g stays in f32.
    qkv_ref[...] = proj[:, :3 * E].astype(jnp.bfloat16)
    g = jax.nn.sigmoid(proj[:, 3 * E:] + bg_ref[...])        # [TILE_P*NC, E] f32

    # Head-invariant bias, read ONCE before the head loop.
    bias = bias_ref[...].astype(jnp.float32)                 # [TILE_P, NC, NC]

    for h in range(HEADS):                                   # statically unrolled (HEADS=4)
        lo = h * HEAD_DIM
        hi = lo + HEAD_DIM
        qh = qkv_ref[:, lo:hi].reshape(TILE_P, NC, HEAD_DIM)
        kh = qkv_ref[:, E + lo:E + hi].reshape(TILE_P, NC, HEAD_DIM)
        vh = qkv_ref[:, 2 * E + lo:2 * E + hi].reshape(TILE_P, NC, HEAD_DIM)

        logits = jnp.einsum('pqd,pkd->pqk', qh, kh,
                            preferred_element_type=jnp.float32) * SCALE + bias
        m = jnp.max(logits, axis=-1, keepdims=True)
        p = jnp.exp(logits - m)                              # EUP
        denom = jnp.sum(p, axis=-1, keepdims=True)
        pw = (p * pl.reciprocal(denom, approx=True)).astype(jnp.bfloat16)

        attn_h = jnp.einsum('pqk,pkd->pqd', pw, vh,
                            preferred_element_type=jnp.float32)   # [TILE_P, NC, D] f32

        gated_ref[:, lo:hi] = (attn_h.reshape(TILE_P * NC, HEAD_DIM)
                               * g[:, lo:hi]).astype(jnp.bfloat16)

    # Single K=128 output projection (was 4 padded K=32 matmuls).
    out = jnp.dot(gated_ref[...], wout_ref[...],
                  preferred_element_type=jnp.float32)        # [TILE_P*NC, E] f32
    out = out.reshape(TILE_P, NC, E) + bout_ref[...]         # output_linear bias
    o_ref[...] = out * zm_ref[...][..., None]                # * z_mask


# ------------------------------- pallas_call wrapper ---------------------------------
def _wspec(shape):
    n = len(shape)
    return pl.BlockSpec(shape, lambda b, i, _n=n: (0,) * _n)


def fast_triangle_self_attention(params, z, z_mask_attention_float, z_mask):
    """Mirrors FastTriangleSelfAttention.forward.

    z                      : [B, NP, NC, E] float32
    z_mask_attention_float : [B*NP*HEADS, NC, NC] additive attention bias (large negative = masked)
    z_mask                 : [B, NP, NC] float32
    """
    assert z.shape == (B, NP, NC, E)
    assert z_mask_attention_float.shape == (B * NP * HEADS, NC, NC)

    # The module broadcasts ONE mask over heads (shape is only dictated by SDPA), so the bias
    # is head-invariant: drop the HEADS axis and DMA a single bf16 [B,NP,NC,NC] tile instead.
    # TODO(synk): if a genuinely per-head bias is ever introduced upstream, keep the HEADS axis.
    bias4 = z_mask_attention_float.reshape(B, NP, HEADS, NC, NC)[:, :, 0]
    bias4 = bias4.astype(jnp.bfloat16)

    z_spec = pl.BlockSpec((None, TILE_P, NC, E), lambda b, i: (b, i, 0, 0))
    return pl.pallas_call(
        fast_attn_kernel,
        out_shape=jax.ShapeDtypeStruct((B, NP, NC, E), jnp.float32),
        grid=(B, NP // TILE_P),
        in_specs=[
            z_spec,
            pl.BlockSpec((None, TILE_P, NC, NC), lambda b, i: (b, i, 0, 0)),
            pl.BlockSpec((None, TILE_P, NC), lambda b, i: (b, i, 0)),
            _wspec((1, E)),            # layernorm weight (no bias), f32
            _wspec((E, 4 * E)),        # fused [qkv | g] weight, bf16 (pre-cast)
            _wspec((1, E)),            # g bias, f32
            _wspec((E, E)),            # output_linear weight, bf16 (pre-cast)
            _wspec((1, E)),            # output_linear bias, f32
        ],
        out_specs=z_spec,
        scratch_shapes=[
            pltpu.VMEM((TILE_P * NC, 3 * E), jnp.bfloat16),   # q|k|v spill
            pltpu.VMEM((TILE_P * NC, E), jnp.bfloat16),       # gated output, head-sliced lanes
        ],
        compiler_params=pltpu.CompilerParams(
            dimension_semantics=("parallel", "parallel"),
            vmem_limit_bytes=32 * 1024 * 1024),
    )(z, bias4, z_mask,
      params['ln_gamma'], params['wqkvg'], params['bg'],
      params['wout'], params['bout'])


# ----------------------------------- parameters --------------------------------------
def init_params(key):
    k1, k2, k3, k4, k5, k6 = jax.random.split(key, 6)

    def nrm(k, shape, scale=0.1):
        return (scale * jax.random.normal(k, shape)).astype(jnp.float32)

    wqkv = nrm(k1, (E, 3 * E))              # linear_qkv (bias=False), torch weight transposed
    wg = nrm(k2, (E, E))                    # g Linear weight (transposed)
    return {
        'ln_gamma': (1.0 + 0.05 * jax.random.normal(k6, (1, E))).astype(jnp.float32),
        # matmul weights pre-cast to bf16 outside the kernel (half DMA, no in-kernel casts)
        'wqkvg': jnp.concatenate([wqkv, wg], axis=1).astype(jnp.bfloat16),   # [E, 4E]
        'bg': nrm(k3, (1, E), 0.02),
        'wout': nrm(k4, (E, E)).astype(jnp.bfloat16),
        'bout': nrm(k5, (1, E), 0.02),
    }


# ----------------------------- pure-JAX reference (f32) -------------------------------
def reference_forward(params, z, z_mask_attention_float, z_mask):
    gamma = params['ln_gamma']
    mu = jnp.mean(z, axis=-1, keepdims=True)
    zc = z - mu
    var = jnp.mean(zc * zc, axis=-1, keepdims=True)
    zl = zc * jax.lax.rsqrt(var + EPS) * gamma

    wqkvg = params['wqkvg'].astype(jnp.float32)
    proj = zl @ wqkvg                                                  # [B, NP, NC, 4E]
    q = proj[..., :E].reshape(B, NP, NC, HEADS, HEAD_DIM)
    k = proj[..., E:2 * E].reshape(B, NP, NC, HEADS, HEAD_DIM)
    v = proj[..., 2 * E:3 * E].reshape(B, NP, NC, HEADS, HEAD_DIM)
    g = jax.nn.sigmoid(proj[..., 3 * E:] + params['bg'])

    bias5 = z_mask_attention_float.reshape(B, NP, HEADS, NC, NC)       # full per-head bias
    logits = jnp.einsum('bpqhd,bpkhd->bphqk', q, k) * SCALE + bias5
    w = jax.nn.softmax(logits, axis=-1)
    attn = jnp.einsum('bphqk,bpkhd->bpqhd', w, v).reshape(B, NP, NC, E)

    out = (g * attn) @ params['wout'].astype(jnp.float32) + params['bout']
    return out * z_mask[..., None]


# -------------------------------------- main -----------------------------------------
if __name__ == "__main__":
    key = jax.random.PRNGKey(0)
    kz, kp = jax.random.split(key, 2)
    params = init_params(kp)

    z = jax.random.normal(kz, (B, NP, NC, E), jnp.float32)

    # validity masks (first n nodes valid per batch element), as in TankBind
    n_p = [NP, NP - 9]
    n_c = [NC, NC - 6]
    protein_mask = np.zeros((B, NP), np.float32)
    compound_mask = np.zeros((B, NC), np.float32)
    for b in range(B):
        protein_mask[b, :n_p[b]] = 1.0
        compound_mask[b, :n_c[b]] = 1.0
    protein_mask = jnp.asarray(protein_mask)
    compound_mask = jnp.asarray(compound_mask)

    z_mask = protein_mask[:, :, None] * compound_mask[:, None, :]          # [B, NP, NC]
    attn_bool = z_mask[:, :, None, :] * compound_mask[:, None, :, None]    # [B, NP, NCq, NCk]
    # additive bias, broadcast over heads, flattened to the module's expected shape
    bias = jnp.where(attn_bool > 0, 0.0, -1e9).astype(jnp.float32)[:, :, None, :, :]
    z_mask_attention_float = jnp.broadcast_to(
        bias, (B, NP, HEADS, NC, NC)).reshape(B * NP * HEADS, NC, NC)

    fwd = jax.jit(fast_triangle_self_attention)
    out = fwd(params, z, z_mask_attention_float, z_mask)
    out = jax.block_until_ready(out)

    ref = jax.block_until_ready(
        reference_forward(params, z, z_mask_attention_float, z_mask))

    assert np.all(np.isfinite(np.asarray(out)))
    # kernel uses bf16 MXU operands + approx reciprocal -> loose tolerance vs f32 reference
    np.testing.assert_allclose(np.asarray(out), np.asarray(ref), rtol=0.1, atol=0.1)
    print("KERNEL_OK")
</pallas_src>

<mosaic_0001>
module attributes {stable_mosaic.version = 11 : i64} {
  func.func @fast_attn_kernel(%arg0: i32, %arg1: i32, %arg2: memref<1x16x16x128xf32, #tpu.memory_space<vmem>>, %arg3: memref<1x16x16x16xbf16, #tpu.memory_space<vmem>>, %arg4: memref<1x16x16xf32, #tpu.memory_space<vmem>>, %arg5: memref<1x128xf32, #tpu.memory_space<vmem>>, %arg6: memref<128x512xbf16, #tpu.memory_space<vmem>>, %arg7: memref<1x128xf32, #tpu.memory_space<vmem>>, %arg8: memref<128x128xbf16, #tpu.memory_space<vmem>>, %arg9: memref<1x128xf32, #tpu.memory_space<vmem>>, %arg10: memref<1x16x16x128xf32, #tpu.memory_space<vmem>>, %arg11: memref<256x384xbf16, #tpu.memory_space<vmem>>, %arg12: memref<256x128xbf16, #tpu.memory_space<vmem>>) attributes {dimension_semantics = [#tpu.dimension_semantics<parallel>, #tpu.dimension_semantics<parallel>], iteration_bounds = array<i64: 2, 2>, scalar_prefetch = 0 : i64, scratch_operands = 2 : i64, tpu.core_type = #tpu.core_type<tc>, window_params = [{transform_indices = @transform_0, window_bounds = array<i64: 1, 16, 16, 128>}, {transform_indices = @transform_1, window_bounds = array<i64: 1, 16, 16, 16>}, {transform_indices = @transform_2, window_bounds = array<i64: 1, 16, 16>}, {pipeline_mode = #tpu.pipeline_mode<synchronous>, transform_indices = @transform_3, window_bounds = array<i64: 1, 128>}, {pipeline_mode = #tpu.pipeline_mode<synchronous>, transform_indices = @transform_4, window_bounds = array<i64: 128, 512>}, {pipeline_mode = #tpu.pipeline_mode<synchronous>, transform_indices = @transform_5, window_bounds = array<i64: 1, 128>}, {pipeline_mode = #tpu.pipeline_mode<synchronous>, transform_indices = @transform_6, window_bounds = array<i64: 128, 128>}, {pipeline_mode = #tpu.pipeline_mode<synchronous>, transform_indices = @transform_7, window_bounds = array<i64: 1, 128>}, {transform_indices = @transform_8, window_bounds = array<i64: 1, 16, 16, 128>}]} {
    %c0 = arith.constant 0 : index
    %c0_0 = arith.constant 0 : index
    %c0_1 = arith.constant 0 : index
    %c0_2 = arith.constant 0 : index
    %0 = vector.load %arg2[%c0, %c0_0, %c0_1, %c0_2] : memref<1x16x16x128xf32, #tpu.memory_space<vmem>>, vector<1x16x16x128xf32>
    %1 = vector.shape_cast %0 : vector<1x16x16x128xf32> to vector<16x16x128xf32>
    %c0_3 = arith.constant 0 : index
    %c0_4 = arith.constant 0 : index
    %2 = vector.load %arg5[%c0_3, %c0_4] : memref<1x128xf32, #tpu.memory_space<vmem>>, vector<1x128xf32>
    %cst = arith.constant dense<0.000000e+00> : vector<16x16xf32>
    %3 = vector.multi_reduction <add>, %1, %cst [2] : vector<16x16x128xf32> to vector<16x16xf32>
    %4 = vector.shape_cast %3 : vector<16x16xf32> to vector<16x16x1xf32>
    %cst_5 = arith.constant 1.280000e+02 : f32
    %5 = vector.broadcast %cst_5 : f32 to vector<16x16x1xf32>
    %6 = arith.divf %4, %5 : vector<16x16x1xf32>
    %7 = vector.broadcast %6 : vector<16x16x1xf32> to vector<16x16x128xf32>
    %8 = arith.subf %1, %7 : vector<16x16x128xf32>
    %9 = arith.mulf %8, %8 : vector<16x16x128xf32>
    %cst_6 = arith.constant dense<0.000000e+00> : vector<16x16xf32>
    %10 = vector.multi_reduction <add>, %9, %cst_6 [2] : vector<16x16x128xf32> to vector<16x16xf32>
    %11 = vector.shape_cast %10 : vector<16x16xf32> to vector<16x16x1xf32>
    %cst_7 = arith.constant 1.280000e+02 : f32
    %12 = vector.broadcast %cst_7 : f32 to vector<16x16x1xf32>
    %13 = arith.divf %11, %12 : vector<16x16x1xf32>
    %cst_8 = arith.constant 9.99999974E-6 : f32
    %14 = vector.broadcast %cst_8 : f32 to vector<16x16x1xf32>
    %15 = arith.addf %13, %14 : vector<16x16x1xf32>
    %16 = math.rsqrt %15 : vector<16x16x1xf32>
    %17 = vector.broadcast %16 : vector<16x16x1xf32> to vector<16x16x128xf32>
    %18 = arith.mulf %8, %17 : vector<16x16x128xf32>
    %19 = vector.shape_cast %2 : vector<1x128xf32> to vector<1x1x128xf32>
    %20 = vector.broadcast %19 : vector<1x1x128xf32> to vector<16x16x128xf32>
    %21 = arith.mulf %18, %20 : vector<16x16x128xf32>
    %22 = vector.shape_cast %21 : vector<16x16x128xf32> to vector<256x128xf32>
    %23 = arith.truncf %22 : vector<256x128xf32> to vector<256x128xbf16>
    %c0_9 = arith.constant 0 : index
    %c0_10 = arith.constant 0 : index
    %24 = vector.load %arg6[%c0_9, %c0_10] : memref<128x512xbf16, #tpu.memory_space<vmem>>, vector<128x512xbf16>
    %cst_11 = arith.constant dense<0.000000e+00> : vector<256x512xf32>
    %25 = tpu.matmul %23, %24, %cst_11 {dimension_numbers = #tpu.dot_dimension_numbers<[1], [0], [0], [1], [0, 0, 1, 1], [], []>} : vector<256x128xbf16>, vector<128x512xbf16>, vector<256x512xf32> -> vector<256x512xf32>
    %26 = vector.extract_strided_slice %25 {offsets = [0, 0], sizes = [256, 384], strides = [1, 1]} : vector<256x512xf32> to vector<256x384xf32>
    %27 = arith.truncf %26 : vector<256x384xf32> to vector<256x384xbf16>
    %c0_12 = arith.constant 0 : index
    %c0_13 = arith.constant 0 : index
    %28 = vector.load %arg11[%c0_12, %c0_13] : memref<256x384xbf16, #tpu.memory_space<vmem>>, vector<256x384xbf16>
    tpu.vector_store %arg11[%c0_12, %c0_13], %27 {strides = array<i32>} : memref<256x384xbf16, #tpu.memory_space<vmem>>, vector<256x384xbf16>,
    %29 = vector.extract_strided_slice %25 {offsets = [0, 384], sizes = [256, 128], strides = [1, 1]} : vector<256x512xf32> to vector<256x128xf32>
    %c0_14 = arith.constant 0 : index
    %c0_15 = arith.constant 0 : index
    %30 = vector.load %arg7[%c0_14, %c0_15] : memref<1x128xf32, #tpu.memory_space<vmem>>, vector<1x128xf32>
    %31 = vector.broadcast %30 : vector<1x128xf32> to vector<256x128xf32>
    %32 = arith.addf %29, %31 : vector<256x128xf32>
    %33 = arith.negf %32 : vector<256x128xf32>
    %34 = math.exp %33 : vector<256x128xf32>
    %cst_16 = arith.constant 1.000000e+00 : f32
    %35 = vector.broadcast %cst_16 : f32 to vector<256x128xf32>
    %36 = arith.addf %35, %34 : vector<256x128xf32>
    %37 = arith.divf %35, %36 : vector<256x128xf32>
    %c0_17 = arith.constant 0 : index
    %c0_18 = arith.constant 0 : index
    %c0_19 = arith.constant 0 : index
    %c0_20 = arith.constant 0 : index
    %38 = vector.load %arg3[%c0_17, %c0_18, %c0_19, %c0_20] : memref<1x16x16x16xbf16, #tpu.memory_space<vmem>>, vector<1x16x16x16xbf16>
    %39 = vector.shape_cast %38 : vector<1x16x16x16xbf16> to vector<16x16x16xbf16>
    %40 = arith.extf %39 : vector<16x16x16xbf16> to vector<16x16x16xf32>
    %c0_21 = arith.constant 0 : index
    %c0_22 = arith.constant 0 : index
    %41 = vector.load %arg11[%c0_21, %c0_22] : memref<256x384xbf16, #tpu.memory_space<vmem>>, vector<256x32xbf16>
    %42 = vector.shape_cast %41 : vector<256x32xbf16> to vector<16x16x32xbf16>
    %c0_23 = arith.constant 0 : index
    %c128 = arith.constant 128 : index
    %43 = vector.load %arg11[%c0_23, %c128] : memref<256x384xbf16, #tpu.memory_space<vmem>>, vector<256x32xbf16>
    %44 = vector.shape_cast %43 : vector<256x32xbf16> to vector<16x16x32xbf16>
    %c0_24 = arith.constant 0 : index
    %c256 = arith.constant 256 : index
    %45 = vector.load %arg11[%c0_24, %c256] : memref<256x384xbf16, #tpu.memory_space<vmem>>, vector<256x32xbf16>
    %46 = vector.shape_cast %45 : vector<256x32xbf16> to vector<16x16x32xbf16>
    "tpu.trace_start"() <{level = 10 : i32, message = "pqd,pkd->pqk"}> : () -> ()
    %cst_25 = arith.constant dense<0.000000e+00> : vector<16x16x16xf32>
    %47 = tpu.matmul %42, %44, %cst_25 {dimension_numbers = #tpu.dot_dimension_numbers<[2], [2], [1], [1], [0, 0, 0, 1, 1, 1], [0], [0]>} : vector<16x16x32xbf16>, vector<16x16x32xbf16>, vector<16x16x16xf32> -> vector<16x16x16xf32>
    "tpu.trace_stop"() : () -> ()
    %cst_26 = arith.constant 0.176776692 : f32
    %48 = vector.broadcast %cst_26 : f32 to vector<16x16x16xf32>
    %49 = arith.mulf %47, %48 : vector<16x16x16xf32>
    %50 = arith.addf %49, %40 : vector<16x16x16xf32>
    %cst_27 = arith.constant dense<0xFF800000> : vector<16x16xf32>
    %51 = vector.multi_reduction <maximumf>, %50, %cst_27 [2] : vector<16x16x16xf32> to vector<16x16xf32>
    %52 = vector.shape_cast %51 : vector<16x16xf32> to vector<16x16x1xf32>
    %53 = vector.broadcast %52 : vector<16x16x1xf32> to vector<16x16x16xf32>
    %54 = arith.subf %50, %53 : vector<16x16x16xf32>
    %55 = math.exp %54 : vector<16x16x16xf32>
    %cst_28 = arith.constant dense<0.000000e+00> : vector<16x16xf32>
    %56 = vector.multi_reduction <add>, %55, %cst_28 [2] : vector<16x16x16xf32> to vector<16x16xf32>
    %57 = vector.shape_cast %56 : vector<16x16xf32> to vector<16x16x1xf32>
    %58 = tpu.reciprocal %57 {approx = true} : vector<16x16x1xf32> -> vector<16x16x1xf32>
    %59 = vector.broadcast %58 : vector<16x16x1xf32> to vector<16x16x16xf32>
    %60 = arith.mulf %55, %59 : vector<16x16x16xf32>
    %61 = arith.truncf %60 : vector<16x16x16xf32> to vector<16x16x16xbf16>
    "tpu.trace_start"() <{level = 10 : i32, message = "pqk,pkd->pqd"}> : () -> ()
    %cst_29 = arith.constant dense<0.000000e+00> : vector<16x16x32xf32>
    %62 = tpu.matmul %61, %46, %cst_29 {dimension_numbers = #tpu.dot_dimension_numbers<[2], [1], [1], [2], [0, 0, 0, 1, 1, 2], [0], [0]>} : vector<16x16x16xbf16>, vector<16x16x32xbf16>, vector<16x16x32xf32> -> vector<16x16x32xf32>
    "tpu.trace_stop"() : () -> ()
    %63 = vector.shape_cast %62 : vector<16x16x32xf32> to vector<256x32xf32>
    %64 = vector.extract_strided_slice %37 {offsets = [0, 0], sizes = [256, 32], strides = [1, 1]} : vector<256x128xf32> to vector<256x32xf32>
    %65 = arith.mulf %63, %64 : vector<256x32xf32>
    %66 = arith.truncf %65 : vector<256x32xf32> to vector<256x32xbf16>
    %c0_30 = arith.constant 0 : index
    %c0_31 = arith.constant 0 : index
    %67 = vector.load %arg12[%c0_30, %c0_31] : memref<256x128xbf16, #tpu.memory_space<vmem>>, vector<256x32xbf16>
    tpu.vector_store %arg12[%c0_30, %c0_31], %66 {strides = array<i32>} : memref<256x128xbf16, #tpu.memory_space<vmem>>, vector<256x32xbf16>,
    %c0_32 = arith.constant 0 : index
    %c32 = arith.constant 32 : index
    %68 = vector.load %arg11[%c0_32, %c32] : memref<256x384xbf16, #tpu.memory_space<vmem>>, vector<256x32xbf16>
    %69 = vector.shape_cast %68 : vector<256x32xbf16> to vector<16x16x32xbf16>
    %c0_33 = arith.constant 0 : index
    %c160 = arith.constant 160 : index
    %70 = vector.load %arg11[%c0_33, %c160] : memref<256x384xbf16, #tpu.memory_space<vmem>>, vector<256x32xbf16>
    %71 = vector.shape_cast %70 : vector<256x32xbf16> to vector<16x16x32xbf16>
    %c0_34 = arith.constant 0 : index
    %c288 = arith.constant 288 : index
    %72 = vector.load %arg11[%c0_34, %c288] : memref<256x384xbf16, #tpu.memory_space<vmem>>, vector<256x32xbf16>
    %73 = vector.shape_cast %72 : vector<256x32xbf16> to vector<16x16x32xbf16>
    "tpu.trace_start"() <{level = 10 : i32, message = "pqd,pkd->pqk"}> : () -> ()
    %cst_35 = arith.constant dense<0.000000e+00> : vector<16x16x16xf32>
    %74 = tpu.matmul %69, %71, %cst_35 {dimension_numbers = #tpu.dot_dimension_numbers<[2], [2], [1], [1], [0, 0, 0, 1, 1, 1], [0], [0]>} : vector<16x16x32xbf16>, vector<16x16x32xbf16>, vector<16x16x16xf32> -> vector<16x16x16xf32>
    "tpu.trace_stop"() : () -> ()
    %cst_36 = arith.constant 0.176776692 : f32
    %75 = vector.broadcast %cst_36 : f32 to vector<16x16x16xf32>
    %76 = arith.mulf %74, %75 : vector<16x16x16xf32>
    %77 = arith.addf %76, %40 : vector<16x16x16xf32>
    %cst_37 = arith.constant dense<0xFF800000> : vector<16x16xf32>
    %78 = vector.multi_reduction <maximumf>, %77, %cst_37 [2] : vector<16x16x16xf32> to vector<16x16xf32>
    %79 = vector.shape_cast %78 : vector<16x16xf32> to vector<16x16x1xf32>
    %80 = vector.broadcast %79 : vector<16x16x1xf32> to vector<16x16x16xf32>
    %81 = arith.subf %77, %80 : vector<16x16x16xf32>
    %82 = math.exp %81 : vector<16x16x16xf32>
    %cst_38 = arith.constant dense<0.000000e+00> : vector<16x16xf32>
    %83 = vector.multi_reduction <add>, %82, %cst_38 [2] : vector<16x16x16xf32> to vector<16x16xf32>
    %84 = vector.shape_cast %83 : vector<16x16xf32> to vector<16x16x1xf32>
    %85 = tpu.reciprocal %84 {approx = true} : vector<16x16x1xf32> -> vector<16x16x1xf32>
    %86 = vector.broadcast %85 : vector<16x16x1xf32> to vector<16x16x16xf32>
    %87 = arith.mulf %82, %86 : vector<16x16x16xf32>
    %88 = arith.truncf %87 : vector<16x16x16xf32> to vector<16x16x16xbf16>
    "tpu.trace_start"() <{level = 10 : i32, message = "pqk,pkd->pqd"}> : () -> ()
    %cst_39 = arith.constant dense<0.000000e+00> : vector<16x16x32xf32>
    %89 = tpu.matmul %88, %73, %cst_39 {dimension_numbers = #tpu.dot_dimension_numbers<[2], [1], [1], [2], [0, 0, 0, 1, 1, 2], [0], [0]>} : vector<16x16x16xbf16>, vector<16x16x32xbf16>, vector<16x16x32xf32> -> vector<16x16x32xf32>
    "tpu.trace_stop"() : () -> ()
    %90 = vector.shape_cast %89 : vector<16x16x32xf32> to vector<256x32xf32>
    %91 = vector.extract_strided_slice %37 {offsets = [0, 32], sizes = [256, 32], strides = [1, 1]} : vector<256x128xf32> to vector<256x32xf32>
    %92 = arith.mulf %90, %91 : vector<256x32xf32>
    %93 = arith.truncf %92 : vector<256x32xf32> to vector<256x32xbf16>
    %c0_40 = arith.constant 0 : index
    %c32_41 = arith.constant 32 : index
    %94 = vector.load %arg12[%c0_40, %c32_41] : memref<256x128xbf16, #tpu.memory_space<vmem>>, vector<256x32xbf16>
    tpu.vector_store %arg12[%c0_40, %c32_41], %93 {strides = array<i32>} : memref<256x128xbf16, #tpu.memory_space<vmem>>, vector<256x32xbf16>,
    %c0_42 = arith.constant 0 : index
    %c64 = arith.constant 64 : index
    %95 = vector.load %arg11[%c0_42, %c64] : memref<256x384xbf16, #tpu.memory_space<vmem>>, vector<256x32xbf16>
    %96 = vector.shape_cast %95 : vector<256x32xbf16> to vector<16x16x32xbf16>
    %c0_43 = arith.constant 0 : index
    %c192 = arith.constant 192 : index
    %97 = vector.load %arg11[%c0_43, %c192] : memref<256x384xbf16, #tpu.memory_space<vmem>>, vector<256x32xbf16>
    %98 = vector.shape_cast %97 : vector<256x32xbf16> to vector<16x16x32xbf16>
    %c0_44 = arith.constant 0 : index
    %c320 = arith.constant 320 : index
    %99 = vector.load %arg11[%c0_44, %c320] : memref<256x384xbf16, #tpu.memory_space<vmem>>, vector<256x32xbf16>
    %100 = vector.shape_cast %99 : vector<256x32xbf16> to vector<16x16x32xbf16>
    "tpu.trace_start"() <{level = 10 : i32, message = "pqd,pkd->pqk"}> : () -> ()
    %cst_45 = arith.constant dense<0.000000e+00> : vector<16x16x16xf32>
    %101 = tpu.matmul %96, %98, %cst_45 {dimension_numbers = #tpu.dot_dimension_numbers<[2], [2], [1], [1], [0, 0, 0, 1, 1, 1], [0], [0]>} : vector<16x16x32xbf16>, vector<16x16x32xbf16>, vector<16x16x16xf32> -> vector<16x16x16xf32>
    "tpu.trace_stop"() : () -> ()
    %cst_46 = arith.constant 0.176776692 : f32
    %102 = vector.broadcast %cst_46 : f32 to vector<16x16x16xf32>
    %103 = arith.mulf %101, %102 : vector<16x16x16xf32>
    %104 = arith.addf %103, %40 : vector<16x16x16xf32>
    %cst_47 = arith.constant dense<0xFF800000> : vector<16x16xf32>
    %105 = vector.multi_reduction <maximumf>, %104, %cst_47 [2] : vector<16x16x16xf32> to vector<16x16xf32>
    %106 = vector.shape_cast %105 : vector<16x16xf32> to vector<16x16x1xf32>
    %107 = vector.broadcast %106 : vector<16x16x1xf32> to vector<16x16x16xf32>
    %108 = arith.subf %104, %107 : vector<16x16x16xf32>
    %109 = math.exp %108 : vector<16x16x16xf32>
    %cst_48 = arith.constant dense<0.000000e+00> : vector<16x16xf32>
    %110 = vector.multi_reduction <add>, %109, %cst_48 [2] : vector<16x16x16xf32> to vector<16x16xf32>
    %111 = vector.shape_cast %110 : vector<16x16xf32> to vector<16x16x1xf32>
    %112 = tpu.reciprocal %111 {approx = true} : vector<16x16x1xf32> -> vector<16x16x1xf32>
    %113 = vector.broadcast %112 : vector<16x16x1xf32> to vector<16x16x16xf32>
    %114 = arith.mulf %109, %113 : vector<16x16x16xf32>
    %115 = arith.truncf %114 : vector<16x16x16xf32> to vector<16x16x16xbf16>
    "tpu.trace_start"() <{level = 10 : i32, message = "pqk,pkd->pqd"}> : () -> ()
    %cst_49 = arith.constant dense<0.000000e+00> : vector<16x16x32xf32>
    %116 = tpu.matmul %115, %100, %cst_49 {dimension_numbers = #tpu.dot_dimension_numbers<[2], [1], [1], [2], [0, 0, 0, 1, 1, 2], [0], [0]>} : vector<16x16x16xbf16>, vector<16x16x32xbf16>, vector<16x16x32xf32> -> vector<16x16x32xf32>
    "tpu.trace_stop"() : () -> ()
    %117 = vector.shape_cast %116 : vector<16x16x32xf32> to vector<256x32xf32>
    %118 = vector.extract_strided_slice %37 {offsets = [0, 64], sizes = [256, 32], strides = [1, 1]} : vector<256x128xf32> to vector<256x32xf32>
    %119 = arith.mulf %117, %118 : vector<256x32xf32>
    %120 = arith.truncf %119 : vector<256x32xf32> to vector<256x32xbf16>
    %c0_50 = arith.constant 0 : index
    %c64_51 = arith.constant 64 : index
    %121 = vector.load %arg12[%c0_50, %c64_51] : memref<256x128xbf16, #tpu.memory_space<vmem>>, vector<256x32xbf16>
    tpu.vector_store %arg12[%c0_50, %c64_51], %120 {strides = array<i32>} : memref<256x128xbf16, #tpu.memory_space<vmem>>, vector<256x32xbf16>,
    %c0_52 = arith.constant 0 : index
    %c96 = arith.constant 96 : index
    %122 = vector.load %arg11[%c0_52, %c96] : memref<256x384xbf16, #tpu.memory_space<vmem>>, vector<256x32xbf16>
    %123 = vector.shape_cast %122 : vector<256x32xbf16> to vector<16x16x32xbf16>
    %c0_53 = arith.constant 0 : index
    %c224 = arith.constant 224 : index
    %124 = vector.load %arg11[%c0_53, %c224] : memref<256x384xbf16, #tpu.memory_space<vmem>>, vector<256x32xbf16>
    %125 = vector.shape_cast %124 : vector<256x32xbf16> to vector<16x16x32xbf16>
    %c0_54 = arith.constant 0 : index
    %c352 = arith.constant 352 : index
    %126 = vector.load %arg11[%c0_54, %c352] : memref<256x384xbf16, #tpu.memory_space<vmem>>, vector<256x32xbf16>
    %127 = vector.shape_cast %126 : vector<256x32xbf16> to vector<16x16x32xbf16>
    "tpu.trace_start"() <{level = 10 : i32, message = "pqd,pkd->pqk"}> : () -> ()
    %cst_55 = arith.constant dense<0.000000e+00> : vector<16x16x16xf32>
    %128 = tpu.matmul %123, %125, %cst_55 {dimension_numbers = #tpu.dot_dimension_numbers<[2], [2], [1], [1], [0, 0, 0, 1, 1, 1], [0], [0]>} : vector<16x16x32xbf16>, vector<16x16x32xbf16>, vector<16x16x16xf32> -> vector<16x16x16xf32>
    "tpu.trace_stop"() : () -> ()
    %cst_56 = arith.constant 0.176776692 : f32
    %129 = vector.broadcast %cst_56 : f32 to vector<16x16x16xf32>
    %130 = arith.mulf %128, %129 : vector<16x16x16xf32>
    %131 = arith.addf %130, %40 : vector<16x16x16xf32>
    %cst_57 = arith.constant dense<0xFF800000> : vector<16x16xf32>
    %132 = vector.multi_reduction <maximumf>, %131, %cst_57 [2] : vector<16x16x16xf32> to vector<16x16xf32>
    %133 = vector.shape_cast %132 : vector<16x16xf32> to vector<16x16x1xf32>
    %134 = vector.broadcast %133 : vector<16x16x1xf32> to vector<16x16x16xf32>
    %135 = arith.subf %131, %134 : vector<16x16x16xf32>
    %136 = math.exp %135 : vector<16x16x16xf32>
    %cst_58 = arith.constant dense<0.000000e+00> : vector<16x16xf32>
    %137 = vector.multi_reduction <add>, %136, %cst_58 [2] : vector<16x16x16xf32> to vector<16x16xf32>
    %138 = vector.shape_cast %137 : vector<16x16xf32> to vector<16x16x1xf32>
    %139 = tpu.reciprocal %138 {approx = true} : vector<16x16x1xf32> -> vector<16x16x1xf32>
    %140 = vector.broadcast %139 : vector<16x16x1xf32> to vector<16x16x16xf32>
    %141 = arith.mulf %136, %140 : vector<16x16x16xf32>
    %142 = arith.truncf %141 : vector<16x16x16xf32> to vector<16x16x16xbf16>
    "tpu.trace_start"() <{level = 10 : i32, message = "pqk,pkd->pqd"}> : () -> ()
    %cst_59 = arith.constant dense<0.000000e+00> : vector<16x16x32xf32>
    %143 = tpu.matmul %142, %127, %cst_59 {dimension_numbers = #tpu.dot_dimension_numbers<[2], [1], [1], [2], [0, 0, 0, 1, 1, 2], [0], [0]>} : vector<16x16x16xbf16>, vector<16x16x32xbf16>, vector<16x16x32xf32> -> vector<16x16x32xf32>
    "tpu.trace_stop"() : () -> ()
    %144 = vector.shape_cast %143 : vector<16x16x32xf32> to vector<256x32xf32>
    %145 = vector.extract_strided_slice %37 {offsets = [0, 96], sizes = [256, 32], strides = [1, 1]} : vector<256x128xf32> to vector<256x32xf32>
    %146 = arith.mulf %144, %145 : vector<256x32xf32>
    %147 = arith.truncf %146 : vector<256x32xf32> to vector<256x32xbf16>
    %c0_60 = arith.constant 0 : index
    %c96_61 = arith.constant 96 : index
    %148 = vector.load %arg12[%c0_60, %c96_61] : memref<256x128xbf16, #tpu.memory_space<vmem>>, vector<256x32xbf16>
    tpu.vector_store %arg12[%c0_60, %c96_61], %147 {strides = array<i32>} : memref<256x128xbf16, #tpu.memory_space<vmem>>, vector<256x32xbf16>,
    %c0_62 = arith.constant 0 : index
    %c0_63 = arith.constant 0 : index
    %149 = vector.load %arg12[%c0_62, %c0_63] : memref<256x128xbf16, #tpu.memory_space<vmem>>, vector<256x128xbf16>
    %c0_64 = arith.constant 0 : index
    %c0_65 = arith.constant 0 : index
    %150 = vector.load %arg8[%c0_64, %c0_65] : memref<128x128xbf16, #tpu.memory_space<vmem>>, vector<128x128xbf16>
    %cst_66 = arith.constant dense<0.000000e+00> : vector<256x128xf32>
    %151 = tpu.matmul %149, %150, %cst_66 {dimension_numbers = #tpu.dot_dimension_numbers<[1], [0], [0], [1], [0, 0, 1, 1], [], []>} : vector<256x128xbf16>, vector<128x128xbf16>, vector<256x128xf32> -> vector<256x128xf32>
    %152 = vector.shape_cast %151 : vector<256x128xf32> to vector<16x16x128xf32>
    %c0_67 = arith.constant 0 : index
    %c0_68 = arith.constant 0 : index
    %153 = vector.load %arg9[%c0_67, %c0_68] : memref<1x128xf32, #tpu.memory_space<vmem>>, vector<1x128xf32>
    %154 = vector.shape_cast %153 : vector<1x128xf32> to vector<1x1x128xf32>
    %155 = vector.broadcast %154 : vector<1x1x128xf32> to vector<16x16x128xf32>
    %156 = arith.addf %152, %155 : vector<16x16x128xf32>
    %c0_69 = arith.constant 0 : index
    %c0_70 = arith.constant 0 : index
    %c0_71 = arith.constant 0 : index
    %157 = vector.load %arg4[%c0_69, %c0_70, %c0_71] : memref<1x16x16xf32, #tpu.memory_space<vmem>>, vector<1x16x16xf32>
    %158 = vector.shape_cast %157 : vector<1x16x16xf32> to vector<16x16xf32>
    %159 = vector.shape_cast %158 : vector<16x16xf32> to vector<16x16x1xf32>
    %160 = vector.broadcast %159 : vector<16x16x1xf32> to vector<16x16x128xf32>
    %161 = arith.mulf %156, %160 : vector<16x16x128xf32>
    %c0_72 = arith.constant 0 : index
    %c0_73 = arith.constant 0 : index
    %c0_74 = arith.constant 0 : index
    %c0_75 = arith.constant 0 : index
    %162 = vector.load %arg10[%c0_72, %c0_73, %c0_74, %c0_75] : memref<1x16x16x128xf32, #tpu.memory_space<vmem>>, vector<1x16x16x128xf32>
    %163 = vector.shape_cast %162 : vector<1x16x16x128xf32> to vector<16x16x128xf32>
    %164 = vector.shape_cast %161 : vector<16x16x128xf32> to vector<1x16x16x128xf32>
    tpu.vector_store %arg10[%c0_72, %c0_73, %c0_74, %c0_75], %164 {strides = array<i32>} : memref<1x16x16x128xf32, #tpu.memory_space<vmem>>, vector<1x16x16x128xf32>,
    return
  }
  func.func @transform_0(%arg0: i32, %arg1: i32) -> (i32, i32, i32, i32) {
    %c0_i32 = arith.constant 0 : i32
    %c0_i32_0 = arith.constant 0 : i32
    %c0_i32_1 = arith.constant 0 : i32
    return %arg0, %arg1, %c0_i32, %c0_i32_0 : i32, i32, i32, i32
  }
  func.func @transform_1(%arg0: i32, %arg1: i32) -> (i32, i32, i32, i32) {
    %c0_i32 = arith.constant 0 : i32
    %c0_i32_0 = arith.constant 0 : i32
    %c0_i32_1 = arith.constant 0 : i32
    return %arg0, %arg1, %c0_i32, %c0_i32_0 : i32, i32, i32, i32
  }
  func.func @transform_2(%arg0: i32, %arg1: i32) -> (i32, i32, i32) {
    %c0_i32 = arith.constant 0 : i32
    %c0_i32_0 = arith.constant 0 : i32
    return %arg0, %arg1, %c0_i32 : i32, i32, i32
  }
  func.func @transform_3(%arg0: i32, %arg1: i32) -> (i32, i32) {
    %c0_i32 = arith.constant 0 : i32
    %c0_i32_0 = arith.constant 0 : i32
    %c0_i32_1 = arith.constant 0 : i32
    return %c0_i32, %c0_i32_0 : i32, i32
  }
  func.func @transform_4(%arg0: i32, %arg1: i32) -> (i32, i32) {
    %c0_i32 = arith.constant 0 : i32
    %c0_i32_0 = arith.constant 0 : i32
    %c0_i32_1 = arith.constant 0 : i32
    return %c0_i32, %c0_i32_0 : i32, i32
  }
  func.func @transform_5(%arg0: i32, %arg1: i32) -> (i32, i32) {
    %c0_i32 = arith.constant 0 : i32
    %c0_i32_0 = arith.constant 0 : i32
    %c0_i32_1 = arith.constant 0 : i32
    return %c0_i32, %c0_i32_0 : i32, i32
  }
  func.func @transform_6(%arg0: i32, %arg1: i32) -> (i32, i32) {
    %c0_i32 = arith.constant 0 : i32
    %c0_i32_0 = arith.constant 0 : i32
    %c0_i32_1 = arith.constant 0 : i32
    return %c0_i32, %c0_i32_0 : i32, i32
  }
  func.func @transform_7(%arg0: i32, %arg1: i32) -> (i32, i32) {
    %c0_i32 = arith.constant 0 : i32
    %c0_i32_0 = arith.constant 0 : i32
    %c0_i32_1 = arith.constant 0 : i32
    return %c0_i32, %c0_i32_0 : i32, i32
  }
  func.func @transform_8(%arg0: i32, %arg1: i32) -> (i32, i32, i32, i32) {
    %c0_i32 = arith.constant 0 : i32
    %c0_i32_0 = arith.constant 0 : i32
    %c0_i32_1 = arith.constant 0 : i32
    return %arg0, %arg1, %c0_i32, %c0_i32_0 : i32, i32, i32, i32
  }
}

</mosaic_0001>

<bundles_post_ra>
// kernel: fast_triangle_self_attention.1
= control target key start
LH: loop header
LB: loop body
LE: loop exit
PB: predicated region body
PF: predicated region fallthrough
CT: control target
= control target key end

     0   :  { %s18331_s0 = inlined_call_operand.vmem [shape: f32[2,32,16,128], index: 0, kind: input, shape index: {}]   ;;  %s18332_s1 = inlined_call_operand.vmem [shape: bf16[2,32,16,16], index: 1, kind: input, shape index: {}]   ;;  %s18333_s2 = inlined_call_operand.vmem [shape: f32[2,32,16], index: 2, kind: input, shape index: {}]   ;;  %s18334_s3 = inlined_call_operand.vmem [shape: f32[1,128], index: 3, kind: input, shape index: {}]   ;;  %s18335_s4 = inlined_call_operand.vmem [shape: bf16[128,512], index: 4, kind: input, shape index: {}]   ;;  %s18336_s5 = inlined_call_operand.vmem [shape: f32[1,128], index: 5, kind: input, shape index: {}]   ;;  %s18337_s6 = inlined_call_operand.vmem [shape: bf16[128,128], index: 6, kind: input, shape index: {}]   ;;  %s18338_s7 = inlined_call_operand.vmem [shape: f32[1,128], index: 7, kind: input, shape index: {}]   ;;  %s18339_s8 = inlined_call_operand.hbm [shape: f32[2,32,16,128], index: 8, kind: output, shape index: {}]  }
   0x1   :  { %18549 = sst [smem:[#allocation147_spill]] %s18331_s0 }
   0x2   :  { %13 = vsyncpa [#allocation5], 0 }
   0x3   :  { %15 = vsyncpa [#allocation5 + $0x1], 0  ;;  %s13891_s27 = smov 0   ;;  %s13893_s28 = smov 0  }
   0x4   :  { %s13895_s29 = smov 0   ;;  %s13897_s30 = smov 0  }
   0x5   :  { %s13899_s9 = smov 0   ;;  %s13901_s10 = smov 0  }
   0x6   :  { %s13903_s11 = smov 0   ;;  %s13905_s12 = smov 0  }
   0x7 LB: > { %s11483_s13 = sadd.s32 4294967295, %s13835_s12   ;;  %s11484_s14 = sadd.s32 4294967294, %s13835_s12   ;;  %s13835_s12 = sphi %s13905_s12, %s21_s12   ;;  %s13831_s11 = sphi %s13903_s11, %s19128_s11   ;;  %s13827_s10 = sphi %s13901_s10, %s19127_s10   ;;  %s13823_s9 = sphi %s13899_s9, %s19126_s9   ;;  %s13819_s30 = sphi %s13897_s30, %s19125_s30   ;;  %s13815_s29 = sphi %s13895_s29, %s19124_s29   ;;  %s13811_s28 = sphi %s13893_s28, %s19123_s28   ;;  %s13807_s27 = sphi %s13891_s27, %s19122_s27  }
   0x8   : > { %s30_s15 = sadd.s32 1, %s13827_s10  ;;  %s33_s16 = sadd.s32 1, %s13831_s11 }
   0x9   : > { %p31_p0 = scmp.ge.s32.totalorder %s30_s15, 2  ;;  %p241_p1 = scmp.ne.s32.totalorder %s13815_s29, %s13811_s28 }
   0xa   : > { %p242_p2 = scmp.eq.s32.totalorder %s11483_s13, 3  ;;  %p247_p5 = scmp.ne.s32.totalorder %s13811_s28, %s13807_s27 }
   0xb   : > { %s19130_s15 = smov (%p31_p0, %s30_s15), 0  ;;  %s19132_s16 = smov (!%p31_p0, %s33_s16), %s13831_s11 }
   0xc   : > { %s227_s17 = ssub.s32 %s13827_s10, %s19130_s15  ;;  %p13942_p3 = por %p242_p2, %p241_p1 }
   0xd   : > { %p35_p4 = scmp.ge.s32.totalorder %s19132_s16, 2  ;;  %p248_p6 = scmp.eq.s32.totalorder %s11484_s14, 3 }
   0xe   : > { %p11487_p7 = scmp.ge.s32.totalorder %s13835_s12, 1  ;;  %p322_p9 = scmp.lt.s32.totalorder %s13835_s12, 5 }
   0xf   : > { %s19134_s16 = smov (%p35_p4, %s19132_s16), 0  ;;  %p13951_p8 = por %p248_p6, %p247_p5 }
  0x10   : > { %18551 = sst [smem:[#allocation7_spill]] %s19134_s16  ;;  %s226_s20 = ssub.s32 %s13831_s11, %s19134_s16 }
  0x11   : > { %s231_s21 = sadd.s32 1, %s13815_s29  ;;  %s228_s22 = sor.u32 %s227_s17, %s226_s20 }
  0x12   : > { %p323_p10 = pnand %p11487_p7, %p322_p9  ;;  %p229_p11 = scmp.eq.s32.totalorder %s228_s22, 0 }
  0x14   : > { %s13960_s23 = scalar_select %p229_p11, %s13815_s29, %s231_s21  }
  0x15   : > { %326 = sbr.rel (%p323_p10) target bundleno = 3846 (0xf06), region = 52 }
  0x1c   : > { %s11489_s24 = sshll.u32 %s13819_s30, 4  ;;  %p381_p12 = scmp.lt.s32.totalorder %s13823_s9, 1  ;;  %v12981_v26 = vld [vmem:[%s18335_s4 + $0x4] ss:$16 sps:$4 sm:$0xff]   ;;  %v12983_v27 = vld [vmem:[%s18335_s4] ss:$16 sps:$4 sm:$0xff]  }
  0x1d   : > { %p383_p13 = scmp.lt.s32.totalorder %s11489_s24, 31  ;;  %s18553_s0 = sld [smem:[#allocation147_spill]]  ;;  %v12984_v28 = vld [vmem:[%s18335_s4 + $0x24] ss:$16 sps:$4 sm:$0xff]   ;;  %1046 = vmatprep.subr.bf16.mxu0 %v12981_v26  ;;  %12886 = vmatprep.subr.bf16.mxu1 %v12981_v26  ;;  %v12986_v29 = vld [vmem:[%s18335_s4 + $0x20] ss:$16 sps:$4 sm:$0xff]  }
  0x1e   : > { %s13965_s25 = scalar_select %p381_p12, %s13823_s9, 1  ;;  %1047 = vmatpush1.bf16.msra.mxu0 %v12983_v27  ;;  %12894 = vmatpush1.bf16.msra.mxu1 %v12983_v27  ;;  %vm13839_vm0 = vmmov 0   ;;  %vm1871_vm1 = vcmask 261120   ;;  %vm2688_vm2 = vcmask 130048   ;;  %vm6161_vm3 = vcmask 523520  }
  0x1f   : > { %s19136_s24 = smov (!%p383_p13, %s11489_s24), 31  ;;  %1048 = vmatprep.subr.bf16.mxu0 %v12984_v28  ;;  %12887 = vmatprep.subr.bf16.mxu1 %v12984_v28  ;;  %vm8482_vm4 = vcmask 785920   ;;  %vm10803_vm5 = vcmask 1048320  }
  0x20   : > { %s11491_s26 = sshll.u32 %s13965_s25, 6  ;;  %s11490_s13 = sshll.u32 %s19136_s24, 1 }
  0x21   : > { %s13968_s14 = sadd.s32 %s11491_s26, %s11490_s13  ;;  %s13841_s24 = smov 64  }
  0x22   : > { %s11492_s17 = sshll.u32 %s13968_s14, 3  ;;  %1049 = vmatpush1.bf16.msra.mxu0 %v12986_v29  ;;  %12895 = vmatpush1.bf16.msra.mxu1 %v12986_v29  ;;  %v12990_v29 = vld [vmem:[%s18335_s4 + $0x64] ss:$16 sps:$4 sm:$0xff]   ;;  %s11496_s13 = sshll.u32 %s13968_s14, 2 }
  0x23   : > { %s13974_s22 = scalar_lea.vmem %s18553_s0, %s11492_s17  ;;  %s14747_s21 = scalar_lea.vmem %s18332_s1, %s11496_s13 }
  0x24   : > { %v13977_v0 = vld [vmem:[%s13974_s22] sm:$0xff]  ;;  %v13980_v1 = vld [vmem:[%s13974_s22 + $0x10] sm:$0xff]  ;;  %v13985_v2 = vld [vmem:[%s13974_s22 + $0x8] sm:$0xff]  ;;  %s13840_s14 = smov 96   ;;  %s13842_s26 = smov 32  }
  0x25   : > { %447 = vadd.xlane.f32.xlu0 %v13977_v0  ;;  %451 = vadd.xlane.f32.xlu1 %v13980_v1  ;;  %v13988_v3 = vld [vmem:[%s13974_s22 + $0x18] sm:$0xff]  ;;  %v13993_v4 = vld [vmem:[%s13974_s22 + $0x20] sm:$0xff]  ;;  %v13996_v5 = vld [vmem:[%s13974_s22 + $0x28] sm:$0xff] }
  0x26   : > { %v13999_v6 = vld [vmem:[%s13974_s22 + $0x30] sm:$0xff]  ;;  %v14002_v7 = vld [vmem:[%s13974_s22 + $0x38] sm:$0xff]  ;;  %v14007_v8 = vld [vmem:[%s13974_s22 + $0x40] sm:$0xff] }
  0x27   : > { %v14010_v9 = vld [vmem:[%s13974_s22 + $0x48] sm:$0xff]  ;;  %v14017_v10 = vld [vmem:[%s13974_s22 + $0x50] sm:$0xff]  ;;  %v14020_v11 = vld [vmem:[%s13974_s22 + $0x58] sm:$0xff] }
  0x28   : > { %v14025_v12 = vld [vmem:[%s13974_s22 + $0x60] sm:$0xff]  ;;  %v14028_v13 = vld [vmem:[%s13974_s22 + $0x68] sm:$0xff]  ;;  %v14033_v14 = vld [vmem:[%s13974_s22 + $0x70] sm:$0xff] }
  0x29   : > { %449 = vadd.xlane.f32.xlu0 %v13985_v2  ;;  %453 = vadd.xlane.f32.xlu1 %v13988_v3  ;;  %v14036_v15 = vld [vmem:[%s13974_s22 + $0x78] sm:$0xff]  ;;  %v14041_v16 = vld [vmem:[%s13974_s22 + $0x80] sm:$0xff]  ;;  %v14044_v17 = vld [vmem:[%s13974_s22 + $0x88] sm:$0xff] }
  0x2a   : > { %v14049_v18 = vld [vmem:[%s13974_s22 + $0xb0] sm:$0xff]  ;;  %v14052_v19 = vld [vmem:[%s13974_s22 + $0xb8] sm:$0xff]  ;;  %v14065_v22 = vld [vmem:[%s13974_s22 + $0xc0] sm:$0xff] }
  0x2b   : > { %v14057_v20 = vld [vmem:[%s13974_s22 + $0x90] sm:$0xff]  ;;  %v14060_v21 = vld [vmem:[%s13974_s22 + $0x98] sm:$0xff]  ;;  %v14068_v23 = vld [vmem:[%s13974_s22 + $0xc8] sm:$0xff] }
  0x2c   : > { %v14073_v24 = vld [vmem:[%s13974_s22 + $0xa0] sm:$0xff]  ;;  %v14076_v25 = vld [vmem:[%s13974_s22 + $0xa8] sm:$0xff]  ;;  %v14104_v42 = vld [vmem:[%s13974_s22 + $0xd0] sm:$0xff] }
  0x2d   : > { %455 = vadd.xlane.f32.xlu0 %v13993_v4  ;;  %457 = vadd.xlane.f32.xlu1 %v13996_v5  ;;  %v14115_v49 = vld [vmem:[%s13974_s22 + $0xd8] sm:$0xff]  ;;  %v14124_v55 = vld [vmem:[%s13974_s22 + $0xe0] sm:$0xff]  ;;  %v14133_v61 = vld [vmem:[%s13974_s22 + $0xe8] sm:$0xff] }
  0x2e   : > { %v14148_v26 = vld [vmem:[%s13974_s22 + $0xf0] sm:$0xff] }
  0x31   : > { %459 = vadd.xlane.f32.xlu0 %v13999_v6  ;;  %461 = vadd.xlane.f32.xlu1 %v14002_v7 }
  0x35   : > { %463 = vadd.xlane.f32.xlu0 %v14007_v8  ;;  %465 = vadd.xlane.f32.xlu1 %v14010_v9 }
  0x39   : > { %467 = vadd.xlane.f32.xlu0 %v14017_v10  ;;  %469 = vadd.xlane.f32.xlu1 %v14020_v11 }
  0x3d   : > { %471 = vadd.xlane.f32.xlu0 %v14025_v12  ;;  %473 = vadd.xlane.f32.xlu1 %v14028_v13 }
  0x41   : > { %475 = vadd.xlane.f32.xlu0 %v14033_v14  ;;  %477 = vadd.xlane.f32.xlu1 %v14036_v15 }
  0x45   : > { %479 = vadd.xlane.f32.xlu0 %v14041_v16  ;;  %481 = vadd.xlane.f32.xlu1 %v14044_v17 }
  0x49   : > { %491 = vadd.xlane.f32.xlu0 %v14049_v18  ;;  %493 = vadd.xlane.f32.xlu1 %v14052_v19 }
  0x4d   : > { %483 = vadd.xlane.f32.xlu0 %v14057_v20  ;;  %485 = vadd.xlane.f32.xlu1 %v14060_v21 }
  0x51   : > { %495 = vadd.xlane.f32.xlu0 %v14065_v22  ;;  %497 = vadd.xlane.f32.xlu1 %v14068_v23 }
  0x55   : > { %487 = vadd.xlane.f32.xlu0 %v14073_v24  ;;  %489 = vadd.xlane.f32.xlu1 %v14076_v25 }
  0xb2   : > { %v448_v30 = vpop.xlane.xlu0 %447  ;;  %v452_v31 = vpop.xlane.xlu1 %451 }
  0xb3   : > { %v512_v32 = vmul.f32 0.0078125, %v448_v30  ;;  %v514_v34 = vmul.f32 0.0078125, %v452_v31  ;;  %v12992_v30 = vld [vmem:[%s18335_s4 + $0x60] ss:$16 sps:$4 sm:$0xff]  }
  0xb5   : > { %v14093_v33 = vsub.f32 %v13977_v0, %v512_v32  ;;  %v14101_v41 = vsub.f32 %v13980_v1, %v514_v34  ;;  %v12987_v0 = vld [vmem:[%s18335_s4 + $0x44] ss:$16 sps:$4 sm:$0xff]   ;;  %v12989_v1 = vld [vmem:[%s18335_s4 + $0x40] ss:$16 sps:$4 sm:$0xff]  }
  0xb6   : > { %v450_v35 = vpop.xlane.xlu0 %449  ;;  %v454_v36 = vpop.xlane.xlu1 %453  ;;  %1050 = vmatprep.subr.bf16.mxu0 %v12987_v0  ;;  %12888 = vmatprep.subr.bf16.mxu1 %v12987_v0  ;;  %v13001_v0 = vld [vmem:[%s18335_s4 + $0xc0] ss:$16 sps:$4 sm:$0xff]  }
  0xb7   : > { %v513_v37 = vmul.f32 0.0078125, %v450_v35  ;;  %v576_v38 = vmul.f32 %v14093_v33, %v14093_v33  ;;  %v515_v40 = vmul.f32 0.0078125, %v454_v36  ;;  %v578_v46 = vmul.f32 %v14101_v41, %v14101_v41  ;;  %1051 = vmatpush1.bf16.msra.mxu0 %v12989_v1  ;;  %12896 = vmatpush1.bf16.msra.mxu1 %v12989_v1  ;;  %v14166_v36 = vld [vmem:[%s13974_s22 + $0xf8] sm:$0xff] }
  0xb8   : > { %1052 = vmatprep.subr.bf16.mxu0 %v12990_v29  ;;  %12889 = vmatprep.subr.bf16.mxu1 %v12990_v29  ;;  %v13004_v29 = vld [vmem:[%s18335_s4 + $0xe0] ss:$16 sps:$4 sm:$0xff]  }
  0xb9   : > { %608 = vadd.xlane.f32.xlu0 %v576_v38  ;;  %v14098_v39 = vsub.f32 %v13985_v2, %v513_v37  ;;  %v14112_v48 = vsub.f32 %v13988_v3, %v515_v40  ;;  %v12995_v40 = vld [vmem:[%s18335_s4 + $0x80] ss:$16 sps:$4 sm:$0xff]  }
  0xba   : > { %v456_v43 = vpop.xlane.xlu0 %455  ;;  %v458_v44 = vpop.xlane.xlu1 %457 }
  0xbb   : > { %v577_v45 = vmul.f32 %v14098_v39, %v14098_v39  ;;  %v516_v47 = vmul.f32 0.0078125, %v456_v43  ;;  %v579_v52 = vmul.f32 %v14112_v48, %v14112_v48  ;;  %v517_v53 = vmul.f32 0.0078125, %v458_v44  ;;  %1053 = vmatpush1.bf16.msra.mxu0 %v12992_v30  ;;  %12897 = vmatpush1.bf16.msra.mxu1 %v12992_v30 }
  0xbd   : > { %499 = vadd.xlane.f32.xlu0 %v14104_v42  ;;  %610 = vadd.xlane.f32.xlu1 %v577_v45  ;;  %v14121_v54 = vsub.f32 %v13993_v4, %v516_v47  ;;  %v14130_v60 = vsub.f32 %v13996_v5, %v517_v53 }
  0xbe   : > { %v460_v50 = vpop.xlane.xlu0 %459  ;;  %v462_v51 = vpop.xlane.xlu1 %461 }
  0xbf   : > { %v580_v58 = vmul.f32 %v14121_v54, %v14121_v54  ;;  %v518_v59 = vmul.f32 0.0078125, %v460_v50  ;;  %v519_v2 = vmul.f32 0.0078125, %v462_v51  ;;  %v581_v3 = vmul.f32 %v14130_v60, %v14130_v60 }
  0xc1   : > { %612 = vadd.xlane.f32.xlu0 %v578_v46  ;;  %501 = vadd.xlane.f32.xlu1 %v14115_v49  ;;  %v14145_v5 = vsub.f32 %v13999_v6, %v518_v59  ;;  %v14157_v32 = vsub.f32 %v14002_v7, %v519_v2  ;;  %v12993_v7 = vld [vmem:[%s18335_s4 + $0x84] ss:$16 sps:$4 sm:$0xff]  }
  0xc2   : > { %v464_v56 = vpop.xlane.xlu0 %463  ;;  %v466_v57 = vpop.xlane.xlu1 %465  ;;  %1054 = vmatprep.subr.bf16.mxu0 %v12993_v7  ;;  %12890 = vmatprep.subr.bf16.mxu1 %v12993_v7  ;;  %v13837_v7 = vmov 0  }
  0xc3   : > { %v520_v4 = vmul.f32 0.0078125, %v464_v56  ;;  %v521_v31 = vmul.f32 0.0078125, %v466_v57  ;;  %v582_v6 = vmul.f32 %v14145_v5, %v14145_v5  ;;  %v583_v43 = vmul.f32 %v14157_v32, %v14157_v32  ;;  %1055 = vmatpush1.bf16.msra.mxu0 %v12995_v40  ;;  %12898 = vmatpush1.bf16.msra.mxu1 %v12995_v40 }
  0xc4   : > { %1078 = vmatprep.mubr.bf16.mxu0 %v13837_v7  ;;  %1188 = vmatprep.mubr.bf16.mxu1 %v13837_v7 }
  0xc5   : > { %503 = vadd.xlane.f32.xlu0 %v14124_v55  ;;  %614 = vadd.xlane.f32.xlu1 %v579_v52  ;;  %v14163_v35 = vsub.f32 %v14007_v8, %v520_v4  ;;  %v14177_v8 = vsub.f32 %v14010_v9, %v521_v31  ;;  %v12996_v9 = vld [vmem:[%s18335_s4 + $0xa4] ss:$16 sps:$4 sm:$0xff]   ;;  %v12998_v52 = vld [vmem:[%s18335_s4 + $0xa0] ss:$16 sps:$4 sm:$0xff]  }
  0xc6   : > { %v468_v62 = vpop.xlane.xlu0 %467  ;;  %v470_v63 = vpop.xlane.xlu1 %469  ;;  %1056 = vmatprep.subr.bf16.mxu0 %v12996_v9  ;;  %12891 = vmatprep.subr.bf16.mxu1 %v12996_v9 }
  0xc7   : > { %v522_v34 = vmul.f32 0.0078125, %v468_v62  ;;  %v584_v44 = vmul.f32 %v14163_v35, %v14163_v35  ;;  %v523_v45 = vmul.f32 0.0078125, %v470_v63  ;;  %v585_v53 = vmul.f32 %v14177_v8, %v14177_v8  ;;  %1057 = vmatpush1.bf16.msra.mxu0 %v12998_v52  ;;  %v12999_v63 = vld [vmem:[%s18335_s4 + $0xc4] ss:$16 sps:$4 sm:$0xff]   ;;  %12899 = vmatpush1.bf16.msra.mxu1 %v12998_v52 }
  0xc8   : > { %1058 = vmatprep.subr.bf16.mxu0 %v12999_v63  ;;  %12892 = vmatprep.subr.bf16.mxu1 %v12999_v63 }
  0xc9   : > { %505 = vadd.xlane.f32.xlu1 %v14133_v61  ;;  %616 = vadd.xlane.f32.xlu0 %v580_v58  ;;  %v14183_v47 = vsub.f32 %v14017_v10, %v522_v34  ;;  %v14196_v58 = vsub.f32 %v14020_v11, %v523_v45 }
  0xca   : > { %v472_v27 = vpop.xlane.xlu0 %471  ;;  %v474_v28 = vpop.xlane.xlu1 %473 }
  0xcb   : > { %v524_v46 = vmul.f32 0.0078125, %v472_v27  ;;  %v525_v56 = vmul.f32 0.0078125, %v474_v28  ;;  %v586_v10 = vmul.f32 %v14183_v47, %v14183_v47  ;;  %1059 = vmatpush1.bf16.msra.mxu0 %v13001_v0  ;;  %12900 = vmatpush1.bf16.msra.mxu1 %v13001_v0 }
  0xcd   : > { %618 = vadd.xlane.f32.xlu1 %v581_v3  ;;  %507 = vadd.xlane.f32.xlu0 %v14148_v26  ;;  %v14199_v59 = vsub.f32 %v14025_v12, %v524_v46  ;;  %v14208_v2 = vsub.f32 %v14028_v13, %v525_v56  ;;  %v587_v12 = vmul.f32 %v14196_v58, %v14196_v58  ;;  %v13002_v13 = vld [vmem:[%s18335_s4 + $0xe4] ss:$16 sps:$4 sm:$0xff]  }
  0xce   : > { %v476_v37 = vpop.xlane.xlu0 %475  ;;  %v478_v38 = vpop.xlane.xlu1 %477  ;;  %1060 = vmatprep.subr.bf16.mxu0 %v13002_v13  ;;  %12893 = vmatprep.subr.bf16.mxu1 %v13002_v13 }
  0xcf   : > { %v526_v57 = vmul.f32 0.0078125, %v476_v37  ;;  %v527_v1 = vmul.f32 0.0078125, %v478_v38  ;;  %v588_v3 = vmul.f32 %v14199_v59, %v14199_v59  ;;  %v589_v30 = vmul.f32 %v14208_v2, %v14208_v2  ;;  %1061 = vmatpush1.bf16.msra.mxu0 %v13004_v29  ;;  %12901 = vmatpush1.bf16.msra.mxu1 %v13004_v29 }
  0xd1   : > { %509 = vadd.xlane.f32.xlu1 %v14166_v36  ;;  %620 = vadd.xlane.f32.xlu0 %v582_v6  ;;  %v14215_v27 = vsub.f32 %v14033_v14, %v526_v57  ;;  %v14226_v31 = vsub.f32 %v14036_v15, %v527_v1 }
  0xd2   : > { %v480_v50 = vpop.xlane.xlu0 %479  ;;  %v482_v51 = vpop.xlane.xlu1 %481 }
  0xd3   : > { %v528_v4 = vmul.f32 0.0078125, %v480_v50  ;;  %v590_v14 = vmul.f32 %v14215_v27, %v14215_v27  ;;  %v529_v6 = vmul.f32 0.0078125, %v482_v51  ;;  %v591_v15 = vmul.f32 %v14226_v31, %v14226_v31 }
  0xd5   : > { %622 = vadd.xlane.f32.xlu1 %v583_v43  ;;  %624 = vadd.xlane.f32.xlu0 %v584_v44  ;;  %v14231_v37 = vsub.f32 %v14041_v16, %v528_v4  ;;  %v14240_v45 = vsub.f32 %v14044_v17, %v529_v6 }
  0xd6   : > { %v492_v62 = vpop.xlane.xlu0 %491  ;;  %v494_v11 = vpop.xlane.xlu1 %493 }
  0xd7   : > { %v534_v34 = vmul.f32 0.0078125, %v492_v62  ;;  %v535_v40 = vmul.f32 0.0078125, %v494_v11  ;;  %v592_v44 = vmul.f32 %v14231_v37, %v14231_v37  ;;  %v593_v52 = vmul.f32 %v14240_v45, %v14240_v45 }
  0xd9   : > { %626 = vadd.xlane.f32.xlu1 %v585_v53  ;;  %628 = vadd.xlane.f32.xlu0 %v586_v10  ;;  %v14243_v46 = vsub.f32 %v14049_v18, %v534_v34  ;;  %v14246_v51 = vsub.f32 %v14052_v19, %v535_v40 }
  0xda   : > { %v484_v28 = vpop.xlane.xlu0 %483  ;;  %v486_v38 = vpop.xlane.xlu1 %485 }
  0xdb   : > { %v530_v16 = vmul.f32 0.0078125, %v484_v28  ;;  %v531_v50 = vmul.f32 0.0078125, %v486_v38  ;;  %v598_v53 = vmul.f32 %v14243_v46, %v14243_v46  ;;  %v599_v18 = vmul.f32 %v14246_v51, %v14246_v51 }
  0xdd   : > { %630 = vadd.xlane.f32.xlu1 %v587_v12  ;;  %632 = vadd.xlane.f32.xlu0 %v588_v3  ;;  %v14253_v17 = vsub.f32 %v14057_v20, %v530_v16  ;;  %v14258_v19 = vsub.f32 %v14060_v21, %v531_v50 }
  0xde   : > { %v496_v43 = vpop.xlane.xlu0 %495  ;;  %v498_v9 = vpop.xlane.xlu1 %497 }
  0xdf   : > { %v536_v56 = vmul.f32 0.0078125, %v496_v43  ;;  %v594_v57 = vmul.f32 %v14253_v17, %v14253_v17  ;;  %v537_v62 = vmul.f32 0.0078125, %v498_v9  ;;  %v595_v20 = vmul.f32 %v14258_v19, %v14258_v19 }
  0xe1   : > { %634 = vadd.xlane.f32.xlu1 %v589_v30  ;;  %636 = vadd.xlane.f32.xlu0 %v590_v14  ;;  %v14263_v0 = vsub.f32 %v14065_v22, %v536_v56  ;;  %v14270_v12 = vsub.f32 %v14068_v23, %v537_v62 }
  0xe2   : > { %v488_v10 = vpop.xlane.xlu0 %487  ;;  %v490_v1 = vpop.xlane.xlu1 %489 }
  0xe3   : > { %v532_v63 = vmul.f32 0.0078125, %v488_v10  ;;  %v600_v21 = vmul.f32 %v14263_v0, %v14263_v0  ;;  %v533_v11 = vmul.f32 0.0078125, %v490_v1  ;;  %v601_v22 = vmul.f32 %v14270_v12, %v14270_v12 }
  0xe5   : > { %638 = vadd.xlane.f32.xlu1 %v591_v15  ;;  %640 = vadd.xlane.f32.xlu0 %v592_v44  ;;  %v14273_v3 = vsub.f32 %v14073_v24, %v532_v63  ;;  %v14280_v28 = vsub.f32 %v14076_v25, %v533_v11 }
  0xe7   : > { %v596_v4 = vmul.f32 %v14273_v3, %v14273_v3  ;;  %v597_v23 = vmul.f32 %v14280_v28, %v14280_v28 }
  0xe9   : > { %642 = vadd.xlane.f32.xlu1 %v593_v52  ;;  %652 = vadd.xlane.f32.xlu0 %v598_v53 }
  0xed   : > { %654 = vadd.xlane.f32.xlu1 %v599_v18  ;;  %644 = vadd.xlane.f32.xlu0 %v594_v57 }
  0xf1   : > { %646 = vadd.xlane.f32.xlu1 %v595_v20  ;;  %656 = vadd.xlane.f32.xlu0 %v600_v21 }
  0xf5   : > { %658 = vadd.xlane.f32.xlu1 %v601_v22  ;;  %648 = vadd.xlane.f32.xlu0 %v596_v4 }
  0xf9   : > { %650 = vadd.xlane.f32.xlu1 %v597_v23 }
 0x146   : > { %v609_v13 = vpop.xlane.xlu0 %608 }
 0x147   : > { %v672_v24 = vmul.f32 0.0078125, %v609_v13 }
 0x149   : > { %v704_v29 = vadd.f32 1e-05, %v672_v24 }
 0x14a   : > { %v611_v30 = vpop.xlane.xlu1 %610  ;;  %v500_v14 = vpop.xlane.xlu0 %499 }
 0x14b   : > { %13037 = vrsqrt.f32 %v704_v29  ;;  %v673_v6 = vmul.f32 0.0078125, %v611_v30  ;;  %v538_v34 = vmul.f32 0.0078125, %v500_v14 }
 0x14d   : > { %v705_v38 = vadd.f32 1e-05, %v673_v6  ;;  %v14285_v15 = vsub.f32 %v14104_v42, %v538_v34 }
 0x14e   : > { %v502_v25 = vpop.xlane.xlu1 %501  ;;  %v613_v40 = vpop.xlane.xlu0 %612 }
 0x14f   : > { %13039 = vrsqrt.f32 %v705_v38  ;;  %v539_v43 = vmul.f32 0.0078125, %v502_v25  ;;  %v674_v44 = vmul.f32 0.0078125, %v613_v40  ;;  %v602_v16 = vmul.f32 %v14285_v15, %v14285_v15 }
 0x151   : > { %v706_v50 = vadd.f32 1e-05, %v674_v44  ;;  %660 = vadd.xlane.f32.xlu0 %v602_v16  ;;  %v14290_v9 = vsub.f32 %v14115_v49, %v539_v43 }
 0x152   : > { %v615_v52 = vpop.xlane.xlu1 %614  ;;  %v504_v53 = vpop.xlane.xlu0 %503 }
 0x153   : > { %13041 = vrsqrt.f32 %v706_v50  ;;  %v675_v56 = vmul.f32 0.0078125, %v615_v52  ;;  %v540_v10 = vmul.f32 0.0078125, %v504_v53  ;;  %v603_v42 = vmul.f32 %v14290_v9, %v14290_v9 }
 0x155   : > { %v13038_v18 = vpop.eup %13037  ;;  %v707_v57 = vadd.f32 1e-05, %v675_v56  ;;  %662 = vadd.xlane.f32.xlu1 %v603_v42  ;;  %v14295_v62 = vsub.f32 %v14124_v55, %v540_v10  ;;  %v14306_v55 = vld [vmem:[%s18334_s3] ss:$0 sm:$0xff] }
 0x156   : > { %v506_v63 = vpop.xlane.xlu1 %505  ;;  %v617_v1 = vpop.xlane.xlu0 %616  ;;  %v768_v11 = vmul.f32 %v13038_v18, %v14093_v33 }
 0x157   : > { %13043 = vrsqrt.f32 %v707_v57  ;;  %v541_v20 = vmul.f32 0.0078125, %v506_v63  ;;  %v676_v49 = vmul.f32 0.0078125, %v617_v1  ;;  %v604_v21 = vmul.f32 %v14295_v62, %v14295_v62 }
 0x158   : > { %v806_v6 = vmul.f32 %v14306_v55, %v768_v11 }
 0x159   : > { %v13040_v22 = vpop.eup %13039  ;;  %v708_v4 = vadd.f32 1e-05, %v676_v49  ;;  %664 = vadd.xlane.f32.xlu0 %v604_v21  ;;  %v14301_v23 = vsub.f32 %v14133_v61, %v541_v20 }
 0x15a   : > { %v619_v13 = vpop.xlane.xlu1 %618  ;;  %v508_v24 = vpop.xlane.xlu0 %507  ;;  %v769_v29 = vmul.f32 %v13040_v22, %v14098_v39 }
 0x15b   : > { %13045 = vrsqrt.f32 %v708_v4  ;;  %v677_v30 = vmul.f32 0.0078125, %v619_v13  ;;  %v542_v14 = vmul.f32 0.0078125, %v508_v24  ;;  %v605_v33 = vmul.f32 %v14301_v23, %v14301_v23 }
 0x15c   : > { %v807_v61 = vmul.f32 %v14306_v55, %v769_v29 }
 0x15d   : > { %v13042_v34 = vpop.eup %13041  ;;  %v709_v38 = vadd.f32 1e-05, %v677_v30  ;;  %666 = vadd.xlane.f32.xlu1 %v605_v33  ;;  %v14314_v25 = vsub.f32 %v14148_v26, %v542_v14 }
 0x15e   : > { %v510_v40 = vpop.xlane.xlu1 %509  ;;  %v621_v43 = vpop.xlane.xlu0 %620  ;;  %v14316_v44 = vpack.c.bf16 %v807_v61, %v806_v6  ;;  %v770_v52 = vmul.f32 %v13042_v34, %v14101_v41 }
 0x15f   : > { %13047 = vrsqrt.f32 %v709_v38  ;;  %v543_v39 = vmul.f32 0.0078125, %v510_v40  ;;  %v678_v16 = vmul.f32 0.0078125, %v621_v43  ;;  %v606_v50 = vmul.f32 %v14314_v25, %v14314_v25 }
 0x160   : > { %1079 = vmatmul.mubr.bf16.vlgmr.msra.gmra.mrb[0].mxu0 %v14316_v44  ;;  %v808_v41 = vmul.f32 %v14306_v55, %v770_v52  ;;  %v13007_v52 = vld [vmem:[%s18335_s4 + $0xc] ss:$16 sps:$4 sm:$0xff]  }
 0x161   : > { %v13044_v53 = vpop.eup %13043  ;;  %v710_v56 = vadd.f32 1e-05, %v678_v16  ;;  %668 = vadd.xlane.f32.xlu0 %v606_v50  ;;  %v14323_v26 = vsub.f32 %v14166_v36, %v543_v39  ;;  %1088 = vmatprep.mubr.bf16.mxu0 %v13837_v7 }
 0x162   : > { %v623_v10 = vpop.xlane.xlu1 %622  ;;  %v625_v42 = vpop.xlane.xlu0 %624  ;;  %v771_v18 = vmul.f32 %v13044_v53, %v14112_v48  ;;  %1239 = vmatprep.subr.bf16.mxu1 %v13007_v52 }
 0x163   : > { %13049 = vrsqrt.f32 %v710_v56  ;;  %v679_v57 = vmul.f32 0.0078125, %v623_v10  ;;  %v680_v63 = vmul.f32 0.0078125, %v625_v42  ;;  %v607_v1 = vmul.f32 %v14323_v26, %v14323_v26 }
 0x164   : > { %v809_v20 = vmul.f32 %v14306_v55, %v771_v18 }
 0x165   : > { %v13046_v49 = vpop.eup %13045  ;;  %v711_v21 = vadd.f32 1e-05, %v679_v57  ;;  %670 = vadd.xlane.f32.xlu1 %v607_v1  ;;  %v712_v36 = vadd.f32 1e-05, %v680_v63 }
 0x166   : > { %v627_v11 = vpop.xlane.xlu1 %626  ;;  %v629_v22 = vpop.xlane.xlu0 %628  ;;  %v14331_v4 = vpack.c.bf16 %v809_v20, %v808_v41  ;;  %v772_v13 = vmul.f32 %v13046_v49, %v14121_v54 }
 0x167   : > { %13051 = vrsqrt.f32 %v711_v21  ;;  %v681_v48 = vmul.f32 0.0078125, %v627_v11  ;;  %v682_v6 = vmul.f32 0.0078125, %v629_v22 }
 0x168   : > { %1089 = vmatmul.mubr.bf16.gmra.mrb[4].mxu0 %v14331_v4  ;;  %13053 = vrsqrt.f32 %v712_v36  ;;  %v810_v34 = vmul.f32 %v14306_v55, %v772_v13 }
 0x169   : > { %v13048_v24 = vpop.eup %13047  ;;  %v713_v29 = vadd.f32 1e-05, %v681_v48  ;;  %1098 = vmatprep.mubr.bf16.mxu0 %v13837_v7  ;;  %v714_v50 = vadd.f32 1e-05, %v682_v6 }
 0x16a   : > { %v631_v30 = vpop.xlane.xlu1 %630  ;;  %v633_v14 = vpop.xlane.xlu0 %632  ;;  %v773_v33 = vmul.f32 %v13048_v24, %v14130_v60 }
 0x16b   : > { %13055 = vrsqrt.f32 %v713_v29  ;;  %v683_v61 = vmul.f32 0.0078125, %v631_v30  ;;  %v684_v57 = vmul.f32 0.0078125, %v633_v14 }
 0x16c   : > { %v811_v38 = vmul.f32 %v14306_v55, %v773_v33 }
 0x16d   : > { %v13050_v40 = vpop.eup %13049  ;;  %v715_v43 = vadd.f32 1e-05, %v683_v61  ;;  %v716_v22 = vadd.f32 1e-05, %v684_v57 }
 0x16e   : > { %v635_v39 = vpop.xlane.xlu1 %634  ;;  %v637_v54 = vpop.xlane.xlu0 %636  ;;  %v14339_v16 = vpack.c.bf16 %v811_v38, %v810_v34  ;;  %v774_v60 = vmul.f32 %v13050_v40, %v14145_v5 }
 0x16f   : > { %13057 = vrsqrt.f32 %v715_v43  ;;  %v685_v56 = vmul.f32 0.0078125, %v635_v39  ;;  %v686_v6 = vmul.f32 0.0078125, %v637_v54 }
 0x170   : > { %1099 = vmatmul.mubr.bf16.gmra.mrb[8].mxu0 %v14339_v16  ;;  %13059 = vrsqrt.f32 %v714_v50  ;;  %v812_v1 = vmul.f32 %v14306_v55, %v774_v60 }
 0x171   : > { %v13052_v53 = vpop.eup %13051  ;;  %1108 = vmatprep.mubr.bf16.mxu0 %v13837_v7  ;;  %v717_v49 = vadd.f32 1e-05, %v685_v56  ;;  %v718_v52 = vadd.f32 1e-05, %v686_v6 }
 0x172   : > { %v639_v10 = vpop.xlane.xlu1 %638  ;;  %v641_v42 = vpop.xlane.xlu0 %640  ;;  %v775_v18 = vmul.f32 %v13052_v53, %v14157_v32 }
 0x173   : > { %v13054_v63 = vpop.eup %13053  ;;  %13061 = vrsqrt.f32 %v717_v49  ;;  %v687_v13 = vmul.f32 0.0078125, %v639_v10 }
 0x174   : > { %v813_v41 = vmul.f32 %v14306_v55, %v775_v18  ;;  %v776_v32 = vmul.f32 %v13054_v63, %v14163_v35  ;;  %13063 = vrsqrt.f32 %v716_v22  ;;  %v688_v63 = vmul.f32 0.0078125, %v641_v42 }
 0x175   : > { %v13056_v20 = vpop.eup %13055  ;;  %v719_v38 = vadd.f32 1e-05, %v687_v13 }
 0x176   : > { %v643_v5 = vpop.xlane.xlu1 %642  ;;  %v653_v21 = vpop.xlane.xlu0 %652  ;;  %v14350_v36 = vpack.c.bf16 %v813_v41, %v812_v1  ;;  %v777_v11 = vmul.f32 %v13056_v20, %v14177_v8  ;;  %v814_v8 = vmul.f32 %v14306_v55, %v776_v32 }
 0x177   : > { %v694_v48 = vmul.f32 0.0078125, %v653_v21  ;;  %v689_v53 = vmul.f32 0.0078125, %v643_v5 }
 0x178   : > { %1109 = vmatmul.mubr.bf16.gmra.mrb[12].mxu0 %v14350_v36  ;;  %v815_v14 = vmul.f32 %v14306_v55, %v777_v11  ;;  %v720_v11 = vadd.f32 1e-05, %v688_v63 }
 0x179   : > { %v726_v24 = vadd.f32 1e-05, %v694_v48  ;;  %1118 = vmatprep.mubr.bf16.mxu0 %v13837_v7  ;;  %v13058_v33 = vpop.eup %13057  ;;  %v721_v20 = vadd.f32 1e-05, %v689_v53 }
 0x17a   : > { %v655_v29 = vpop.xlane.xlu1 %654  ;;  %v645_v30 = vpop.xlane.xlu0 %644  ;;  %v14358_v39 = vpack.c.bf16 %v815_v14, %v814_v8  ;;  %v779_v50 = vmul.f32 %v13058_v33, %v14196_v58 }
 0x17b   : > { %v695_v61 = vmul.f32 0.0078125, %v655_v29  ;;  %13065 = vrsqrt.f32 %v726_v24  ;;  %v13060_v34 = vpop.eup %13059 }
 0x17c   : > { %v778_v54 = vmul.f32 %v13060_v34, %v14183_v47  ;;  %v817_v18 = vmul.f32 %v14306_v55, %v779_v50 }
 0x17d   : > { %v727_v40 = vadd.f32 1e-05, %v695_v61  ;;  %v13062_v57 = vpop.eup %13061 }
 0x17e   : > { %v647_v35 = vpop.xlane.xlu1 %646  ;;  %v657_v43 = vpop.xlane.xlu0 %656  ;;  %v816_v58 = vmul.f32 %v14306_v55, %v778_v54  ;;  %v781_v5 = vmul.f32 %v13062_v57, %v14208_v2  ;;  %v690_v2 = vmul.f32 0.0078125, %v645_v30 }
 0x17f   : > { %13067 = vrsqrt.f32 %v727_v40  ;;  %v696_v60 = vmul.f32 0.0078125, %v657_v43  ;;  %v13064_v41 = vpop.eup %13063  ;;  %v691_v32 = vmul.f32 0.0078125, %v647_v35  ;;  %v13010_v35 = vld [vmem:[%s18335_s4 + $0x2c] ss:$16 sps:$4 sm:$0xff]  }
 0x180   : > { %1119 = vmatmul.mubr.bf16.gmra.mrb[16].mxu0 %v14358_v39  ;;  %13069 = vrsqrt.f32 %v719_v38  ;;  %v14366_v47 = vpack.c.bf16 %v817_v18, %v816_v58  ;;  %v780_v22 = vmul.f32 %v13064_v41, %v14199_v59  ;;  %v819_v13 = vmul.f32 %v14306_v55, %v781_v5  ;;  %v13016_v5 = vld [vmem:[%s18335_s4 + $0x6c] ss:$16 sps:$4 sm:$0xff]  }
 0x181   : > { %v728_v56 = vadd.f32 1e-05, %v696_v60  ;;  %1128 = vmatprep.mubr.bf16.mxu0 %v13837_v7  ;;  %13071 = vrsqrt.f32 %v718_v52  ;;  %v722_v30 = vadd.f32 1e-05, %v690_v2  ;;  %v13022_v2 = vld [vmem:[%s18335_s4 + $0xac] ss:$16 sps:$4 sm:$0xff]  }
 0x182   : > { %v659_v10 = vpop.xlane.xlu1 %658  ;;  %v818_v14 = vmul.f32 %v14306_v55, %v780_v22  ;;  %v649_v43 = vpop.xlane.xlu0 %648  ;;  %v13014_v22 = vld [vmem:[%s18335_s4 + $0x68] ss:$16 sps:$4 sm:$0xff]  }
 0x183   : > { %v697_v1 = vmul.f32 0.0078125, %v659_v10  ;;  %13073 = vrsqrt.f32 %v728_v56  ;;  %v13008_v56 = vld [vmem:[%s18335_s4 + $0x28] ss:$16 sps:$4 sm:$0xff]  }
 0x184   : > { %v14378_v34 = vpack.c.bf16 %v819_v13, %v818_v14 }
 0x185   : > { %v729_v49 = vadd.f32 1e-05, %v697_v1  ;;  %v13066_v21 = vpop.eup %13065 }
 0x186   : > { %v790_v42 = vmul.f32 %v13066_v21, %v14243_v46  ;;  %v723_v46 = vadd.f32 1e-05, %v691_v32  ;;  %v651_v8 = vpop.xlane.xlu1 %650 }
 0x187   : > { %13075 = vrsqrt.f32 %v729_v49  ;;  %v13011_v49 = vld [vmem:[%s18335_s4 + $0x48] ss:$16 sps:$4 sm:$0xff]  }
 0x188   : > { %1129 = vmatmul.mubr.bf16.gmra.mrb[20].mxu0 %v14366_v47  ;;  %13077 = vrsqrt.f32 %v721_v20  ;;  %v828_v33 = vmul.f32 %v14306_v55, %v790_v42 }
 0x189   : > { %v13068_v48 = vpop.eup %13067  ;;  %1138 = vmatprep.mubr.bf16.mxu0 %v13837_v7  ;;  %13079 = vrsqrt.f32 %v720_v11 }
 0x18a   : > { %v791_v24 = vmul.f32 %v13068_v48, %v14246_v51  ;;  %v13070_v29 = vpop.eup %13069  ;;  %v13005_v51 = vld [vmem:[%s18335_s4 + $0x8] ss:$16 sps:$4 sm:$0xff]   ;;  %13081 = vrsqrt.f32 %v723_v46  ;;  %v13019_v48 = vld [vmem:[%s18335_s4 + $0x8c] ss:$16 sps:$4 sm:$0xff]  }
 0x18b   : > { %v13072_v6 = vpop.eup %13071  ;;  %v783_v40 = vmul.f32 %v13070_v29, %v14226_v31  ;;  %v693_v31 = vmul.f32 0.0078125, %v651_v8  ;;  %13083 = vrsqrt.f32 %v722_v30  ;;  %v13017_v29 = vld [vmem:[%s18335_s4 + $0x88] ss:$16 sps:$4 sm:$0xff]  }
 0x18c   : > { %v829_v59 = vmul.f32 %v14306_v55, %v791_v24  ;;  %v782_v50 = vmul.f32 %v13072_v6, %v14215_v27  ;;  %v692_v27 = vmul.f32 0.0078125, %v649_v43  ;;  %v13025_v6 = vld [vmem:[%s18335_s4 + $0xcc] ss:$16 sps:$4 sm:$0xff]  }
 0x18d   : > { %v13074_v61 = vpop.eup %13073  ;;  %v821_v54 = vmul.f32 %v14306_v55, %v783_v40  ;;  %v725_v1 = vadd.f32 1e-05, %v693_v31  ;;  %v13023_v40 = vld [vmem:[%s18335_s4 + $0xc8] ss:$16 sps:$4 sm:$0xff]  }
 0x18e   : > { %v14380_v38 = vpack.c.bf16 %v829_v59, %v828_v33  ;;  %v792_v52 = vmul.f32 %v13074_v61, %v14263_v0  ;;  %v13013_v0 = vld [vmem:[%s18335_s4 + $0x4c] ss:$16 sps:$4 sm:$0xff]   ;;  %v820_v18 = vmul.f32 %v14306_v55, %v782_v50  ;;  %v724_v21 = vadd.f32 1e-05, %v692_v27 }
 0x18f   : > { %13085 = vrsqrt.f32 %v725_v1 }
 0x190   : > { %1139 = vmatmul.mubr.bf16.gmra.mrb[24].mxu0 %v14378_v34  ;;  %1189 = vmatmul.mubr.bf16.vlgmr.msra.gmra.mrb[0].mxu1 %v14380_v38  ;;  %v830_v57 = vmul.f32 %v14306_v55, %v792_v52  ;;  %v14406_v58 = vpack.c.bf16 %v821_v54, %v820_v18  ;;  %13087 = vrsqrt.f32 %v724_v21  ;;  %v18341_v52 = vmov 0.0  }
 0x191   : > { %v13076_v60 = vpop.eup %13075  ;;  %1148 = vmatprep.mubr.bf16.mxu0 %v13837_v7  ;;  %1198 = vmatprep.mubr.bf16.mxu1 %v13837_v7 }
 0x192   : > { %v793_v53 = vmul.f32 %v13076_v60, %v14270_v12  ;;  %1240 = vmatpush1.bf16.msra.mxu1 %v13005_v51  ;;  %v13078_v10 = vpop.eup %13077  ;;  %v13028_v51 = vld [vmem:[%s18335_s4 + $0xec] ss:$16 sps:$4 sm:$0xff]   ;;  %12070 = vmatprep.subr.bf16.mxu0 %v18341_v52 }
 0x193   : > { %1241 = vmatprep.subr.bf16.mxu1 %v13010_v35  ;;  %v13080_v12 = vpop.eup %13079  ;;  %v785_v20 = vmul.f32 %v13078_v10, %v14240_v45 }
 0x194   : > { %v831_v63 = vmul.f32 %v14306_v55, %v793_v53  ;;  %v784_v11 = vmul.f32 %v13080_v12, %v14231_v37  ;;  %v13082_v42 = vpop.eup %13081 }
 0x195   : > { %v823_v45 = vmul.f32 %v14306_v55, %v785_v20  ;;  %v13084_v32 = vpop.eup %13083  ;;  %v787_v24 = vmul.f32 %v13082_v42, %v14258_v19  ;;  %v13020_v19 = vld [vmem:[%s18335_s4 + $0xa8] ss:$16 sps:$4 sm:$0xff]  }
 0x196   : > { %v14408_v41 = vpack.c.bf16 %v831_v63, %v830_v57  ;;  %1242 = vmatpush1.bf16.msra.mxu1 %v13008_v56  ;;  %v822_v37 = vmul.f32 %v14306_v55, %v784_v11  ;;  %v786_v14 = vmul.f32 %v13084_v32, %v14253_v17 }
 0x197   : > { %1243 = vmatprep.subr.bf16.mxu1 %v13013_v0  ;;  %v825_v33 = vmul.f32 %v14306_v55, %v787_v24 }
 0x198   : > { %1149 = vmatmul.mubr.bf16.gmra.mrb[28].mxu0 %v14406_v58  ;;  %1199 = vmatmul.mubr.bf16.gmra.mrb[4].mxu1 %v14408_v41  ;;  %v14430_v13 = vpack.c.bf16 %v823_v45, %v822_v37  ;;  %v824_v46 = vmul.f32 %v14306_v55, %v786_v14 }
 0x199   : > { %1158 = vmatprep.mubr.bf16.mxu0 %v13837_v7  ;;  %1208 = vmatprep.mubr.bf16.mxu1 %v13837_v7  ;;  %v13086_v59 = vpop.eup %13085 }
 0x19a   : > { %1244 = vmatpush1.bf16.msra.mxu1 %v13011_v49  ;;  %v13088_v61 = vpop.eup %13087  ;;  %v14450_v8 = vpack.c.bf16 %v825_v33, %v824_v46  ;;  %v789_v17 = vmul.f32 %v13086_v59, %v14280_v28  ;;  %v13026_v28 = vld [vmem:[%s18335_s4 + $0xe8] ss:$16 sps:$4 sm:$0xff]  }
 0x19b   : > { %1245 = vmatprep.subr.bf16.mxu1 %v13016_v5  ;;  %v788_v30 = vmul.f32 %v13088_v61, %v14273_v3 }
 0x19c   : > { %v827_v35 = vmul.f32 %v14306_v55, %v789_v17 }
 0x19d   : > { %v826_v43 = vmul.f32 %v14306_v55, %v788_v30 }
 0x19e   : > { %1246 = vmatpush1.bf16.msra.mxu1 %v13014_v22 }
 0x19f   : > { %1247 = vmatprep.subr.bf16.mxu1 %v13019_v48  ;;  %v14467_v50 = vpack.c.bf16 %v827_v35, %v826_v43 }
 0x1a0   : > { %1159 = vmatmul.mubr.bf16.gmra.mrb[32].mxu0 %v14430_v13 }
 0x1a1   : > { %1168 = vmatprep.mubr.bf16.mxu0 %v13837_v7 }
 0x1a2   : > { %1248 = vmatpush1.bf16.msra.mxu1 %v13017_v29 }
 0x1a3   : > { %1249 = vmatprep.subr.bf16.mxu1 %v13022_v2 }
 0x1a6   : > { %1250 = vmatpush1.bf16.msra.mxu1 %v13020_v19 }
 0x1a7   : > { %1251 = vmatprep.subr.bf16.mxu1 %v13025_v6 }
 0x1a8   : > { %1169 = vmatmul.mubr.bf16.gmra.mrb[36].mxu0 %v14450_v8 }
 0x1a9   : > { %1178 = vmatprep.mubr.bf16.mxu0 %v13837_v7 }
 0x1aa   : > { %1252 = vmatpush1.bf16.msra.mxu1 %v13023_v40 }
 0x1ab   : > { %1253 = vmatprep.subr.bf16.mxu1 %v13028_v51 }
 0x1ae   : > { %1254 = vmatpush1.bf16.msra.mxu1 %v13026_v28 }
 0x1af   : > { %12076 = vmatprep.subr.bf16.mxu1 %v18341_v52 }
 0x1b0   : > { %1179 = vmatmul.mubr.bf16.gmra.mrb[40].mxu0 %v14467_v50 }
 0x1b1   : > { %12072 = vmatprep.mubr.msk.bf16.mxu0 %vm13839_vm0, %v18341_v52 }
 0x1de   : > { %v661_v3 = vpop.xlane.xlu0 %660 }
 0x1df   : > { %v698_v60 = vmul.f32 0.0078125, %v661_v3 }
 0x1e1   : > { %v730_v31 = vadd.f32 1e-05, %v698_v60 }
 0x1e2   : > { %v663_v54 = vpop.xlane.xlu1 %662 }
 0x1e3   : > { %13089 = vrsqrt.f32 %v730_v31  ;;  %v699_v53 = vmul.f32 0.0078125, %v663_v54 }
 0x1e5   : > { %v731_v56 = vadd.f32 1e-05, %v699_v53 }
 0x1e6   : > { %v665_v10 = vpop.xlane.xlu0 %664 }
 0x1e7   : > { %13091 = vrsqrt.f32 %v731_v56  ;;  %v700_v27 = vmul.f32 0.0078125, %v665_v10 }
 0x1e9   : > { %v732_v0 = vadd.f32 1e-05, %v700_v27 }
 0x1ea   : > { %v667_v18 = vpop.xlane.xlu1 %666 }
 0x1eb   : > { %13093 = vrsqrt.f32 %v732_v0  ;;  %v701_v57 = vmul.f32 0.0078125, %v667_v18 }
 0x1ed   : > { %v13090_v63 = vpop.eup %13089  ;;  %v733_v12 = vadd.f32 1e-05, %v701_v57 }
 0x1ee   : > { %v669_v1 = vpop.xlane.xlu0 %668  ;;  %v794_v49 = vmul.f32 %v13090_v63, %v14285_v15 }
 0x1ef   : > { %13095 = vrsqrt.f32 %v733_v12  ;;  %v702_v20 = vmul.f32 0.0078125, %v669_v1 }
 0x1f0   : > { %v832_v42 = vmul.f32 %v14306_v55, %v794_v49 }
 0x1f1   : > { %v13092_v21 = vpop.eup %13091  ;;  %v734_v5 = vadd.f32 1e-05, %v702_v20 }
 0x1f2   : > { %v671_v11 = vpop.xlane.xlu1 %670  ;;  %v795_v45 = vmul.f32 %v13092_v21, %v14290_v9 }
 0x1f3   : > { %13097 = vrsqrt.f32 %v734_v5  ;;  %v703_v22 = vmul.f32 0.0078125, %v671_v11 }
 0x1f4   : > { %v833_v48 = vmul.f32 %v14306_v55, %v795_v45 }
 0x1f5   : > { %v13094_v37 = vpop.eup %13093  ;;  %v735_v32 = vadd.f32 1e-05, %v703_v22 }
 0x1f6   : > { %v14478_v24 = vpack.c.bf16 %v833_v48, %v832_v42  ;;  %v796_v15 = vmul.f32 %v13094_v37, %v14295_v62 }
 0x1f7   : > { %13099 = vrsqrt.f32 %v735_v32 }
 0x1f8   : > { %1209 = vmatmul.mubr.bf16.gmra.mrb[8].mxu1 %v14478_v24  ;;  %v834_v2 = vmul.f32 %v14306_v55, %v796_v15 }
 0x1f9   : > { %v13096_v29 = vpop.eup %13095  ;;  %1218 = vmatprep.mubr.bf16.mxu1 %v13837_v7 }
 0x1fa   : > { %v797_v9 = vmul.f32 %v13096_v29, %v14301_v23 }
 0x1fc   : > { %v835_v14 = vmul.f32 %v14306_v55, %v797_v9 }
 0x1fd   : > { %v13098_v33 = vpop.eup %13097 }
 0x1fe   : > { %v14486_v19 = vpack.c.bf16 %v835_v14, %v834_v2  ;;  %v798_v59 = vmul.f32 %v13098_v33, %v14314_v25 }
 0x200   : > { %1219 = vmatmul.mubr.bf16.gmra.mrb[12].mxu1 %v14486_v19  ;;  %v836_v46 = vmul.f32 %v14306_v55, %v798_v59 }
 0x201   : > { %v13100_v6 = vpop.eup %13099  ;;  %1228 = vmatprep.mubr.bf16.mxu1 %v13837_v7 }
 0x202   : > { %v799_v62 = vmul.f32 %v13100_v6, %v14323_v26 }
 0x204   : > { %v837_v23 = vmul.f32 %v14306_v55, %v799_v62 }
 0x206   : > { %v14494_v61 = vpack.c.bf16 %v837_v23, %v836_v46 }
 0x208   : > { %1229 = vmatmul.mubr.bf16.gmra.mrb[16].mxu1 %v14494_v61 }
 0x209   : > { %1271 = vmatprep.mubr.bf16.mxu1 %v13837_v7 }
 0x210   : > { %1272 = vmatmul.mubr.bf16.vlgmr.msra.gmra.mrb[20].mxu1 %v14316_v44 }
 0x211   : > { %1281 = vmatprep.mubr.bf16.mxu1 %v13837_v7 }
 0x218   : > { %1282 = vmatmul.mubr.bf16.gmra.mrb[24].mxu1 %v14331_v4 }
 0x219   : > { %1291 = vmatprep.mubr.bf16.mxu1 %v13837_v7 }
 0x220   : > { %1292 = vmatmul.mubr.bf16.gmra.mrb[28].mxu1 %v14339_v16 }
 0x221   : > { %1301 = vmatprep.mubr.bf16.mxu1 %v13837_v7 }
 0x228   : > { %1302 = vmatmul.mubr.bf16.gmra.mrb[32].mxu1 %v14350_v36 }
 0x229   : > { %1311 = vmatprep.mubr.bf16.mxu1 %v13837_v7 }
 0x230   : > { %1312 = vmatmul.mubr.bf16.gmra.mrb[36].mxu1 %v14358_v39 }
 0x231   : > { %1321 = vmatprep.mubr.bf16.mxu1 %v13837_v7 }
 0x233   : > { %v1080_v55 = vpop.f32.mrb[0].mxu0 }
 0x234   : > { %v1082_v25 = vpop.f32.mrb[1].mxu0 }
 0x235   : > { %v1084_v44 = vpop.f32.mrb[2].mxu0 }
 0x236   : > { %v14508_v26 = vpack.c.bf16 %v1084_v44, %v1080_v55  ;;  %v1086_v4 = vpop.f32.mrb[3].mxu0 }
 0x237   : > { %v14510_v17 = vpack.c.bf16 %v1086_v4, %v1082_v25 }
 0x238   : > { %1322 = vmatmul.mubr.bf16.gmra.mrb[40].mxu1 %v14366_v47 }
 0x239   : > { %v1876_v16 = vsel %vm1871_vm1, %v14510_v17, 0  ;;  %1331 = vmatprep.mubr.bf16.mxu1 %v13837_v7 }
 0x23a   : > { %12071 = vmatpush3.bf16.xpose.msra.mxu0 %v1876_v16 }
 0x23b   : > { %v1090_v36 = vpop.f32.mrb[4].mxu0  ;;  %12082 = vmatprep.subr.bf16.mxu0 %v18341_v52 }
 0x23c   : > { %v1092_v39 = vpop.f32.mrb[5].mxu0 }
 0x23d   : > { %v1094_v40 = vpop.f32.mrb[6].mxu0 }
 0x23e   : > { %v14517_v51 = vpack.c.bf16 %v1094_v40, %v1090_v36  ;;  %v1096_v30 = vpop.f32.mrb[7].mxu0 }
 0x23f   : > { %v14519_v35 = vpack.c.bf16 %v1096_v30, %v1092_v39 }
 0x240   : > { %1332 = vmatmul.mubr.bf16.gmra.mrb[44].mxu1 %v14378_v34 }
 0x241   : > { %12073 = vmatmul.mubr.msk.bf16.vlgmr.msra.gmra.mrb[44].mxu0 %vm1871_vm1, %v14508_v26  ;;  %v1923_v47 = vsel %vm1871_vm1, %v14519_v35, 0  ;;  %1341 = vmatprep.mubr.bf16.mxu1 %v13837_v7 }
 0x242   : > { %12077 = vmatpush3.bf16.xpose.msra.mxu1 %v1923_v47  ;;  %12084 = vmatprep.mubr.msk.bf16.mxu0 %vm13839_vm0, %v18341_v52 }
 0x243   : > { %v1100_v28 = vpop.f32.mrb[8].mxu0  ;;  %12088 = vmatprep.subr.bf16.mxu1 %v18341_v52 }
 0x244   : > { %v1102_v43 = vpop.f32.mrb[9].mxu0 }
 0x245   : > { %v1104_v3 = vpop.f32.mrb[10].mxu0 }
 0x246   : > { %v14530_v60 = vpack.c.bf16 %v1104_v3, %v1100_v28  ;;  %v1106_v34 = vpop.f32.mrb[11].mxu0 }
 0x247   : > { %v14532_v31 = vpack.c.bf16 %v1106_v34, %v1102_v43 }
 0x248   : > { %1342 = vmatmul.mubr.bf16.gmra.mrb[48].mxu1 %v14406_v58 }
 0x249   : > { %v1970_v54 = vsel %vm1871_vm1, %v14532_v31, 0  ;;  %1351 = vmatprep.mubr.bf16.mxu1 %v13837_v7 }
 0x24a   : > { %12083 = vmatpush3.bf16.xpose.msra.mxu0 %v1970_v54 }
 0x24b   : > { %v1110_v53 = vpop.f32.mrb[12].mxu0  ;;  %12094 = vmatprep.subr.bf16.mxu0 %v18341_v52 }
 0x24c   : > { %v1112_v56 = vpop.f32.mrb[13].mxu0 }
 0x24d   : > { %v1114_v10 = vpop.f32.mrb[14].mxu0 }
 0x24e   : > { %v14539_v27 = vpack.c.bf16 %v1114_v10, %v1110_v53  ;;  %v1116_v0 = vpop.f32.mrb[15].mxu0 }
 0x24f   : > { %v14541_v18 = vpack.c.bf16 %v1116_v0, %v1112_v56 }
 0x250   : > { %1352 = vmatmul.mubr.bf16.gmra.mrb[52].mxu1 %v14430_v13 }
 0x251   : > { %12085 = vmatmul.mubr.msk.bf16.vlgmr.msra.gmra.mrb[48].mxu0 %vm1871_vm1, %v14530_v60  ;;  %1361 = vmatprep.mubr.bf16.mxu1 %v13837_v7 }
 0x252   : > { %12096 = vmatprep.mubr.msk.bf16.mxu0 %vm13839_vm0, %v18341_v52 }
 0x253   : > { %v1120_v58 = vpop.f32.mrb[16].mxu0 }
 0x254   : > { %v1122_v57 = vpop.f32.mrb[17].mxu0 }
 0x255   : > { %v1124_v63 = vpop.f32.mrb[18].mxu0 }
 0x256   : > { %v14549_v12 = vpack.c.bf16 %v1124_v63, %v1120_v58  ;;  %v1126_v1 = vpop.f32.mrb[19].mxu0 }
 0x257   : > { %v14551_v20 = vpack.c.bf16 %v1126_v1, %v1122_v57 }
 0x258   : > { %1362 = vmatmul.mubr.bf16.gmra.mrb[56].mxu1 %v14450_v8 }
 0x259   : > { %18554 = vst [vmem:[#allocation8_spill] sm:$0xff] %v14551_v20  ;;  %v2064_v13 = vsel %vm1871_vm1, %v14551_v20, 0  ;;  %1371 = vmatprep.mubr.bf16.mxu1 %v13837_v7 }
 0x25a   : > { %12095 = vmatpush3.bf16.xpose.msra.mxu0 %v2064_v13 }
 0x25b   : > { %v1130_v49 = vpop.f32.mrb[20].mxu0  ;;  %12106 = vmatprep.subr.bf16.mxu0 %v18341_v52 }
 0x25c   : > { %v1132_v21 = vpop.f32.mrb[21].mxu0 }
 0x25d   : > { %v1134_v5 = vpop.f32.mrb[22].mxu0 }
 0x25e   : > { %v14558_v11 = vpack.c.bf16 %v1134_v5, %v1130_v49  ;;  %v1136_v45 = vpop.f32.mrb[23].mxu0 }
 0x25f   : > { %v14560_v22 = vpack.c.bf16 %v1136_v45, %v1132_v21 }
 0x260   : > { %1372 = vmatmul.mubr.bf16.gmra.mrb[60].mxu1 %v14467_v50 }
 0x261   : > { %18555 = vst [vmem:[#allocation9_spill] sm:$0xff] %v14560_v22  ;;  %12097 = vmatmul.mubr.msk.bf16.vlgmr.msra.gmra.mrb[52].mxu0 %vm1871_vm1, %v14549_v12  ;;  %1381 = vmatprep.mubr.bf16.mxu1 %v13837_v7  ;;  %v2111_v49 = vsel %vm1871_vm1, %v14560_v22, 0 }
 0x262   : > { %12108 = vmatprep.mubr.msk.bf16.mxu0 %vm13839_vm0, %v18341_v52 }
 0x263   : > { %v1140_v8 = vpop.f32.mrb[24].mxu0  ;;  %v1190_v42 = vpop.f32.mrb[0].mxu1 }
 0x264   : > { %v1142_v48 = vpop.f32.mrb[25].mxu0  ;;  %v1192_v37 = vpop.f32.mrb[1].mxu1 }
 0x265   : > { %v1144_v32 = vpop.f32.mrb[26].mxu0  ;;  %v1194_v15 = vpop.f32.mrb[2].mxu1 }
 0x266   : > { %v14568_v29 = vpack.c.bf16 %v1144_v32, %v1140_v8  ;;  %v14570_v9 = vpack.c.bf16 %v1194_v15, %v1190_v42  ;;  %v1146_v2 = vpop.f32.mrb[27].mxu0  ;;  %v1196_v50 = vpop.f32.mrb[3].mxu1 }
 0x267   : > { %v14572_v14 = vpack.c.bf16 %v1146_v2, %v1142_v48  ;;  %v14574_v33 = vpack.c.bf16 %v1196_v50, %v1192_v37 }
 0x268   : > { %18556 = vst [vmem:[#allocation10_spill] sm:$0xff] %v14570_v9  ;;  %1382 = vmatmul.mubr.bf16.gmra.mrb[64].mxu1 %v14380_v38 }
 0x269   : > { %18557 = vst [vmem:[#allocation11_spill] sm:$0xff] %v14572_v14  ;;  %18558 = vst [vmem:[#allocation12_spill] sm:$0xff] %v14574_v33  ;;  %v2158_v59 = vsel %vm1871_vm1, %v14572_v14, 0  ;;  %1391 = vmatprep.mubr.bf16.mxu1 %v13837_v7  ;;  %v2393_v45 = vsel %vm1871_vm1, %v14574_v33, 0 }
 0x26a   : > { %12107 = vmatpush3.bf16.xpose.msra.mxu0 %v2158_v59 }
 0x26b   : > { %v1150_v6 = vpop.f32.mrb[28].mxu0  ;;  %v1200_v62 = vpop.f32.mrb[4].mxu1  ;;  %12118 = vmatprep.subr.bf16.mxu0 %v18341_v52 }
 0x26c   : > { %v1152_v46 = vpop.f32.mrb[29].mxu0  ;;  %v1202_v23 = vpop.f32.mrb[5].mxu1 }
 0x26d   : > { %v1154_v55 = vpop.f32.mrb[30].mxu0  ;;  %v1204_v25 = vpop.f32.mrb[6].mxu1 }
 0x26e   : > { %v14581_v44 = vpack.c.bf16 %v1154_v55, %v1150_v6  ;;  %v14583_v4 = vpack.c.bf16 %v1204_v25, %v1200_v62  ;;  %v1156_v16 = vpop.f32.mrb[31].mxu0  ;;  %v1206_v38 = vpop.f32.mrb[7].mxu1 }
 0x26f   : > { %v14585_v36 = vpack.c.bf16 %v1156_v16, %v1152_v46  ;;  %v14587_v39 = vpack.c.bf16 %v1206_v38, %v1202_v23 }
 0x270   : > { %18559 = vst [vmem:[#allocation13_spill] sm:$0xff] %v14581_v44  ;;  %18560 = vst [vmem:[#allocation14_spill] sm:$0xff] %v14583_v4  ;;  %1392 = vmatmul.mubr.bf16.gmra.mrb[68].mxu1 %v14408_v41 }
 0x271   : > { %18561 = vst [vmem:[#allocation15_spill] sm:$0xff] %v14585_v36  ;;  %18562 = vst [vmem:[#allocation16_spill] sm:$0xff] %v14587_v39  ;;  %12109 = vmatmul.mubr.msk.bf16.vlgmr.msra.gmra.mrb[56].mxu0 %vm1871_vm1, %v14568_v29  ;;  %1401 = vmatprep.mubr.bf16.mxu1 %v13837_v7  ;;  %v2205_v21 = vsel %vm1871_vm1, %v14585_v36, 0 }
 0x272   : > { %12120 = vmatprep.mubr.msk.bf16.mxu0 %vm13839_vm0, %v18341_v52 }
 0x273   : > { %v1160_v40 = vpop.f32.mrb[32].mxu0 }
 0x274   : > { %v1162_v30 = vpop.f32.mrb[33].mxu0 }
 0x275   : > { %v1164_v47 = vpop.f32.mrb[34].mxu0 }
 0x276   : > { %v14595_v28 = vpack.c.bf16 %v1164_v47, %v1160_v40  ;;  %v1166_v43 = vpop.f32.mrb[35].mxu0 }
 0x277   : > { %v14597_v3 = vpack.c.bf16 %v1166_v43, %v1162_v30 }
 0x278   : > { %18563 = vst [vmem:[#allocation17_spill] sm:$0xff] %v14595_v28  ;;  %1402 = vmatmul.mubr.bf16.gmra.mrb[72].mxu1 %v14478_v24 }
 0x279   : > { %18564 = vst [vmem:[#allocation18_spill] sm:$0xff] %v14597_v3  ;;  %v2252_v41 = vsel %vm1871_vm1, %v14597_v3, 0  ;;  %1411 = vmatprep.mubr.bf16.mxu1 %v13837_v7 }
 0x27a   : > { %12119 = vmatpush3.bf16.xpose.msra.mxu0 %v2252_v41 }
 0x27b   : > { %v1170_v34 = vpop.f32.mrb[36].mxu0  ;;  %12130 = vmatprep.subr.bf16.mxu0 %v18341_v52 }
 0x27c   : > { %v1172_v54 = vpop.f32.mrb[37].mxu0 }
 0x27d   : > { %v1174_v53 = vpop.f32.mrb[38].mxu0 }
 0x27e   : > { %v14604_v56 = vpack.c.bf16 %v1174_v53, %v1170_v34  ;;  %v1176_v10 = vpop.f32.mrb[39].mxu0 }
 0x27f   : > { %v14606_v0 = vpack.c.bf16 %v1176_v10, %v1172_v54 }
 0x280   : > { %18565 = vst [vmem:[#allocation19_spill] sm:$0xff] %v14604_v56  ;;  %1412 = vmatmul.mubr.bf16.gmra.mrb[76].mxu1 %v14486_v19 }
 0x281   : > { %18566 = vst [vmem:[#allocation20_spill] sm:$0xff] %v14606_v0  ;;  %12121 = vmatmul.mubr.msk.bf16.vlgmr.msra.gmra.mrb[60].mxu0 %vm1871_vm1, %v14595_v28  ;;  %1421 = vmatprep.mubr.bf16.mxu1 %v13837_v7  ;;  %v2017_v7 = vsel %vm1871_vm1, %v14541_v18, 0  ;;  %v2299_v5 = vsel %vm1871_vm1, %v14606_v0, 0 }
 0x282   : > { %12132 = vmatprep.mubr.msk.bf16.mxu0 %vm13839_vm0, %v18341_v52 }
 0x283   : > { %v1180_v24 = vpop.f32.mrb[40].mxu0 }
 0x284   : > { %v1182_v58 = vpop.f32.mrb[41].mxu0 }
 0x285   : > { %v1184_v57 = vpop.f32.mrb[42].mxu0 }
 0x286   : > { %v14614_v63 = vpack.c.bf16 %v1184_v57, %v1180_v24  ;;  %v1186_v1 = vpop.f32.mrb[43].mxu0 }
 0x287   : > { %v14616_v13 = vpack.c.bf16 %v1186_v1, %v1182_v58 }
 0x288   : > { %18567 = vst [vmem:[#allocation21_spill] sm:$0xff] %v14614_v63  ;;  %1422 = vmatmul.mubr.bf16.gmra.mrb[80].mxu1 %v14494_v61  ;;  %v2440_v61 = vsel %vm1871_vm1, %v14587_v39, 0 }
 0x289   : > { %18568 = vst [vmem:[#allocation22_spill] sm:$0xff] %v14616_v13  ;;  %v2346_v19 = vsel %vm1871_vm1, %v14616_v13, 0  ;;  %12078 = vmatprep.mubr.msk.bf16.mxu1 %vm13839_vm0, %v18341_v52 }
 0x28a   : > { %12131 = vmatpush3.bf16.xpose.msra.mxu0 %v2346_v19 }
 0x28b   : > { %12142 = vmatprep.subr.bf16.mxu0 %v18341_v52 }
 0x290   : > { %12079 = vmatmul.mubr.msk.bf16.vlgmr.msra.gmra.mrb[84].mxu1 %vm1871_vm1, %v14517_v51 }
 0x291   : > { %12089 = vmatpush3.bf16.xpose.msra.mxu1 %v2017_v7  ;;  %12133 = vmatmul.mubr.msk.bf16.vlgmr.msra.gmra.mrb[64].mxu0 %vm1871_vm1, %v14614_v63 }
 0x292   : > { %12143 = vmatpush3.bf16.xpose.msra.mxu0 %v2440_v61  ;;  %12090 = vmatprep.mubr.msk.bf16.mxu1 %vm13839_vm0, %v18341_v52 }
 0x293   : > { %12100 = vmatprep.subr.bf16.mxu1 %v18341_v52  ;;  %12144 = vmatprep.mubr.msk.bf16.mxu0 %vm13839_vm0, %v18341_v52 }
 0x294   : > { %12154 = vmatprep.subr.bf16.mxu0 %v18341_v52 }
 0x298   : > { %12091 = vmatmul.mubr.msk.bf16.vlgmr.msra.gmra.mrb[88].mxu1 %vm1871_vm1, %v14539_v27 }
 0x299   : > { %12101 = vmatpush3.bf16.xpose.msra.mxu1 %v2111_v49  ;;  %12145 = vmatmul.mubr.msk.bf16.vlgmr.msra.gmra.mrb[68].mxu0 %vm1871_vm1, %v14583_v4 }
 0x29a   : > { %12102 = vmatprep.mubr.msk.bf16.mxu1 %vm13839_vm0, %v18341_v52  ;;  %12112 = vmatprep.subr.bf16.mxu1 %v18341_v52 }
 0x29b   : > { %12156 = vmatprep.mubr.msk.bf16.mxu0 %vm13839_vm0, %v18341_v52 }
 0x2a0   : > { %12103 = vmatmul.mubr.msk.bf16.vlgmr.msra.gmra.mrb[92].mxu1 %vm1871_vm1, %v14558_v11 }
 0x2a1   : > { %12113 = vmatpush3.bf16.xpose.msra.mxu1 %v2205_v21  ;;  %12114 = vmatprep.mubr.msk.bf16.mxu1 %vm13839_vm0, %v18341_v52 }
 0x2a2   : > { %12124 = vmatprep.subr.bf16.mxu1 %v18341_v52 }
 0x2a8   : > { %12115 = vmatmul.mubr.msk.bf16.vlgmr.msra.gmra.mrb[96].mxu1 %vm1871_vm1, %v14581_v44 }
 0x2a9   : > { %12125 = vmatpush3.bf16.xpose.msra.mxu1 %v2299_v5  ;;  %12126 = vmatprep.mubr.msk.bf16.mxu1 %vm13839_vm0, %v18341_v52 }
 0x2aa   : > { %12136 = vmatprep.subr.bf16.mxu1 %v18341_v52 }
 0x2b0   : > { %12127 = vmatmul.mubr.msk.bf16.vlgmr.msra.gmra.mrb[100].mxu1 %vm1871_vm1, %v14604_v56 }
 0x2b1   : > { %12137 = vmatpush3.bf16.xpose.msra.mxu1 %v2393_v45  ;;  %12138 = vmatprep.mubr.msk.bf16.mxu1 %vm13839_vm0, %v18341_v52 }
 0x2b2   : > { %12148 = vmatprep.subr.bf16.mxu1 %v18341_v52 }
 0x2b8   : > { %12139 = vmatmul.mubr.msk.bf16.vlgmr.msra.gmra.mrb[104].mxu1 %vm1871_vm1, %v14570_v9 }
 0x2b9   : > { %12150 = vmatprep.mubr.msk.bf16.mxu1 %vm13839_vm0, %v18341_v52 }
 0x2cb   : > { %v1210_v8 = vpop.f32.mrb[8].mxu1 }
 0x2cc   : > { %v1212_v42 = vpop.f32.mrb[9].mxu1 }
 0x2cd   : > { %v1214_v48 = vpop.f32.mrb[10].mxu1 }
 0x2ce   : > { %v14674_v37 = vpack.c.bf16 %v1214_v48, %v1210_v8  ;;  %v1216_v32 = vpop.f32.mrb[11].mxu1 }
 0x2cf   : > { %v14676_v15 = vpack.c.bf16 %v1216_v32, %v1212_v42 }
 0x2d0   : > { %18569 = vst [vmem:[#allocation23_spill] sm:$0xff] %v14674_v37 }
 0x2d1   : > { %18570 = vst [vmem:[#allocation24_spill] sm:$0xff] %v14676_v15  ;;  %v2487_v2 = vsel %vm1871_vm1, %v14676_v15, 0 }
 0x2d2   : > { %12149 = vmatpush3.bf16.xpose.msra.mxu1 %v2487_v2 }
 0x2d3   : > { %v1220_v50 = vpop.f32.mrb[12].mxu1  ;;  %12160 = vmatprep.subr.bf16.mxu1 %v18341_v52 }
 0x2d4   : > { %v1222_v59 = vpop.f32.mrb[13].mxu1 }
 0x2d5   : > { %v1224_v6 = vpop.f32.mrb[14].mxu1 }
 0x2d6   : > { %v14681_v62 = vpack.c.bf16 %v1224_v6, %v1220_v50  ;;  %v1226_v46 = vpop.f32.mrb[15].mxu1 }
 0x2d7   : > { %v14683_v23 = vpack.c.bf16 %v1226_v46, %v1222_v59 }
 0x2d8   : > { %18571 = vst [vmem:[#allocation25_spill] sm:$0xff] %v14681_v62 }
 0x2d9   : > { %18572 = vst [vmem:[#allocation26_spill] sm:$0xff] %v14683_v23  ;;  %12151 = vmatmul.mubr.msk.bf16.vlgmr.msra.gmra.mrb[108].mxu1 %vm1871_vm1, %v14674_v37  ;;  %v2534_v55 = vsel %vm1871_vm1, %v14683_v23, 0 }
 0x2da   : > { %12155 = vmatpush3.bf16.xpose.msra.mxu0 %v2534_v55  ;;  %12162 = vmatprep.mubr.msk.bf16.mxu1 %vm13839_vm0, %v18341_v52 }
 0x2db   : > { %v1230_v25 = vpop.f32.mrb[16].mxu1  ;;  %12166 = vmatprep.subr.bf16.mxu0 %v18341_v52 }
 0x2dc   : > { %v1232_v16 = vpop.f32.mrb[17].mxu1 }
 0x2dd   : > { %v1234_v38 = vpop.f32.mrb[18].mxu1 }
 0x2de   : > { %v14692_v40 = vpack.c.bf16 %v1234_v38, %v1230_v25  ;;  %v1236_v30 = vpop.f32.mrb[19].mxu1 }
 0x2df   : > { %v14694_v47 = vpack.c.bf16 %v1236_v30, %v1232_v16 }
 0x2e0   : > { %18573 = vst [vmem:[#allocation27_spill] sm:$0xff] %v14692_v40 }
 0x2e1   : > { %18574 = vst [vmem:[#allocation28_spill] sm:$0xff] %v14694_v47  ;;  %12157 = vmatmul.mubr.msk.bf16.vlgmr.msra.gmra.mrb[72].mxu0 %vm1871_vm1, %v14681_v62  ;;  %v2581_v43 = vsel %vm1871_vm1, %v14694_v47, 0  ;;  %v11788_v62 = vld [vmem:[%s14747_s21 + $0x70] sm:$0xff]  }
 0x2e2   : > { %12161 = vmatpush3.bf16.xpose.msra.mxu1 %v2581_v43  ;;  %12168 = vmatprep.mubr.msk.bf16.mxu0 %vm13839_vm0, %v18341_v52  ;;  %v11712_v43 = vld [vmem:[%s14747_s21] sm:$0xff]  }
 0x2e3   : > { %v1273_v41 = vpop.f32.mrb[20].mxu1  ;;  %12172 = vmatprep.subr.bf16.mxu1 %v18341_v52 }
 0x2e4   : > { %v14703_v34 = vpop.f32.mrb[21].mxu1 }
 0x2e5   : > { %18575 = vst [vmem:[#allocation29_spill] sm:$0xff] %v14703_v34  ;;  %v1277_v54 = vpop.f32.mrb[22].mxu1 }
 0x2e6   : > { %v14705_v53 = vpack.c.bf16 %v1277_v54, %v1273_v41  ;;  %v14707_v10 = vpop.f32.mrb[23].mxu1  ;;  %v14754_v54 = vunpack.c.l.bf16 %v11712_v43 }
 0x2e7   : > { %18577 = vst [vmem:[#allocation31_spill] sm:$0xff] %v14707_v10 }
 0x2e8   : > { %18576 = vst [vmem:[#allocation30_spill] sm:$0xff] %v14705_v53  ;;  %12167 = vmatpush3.bf16.msra.mxu0 %v14705_v53  ;;  %18593 = vst [vmem:[#allocation47_spill] sm:$0xff] %v14754_v54 }
 0x2e9   : > { %12163 = vmatmul.mubr.msk.bf16.vlgmr.msra.gmra.mrb[112].mxu1 %vm1871_vm1, %v14692_v40  ;;  %12178 = vmatprep.subr.bf16.mxu0 %v18341_v52 }
 0x2ea   : > { %12174 = vmatprep.mubr.msk.bf16.mxu1 %vm13839_vm0, %v18341_v52 }
 0x2eb   : > { %v1283_v24 = vpop.f32.mrb[24].mxu1 }
 0x2ec   : > { %v14715_v58 = vpop.f32.mrb[25].mxu1 }
 0x2ed   : > { %18578 = vst [vmem:[#allocation32_spill] sm:$0xff] %v14715_v58  ;;  %v1287_v57 = vpop.f32.mrb[26].mxu1 }
 0x2ee   : > { %v14717_v1 = vpack.c.bf16 %v1287_v57, %v1283_v24  ;;  %v14719_v19 = vpop.f32.mrb[27].mxu1 }
 0x2ef   : > { %18580 = vst [vmem:[#allocation34_spill] sm:$0xff] %v14719_v19 }
 0x2f0   : > { %18579 = vst [vmem:[#allocation33_spill] sm:$0xff] %v14717_v1  ;;  %12173 = vmatpush3.bf16.msra.mxu1 %v14717_v1 }
 0x2f1   : > { %12184 = vmatprep.subr.bf16.mxu1 %v18341_v52 }
 0x2f3   : > { %v1293_v7 = vpop.f32.mrb[28].mxu1 }
 0x2f4   : > { %v14723_v61 = vpop.f32.mrb[29].mxu1 }
 0x2f5   : > { %18581 = vst [vmem:[#allocation35_spill] sm:$0xff] %v14723_v61  ;;  %v1297_v49 = vpop.f32.mrb[30].mxu1 }
 0x2f6   : > { %v14725_v21 = vpack.c.bf16 %v1297_v49, %v1293_v7  ;;  %v14727_v5 = vpop.f32.mrb[31].mxu1 }
 0x2f7   : > { %18583 = vst [vmem:[#allocation37_spill] sm:$0xff] %v14727_v5 }
 0x2f8   : > { %18582 = vst [vmem:[#allocation36_spill] sm:$0xff] %v14725_v21 }
 0x2fb   : > { %v1303_v45 = vpop.f32.mrb[32].mxu1 }
 0x2fc   : > { %v14729_v8 = vpop.f32.mrb[33].mxu1 }
 0x2fd   : > { %18584 = vst [vmem:[#allocation38_spill] sm:$0xff] %v14729_v8  ;;  %v1307_v42 = vpop.f32.mrb[34].mxu1 }
 0x2fe   : > { %v14731_v48 = vpack.c.bf16 %v1307_v42, %v1303_v45  ;;  %v14733_v32 = vpop.f32.mrb[35].mxu1  ;;  %v14758_v42 = vunpack.c.h.bf16 %v11712_v43 }
 0x2ff   : > { %18586 = vst [vmem:[#allocation40_spill] sm:$0xff] %v14733_v32 }
 0x300   : > { %18585 = vst [vmem:[#allocation39_spill] sm:$0xff] %v14731_v48  ;;  %18595 = vst [vmem:[#allocation49_spill] sm:$0xff] %v14758_v42 }
 0x303   : > { %v1313_v2 = vpop.f32.mrb[36].mxu1 }
 0x304   : > { %v14735_v50 = vpop.f32.mrb[37].mxu1 }
 0x305   : > { %18587 = vst [vmem:[#allocation41_spill] sm:$0xff] %v14735_v50  ;;  %v1317_v59 = vpop.f32.mrb[38].mxu1 }
 0x306   : > { %v14737_v6 = vpack.c.bf16 %v1317_v59, %v1313_v2  ;;  %v14739_v46 = vpop.f32.mrb[39].mxu1 }
 0x307   : > { %18589 = vst [vmem:[#allocation43_spill] sm:$0xff] %v14739_v46 }
 0x308   : > { %18588 = vst [vmem:[#allocation42_spill] sm:$0xff] %v14737_v6 }
 0x30b   : > { %v1323_v55 = vpop.f32.mrb[40].mxu1 }
 0x30c   : > { %v14742_v25 = vpop.f32.mrb[41].mxu1 }
 0x30d   : > { %18590 = vst [vmem:[#allocation44_spill] sm:$0xff] %v14742_v25  ;;  %v1327_v16 = vpop.f32.mrb[42].mxu1 }
 0x30e   : > { %v14749_v38 = vpack.c.bf16 %v1327_v16, %v1323_v55  ;;  %v14751_v30 = vpop.f32.mrb[43].mxu1 }
 0x30f   : > { %18592 = vst [vmem:[#allocation46_spill] sm:$0xff] %v14751_v30 }
 0x310   : > { %18591 = vst [vmem:[#allocation45_spill] sm:$0xff] %v14749_v38 }
 0x313   : > { %v1333_v41 = vpop.f32.mrb[44].mxu1 }
 0x314   : > { %v14756_v24 = vpop.f32.mrb[45].mxu1  ;;  %v1912_v57 = vpop.f32.mrb[44].mxu0 }
 0x315   : > { %18594 = vst [vmem:[#allocation48_spill] sm:$0xff] %v14756_v24  ;;  %v2624_v7 = vmul.f32 0.17677669, %v1912_v57  ;;  %v1337_v49 = vpop.f32.mrb[46].mxu1  ;;  %v12074_v45 = vpop.f32.mrb[45].mxu0 }
 0x316   : > { %v14760_v2 = vpack.c.bf16 %v1337_v49, %v1333_v41  ;;  %v14762_v59 = vpop.f32.mrb[47].mxu1  ;;  %v1915_v55 = vpop.f32.mrb[46].mxu0 }
 0x317   : > { %18597 = vst [vmem:[#allocation51_spill] sm:$0xff] %v14762_v59  ;;  %v2625_v16 = vmul.f32 0.17677669, %v1915_v55  ;;  %v12075_v52 = vpop.f32.mrb[47].mxu0  ;;  %v14765_v30 = vadd.f32 %v14754_v54, %v2624_v7 }
 0x318   : > { %18596 = vst [vmem:[#allocation50_spill] sm:$0xff] %v14760_v2 }
 0x319   : > { %v2689_v24 = vsel %vm2688_vm2, %v14765_v30, -inf  ;;  %v14770_v57 = vadd.f32 %v14758_v42, %v2625_v16 }
 0x31a   : > { %2690 = vmax.xlane.f32.xlu0 %v2689_v24 }
 0x31b   : > { %v1343_v43 = vpop.f32.mrb[48].mxu1  ;;  %v2692_v41 = vsel %vm2688_vm2, %v14770_v57, -inf }
 0x31c   : > { %2693 = vmax.xlane.f32.xlu1 %v2692_v41  ;;  %v14774_v49 = vpop.f32.mrb[49].mxu1 }
 0x31d   : > { %18598 = vst [vmem:[#allocation52_spill] sm:$0xff] %v14774_v49  ;;  %v1347_v45 = vpop.f32.mrb[50].mxu1 }
 0x31e   : > { %v14776_v55 = vpack.c.bf16 %v1347_v45, %v1343_v43  ;;  %v14778_v52 = vpop.f32.mrb[51].mxu1 }
 0x31f   : > { %18600 = vst [vmem:[#allocation54_spill] sm:$0xff] %v14778_v52 }
 0x320   : > { %18599 = vst [vmem:[#allocation53_spill] sm:$0xff] %v14776_v55 }
 0x323   : > { %v1353_v7 = vpop.f32.mrb[52].mxu1 }
 0x324   : > { %v14780_v54 = vpop.f32.mrb[53].mxu1  ;;  %v2006_v59 = vpop.f32.mrb[48].mxu0 }
 0x325   : > { %18601 = vst [vmem:[#allocation55_spill] sm:$0xff] %v14780_v54  ;;  %v1357_v25 = vpop.f32.mrb[54].mxu1  ;;  %v12086_v16 = vpop.f32.mrb[49].mxu0 }
 0x326   : > { %v14782_v42 = vpack.c.bf16 %v1357_v25, %v1353_v7  ;;  %v14784_v24 = vpop.f32.mrb[55].mxu1  ;;  %v2009_v46 = vpop.f32.mrb[50].mxu0 }
 0x327   : > { %18603 = vst [vmem:[#allocation57_spill] sm:$0xff] %v14784_v24  ;;  %v12087_v50 = vpop.f32.mrb[51].mxu0 }
 0x328   : > { %18602 = vst [vmem:[#allocation56_spill] sm:$0xff] %v14782_v42 }
 0x32b   : > { %v1363_v41 = vpop.f32.mrb[56].mxu1 }
 0x32c   : > { %v14786_v32 = vpop.f32.mrb[57].mxu1 }
 0x32d   : > { %18604 = vst [vmem:[#allocation58_spill] sm:$0xff] %v14786_v32  ;;  %v1367_v49 = vpop.f32.mrb[58].mxu1 }
 0x32e   : > { %v14788_v43 = vpack.c.bf16 %v1367_v49, %v1363_v41  ;;  %v14790_v45 = vpop.f32.mrb[59].mxu1 }
 0x32f   : > { %18606 = vst [vmem:[#allocation60_spill] sm:$0xff] %v14790_v45 }
 0x330   : > { %18605 = vst [vmem:[#allocation59_spill] sm:$0xff] %v14788_v43 }
 0x333   : > { %v1373_v52 = vpop.f32.mrb[60].mxu1 }
 0x334   : > { %v14792_v8 = vpop.f32.mrb[61].mxu1  ;;  %v14794_v54 = vpop.f32.mrb[52].mxu0 }
 0x335   : > { %18607 = vst [vmem:[#allocation61_spill] sm:$0xff] %v14792_v8  ;;  %v1377_v16 = vpop.f32.mrb[62].mxu1  ;;  %v12098_v25 = vpop.f32.mrb[53].mxu0 }
 0x336   : > { %v14796_v7 = vpack.c.bf16 %v1377_v16, %v1373_v52  ;;  %v14798_v24 = vpop.f32.mrb[63].mxu1  ;;  %v14800_v50 = vpop.f32.mrb[54].mxu0 }
 0x337   : > { %18609 = vst [vmem:[#allocation63_spill] sm:$0xff] %v14798_v24  ;;  %v12099_v5 = vpop.f32.mrb[55].mxu0 }
 0x338   : > { %18608 = vst [vmem:[#allocation62_spill] sm:$0xff] %v14796_v7  ;;  %v2633_v7 = vmul.f32 0.17677669, %v14800_v50 }
 0x33b   : > { %v1383_v32 = vpop.f32.mrb[64].mxu1 }
 0x33c   : > { %v14802_v61 = vpop.f32.mrb[65].mxu1 }
 0x33d   : > { %18610 = vst [vmem:[#allocation64_spill] sm:$0xff] %v14802_v61  ;;  %v1387_v49 = vpop.f32.mrb[66].mxu1 }
 0x33e   : > { %v14804_v41 = vpack.c.bf16 %v1387_v49, %v1383_v32  ;;  %v14806_v45 = vpop.f32.mrb[67].mxu1 }
 0x33f   : > { %18612 = vst [vmem:[#allocation66_spill] sm:$0xff] %v14806_v45 }
 0x340   : > { %18611 = vst [vmem:[#allocation65_spill] sm:$0xff] %v14804_v41 }
 0x343   : > { %v1393_v8 = vpop.f32.mrb[68].mxu1 }
 0x344   : > { %v14808_v19 = vpop.f32.mrb[69].mxu1  ;;  %v14810_v58 = vpop.f32.mrb[56].mxu0 }
 0x345   : > { %18613 = vst [vmem:[#allocation67_spill] sm:$0xff] %v14808_v19  ;;  %v1397_v52 = vpop.f32.mrb[70].mxu1  ;;  %v12110_v16 = vpop.f32.mrb[57].mxu0 }
 0x346   : > { %v14812_v25 = vpack.c.bf16 %v1397_v52, %v1393_v8  ;;  %v14814_v24 = vpop.f32.mrb[71].mxu1  ;;  %v14816_v5 = vpop.f32.mrb[58].mxu0 }
 0x347   : > { %18615 = vst [vmem:[#allocation69_spill] sm:$0xff] %v14814_v24  ;;  %v12111_v10 = vpop.f32.mrb[59].mxu0 }
 0x348   : > { %18614 = vst [vmem:[#allocation68_spill] sm:$0xff] %v14812_v25 }
 0x34b   : > { %v1403_v61 = vpop.f32.mrb[72].mxu1 }
 0x34c   : > { %v14818_v34 = vpop.f32.mrb[73].mxu1 }
 0x34d   : > { %18616 = vst [vmem:[#allocation70_spill] sm:$0xff] %v14818_v34  ;;  %v1407_v32 = vpop.f32.mrb[74].mxu1 }
 0x34e   : > { %v14820_v49 = vpack.c.bf16 %v1407_v32, %v1403_v61  ;;  %v14822_v45 = vpop.f32.mrb[75].mxu1 }
 0x34f   : > { %18618 = vst [vmem:[#allocation72_spill] sm:$0xff] %v14822_v45 }
 0x350   : > { %18617 = vst [vmem:[#allocation71_spill] sm:$0xff] %v14820_v49  ;;  %v11776_v49 = vld [vmem:[%s14747_s21 + $0x10] sm:$0xff]  }
 0x353   : > { %v1413_v19 = vpop.f32.mrb[76].mxu1 }
 0x354   : > { %v14824_v1 = vpop.f32.mrb[77].mxu1  ;;  %v14826_v8 = vpop.f32.mrb[60].mxu0 }
 0x355   : > { %18619 = vst [vmem:[#allocation73_spill] sm:$0xff] %v14824_v1  ;;  %v1417_v52 = vpop.f32.mrb[78].mxu1  ;;  %v12122_v16 = vpop.f32.mrb[61].mxu0  ;;  %v11775_v1 = vld [vmem:[%s14747_s21 + $0x8] sm:$0xff]  }
 0x356   : > { %v14828_v24 = vpack.c.bf16 %v1417_v52, %v1413_v19  ;;  %v14830_v10 = vpop.f32.mrb[79].mxu1  ;;  %v14832_v40 = vpop.f32.mrb[62].mxu0  ;;  %v14842_v15 = vunpack.c.l.bf16 %v11775_v1  ;;  %v2628_v16 = vmul.f32 0.17677669, %v2006_v59  ;;  %v14844_v52 = vunpack.c.l.bf16 %v11776_v49 }
 0x357   : > { %18621 = vst [vmem:[#allocation75_spill] sm:$0xff] %v14830_v10  ;;  %v12123_v34 = vpop.f32.mrb[63].mxu0  ;;  %v14848_v39 = vunpack.c.h.bf16 %v11775_v1 }
 0x358   : > { %18620 = vst [vmem:[#allocation74_spill] sm:$0xff] %v14828_v24  ;;  %18625 = vst [vmem:[#allocation79_spill] sm:$0xff] %v14842_v15 }
 0x359   : > { %18626 = vst [vmem:[#allocation80_spill] sm:$0xff] %v14844_v52  ;;  %18627 = vst [vmem:[#allocation81_spill] sm:$0xff] %v14848_v39 }
 0x35b   : > { %v1423_v61 = vpop.f32.mrb[80].mxu1 }
 0x35c   : > { %v14834_v32 = vpop.f32.mrb[81].mxu1 }
 0x35d   : > { %18622 = vst [vmem:[#allocation76_spill] sm:$0xff] %v14834_v32  ;;  %v1427_v47 = vpop.f32.mrb[82].mxu1 }
 0x35e   : > { %v14836_v45 = vpack.c.bf16 %v1427_v47, %v1423_v61  ;;  %v14838_v23 = vpop.f32.mrb[83].mxu1  ;;  %v2629_v47 = vmul.f32 0.17677669, %v2009_v46 }
 0x35f   : > { %18624 = vst [vmem:[#allocation78_spill] sm:$0xff] %v14838_v23  ;;  %v14850_v23 = vunpack.c.h.bf16 %v11776_v49 }
 0x360   : > { %18623 = vst [vmem:[#allocation77_spill] sm:$0xff] %v14836_v45 }
 0x361   : > { %18628 = vst [vmem:[#allocation82_spill] sm:$0xff] %v14850_v23  ;;  %v14867_v49 = vadd.f32 %v14850_v23, %v2629_v47 }
 0x363   : > { %v1959_v19 = vpop.f32.mrb[84].mxu1 }
 0x364   : > { %v2626_v10 = vmul.f32 0.17677669, %v1959_v19  ;;  %v12080_v24 = vpop.f32.mrb[85].mxu1  ;;  %v14846_v34 = vpop.f32.mrb[64].mxu0  ;;  %v11777_v19 = vld [vmem:[%s14747_s21 + $0x18] sm:$0xff]  }
 0x365   : > { %v1962_v61 = vpop.f32.mrb[86].mxu1  ;;  %v12134_v32 = vpop.f32.mrb[65].mxu0  ;;  %v14858_v24 = vadd.f32 %v14844_v52, %v2628_v16  ;;  %v14879_v47 = vunpack.c.h.bf16 %v11777_v19 }
 0x366   : > { %v2627_v45 = vmul.f32 0.17677669, %v1962_v61  ;;  %v12081_v41 = vpop.f32.mrb[87].mxu1  ;;  %v14852_v25 = vpop.f32.mrb[66].mxu0  ;;  %v14855_v59 = vadd.f32 %v14842_v15, %v2626_v10  ;;  %v14872_v32 = vunpack.c.l.bf16 %v11777_v19  ;;  %v2632_v61 = vmul.f32 0.17677669, %v14794_v54 }
 0x367   : > { %v12135_v33 = vpop.f32.mrb[67].mxu0  ;;  %v11778_v41 = vld [vmem:[%s14747_s21 + $0x20] sm:$0xff]   ;;  %v2701_v16 = vsel %vm2688_vm2, %v14858_v24, -inf  ;;  %18630 = vst [vmem:[#allocation84_spill] sm:$0xff] %v14879_v47 }
 0x368   : > { %v2695_v1 = vsel %vm2688_vm2, %v14855_v59, -inf  ;;  %v14864_v46 = vadd.f32 %v14848_v39, %v2627_v45  ;;  %18629 = vst [vmem:[#allocation83_spill] sm:$0xff] %v14872_v32  ;;  %v14881_v23 = vunpack.c.l.bf16 %v11778_v41  ;;  %v14891_v19 = vunpack.c.h.bf16 %v11778_v41 }
 0x369   : > { %2696 = vmax.xlane.f32.xlu0 %v2695_v1 }
 0x36a   : > { %v2698_v10 = vsel %vm2688_vm2, %v14864_v46, -inf  ;;  %18631 = vst [vmem:[#allocation85_spill] sm:$0xff] %v14881_v23  ;;  %18632 = vst [vmem:[#allocation86_spill] sm:$0xff] %v14891_v19  ;;  %v14900_v50 = vadd.f32 %v14881_v23, %v2632_v61  ;;  %v14906_v41 = vadd.f32 %v14891_v19, %v2633_v7 }
 0x36b   : > { %2699 = vmax.xlane.f32.xlu1 %v2698_v10  ;;  %v2053_v33 = vpop.f32.mrb[88].mxu1  ;;  %v2704_v10 = vsel %vm2688_vm2, %v14867_v49, -inf }
 0x36c   : > { %v2630_v52 = vmul.f32 0.17677669, %v2053_v33  ;;  %v12092_v45 = vpop.f32.mrb[89].mxu1  ;;  %v14877_v1 = vpop.f32.mrb[68].mxu0  ;;  %v2716_v3 = vsel %vm2688_vm2, %v14906_v41, -inf }
 0x36d   : > { %v12146_v39 = vpop.f32.mrb[69].mxu0  ;;  %2702 = vmax.xlane.f32.xlu0 %v2701_v16  ;;  %v2056_v15 = vpop.f32.mrb[90].mxu1 }
 0x36e   : > { %v2631_v13 = vmul.f32 0.17677669, %v2056_v15  ;;  %v12093_v54 = vpop.f32.mrb[91].mxu1  ;;  %v14886_v33 = vpop.f32.mrb[70].mxu0  ;;  %v14889_v45 = vadd.f32 %v14872_v32, %v2630_v52  ;;  %v11779_v39 = vld [vmem:[%s14747_s21 + $0x28] sm:$0xff]   ;;  %v11780_v15 = vld [vmem:[%s14747_s21 + $0x30] sm:$0xff]  }
 0x36f   : > { %v12147_v43 = vpop.f32.mrb[71].mxu0  ;;  %2705 = vmax.xlane.f32.xlu1 %v2704_v10  ;;  %v14910_v54 = vunpack.c.l.bf16 %v11780_v15  ;;  %v14915_v23 = vunpack.c.h.bf16 %v11779_v39  ;;  %v14917_v19 = vunpack.c.h.bf16 %v11780_v15 }
 0x370   : > { %v2707_v16 = vsel %vm2688_vm2, %v14889_v45, -inf  ;;  %v14897_v0 = vadd.f32 %v14879_v47, %v2631_v13  ;;  %v14908_v43 = vunpack.c.l.bf16 %v11779_v39  ;;  %v2636_v13 = vmul.f32 0.17677669, %v14810_v58 }
 0x371   : > { %2708 = vmax.xlane.f32.xlu0 %v2707_v16  ;;  %18634 = vst [vmem:[#allocation88_spill] sm:$0xff] %v14910_v54  ;;  %v2713_v16 = vsel %vm2688_vm2, %v14900_v50, -inf  ;;  %18635 = vst [vmem:[#allocation89_spill] sm:$0xff] %v14915_v23 }
 0x372   : > { %v2710_v52 = vsel %vm2688_vm2, %v14897_v0, -inf  ;;  %18633 = vst [vmem:[#allocation87_spill] sm:$0xff] %v14908_v43  ;;  %18636 = vst [vmem:[#allocation90_spill] sm:$0xff] %v14917_v19  ;;  %v14932_v15 = vadd.f32 %v14910_v54, %v2636_v13 }
 0x373   : > { %2711 = vmax.xlane.f32.xlu1 %v2710_v52  ;;  %v2147_v10 = vpop.f32.mrb[92].mxu1  ;;  %v2637_v52 = vmul.f32 0.17677669, %v14816_v5  ;;  %v11782_v5 = vld [vmem:[%s14747_s21 + $0x40] sm:$0xff]  }
 0x374   : > { %v2634_v47 = vmul.f32 0.17677669, %v2147_v10  ;;  %v12104_v61 = vpop.f32.mrb[93].mxu1  ;;  %v11781_v10 = vld [vmem:[%s14747_s21 + $0x38] sm:$0xff]  }
 0x375   : > { %2714 = vmax.xlane.f32.xlu0 %v2713_v16  ;;  %v2150_v7 = vpop.f32.mrb[94].mxu1  ;;  %v14938_v16 = vadd.f32 %v14917_v19, %v2637_v52  ;;  %v14947_v54 = vunpack.c.h.bf16 %v11781_v10  ;;  %v14949_v19 = vunpack.c.h.bf16 %v11782_v5 }
 0x376   : > { %v2635_v32 = vmul.f32 0.17677669, %v2150_v7  ;;  %v12105_v42 = vpop.f32.mrb[95].mxu1  ;;  %v14923_v58 = vadd.f32 %v14908_v43, %v2634_v47  ;;  %v14940_v47 = vunpack.c.l.bf16 %v11781_v10  ;;  %v14942_v7 = vunpack.c.l.bf16 %v11782_v5 }
 0x377   : > { %2717 = vmax.xlane.f32.xlu1 %v2716_v3  ;;  %18639 = vst [vmem:[#allocation93_spill] sm:$0xff] %v14947_v54  ;;  %18640 = vst [vmem:[#allocation94_spill] sm:$0xff] %v14949_v19  ;;  %v2728_v36 = vsel %vm2688_vm2, %v14938_v16, -inf }
 0x378   : > { %v2719_v39 = vsel %vm2688_vm2, %v14923_v58, -inf  ;;  %v14929_v61 = vadd.f32 %v14915_v23, %v2635_v32  ;;  %18637 = vst [vmem:[#allocation91_spill] sm:$0xff] %v14940_v47  ;;  %18638 = vst [vmem:[#allocation92_spill] sm:$0xff] %v14942_v7  ;;  %v2640_v32 = vmul.f32 0.17677669, %v14826_v8 }
 0x379   : > { %2720 = vmax.xlane.f32.xlu0 %v2719_v39  ;;  %v2725_v39 = vsel %vm2688_vm2, %v14932_v15, -inf }
 0x37a   : > { %v2722_v42 = vsel %vm2688_vm2, %v14929_v61, -inf  ;;  %v14964_v5 = vadd.f32 %v14942_v7, %v2640_v32 }
 0x37b   : > { %2723 = vmax.xlane.f32.xlu1 %v2722_v42  ;;  %v2241_v3 = vpop.f32.mrb[96].mxu1  ;;  %v2641_v42 = vmul.f32 0.17677669, %v14832_v40  ;;  %v11784_v40 = vld [vmem:[%s14747_s21 + $0x50] sm:$0xff]  }
 0x37c   : > { %v2638_v23 = vmul.f32 0.17677669, %v2241_v3  ;;  %v12116_v13 = vpop.f32.mrb[97].mxu1  ;;  %v11783_v3 = vld [vmem:[%s14747_s21 + $0x48] sm:$0xff]  }
 0x37d   : > { %2726 = vmax.xlane.f32.xlu0 %v2725_v39  ;;  %v2244_v52 = vpop.f32.mrb[98].mxu1  ;;  %v14970_v39 = vadd.f32 %v14949_v19, %v2641_v42  ;;  %v14979_v7 = vunpack.c.h.bf16 %v11783_v3  ;;  %v14981_v19 = vunpack.c.h.bf16 %v11784_v40 }
 0x37e   : > { %v2639_v43 = vmul.f32 0.17677669, %v2244_v52  ;;  %v12117_v55 = vpop.f32.mrb[99].mxu1  ;;  %v14955_v8 = vadd.f32 %v14940_v47, %v2638_v23  ;;  %v14972_v23 = vunpack.c.l.bf16 %v11783_v3  ;;  %v14974_v52 = vunpack.c.l.bf16 %v11784_v40 }
 0x37f   : > { %2729 = vmax.xlane.f32.xlu1 %v2728_v36  ;;  %18643 = vst [vmem:[#allocation97_spill] sm:$0xff] %v14979_v7  ;;  %18644 = vst [vmem:[#allocation98_spill] sm:$0xff] %v14981_v19  ;;  %v2740_v53 = vsel %vm2688_vm2, %v14970_v39, -inf }
 0x380   : > { %v2731_v10 = vsel %vm2688_vm2, %v14955_v8, -inf  ;;  %v14961_v13 = vadd.f32 %v14947_v54, %v2639_v43  ;;  %18641 = vst [vmem:[#allocation95_spill] sm:$0xff] %v14972_v23  ;;  %18642 = vst [vmem:[#allocation96_spill] sm:$0xff] %v14974_v52  ;;  %v2644_v43 = vmul.f32 0.17677669, %v14846_v34 }
 0x381   : > { %2732 = vmax.xlane.f32.xlu0 %v2731_v10  ;;  %v2737_v10 = vsel %vm2688_vm2, %v14964_v5, -inf }
 0x382   : > { %v2734_v55 = vsel %vm2688_vm2, %v14961_v13, -inf  ;;  %v14996_v40 = vadd.f32 %v14974_v52, %v2644_v43 }
 0x383   : > { %2735 = vmax.xlane.f32.xlu1 %v2734_v55  ;;  %v2335_v36 = vpop.f32.mrb[100].mxu1  ;;  %v2645_v55 = vmul.f32 0.17677669, %v14852_v25  ;;  %v11786_v25 = vld [vmem:[%s14747_s21 + $0x60] sm:$0xff]  }
 0x384   : > { %v2642_v54 = vmul.f32 0.17677669, %v2335_v36  ;;  %v12128_v32 = vpop.f32.mrb[101].mxu1  ;;  %v11785_v36 = vld [vmem:[%s14747_s21 + $0x58] sm:$0xff]   ;;  %v2749_v43 = vsel %vm2688_vm2, %v14996_v40, -inf  ;;  %v15013_v14 = vunpack.c.h.bf16 %v11786_v25 }
 0x385   : > { %2738 = vmax.xlane.f32.xlu0 %v2737_v10  ;;  %v2338_v42 = vpop.f32.mrb[102].mxu1  ;;  %v15002_v10 = vadd.f32 %v14981_v19, %v2645_v55  ;;  %v2649_v55 = vmul.f32 0.17677669, %v14886_v33 }
 0x386   : > { %v2643_v47 = vmul.f32 0.17677669, %v2338_v42  ;;  %v12129_v2 = vpop.f32.mrb[103].mxu1  ;;  %v14987_v34 = vadd.f32 %v14972_v23, %v2642_v54  ;;  %v15004_v54 = vunpack.c.l.bf16 %v11785_v36  ;;  %v15006_v42 = vunpack.c.l.bf16 %v11786_v25  ;;  %18648 = vst [vmem:[#allocation102_spill] sm:$0xff] %v15013_v14 }
 0x387   : > { %2741 = vmax.xlane.f32.xlu1 %v2740_v53  ;;  %v2752_v38 = vsel %vm2688_vm2, %v15002_v10, -inf }
 0x388   : > { %v2743_v3 = vsel %vm2688_vm2, %v14987_v34, -inf  ;;  %v14993_v32 = vadd.f32 %v14979_v7, %v2643_v47  ;;  %18645 = vst [vmem:[#allocation99_spill] sm:$0xff] %v15004_v54  ;;  %18646 = vst [vmem:[#allocation100_spill] sm:$0xff] %v15006_v42  ;;  %v2648_v47 = vmul.f32 0.17677669, %v14877_v1 }
 0x389   : > { %2744 = vmax.xlane.f32.xlu0 %v2743_v3  ;;  %v15011_v3 = vunpack.c.h.bf16 %v11785_v36 }
 0x38a   : > { %v2746_v2 = vsel %vm2688_vm2, %v14993_v32, -inf  ;;  %v15027_v25 = vadd.f32 %v15006_v42, %v2648_v47 }
 0x38b   : > { %2747 = vmax.xlane.f32.xlu1 %v2746_v2  ;;  %v2429_v53 = vpop.f32.mrb[104].mxu1  ;;  %18647 = vst [vmem:[#allocation101_spill] sm:$0xff] %v15011_v3 }
 0x38c   : > { %v2646_v7 = vmul.f32 0.17677669, %v2429_v53  ;;  %v12140_v23 = vpop.f32.mrb[105].mxu1 }
 0x38d   : > { %2750 = vmax.xlane.f32.xlu0 %v2749_v43  ;;  %v2432_v52 = vpop.f32.mrb[106].mxu1 }
 0x38e   : > { %v2647_v19 = vmul.f32 0.17677669, %v2432_v52  ;;  %v12141_v2 = vpop.f32.mrb[107].mxu1  ;;  %v15019_v1 = vadd.f32 %v15004_v54, %v2646_v7  ;;  %v15032_v52 = vadd.f32 %v15013_v14, %v2649_v55  ;;  %v11787_v7 = vld [vmem:[%s14747_s21 + $0x68] sm:$0xff]  }
 0x38f   : > { %2753 = vmax.xlane.f32.xlu1 %v2752_v38  ;;  %v2761_v38 = vsel %vm2688_vm2, %v15027_v25, -inf  ;;  %v15039_v53 = vunpack.c.l.bf16 %v11787_v7  ;;  %v15041_v42 = vunpack.c.h.bf16 %v11787_v7 }
 0x390   : > { %v2755_v23 = vsel %vm2688_vm2, %v15019_v1, -inf  ;;  %v15024_v36 = vadd.f32 %v15011_v3, %v2647_v19  ;;  %v2764_v19 = vsel %vm2688_vm2, %v15032_v52, -inf }
 0x391   : > { %2756 = vmax.xlane.f32.xlu0 %v2755_v23  ;;  %18649 = vst [vmem:[#allocation103_spill] sm:$0xff] %v15039_v53  ;;  %18650 = vst [vmem:[#allocation104_spill] sm:$0xff] %v15041_v42 }
 0x392   : > { %v2758_v33 = vsel %vm2688_vm2, %v15024_v36, -inf }
 0x393   : > { %2759 = vmax.xlane.f32.xlu1 %v2758_v33 }
 0x395   : > { %2762 = vmax.xlane.f32.xlu0 %v2761_v38 }
 0x397   : > { %2765 = vmax.xlane.f32.xlu1 %v2764_v19 }
 0x3a7   : > { %v2691_v43 = vpop.xlane.xlu0 %2690 }
 0x3a8   : > { %v2785_v54 = vsub.f32 %v14765_v30, %v2691_v43 }
 0x3a9   : > { %v2694_v33 = vpop.xlane.xlu1 %2693 }
 0x3ac   : > { %v2523_v47 = vpop.f32.mrb[108].mxu1 }
 0x3ad   : > { %v2650_v2 = vmul.f32 0.17677669, %v2523_v47  ;;  %v12152_v23 = vpop.f32.mrb[109].mxu1  ;;  %v2786_v47 = vsub.f32 %v14770_v57, %v2694_v33  ;;  %v11789_v33 = vld [vmem:[%s14747_s21 + $0x78] sm:$0xff]  }
 0x3ae   : > { %v2526_v55 = vpop.f32.mrb[110].mxu1 }
 0x3af   : > { %v2651_v14 = vmul.f32 0.17677669, %v2526_v55  ;;  %v12153_v3 = vpop.f32.mrb[111].mxu1  ;;  %v15044_v38 = vadd.f32 %v15039_v53, %v2650_v2  ;;  %v2817_v2 = vmul.f32 1.442695, %v2785_v54  ;;  %v15058_v55 = vunpack.c.h.bf16 %v11788_v62 }
 0x3b0   : > { %v15056_v3 = vunpack.c.l.bf16 %v11788_v62  ;;  %v2819_v53 = vmul.f32 1.442695, %v2786_v47  ;;  %v15071_v47 = vunpack.c.l.bf16 %v11789_v33 }
 0x3b1   : > { %v2767_v19 = vsel %vm2688_vm2, %v15044_v38, -inf  ;;  %v15051_v22 = vadd.f32 %v15041_v42, %v2651_v14  ;;  %18652 = vst [vmem:[#allocation106_spill] sm:$0xff] %v15058_v55  ;;  %13101 = vpow2.f32 %v2817_v2 }
 0x3b2   : > { %2768 = vmax.xlane.f32.xlu0 %v2767_v19  ;;  %18651 = vst [vmem:[#allocation105_spill] sm:$0xff] %v15056_v3  ;;  %13103 = vpow2.f32 %v2819_v53  ;;  %18653 = vst [vmem:[#allocation107_spill] sm:$0xff] %v15071_v47 }
 0x3b3   : > { %v2770_v7 = vsel %vm2688_vm2, %v15051_v22, -inf }
 0x3b4   : > { %v2570_v23 = vpop.f32.mrb[72].mxu0  ;;  %2771 = vmax.xlane.f32.xlu1 %v2770_v7 }
 0x3b5   : > { %v2652_v30 = vmul.f32 0.17677669, %v2570_v23  ;;  %v12158_v43 = vpop.f32.mrb[73].mxu0  ;;  %v15073_v23 = vunpack.c.h.bf16 %v11789_v33 }
 0x3b6   : > { %v2573_v6 = vpop.f32.mrb[74].mxu0 }
 0x3b7   : > { %v2653_v14 = vmul.f32 0.17677669, %v2573_v6  ;;  %v12159_v42 = vpop.f32.mrb[75].mxu0  ;;  %v15061_v57 = vadd.f32 %v15056_v3, %v2652_v30  ;;  %18654 = vst [vmem:[#allocation108_spill] sm:$0xff] %v15073_v23 }
 0x3b9   : > { %v2773_v19 = vsel %vm2688_vm2, %v15061_v57, -inf  ;;  %v15067_v54 = vadd.f32 %v15058_v55, %v2653_v14 }
 0x3ba   : > { %2774 = vmax.xlane.f32.xlu0 %v2773_v19 }
 0x3bb   : > { %v2776_v62 = vsel %vm2688_vm2, %v15067_v54, -inf  ;;  %v15083_v19 = vpop.eup %13101 }
 0x3bc   : > { %2777 = vmax.xlane.f32.xlu1 %v2776_v62  ;;  %v2617_v6 = vpop.f32.mrb[112].mxu1  ;;  %v15087_v33 = vpop.eup %13103 }
 0x3bd   : > { %v2654_v42 = vmul.f32 0.17677669, %v2617_v6  ;;  %v12164_v7 = vpop.f32.mrb[113].mxu1  ;;  %v2881_v6 = vsel %vm2688_vm2, %v15083_v19, 0.0 }
 0x3be   : > { %v2620_v2 = vpop.f32.mrb[114].mxu1 }
 0x3bf   : > { %v2655_v30 = vmul.f32 0.17677669, %v2620_v2  ;;  %v12165_v43 = vpop.f32.mrb[115].mxu1  ;;  %v15076_v3 = vadd.f32 %v15071_v47, %v2654_v42  ;;  %v2884_v42 = vsel %vm2688_vm2, %v15087_v33, 0.0 }
 0x3c1   : > { %v2779_v53 = vsel %vm2688_vm2, %v15076_v3, -inf  ;;  %v15081_v14 = vadd.f32 %v15073_v23, %v2655_v30 }
 0x3c2   : > { %2780 = vmax.xlane.f32.xlu0 %v2779_v53 }
 0x3c3   : > { %v2782_v62 = vsel %vm2688_vm2, %v15081_v14, -inf }
 0x3c4   : > { %2783 = vmax.xlane.f32.xlu1 %v2782_v62 }
 0x3c6   : > { %2882 = vadd.xlane.f32.xlu0 %v2881_v6 }
 0x3c8   : > { %2885 = vadd.xlane.f32.xlu1 %v2884_v42 }
 0x3f6   : > { %v2697_v7 = vpop.xlane.xlu0 %2696 }
 0x3f7   : > { %v2787_v2 = vsub.f32 %v14855_v59, %v2697_v7 }
 0x3f8   : > { %v2700_v30 = vpop.xlane.xlu1 %2699 }
 0x3f9   : > { %v2821_v43 = vmul.f32 1.442695, %v2787_v2  ;;  %v2788_v53 = vsub.f32 %v14864_v46, %v2700_v30 }
 0x3fa   : > { %v2703_v23 = vpop.xlane.xlu0 %2702 }
 0x3fb   : > { %13105 = vpow2.f32 %v2821_v43  ;;  %v2823_v55 = vmul.f32 1.442695, %v2788_v53  ;;  %v2789_v62 = vsub.f32 %v14858_v24, %v2703_v23 }
 0x3fc   : > { %v2706_v47 = vpop.xlane.xlu1 %2705 }
 0x3fd   : > { %13107 = vpow2.f32 %v2823_v55  ;;  %v2825_v37 = vmul.f32 1.442695, %v2789_v62  ;;  %v2790_v6 = vsub.f32 %v14867_v49, %v2706_v47 }
 0x3fe   : > { %v2709_v20 = vpop.xlane.xlu0 %2708 }
 0x3ff   : > { %13109 = vpow2.f32 %v2825_v37  ;;  %v2827_v42 = vmul.f32 1.442695, %v2790_v6  ;;  %v2791_v48 = vsub.f32 %v14889_v45, %v2709_v20 }
 0x400   : > { %v2712_v59 = vpop.xlane.xlu1 %2711 }
 0x401   : > { %13111 = vpow2.f32 %v2827_v42  ;;  %v2829_v7 = vmul.f32 1.442695, %v2791_v48  ;;  %v2792_v46 = vsub.f32 %v14897_v0, %v2712_v59 }
 0x402   : > { %v2715_v2 = vpop.xlane.xlu0 %2714 }
 0x403   : > { %13113 = vpow2.f32 %v2829_v7  ;;  %v2831_v30 = vmul.f32 1.442695, %v2792_v46  ;;  %v2793_v24 = vsub.f32 %v14900_v50, %v2715_v2 }
 0x404   : > { %v2718_v23 = vpop.xlane.xlu1 %2717 }
 0x405   : > { %v15100_v55 = vpop.eup %13105  ;;  %13115 = vpow2.f32 %v2831_v30  ;;  %v2833_v49 = vmul.f32 1.442695, %v2793_v24  ;;  %v2794_v37 = vsub.f32 %v14906_v41, %v2718_v23 }
 0x406   : > { %v2721_v47 = vpop.xlane.xlu0 %2720  ;;  %v2887_v20 = vsel %vm2688_vm2, %v15100_v55, 0.0 }
 0x407   : > { %v15105_v45 = vpop.eup %13107  ;;  %13117 = vpow2.f32 %v2833_v49  ;;  %v2835_v0 = vmul.f32 1.442695, %v2794_v37  ;;  %v2795_v48 = vsub.f32 %v14923_v58, %v2721_v47  ;;  %2888 = vadd.xlane.f32.xlu0 %v2887_v20 }
 0x408   : > { %v2724_v43 = vpop.xlane.xlu1 %2723  ;;  %v2890_v50 = vsel %vm2688_vm2, %v15105_v45, 0.0 }
 0x409   : > { %v15110_v53 = vpop.eup %13109  ;;  %13119 = vpow2.f32 %v2835_v0  ;;  %v2837_v62 = vmul.f32 1.442695, %v2795_v48  ;;  %v2796_v41 = vsub.f32 %v14929_v61, %v2724_v43  ;;  %2891 = vadd.xlane.f32.xlu1 %v2890_v50 }
 0x40a   : > { %v2727_v6 = vpop.xlane.xlu0 %2726  ;;  %v2893_v42 = vsel %vm2688_vm2, %v15110_v53, 0.0 }
 0x40b   : > { %v15115_v59 = vpop.eup %13111  ;;  %13121 = vpow2.f32 %v2837_v62  ;;  %v2839_v58 = vmul.f32 1.442695, %v2796_v41  ;;  %v2797_v7 = vsub.f32 %v14932_v15, %v2727_v6  ;;  %2894 = vadd.xlane.f32.xlu0 %v2893_v42 }
 0x40c   : > { %v2730_v46 = vpop.xlane.xlu1 %2729  ;;  %v2896_v2 = vsel %vm2688_vm2, %v15115_v59, 0.0 }
 0x40d   : > { %v15120_v30 = vpop.eup %13113  ;;  %13123 = vpow2.f32 %v2839_v58  ;;  %v2841_v61 = vmul.f32 1.442695, %v2797_v7  ;;  %v2798_v24 = vsub.f32 %v14938_v16, %v2730_v46  ;;  %2897 = vadd.xlane.f32.xlu1 %v2896_v2 }
 0x40e   : > { %v2733_v23 = vpop.xlane.xlu0 %2732  ;;  %v2899_v49 = vsel %vm2688_vm2, %v15120_v30, 0.0 }
 0x40f   : > { %v15125_v37 = vpop.eup %13115  ;;  %13125 = vpow2.f32 %v2841_v61  ;;  %v2843_v15 = vmul.f32 1.442695, %v2798_v24  ;;  %v2799_v47 = vsub.f32 %v14955_v8, %v2733_v23  ;;  %2900 = vadd.xlane.f32.xlu0 %v2899_v49 }
 0x410   : > { %v2736_v20 = vpop.xlane.xlu1 %2735  ;;  %v2902_v0 = vsel %vm2688_vm2, %v15125_v37, 0.0 }
 0x411   : > { %v15130_v48 = vpop.eup %13117  ;;  %13127 = vpow2.f32 %v2843_v15  ;;  %v2845_v16 = vmul.f32 1.442695, %v2799_v47  ;;  %v2800_v43 = vsub.f32 %v14961_v13, %v2736_v20  ;;  %2903 = vadd.xlane.f32.xlu1 %v2902_v0 }
 0x412   : > { %v2739_v50 = vpop.xlane.xlu0 %2738  ;;  %v2905_v62 = vsel %vm2688_vm2, %v15130_v48, 0.0 }
 0x413   : > { %v15135_v41 = vpop.eup %13119  ;;  %13129 = vpow2.f32 %v2845_v16  ;;  %v2847_v8 = vmul.f32 1.442695, %v2800_v43  ;;  %v2801_v6 = vsub.f32 %v14964_v5, %v2739_v50  ;;  %2906 = vadd.xlane.f32.xlu0 %v2905_v62 }
 0x414   : > { %v2742_v42 = vpop.xlane.xlu1 %2741  ;;  %v2908_v58 = vsel %vm2688_vm2, %v15135_v41, 0.0 }
 0x415   : > { %v15140_v7 = vpop.eup %13121  ;;  %13131 = vpow2.f32 %v2847_v8  ;;  %v2849_v13 = vmul.f32 1.442695, %v2801_v6  ;;  %v2802_v46 = vsub.f32 %v14970_v39, %v2742_v42  ;;  %2909 = vadd.xlane.f32.xlu1 %v2908_v58 }
 0x416   : > { %v2745_v2 = vpop.xlane.xlu0 %2744  ;;  %v2911_v61 = vsel %vm2688_vm2, %v15140_v7, 0.0 }
 0x417   : > { %v15145_v24 = vpop.eup %13123  ;;  %13133 = vpow2.f32 %v2849_v13  ;;  %v2851_v5 = vmul.f32 1.442695, %v2802_v46  ;;  %v2803_v23 = vsub.f32 %v14987_v34, %v2745_v2  ;;  %2912 = vadd.xlane.f32.xlu0 %v2911_v61 }
 0x418   : > { %v2748_v49 = vpop.xlane.xlu1 %2747  ;;  %v2914_v15 = vsel %vm2688_vm2, %v15145_v24, 0.0 }
 0x419   : > { %v15150_v47 = vpop.eup %13125  ;;  %13135 = vpow2.f32 %v2851_v5  ;;  %v2853_v39 = vmul.f32 1.442695, %v2803_v23  ;;  %v2804_v20 = vsub.f32 %v14993_v32, %v2748_v49  ;;  %2915 = vadd.xlane.f32.xlu1 %v2914_v15 }
 0x41a   : > { %v2751_v0 = vpop.xlane.xlu0 %2750  ;;  %v2917_v16 = vsel %vm2688_vm2, %v15150_v47, 0.0 }
 0x41b   : > { %v15155_v43 = vpop.eup %13127  ;;  %13137 = vpow2.f32 %v2853_v39  ;;  %v2855_v34 = vmul.f32 1.442695, %v2804_v20  ;;  %v2805_v50 = vsub.f32 %v14996_v40, %v2751_v0  ;;  %2918 = vadd.xlane.f32.xlu0 %v2917_v16 }
 0x41c   : > { %v2754_v62 = vpop.xlane.xlu1 %2753  ;;  %v2920_v8 = vsel %vm2688_vm2, %v15155_v43, 0.0 }
 0x41d   : > { %v15160_v6 = vpop.eup %13129  ;;  %13139 = vpow2.f32 %v2855_v34  ;;  %v2857_v32 = vmul.f32 1.442695, %v2805_v50  ;;  %v2806_v42 = vsub.f32 %v15002_v10, %v2754_v62  ;;  %2921 = vadd.xlane.f32.xlu1 %v2920_v8 }
 0x41e   : > { %v2757_v58 = vpop.xlane.xlu0 %2756  ;;  %v2923_v13 = vsel %vm2688_vm2, %v15160_v6, 0.0 }
 0x41f   : > { %v15165_v46 = vpop.eup %13131  ;;  %13141 = vpow2.f32 %v2857_v32  ;;  %v2859_v40 = vmul.f32 1.442695, %v2806_v42  ;;  %v2807_v2 = vsub.f32 %v15019_v1, %v2757_v58  ;;  %2924 = vadd.xlane.f32.xlu0 %v2923_v13 }
 0x420   : > { %v2760_v61 = vpop.xlane.xlu1 %2759  ;;  %v2926_v5 = vsel %vm2688_vm2, %v15165_v46, 0.0 }
 0x421   : > { %v15170_v23 = vpop.eup %13133  ;;  %13143 = vpow2.f32 %v2859_v40  ;;  %v2861_v10 = vmul.f32 1.442695, %v2807_v2  ;;  %v2808_v49 = vsub.f32 %v15024_v36, %v2760_v61  ;;  %2927 = vadd.xlane.f32.xlu1 %v2926_v5 }
 0x422   : > { %v2763_v15 = vpop.xlane.xlu0 %2762  ;;  %v2929_v39 = vsel %vm2688_vm2, %v15170_v23, 0.0 }
 0x423   : > { %v15175_v20 = vpop.eup %13135  ;;  %13145 = vpow2.f32 %v2861_v10  ;;  %v2863_v1 = vmul.f32 1.442695, %v2808_v49  ;;  %v2809_v0 = vsub.f32 %v15027_v25, %v2763_v15  ;;  %2930 = vadd.xlane.f32.xlu0 %v2929_v39 }
 0x424   : > { %v2766_v16 = vpop.xlane.xlu1 %2765  ;;  %v2932_v34 = vsel %vm2688_vm2, %v15175_v20, 0.0 }
 0x425   : > { %v15180_v50 = vpop.eup %13137  ;;  %13147 = vpow2.f32 %v2863_v1  ;;  %v2865_v36 = vmul.f32 1.442695, %v2809_v0  ;;  %v2810_v62 = vsub.f32 %v15032_v52, %v2766_v16  ;;  %2933 = vadd.xlane.f32.xlu1 %v2932_v34 }
 0x426   : > { %v2935_v8 = vsel %vm2688_vm2, %v15180_v50, 0.0 }
 0x427   : > { %v15185_v32 = vpop.eup %13139  ;;  %13149 = vpow2.f32 %v2865_v36  ;;  %v2867_v42 = vmul.f32 1.442695, %v2810_v62  ;;  %2936 = vadd.xlane.f32.xlu0 %v2935_v8 }
 0x428   : > { %v2938_v25 = vsel %vm2688_vm2, %v15185_v32, 0.0 }
 0x429   : > { %v15189_v58 = vpop.eup %13141  ;;  %13151 = vpow2.f32 %v2867_v42  ;;  %2939 = vadd.xlane.f32.xlu1 %v2938_v25 }
 0x42a   : > { %v2941_v13 = vsel %vm2688_vm2, %v15189_v58, 0.0 }
 0x42b   : > { %v15193_v52 = vpop.eup %13143  ;;  %2942 = vadd.xlane.f32.xlu0 %v2941_v13 }
 0x42c   : > { %v2944_v40 = vsel %vm2688_vm2, %v15193_v52, 0.0 }
 0x42d   : > { %v15197_v2 = vpop.eup %13145  ;;  %2945 = vadd.xlane.f32.xlu1 %v2944_v40 }
 0x42e   : > { %v2947_v61 = vsel %vm2688_vm2, %v15197_v2, 0.0 }
 0x42f   : > { %v15201_v5 = vpop.eup %13147  ;;  %2948 = vadd.xlane.f32.xlu0 %v2947_v61 }
 0x430   : > { %v2950_v10 = vsel %vm2688_vm2, %v15201_v5, 0.0 }
 0x431   : > { %v15205_v49 = vpop.eup %13149  ;;  %2951 = vadd.xlane.f32.xlu1 %v2950_v10 }
 0x432   : > { %v2953_v15 = vsel %vm2688_vm2, %v15205_v49, 0.0 }
 0x433   : > { %v15209_v39 = vpop.eup %13151  ;;  %2954 = vadd.xlane.f32.xlu0 %v2953_v15 }
 0x434   : > { %v2956_v1 = vsel %vm2688_vm2, %v15209_v39, 0.0 }
 0x435   : > { %2957 = vadd.xlane.f32.xlu1 %v2956_v1 }
 0x43f   : > { %v2769_v0 = vpop.xlane.xlu0 %2768 }
 0x440   : > { %v2811_v16 = vsub.f32 %v15044_v38, %v2769_v0 }
 0x441   : > { %v2772_v34 = vpop.xlane.xlu1 %2771 }
 0x442   : > { %v2869_v36 = vmul.f32 1.442695, %v2811_v16  ;;  %v2812_v62 = vsub.f32 %v15051_v22, %v2772_v34 }
 0x444   : > { %13153 = vpow2.f32 %v2869_v36  ;;  %v2871_v8 = vmul.f32 1.442695, %v2812_v62 }
 0x446   : > { %13155 = vpow2.f32 %v2871_v8 }
 0x447   : > { %v2775_v42 = vpop.xlane.xlu0 %2774 }
 0x448   : > { %v2813_v25 = vsub.f32 %v15061_v57, %v2775_v42 }
 0x449   : > { %v2778_v40 = vpop.xlane.xlu1 %2777 }
 0x44a   : > { %v2873_v13 = vmul.f32 1.442695, %v2813_v25 }
 0x44c   : > { %13157 = vpow2.f32 %v2873_v13 }
 0x44e   : > { %v15216_v61 = vpop.eup %13153 }
 0x44f   : > { %v2781_v10 = vpop.xlane.xlu0 %2780  ;;  %v2959_v15 = vsel %vm2688_vm2, %v15216_v61, 0.0 }
 0x450   : > { %v15220_v38 = vpop.eup %13155  ;;  %v2815_v1 = vsub.f32 %v15076_v3, %v2781_v10  ;;  %2960 = vadd.xlane.f32.xlu0 %v2959_v15 }
 0x451   : > { %v2784_v22 = vpop.xlane.xlu1 %2783  ;;  %v2962_v0 = vsel %vm2688_vm2, %v15220_v38, 0.0 }
 0x452   : > { %v2877_v16 = vmul.f32 1.442695, %v2815_v1  ;;  %2963 = vadd.xlane.f32.xlu1 %v2962_v0  ;;  %v18655_v1 = vmov 0.0   ;;  %v2816_v0 = vsub.f32 %v15081_v14, %v2784_v22 }
 0x453   : > { %v2883_v57 = vpop.xlane.xlu0 %2882 }
 0x454   : > { %13159 = vpow2.f32 %v2877_v16  ;;  %v2879_v16 = vmul.f32 1.442695, %v2816_v0 }
 0x455   : > { %13161 = vrcp.f32 %v2883_v57  ;;  %v2886_v34 = vpop.xlane.xlu1 %2885 }
 0x456   : > { %v15225_v36 = vpop.eup %13157  ;;  %13163 = vrcp.f32 %v2886_v34 }
 0x457   : > { %v2965_v62 = vsel %vm2688_vm2, %v15225_v36, 0.0 }
 0x458   : > { %2966 = vadd.xlane.f32.xlu0 %v2965_v62 }
 0x45e   : > { %v15229_v8 = vpop.eup %13159 }
 0x45f   : > { %v13162_v3 = vpop.eup %13161  ;;  %v2971_v42 = vsel %vm2688_vm2, %v15229_v8, 0.0 }
 0x460   : > { %2972 = vadd.xlane.f32.xlu0 %v2971_v42  ;;  %v13164_v25 = vpop.eup %13163  ;;  %v3009_v13 = vmul.f32 %v13162_v3, %v15083_v19  ;;  %v2814_v19 = vsub.f32 %v15067_v54, %v2778_v40 }
 0x461   : > { %v3010_v10 = vmul.f32 %v13164_v25, %v15087_v33 }
 0x462   : > { %v2875_v33 = vmul.f32 1.442695, %v2814_v19 }
 0x463   : > { %3930 = vrot.lane.b32.xlu1 %v14519_v35, %s13840_s14  ;;  %v3041_v15 = vpack.c.bf16 %v3010_v10, %v3009_v13 }
 0x464   : > { %13165 = vpow2.f32 %v2875_v33 }
 0x465   : > { %12169 = vmatmul.mubr.msk.bf16.vlgmr.msra.gmra.mrb[76].mxu0 %vm2688_vm2, %v3041_v15  ;;  %13167 = vpow2.f32 %v2879_v16 }
 0x466   : > { %12179 = vmatpush3.bf16.msra.mxu0 %v14725_v21  ;;  %12180 = vmatprep.mubr.msk.bf16.mxu0 %vm13839_vm0, %v18655_v1 }
 0x467   : > { %3874 = vrot.lane.b32.xlu1 %v14508_v26, %s13840_s14  ;;  %12190 = vmatprep.subr.bf16.mxu0 %v18655_v1 }
 0x46e   : > { %v15256_v54 = vpop.eup %13165 }
 0x46f   : > { %v2968_v14 = vsel %vm2688_vm2, %v15256_v54, 0.0  ;;  %v15262_v40 = vpop.eup %13167 }
 0x470   : > { %v2974_v22 = vsel %vm2688_vm2, %v15262_v40, 0.0 }
 0x476   : > { %3877 = vrot.lane.b32.xlu0 %v14510_v17, %s13840_s14 }
 0x47a   : > { %3927 = vrot.lane.b32.xlu0 %v14517_v51, %s13840_s14 }
 0x47e   : > { %3980 = vrot.lane.b32.xlu0 %v14530_v60, %s13840_s14 }
 0x482   : > { %4033 = vrot.lane.b32.xlu0 %v14539_v27, %s13840_s14 }
 0x486   : > { %4086 = vrot.lane.b32.xlu0 %v14549_v12, %s13840_s14 }
 0x48a   : > { %4139 = vrot.lane.b32.xlu0 %v14558_v11, %s13840_s14 }
 0x48b   : > { %2969 = vadd.xlane.f32.xlu1 %v2968_v14 }
 0x48e   : > { %4192 = vrot.lane.b32.xlu0 %v14568_v29, %s13840_s14 }
 0x48f   : > { %2975 = vadd.xlane.f32.xlu1 %v2974_v22 }
 0x492   : > { %4245 = vrot.lane.b32.xlu0 %v14581_v44, %s13840_s14 }
 0x494   : > { %v2889_v57 = vpop.xlane.xlu0 %2888 }
 0x495   : > { %13169 = vrcp.f32 %v2889_v57 }
 0x496   : > { %v2892_v34 = vpop.xlane.xlu1 %2891  ;;  %4298 = vrot.lane.b32.xlu0 %v14595_v28, %s13840_s14 }
 0x497   : > { %13171 = vrcp.f32 %v2892_v34 }
 0x498   : > { %v2895_v62 = vpop.xlane.xlu0 %2894 }
 0x499   : > { %13173 = vrcp.f32 %v2895_v62 }
 0x49a   : > { %v2898_v3 = vpop.xlane.xlu1 %2897  ;;  %4351 = vrot.lane.b32.xlu0 %v14604_v56, %s13840_s14  ;;  %v18776_v56 = vld [vmem:[#allocation103_spill] sm:$0xff] }
 0x49b   : > { %13175 = vrcp.f32 %v2898_v3  ;;  %v18656_v3 = vld [vmem:[#allocation39_spill] sm:$0xff] }
 0x49c   : > { %v2901_v42 = vpop.xlane.xlu0 %2900 }
 0x49d   : > { %13177 = vrcp.f32 %v2901_v42  ;;  %v18657_v42 = vld [vmem:[#allocation8_spill] sm:$0xff] }
 0x49e   : > { %v2904_v25 = vpop.xlane.xlu1 %2903  ;;  %4404 = vrot.lane.b32.xlu0 %v14614_v63, %s13840_s14  ;;  %v18774_v63 = vld [vmem:[#allocation100_spill] sm:$0xff] }
 0x49f   : > { %v13170_v13 = vpop.eup %13169  ;;  %13179 = vrcp.f32 %v2904_v25 }
 0x4a0   : > { %3983 = vrot.lane.b32.xlu1 %v14532_v31, %s13840_s14  ;;  %v2907_v10 = vpop.xlane.xlu0 %2906  ;;  %v3011_v19 = vmul.f32 %v13170_v13, %v15100_v55 }
 0x4a1   : > { %v13172_v15 = vpop.eup %13171  ;;  %13181 = vrcp.f32 %v2907_v10 }
 0x4a2   : > { %v3012_v33 = vmul.f32 %v13172_v15, %v15105_v45  ;;  %v2910_v0 = vpop.xlane.xlu1 %2909  ;;  %4457 = vrot.lane.b32.xlu0 %v14570_v9, %s13840_s14  ;;  %v18772_v9 = vld [vmem:[#allocation99_spill] sm:$0xff] }
 0x4a3   : > { %v13174_v16 = vpop.eup %13173  ;;  %13183 = vrcp.f32 %v2910_v0  ;;  %v18659_v0 = vld [vmem:[#allocation42_spill] sm:$0xff] }
 0x4a4   : > { %4036 = vrot.lane.b32.xlu1 %v14541_v18, %s13840_s14  ;;  %v2913_v14 = vpop.xlane.xlu0 %2912  ;;  %v3042_v22 = vpack.c.bf16 %v3012_v33, %v3011_v19  ;;  %v3013_v34 = vmul.f32 %v13174_v16, %v15110_v53  ;;  %v18658_v19 = vld [vmem:[#allocation23_spill] sm:$0xff]  ;;  %v18660_v16 = vld [vmem:[#allocation9_spill] sm:$0xff] }
 0x4a5   : > { %v13176_v57 = vpop.eup %13175  ;;  %13185 = vrcp.f32 %v2913_v14 }
 0x4a6   : > { %v3014_v62 = vmul.f32 %v13176_v57, %v15115_v59  ;;  %v2916_v55 = vpop.xlane.xlu1 %2915  ;;  %4510 = vrot.lane.b32.xlu0 %v14583_v4, %s13840_s14  ;;  %12175 = vmatmul.mubr.msk.bf16.vlgmr.msra.gmra.mrb[116].mxu1 %vm2688_vm2, %v3042_v22  ;;  %v18770_v4 = vld [vmem:[#allocation96_spill] sm:$0xff] }
 0x4a7   : > { %v13178_v45 = vpop.eup %13177  ;;  %13187 = vrcp.f32 %v2916_v55  ;;  %12185 = vmatpush3.bf16.msra.mxu1 %v18656_v3  ;;  %12186 = vmatprep.mubr.msk.bf16.mxu1 %vm13839_vm0, %v18655_v1 }
 0x4a8   : > { %4089 = vrot.lane.b32.xlu1 %v18657_v42, %s13840_s14  ;;  %v2919_v25 = vpop.xlane.xlu0 %2918  ;;  %v3043_v53 = vpack.c.bf16 %v3014_v62, %v3013_v34  ;;  %12196 = vmatprep.subr.bf16.mxu1 %v18655_v1  ;;  %v3015_v13 = vmul.f32 %v13178_v45, %v15120_v30  ;;  %v18661_v62 = vld [vmem:[#allocation25_spill] sm:$0xff] }
 0x4a9   : > { %v13180_v59 = vpop.eup %13179  ;;  %13189 = vrcp.f32 %v2919_v25  ;;  %v18662_v45 = vld [vmem:[#allocation45_spill] sm:$0xff]  ;;  %v18663_v25 = vld [vmem:[#allocation11_spill] sm:$0xff] }
 0x4aa   : > { %v3016_v10 = vmul.f32 %v13180_v59, %v15125_v37  ;;  %v2922_v15 = vpop.xlane.xlu1 %2921  ;;  %4563 = vrot.lane.b32.xlu0 %v18658_v19, %s13840_s14  ;;  %12181 = vmatmul.mubr.msk.bf16.vlgmr.msra.gmra.mrb[80].mxu0 %vm2688_vm2, %v3043_v53  ;;  %v18768_v19 = vld [vmem:[#allocation95_spill] sm:$0xff] }
 0x4ab   : > { %v13182_v33 = vpop.eup %13181  ;;  %13191 = vrcp.f32 %v2922_v15  ;;  %12191 = vmatpush3.bf16.msra.mxu0 %v18659_v0  ;;  %12192 = vmatprep.mubr.msk.bf16.mxu0 %vm13839_vm0, %v18655_v1  ;;  %v18664_v15 = vld [vmem:[#allocation30_spill] sm:$0xff] }
 0x4ac   : > { %4142 = vrot.lane.b32.xlu1 %v18660_v16, %s13840_s14  ;;  %v2925_v14 = vpop.xlane.xlu0 %2924  ;;  %v3044_v30 = vpack.c.bf16 %v3016_v10, %v3015_v13  ;;  %12202 = vmatprep.subr.bf16.mxu0 %v18655_v1  ;;  %v3017_v22 = vmul.f32 %v13182_v33, %v15130_v48 }
 0x4ad   : > { %v13184_v37 = vpop.eup %13183  ;;  %13193 = vrcp.f32 %v2925_v14  ;;  %v18665_v14 = vld [vmem:[#allocation50_spill] sm:$0xff] }
 0x4ae   : > { %v3018_v57 = vmul.f32 %v13184_v37, %v15135_v41  ;;  %v2928_v34 = vpop.xlane.xlu1 %2927  ;;  %4616 = vrot.lane.b32.xlu0 %v18661_v62, %s13840_s14  ;;  %12187 = vmatmul.mubr.msk.bf16.vlgmr.msra.gmra.mrb[120].mxu1 %vm2688_vm2, %v3044_v30  ;;  %v18666_v30 = vld [vmem:[#allocation15_spill] sm:$0xff]  ;;  %v18766_v62 = vld [vmem:[#allocation92_spill] sm:$0xff] }
 0x4af   : > { %v13186_v55 = vpop.eup %13185  ;;  %13195 = vrcp.f32 %v2928_v34  ;;  %12197 = vmatpush3.bf16.msra.mxu1 %v18662_v45  ;;  %12198 = vmatprep.mubr.msk.bf16.mxu1 %vm13839_vm0, %v18655_v1 }
 0x4b0   : > { %4195 = vrot.lane.b32.xlu1 %v18663_v25, %s13840_s14  ;;  %v2931_v53 = vpop.xlane.xlu0 %2930  ;;  %v3045_v48 = vpack.c.bf16 %v3018_v57, %v3017_v22  ;;  %12208 = vmatprep.subr.bf16.mxu1 %v18655_v1  ;;  %v3019_v59 = vmul.f32 %v13186_v55, %v15140_v7 }
 0x4b1   : > { %v13188_v41 = vpop.eup %13187  ;;  %13197 = vrcp.f32 %v2931_v53  ;;  %v18667_v53 = vld [vmem:[#allocation53_spill] sm:$0xff] }
 0x4b2   : > { %v3020_v13 = vmul.f32 %v13188_v41, %v15145_v24  ;;  %v2934_v10 = vpop.xlane.xlu1 %2933  ;;  %5154 = vrot.lane.b32.xlu0 %v18664_v15, %s13840_s14  ;;  %12193 = vmatmul.mubr.msk.bf16.vlgmr.msra.gmra.mrb[84].mxu0 %vm2688_vm2, %v3045_v48  ;;  %v18668_v48 = vld [vmem:[#allocation18_spill] sm:$0xff] }
 0x4b3   : > { %v13190_v33 = vpop.eup %13189  ;;  %13199 = vrcp.f32 %v2934_v10  ;;  %12203 = vmatpush3.bf16.msra.mxu0 %v18665_v14  ;;  %12204 = vmatprep.mubr.msk.bf16.mxu0 %vm13839_vm0, %v18655_v1 }
 0x4b4   : > { %4248 = vrot.lane.b32.xlu1 %v18666_v30, %s13840_s14  ;;  %v2937_v37 = vpop.xlane.xlu0 %2936  ;;  %v3046_v7 = vpack.c.bf16 %v3020_v13, %v3019_v59  ;;  %12214 = vmatprep.subr.bf16.mxu0 %v18655_v1  ;;  %v3021_v22 = vmul.f32 %v13190_v33, %v15150_v47 }
 0x4b5   : > { %v13192_v24 = vpop.eup %13191  ;;  %13201 = vrcp.f32 %v2937_v37  ;;  %v18669_v37 = vld [vmem:[#allocation56_spill] sm:$0xff] }
 0x4b6   : > { %v3022_v57 = vmul.f32 %v13192_v24, %v15155_v43  ;;  %v2940_v34 = vpop.xlane.xlu1 %2939  ;;  %5250 = vrot.lane.b32.xlu0 %v14725_v21, %s13840_s14  ;;  %12199 = vmatmul.mubr.msk.bf16.vlgmr.msra.gmra.mrb[124].mxu1 %vm2688_vm2, %v3046_v7  ;;  %v18670_v7 = vld [vmem:[#allocation20_spill] sm:$0xff] }
 0x4b7   : > { %v13194_v55 = vpop.eup %13193  ;;  %13203 = vrcp.f32 %v2940_v34  ;;  %12209 = vmatpush3.bf16.msra.mxu1 %v18667_v53  ;;  %12210 = vmatprep.mubr.msk.bf16.mxu1 %vm13839_vm0, %v18655_v1 }
 0x4b8   : > { %4301 = vrot.lane.b32.xlu1 %v18668_v48, %s13840_s14  ;;  %v2943_v41 = vpop.xlane.xlu0 %2942  ;;  %v3047_v47 = vpack.c.bf16 %v3022_v57, %v3021_v22  ;;  %12220 = vmatprep.subr.bf16.mxu1 %v18655_v1  ;;  %v3023_v59 = vmul.f32 %v13194_v55, %v15160_v6 }
 0x4b9   : > { %v13196_v43 = vpop.eup %13195  ;;  %13205 = vrcp.f32 %v2943_v41  ;;  %v18671_v41 = vld [vmem:[#allocation59_spill] sm:$0xff] }
 0x4ba   : > { %v3024_v13 = vmul.f32 %v13196_v43, %v15165_v46  ;;  %v2946_v10 = vpop.xlane.xlu1 %2945  ;;  %5346 = vrot.lane.b32.xlu0 %v18659_v0, %s13840_s14  ;;  %12205 = vmatmul.mubr.msk.bf16.vlgmr.msra.gmra.mrb[88].mxu0 %vm2688_vm2, %v3047_v47  ;;  %v18672_v47 = vld [vmem:[#allocation22_spill] sm:$0xff] }
 0x4bb   : > { %v13198_v33 = vpop.eup %13197  ;;  %13207 = vrcp.f32 %v2946_v10  ;;  %12215 = vmatpush3.bf16.msra.mxu0 %v18669_v37  ;;  %12216 = vmatprep.mubr.msk.bf16.mxu0 %vm13839_vm0, %v18655_v1 }
 0x4bc   : > { %4354 = vrot.lane.b32.xlu1 %v18670_v7, %s13840_s14  ;;  %v2949_v24 = vpop.xlane.xlu0 %2948  ;;  %v3048_v6 = vpack.c.bf16 %v3024_v13, %v3023_v59  ;;  %12226 = vmatprep.subr.bf16.mxu0 %v18655_v1  ;;  %v3025_v22 = vmul.f32 %v13198_v33, %v15170_v23 }
 0x4bd   : > { %v13200_v46 = vpop.eup %13199  ;;  %13209 = vrcp.f32 %v2949_v24  ;;  %v18673_v24 = vld [vmem:[#allocation62_spill] sm:$0xff] }
 0x4be   : > { %v3026_v57 = vmul.f32 %v13200_v46, %v15175_v20  ;;  %v2952_v34 = vpop.xlane.xlu1 %2951  ;;  %5442 = vrot.lane.b32.xlu0 %v18665_v14, %s13840_s14  ;;  %12211 = vmatmul.mubr.msk.bf16.vlgmr.msra.gmra.mrb[128].mxu1 %vm2688_vm2, %v3048_v6  ;;  %v18674_v6 = vld [vmem:[#allocation12_spill] sm:$0xff] }
 0x4bf   : > { %v13202_v55 = vpop.eup %13201  ;;  %13211 = vrcp.f32 %v2952_v34  ;;  %12221 = vmatpush3.bf16.msra.mxu1 %v18671_v41  ;;  %12222 = vmatprep.mubr.msk.bf16.mxu1 %vm13839_vm0, %v18655_v1 }
 0x4c0   : > { %4407 = vrot.lane.b32.xlu1 %v18672_v47, %s13840_s14  ;;  %v2955_v43 = vpop.xlane.xlu0 %2954  ;;  %v3049_v23 = vpack.c.bf16 %v3026_v57, %v3025_v22  ;;  %12232 = vmatprep.subr.bf16.mxu1 %v18655_v1  ;;  %v3027_v59 = vmul.f32 %v13202_v55, %v15180_v50  ;;  %v18675_v57 = vld [vmem:[#allocation68_spill] sm:$0xff]  ;;  %v18676_v55 = vld [vmem:[#allocation65_spill] sm:$0xff] }
 0x4c1   : > { %v13204_v20 = vpop.eup %13203  ;;  %13213 = vrcp.f32 %v2955_v43  ;;  %v18677_v43 = vld [vmem:[#allocation16_spill] sm:$0xff] }
 0x4c2   : > { %v3028_v13 = vmul.f32 %v13204_v20, %v15185_v32  ;;  %v2958_v10 = vpop.xlane.xlu1 %2957  ;;  %5538 = vrot.lane.b32.xlu0 %v18669_v37, %s13840_s14  ;;  %12217 = vmatmul.mubr.msk.bf16.vlgmr.msra.gmra.mrb[92].mxu0 %vm2688_vm2, %v3049_v23 }
 0x4c3   : > { %v13206_v33 = vpop.eup %13205  ;;  %13215 = vrcp.f32 %v2958_v10  ;;  %12227 = vmatpush3.bf16.msra.mxu0 %v18673_v24  ;;  %12228 = vmatprep.mubr.msk.bf16.mxu0 %vm13839_vm0, %v18655_v1 }
 0x4c4   : > { %4460 = vrot.lane.b32.xlu1 %v18674_v6, %s13840_s14  ;;  %v3050_v46 = vpack.c.bf16 %v3028_v13, %v3027_v59  ;;  %12238 = vmatprep.subr.bf16.mxu0 %v18655_v1  ;;  %v3029_v32 = vmul.f32 %v13206_v33, %v15189_v58  ;;  %v18678_v13 = vld [vmem:[#allocation24_spill] sm:$0xff]  ;;  %v18778_v6 = vld [vmem:[#allocation105_spill] sm:$0xff] }
 0x4c5   : > { %v13208_v50 = vpop.eup %13207 }
 0x4c6   : > { %v3030_v22 = vmul.f32 %v13208_v50, %v15193_v52  ;;  %5730 = vrot.lane.b32.xlu0 %v18675_v57, %s13840_s14  ;;  %12223 = vmatmul.mubr.msk.bf16.vlgmr.msra.gmra.mrb[132].mxu1 %vm2688_vm2, %v3050_v46  ;;  %v18680_v50 = vld [vmem:[#allocation26_spill] sm:$0xff] }
 0x4c7   : > { %v13210_v34 = vpop.eup %13209  ;;  %12233 = vmatpush3.bf16.msra.mxu1 %v18676_v55  ;;  %12234 = vmatprep.mubr.msk.bf16.mxu1 %vm13839_vm0, %v18655_v1 }
 0x4c8   : > { %4513 = vrot.lane.b32.xlu1 %v18677_v43, %s13840_s14  ;;  %v3051_v23 = vpack.c.bf16 %v3030_v22, %v3029_v32  ;;  %12244 = vmatprep.subr.bf16.mxu1 %v18655_v1  ;;  %v3031_v52 = vmul.f32 %v13210_v34, %v15197_v2  ;;  %v18681_v22 = vld [vmem:[#allocation74_spill] sm:$0xff]  ;;  %v18684_v34 = vld [vmem:[#allocation33_spill] sm:$0xff] }
 0x4c9   : > { %v13212_v58 = vpop.eup %13211 }
 0x4ca   : > { %v3032_v20 = vmul.f32 %v13212_v58, %v15201_v5  ;;  %12229 = vmatmul.mubr.msk.bf16.vlgmr.msra.gmra.mrb[96].mxu0 %vm2688_vm2, %v3051_v23  ;;  %v18679_v5 = vld [vmem:[#allocation71_spill] sm:$0xff] }
 0x4cb   : > { %v13214_v59 = vpop.eup %13213  ;;  %12239 = vmatpush3.bf16.msra.mxu0 %v18675_v57  ;;  %12240 = vmatprep.mubr.msk.bf16.mxu0 %vm13839_vm0, %v18655_v1 }
 0x4cc   : > { %4566 = vrot.lane.b32.xlu1 %v18678_v13, %s13840_s14  ;;  %v3052_v10 = vpack.c.bf16 %v3032_v20, %v3031_v52  ;;  %12250 = vmatprep.subr.bf16.mxu0 %v18655_v1  ;;  %v3033_v46 = vmul.f32 %v13214_v59, %v15205_v49  ;;  %v18682_v49 = vld [vmem:[#allocation28_spill] sm:$0xff] }
 0x4cd   : > { %v13216_v33 = vpop.eup %13215 }
 0x4ce   : > { %v3034_v2 = vmul.f32 %v13216_v33, %v15209_v39  ;;  %12235 = vmatmul.mubr.msk.bf16.vlgmr.msra.gmra.mrb[136].mxu1 %vm2688_vm2, %v3052_v10  ;;  %v18683_v39 = vld [vmem:[#allocation27_spill] sm:$0xff] }
 0x4cf   : > { %12245 = vmatpush3.bf16.msra.mxu1 %v18679_v5  ;;  %12246 = vmatprep.mubr.msk.bf16.mxu1 %vm13839_vm0, %v18655_v1 }
 0x4d0   : > { %4619 = vrot.lane.b32.xlu1 %v18680_v50, %s13840_s14  ;;  %v3053_v32 = vpack.c.bf16 %v3034_v2, %v3033_v46  ;;  %12256 = vmatprep.subr.bf16.mxu1 %v18655_v1  ;;  %v18685_v46 = vld [vmem:[#allocation77_spill] sm:$0xff] }
 0x4d2   : > { %12241 = vmatmul.mubr.msk.bf16.vlgmr.msra.gmra.mrb[100].mxu0 %vm2688_vm2, %v3053_v32 }
 0x4d3   : > { %12251 = vmatpush3.bf16.msra.mxu0 %v18681_v22  ;;  %12252 = vmatprep.mubr.msk.bf16.mxu0 %vm13839_vm0, %v18655_v1 }
 0x4d4   : > { %4672 = vrot.lane.b32.xlu1 %v18682_v49, %s13840_s14  ;;  %12262 = vmatprep.subr.bf16.mxu0 %v18655_v1 }
 0x4d8   : > { %4669 = vrot.lane.b32.xlu1 %v18683_v39, %s13840_s14 }
 0x4dc   : > { %5202 = vrot.lane.b32.xlu1 %v18684_v34, %s13840_s14 }
 0x4dd   : > { %v2961_v23 = vpop.xlane.xlu0 %2960 }
 0x4de   : > { %13217 = vrcp.f32 %v2961_v23  ;;  %v15436_v23 = vld [vmem:[%s18336_s5] ss:$0 sm:$0xff] }
 0x4df   : > { %v2964_v58 = vpop.xlane.xlu1 %2963 }
 0x4e0   : > { %13219 = vrcp.f32 %v2964_v58  ;;  %5298 = vrot.lane.b32.xlu1 %v18656_v3, %s13840_s14 }
 0x4e3   : > { %v3931_v2 = vpop.permute.xlu1 %3930 }
 0x4e4   : > { %5394 = vrot.lane.b32.xlu1 %v18662_v45, %s13840_s14 }
 0x4e7   : > { %v3875_v58 = vpop.permute.xlu1 %3874 }
 0x4e8   : > { %v13218_v52 = vpop.eup %13217  ;;  %5490 = vrot.lane.b32.xlu1 %v18667_v53, %s13840_s14 }
 0x4e9   : > { %v3035_v59 = vmul.f32 %v13218_v52, %v15216_v61  ;;  %v2967_v61 = vpop.xlane.xlu0 %2966 }
 0x4ea   : > { %v13220_v20 = vpop.eup %13219  ;;  %13221 = vrcp.f32 %v2967_v61 }
 0x4eb   : > { %v3036_v10 = vmul.f32 %v13220_v20, %v15220_v38  ;;  %v18686_v20 = vld [vmem:[#allocation29_spill] sm:$0xff] }
 0x4ec   : > { %5586 = vrot.lane.b32.xlu1 %v18671_v41, %s13840_s14 }
 0x4ed   : > { %v3054_v33 = vpack.c.bf16 %v3036_v10, %v3035_v59  ;;  %v2973_v38 = vpop.xlane.xlu0 %2972  ;;  %v1535_v59 = vadd.f32 %v15436_v23, %v18686_v20  ;;  %v18687_v10 = vld [vmem:[#allocation31_spill] sm:$0xff] }
 0x4ef   : > { %12247 = vmatmul.mubr.msk.bf16.vlgmr.msra.gmra.mrb[140].mxu1 %vm2688_vm2, %v3054_v33  ;;  %v1536_v33 = vadd.f32 %v15436_v23, %v18687_v10  ;;  %v11534_v57 = vmul.f32 -1.442695, %v1535_v59 }
 0x4f0   : > { %12257 = vmatpush3.bf16.msra.mxu1 %v18685_v46  ;;  %5634 = vrot.lane.b32.xlu1 %v18673_v24, %s13840_s14 }
 0x4f1   : > { %12258 = vmatprep.mubr.msk.bf16.mxu1 %vm13839_vm0, %v18655_v1  ;;  %12268 = vmatprep.subr.bf16.mxu1 %v18655_v1  ;;  %v3878_v32 = vpop.permute.xlu0 %3877  ;;  %v11535_v24 = vmul.f32 -1.442695, %v1536_v33 }
 0x4f4   : > { %5682 = vrot.lane.b32.xlu1 %v18676_v55, %s13840_s14  ;;  %v13222_v53 = vpop.eup %13221 }
 0x4f5   : > { %v3928_v52 = vpop.permute.xlu0 %3927  ;;  %v3037_v61 = vmul.f32 %v13222_v53, %v15225_v36  ;;  %v3936_v53 = vsel %vm1871_vm1, %v3931_v2, 0 }
 0x4f8   : > { %5778 = vrot.lane.b32.xlu1 %v18679_v5, %s13840_s14 }
 0x4f9   : > { %v3981_v5 = vpop.permute.xlu0 %3980 }
 0x4fd   : > { %v15442_v41 = vpop.permute.xlu0 %4033 }
 0x518   : > { %v2970_v55 = vpop.xlane.xlu1 %2969 }
 0x519   : > { %13223 = vrcp.f32 %v2970_v55  ;;  %v15446_v55 = vpop.permute.xlu0 %4086 }
 0x51a   : > { %13225 = vrcp.f32 %v2973_v38 }
 0x51c   : > { %v2976_v37 = vpop.xlane.xlu1 %2975 }
 0x51d   : > { %13227 = vrcp.f32 %v2976_v37  ;;  %v3883_v37 = vsel %vm1871_vm1, %v3878_v32, 0 }
 0x51e   : > { %13229 = vpow2.f32 %v11534_v57 }
 0x51f   : > { %13231 = vpow2.f32 %v11535_v24 }
 0x520   : > { %v3984_v14 = vpop.permute.xlu1 %3983 }
 0x521   : > { %v3989_v32 = vsel %vm1871_vm1, %v3984_v14, 0 }
 0x523   : > { %v13224_v0 = vpop.eup %13223 }
 0x524   : > { %v3038_v20 = vmul.f32 %v13224_v0, %v15256_v54  ;;  %v4037_v10 = vpop.permute.xlu1 %4036  ;;  %v13226_v45 = vpop.eup %13225 }
 0x525   : > { %v3039_v33 = vmul.f32 %v13226_v45, %v15229_v8  ;;  %v4140_v8 = vpop.permute.xlu0 %4139  ;;  %v4042_v2 = vsel %vm1871_vm1, %v4037_v10, 0 }
 0x526   : > { %v3055_v59 = vpack.c.bf16 %v3038_v20, %v3037_v61 }
 0x527   : > { %v13228_v38 = vpop.eup %13227 }
 0x528   : > { %v3040_v24 = vmul.f32 %v13228_v38, %v15262_v40  ;;  %v4090_v57 = vpop.permute.xlu1 %4089  ;;  %12253 = vmatmul.mubr.msk.bf16.vlgmr.msra.gmra.mrb[104].mxu0 %vm2688_vm2, %v3055_v59  ;;  %v13230_v21 = vpop.eup %13229 }
 0x529   : > { %12263 = vmatpush3.bf16.xpose.msra.mxu0 %v3883_v37  ;;  %12264 = vmatprep.mubr.msk.bf16.mxu0 %vm13839_vm0, %v18655_v1  ;;  %v13232_v36 = vpop.eup %13231  ;;  %v1663_v0 = vadd.f32 1.0, %v13230_v21  ;;  %v4193_v21 = vpop.permute.xlu0 %4192 }
 0x52a   : > { %v3056_v54 = vpack.c.bf16 %v3040_v24, %v3039_v33  ;;  %12274 = vmatprep.subr.bf16.mxu0 %v18655_v1  ;;  %v1664_v40 = vadd.f32 1.0, %v13232_v36 }
 0x52b   : > { %13233 = vrcp.f32 %v1663_v0 }
 0x52c   : > { %v4143_v45 = vpop.permute.xlu1 %4142  ;;  %12259 = vmatmul.mubr.msk.bf16.vlgmr.msra.gmra.mrb[144].mxu1 %vm2688_vm2, %v3056_v54  ;;  %13235 = vrcp.f32 %v1664_v40 }
 0x52d   : > { %12269 = vmatpush3.bf16.xpose.msra.mxu1 %v3936_v53  ;;  %12270 = vmatprep.mubr.msk.bf16.mxu1 %vm13839_vm0, %v18655_v1  ;;  %v4246_v14 = vpop.permute.xlu0 %4245  ;;  %v4148_v24 = vsel %vm1871_vm1, %v4143_v45, 0 }
 0x52e   : > { %12280 = vmatprep.subr.bf16.mxu1 %v18655_v1 }
 0x530   : > { %v4196_v61 = vpop.permute.xlu1 %4195  ;;  %12265 = vmatmul.mubr.msk.bf16.vlgmr.msra.gmra.mrb[108].mxu0 %vm1871_vm1, %v3875_v58  ;;  %v4095_v58 = vsel %vm1871_vm1, %v4090_v57, 0 }
 0x531   : > { %12275 = vmatpush3.bf16.xpose.msra.mxu0 %v3989_v32  ;;  %12276 = vmatprep.mubr.msk.bf16.mxu0 %vm13839_vm0, %v18655_v1  ;;  %v4299_v0 = vpop.permute.xlu0 %4298  ;;  %v4201_v40 = vsel %vm1871_vm1, %v4196_v61, 0 }
 0x532   : > { %12286 = vmatprep.subr.bf16.mxu0 %v18655_v1 }
 0x534   : > { %v4249_v20 = vpop.permute.xlu1 %4248  ;;  %12271 = vmatmul.mubr.msk.bf16.vlgmr.msra.gmra.mrb[148].mxu1 %vm1871_vm1, %v3928_v52 }
 0x535   : > { %12281 = vmatpush3.bf16.xpose.msra.mxu1 %v4042_v2  ;;  %12282 = vmatprep.mubr.msk.bf16.mxu1 %vm13839_vm0, %v18655_v1  ;;  %v15474_v10 = vpop.eup %13233  ;;  %v4352_v45 = vpop.permute.xlu0 %4351  ;;  %v4254_v32 = vsel %vm1871_vm1, %v4249_v20, 0 }
 0x536   : > { %12292 = vmatprep.subr.bf16.mxu1 %v18655_v1  ;;  %18688 = vst [vmem:[#allocation8_spill] sm:$0xff] %v15474_v10  ;;  %v15477_v33 = vpop.eup %13235 }
 0x537   : > { %18689 = vst [vmem:[#allocation9_spill] sm:$0xff] %v15477_v33 }
 0x538   : > { %v4302_v59 = vpop.permute.xlu1 %4301  ;;  %12277 = vmatmul.mubr.msk.bf16.vlgmr.msra.gmra.mrb[112].mxu0 %vm1871_vm1, %v3981_v5  ;;  %v3094_v38 = vpop.f32.mrb[76].mxu0 }
 0x539   : > { %12287 = vmatpush3.bf16.xpose.msra.mxu0 %v4095_v58  ;;  %12288 = vmatprep.mubr.msk.bf16.mxu0 %vm13839_vm0, %v18655_v1  ;;  %v12170_v52 = vpop.f32.mrb[77].mxu0  ;;  %v3761_v57 = vmul.f32 %v15474_v10, %v3094_v38  ;;  %v4405_v2 = vpop.permute.xlu0 %4404  ;;  %v18690_v38 = vld [vmem:[#allocation32_spill] sm:$0xff] }
 0x53a   : > { %12298 = vmatprep.subr.bf16.mxu0 %v18655_v1  ;;  %v3097_v37 = vpop.f32.mrb[78].mxu0  ;;  %v1537_v52 = vadd.f32 %v15436_v23, %v18690_v38 }
 0x53b   : > { %v3762_v36 = vmul.f32 %v15477_v33, %v3097_v37  ;;  %v12171_v5 = vpop.f32.mrb[79].mxu0 }
 0x53c   : > { %v4355_v54 = vpop.permute.xlu1 %4354  ;;  %12283 = vmatmul.mubr.msk.bf16.vlgmr.msra.gmra.mrb[152].mxu1 %vm1871_vm1, %v15442_v41  ;;  %v18692_v5 = vld [vmem:[#allocation35_spill] sm:$0xff] }
 0x53d   : > { %12293 = vmatpush3.bf16.xpose.msra.mxu1 %v4148_v24  ;;  %12294 = vmatprep.mubr.msk.bf16.mxu1 %vm13839_vm0, %v18655_v1  ;;  %v3793_v53 = vpack.c.bf16 %v3762_v36, %v3761_v57  ;;  %v4458_v58 = vpop.permute.xlu0 %4457  ;;  %v18691_v24 = vld [vmem:[#allocation34_spill] sm:$0xff] }
 0x53e   : > { %12304 = vmatprep.subr.bf16.mxu1 %v18655_v1  ;;  %v1538_v57 = vadd.f32 %v15436_v23, %v18691_v24 }
 0x53f   : > { %3809 = vst.msk [vmem:[#allocation3] sm:$0xff] %vm1871_vm1, %v3793_v53  ;;  %v18693_v53 = vld [vmem:[#allocation37_spill] sm:$0xff] }
 0x540   : > { %12289 = vmatmul.mubr.msk.bf16.vlgmr.msra.gmra.mrb[116].mxu0 %vm1871_vm1, %v15446_v55  ;;  %v4408_v41 = vpop.permute.xlu1 %4407  ;;  %v4307_v55 = vsel %vm1871_vm1, %v4302_v59, 0 }
 0x541   : > { %12299 = vmatpush3.bf16.xpose.msra.mxu0 %v4201_v40  ;;  %12300 = vmatprep.mubr.msk.bf16.mxu0 %vm13839_vm0, %v18655_v1  ;;  %v4511_v37 = vpop.permute.xlu0 %4510  ;;  %v1540_v40 = vadd.f32 %v15436_v23, %v18693_v53 }
 0x542   : > { %12310 = vmatprep.subr.bf16.mxu0 %v18655_v1 }
 0x544   : > { %12295 = vmatmul.mubr.msk.bf16.vlgmr.msra.gmra.mrb[156].mxu1 %vm1871_vm1, %v4140_v8  ;;  %v4461_v61 = vpop.permute.xlu1 %4460  ;;  %v4360_v8 = vsel %vm1871_vm1, %v4355_v54, 0  ;;  %v1539_v54 = vadd.f32 %v15436_v23, %v18692_v5 }
 0x545   : > { %12305 = vmatpush3.bf16.xpose.msra.mxu1 %v4254_v32  ;;  %12306 = vmatprep.mubr.msk.bf16.mxu1 %vm13839_vm0, %v18655_v1  ;;  %v4564_v32 = vpop.permute.xlu0 %4563 }
 0x546   : > { %12316 = vmatprep.subr.bf16.mxu1 %v18655_v1 }
 0x548   : > { %12301 = vmatmul.mubr.msk.bf16.vlgmr.msra.gmra.mrb[120].mxu0 %vm1871_vm1, %v4193_v21  ;;  %v4514_v20 = vpop.permute.xlu1 %4513  ;;  %v4413_v21 = vsel %vm1871_vm1, %v4408_v41, 0 }
 0x549   : > { %12311 = vmatpush3.bf16.xpose.msra.mxu0 %v4307_v55  ;;  %12312 = vmatprep.mubr.msk.bf16.mxu0 %vm13839_vm0, %v18655_v1  ;;  %v4519_v36 = vsel %vm1871_vm1, %v4514_v20, 0  ;;  %v11539_v20 = vmul.f32 -1.442695, %v1540_v40 }
 0x54a   : > { %12322 = vmatprep.subr.bf16.mxu0 %v18655_v1 }
 0x54c   : > { %12307 = vmatmul.mubr.msk.bf16.vlgmr.msra.gmra.mrb[160].mxu1 %vm1871_vm1, %v4246_v14  ;;  %v4466_v14 = vsel %vm1871_vm1, %v4461_v61, 0  ;;  %v4567_v59 = vpop.permute.xlu1 %4566  ;;  %v11538_v61 = vmul.f32 -1.442695, %v1539_v54  ;;  %v4617_v54 = vpop.permute.xlu0 %4616 }
 0x54d   : > { %12317 = vmatpush3.bf16.xpose.msra.mxu1 %v4360_v8  ;;  %12318 = vmatprep.mubr.msk.bf16.mxu1 %vm13839_vm0, %v18655_v1  ;;  %v4572_v55 = vsel %vm1871_vm1, %v4567_v59, 0 }
 0x54e   : > { %12328 = vmatprep.subr.bf16.mxu1 %v18655_v1 }
 0x550   : > { %12313 = vmatmul.mubr.msk.bf16.vlgmr.msra.gmra.mrb[124].mxu0 %vm1871_vm1, %v4299_v0  ;;  %v11536_v0 = vmul.f32 -1.442695, %v1537_v52  ;;  %v4620_v41 = vpop.permute.xlu1 %4619  ;;  %v18696_v52 = vld [vmem:[#allocation41_spill] sm:$0xff] }
 0x551   : > { %12323 = vmatpush3.bf16.xpose.msra.mxu0 %v4413_v21  ;;  %12324 = vmatprep.mubr.msk.bf16.mxu0 %vm13839_vm0, %v18655_v1  ;;  %v18695_v21 = vld [vmem:[#allocation40_spill] sm:$0xff]  ;;  %v4625_v59 = vsel %vm1871_vm1, %v4620_v41, 0  ;;  %v1543_v24 = vadd.f32 %v15436_v23, %v18696_v52  ;;  %v18699_v41 = vld [vmem:[#allocation46_spill] sm:$0xff] }
 0x552   : > { %12334 = vmatprep.subr.bf16.mxu0 %v18655_v1  ;;  %13237 = vpow2.f32 %v11536_v0  ;;  %v18698_v0 = vld [vmem:[#allocation44_spill] sm:$0xff] }
 0x553   : > { %v11542_v40 = vmul.f32 -1.442695, %v1543_v24 }
 0x554   : > { %12319 = vmatmul.mubr.msk.bf16.vlgmr.msra.gmra.mrb[164].mxu1 %vm1871_vm1, %v4352_v45  ;;  %v11537_v45 = vmul.f32 -1.442695, %v1538_v57  ;;  %v4673_v38 = vpop.permute.xlu1 %4672 }
 0x555   : > { %12329 = vmatpush3.bf16.xpose.msra.mxu1 %v4466_v14  ;;  %12330 = vmatprep.mubr.msk.bf16.mxu1 %vm13839_vm0, %v18655_v1  ;;  %v1542_v14 = vadd.f32 %v15436_v23, %v18695_v21  ;;  %v4678_v53 = vsel %vm1871_vm1, %v4673_v38, 0 }
 0x556   : > { %12340 = vmatprep.subr.bf16.mxu1 %v18655_v1  ;;  %13239 = vpow2.f32 %v11537_v45  ;;  %v1546_v45 = vadd.f32 %v15436_v23, %v18699_v41 }
 0x557   : > { %13241 = vpow2.f32 %v11538_v61  ;;  %v11541_v57 = vmul.f32 -1.442695, %v1542_v14 }
 0x558   : > { %12325 = vmatmul.mubr.msk.bf16.vlgmr.msra.gmra.mrb[128].mxu0 %vm1871_vm1, %v4405_v2  ;;  %v18694_v2 = vld [vmem:[#allocation38_spill] sm:$0xff]  ;;  %13243 = vpow2.f32 %v11539_v20  ;;  %v4670_v61 = vpop.permute.xlu1 %4669  ;;  %v18700_v20 = vld [vmem:[#allocation48_spill] sm:$0xff]  ;;  %v11545_v14 = vmul.f32 -1.442695, %v1546_v45 }
 0x559   : > { %12335 = vmatpush3.bf16.xpose.msra.mxu0 %v4519_v36  ;;  %12336 = vmatprep.mubr.msk.bf16.mxu0 %vm13839_vm0, %v18655_v1  ;;  %v1541_v8 = vadd.f32 %v15436_v23, %v18694_v2  ;;  %v18697_v36 = vld [vmem:[#allocation43_spill] sm:$0xff]  ;;  %v1547_v21 = vadd.f32 %v15436_v23, %v18700_v20 }
 0x55a   : > { %12346 = vmatprep.subr.bf16.mxu0 %v18655_v1  ;;  %v1544_v5 = vadd.f32 %v15436_v23, %v18697_v36  ;;  %v18704_v20 = vld [vmem:[#allocation55_spill] sm:$0xff] }
 0x55b   : > { %v11546_v24 = vmul.f32 -1.442695, %v1547_v21  ;;  %v1551_v21 = vadd.f32 %v15436_v23, %v18704_v20 }
 0x55c   : > { %12331 = vmatmul.mubr.msk.bf16.vlgmr.msra.gmra.mrb[168].mxu1 %vm1871_vm1, %v4458_v58  ;;  %v11540_v58 = vmul.f32 -1.442695, %v1541_v8  ;;  %v13238_v2 = vpop.eup %13237 }
 0x55d   : > { %12341 = vmatpush3.bf16.xpose.msra.mxu1 %v4572_v55  ;;  %12342 = vmatprep.mubr.msk.bf16.mxu1 %vm13839_vm0, %v18655_v1  ;;  %v11543_v55 = vmul.f32 -1.442695, %v1544_v5  ;;  %v5203_v5 = vpop.permute.xlu1 %5202 }
 0x55e   : > { %12352 = vmatprep.subr.bf16.mxu1 %v18655_v1  ;;  %13245 = vpow2.f32 %v11540_v58  ;;  %v1665_v58 = vadd.f32 1.0, %v13238_v2  ;;  %v18703_v2 = vld [vmem:[#allocation54_spill] sm:$0xff] }
 0x55f   : > { %13247 = vpow2.f32 %v11541_v57  ;;  %v18701_v57 = vld [vmem:[#allocation51_spill] sm:$0xff] }
 0x560   : > { %12337 = vmatmul.mubr.msk.bf16.vlgmr.msra.gmra.mrb[132].mxu0 %vm1871_vm1, %v4511_v37  ;;  %v1545_v37 = vadd.f32 %v15436_v23, %v18698_v0  ;;  %13249 = vpow2.f32 %v11542_v40  ;;  %v1548_v36 = vadd.f32 %v15436_v23, %v18701_v57  ;;  %v18702_v0 = vld [vmem:[#allocation52_spill] sm:$0xff]  ;;  %v11550_v57 = vmul.f32 -1.442695, %v1551_v21  ;;  %v18709_v21 = vld [vmem:[#allocation61_spill] sm:$0xff] }
 0x561   : > { %12347 = vmatpush3.bf16.xpose.msra.mxu0 %v4625_v59  ;;  %12348 = vmatprep.mubr.msk.bf16.mxu0 %vm13839_vm0, %v18655_v1  ;;  %v13240_v59 = vpop.eup %13239  ;;  %13251 = vpow2.f32 %v11543_v55 }
 0x562   : > { %12358 = vmatprep.subr.bf16.mxu0 %v18655_v1  ;;  %v11544_v8 = vmul.f32 -1.442695, %v1545_v37  ;;  %v13242_v38 = vpop.eup %13241  ;;  %v1549_v37 = vadd.f32 %v15436_v23, %v18702_v0  ;;  %v11547_v55 = vmul.f32 -1.442695, %v1548_v36 }
 0x563   : > { %v13244_v52 = vpop.eup %13243 }
 0x564   : > { %12343 = vmatmul.mubr.msk.bf16.vlgmr.msra.gmra.mrb[172].mxu1 %vm1871_vm1, %v4564_v32  ;;  %v5155_v32 = vpop.permute.xlu0 %5154  ;;  %13253 = vpow2.f32 %v11544_v8  ;;  %v1668_v41 = vadd.f32 1.0, %v13244_v52  ;;  %v11548_v8 = vmul.f32 -1.442695, %v1549_v37  ;;  %v18705_v52 = vld [vmem:[#allocation57_spill] sm:$0xff]  ;;  %v18706_v37 = vld [vmem:[#allocation58_spill] sm:$0xff] }
 0x565   : > { %12353 = vmatpush3.bf16.xpose.msra.mxu1 %v4678_v53  ;;  %12354 = vmatprep.mubr.msk.bf16.mxu1 %vm13839_vm0, %v18655_v1  ;;  %13255 = vpow2.f32 %v11545_v14  ;;  %v1667_v53 = vadd.f32 1.0, %v13242_v38 }
 0x566   : > { %12364 = vmatprep.subr.bf16.mxu1 %v18655_v1  ;;  %13257 = vrcp.f32 %v1665_v58 }
 0x567   : > { %13259 = vpow2.f32 %v11546_v24  ;;  %v1552_v24 = vadd.f32 %v15436_v23, %v18705_v52 }
 0x568   : > { %12349 = vmatmul.mubr.msk.bf16.vlgmr.msra.gmra.mrb[136].mxu0 %vm1871_vm1, %v4617_v54  ;;  %v1666_v54 = vadd.f32 1.0, %v13240_v59  ;;  %v13246_v40 = vpop.eup %13245 }
 0x569   : > { %12359 = vmatpush3.bf16.msra.mxu0 %v5155_v32  ;;  %12360 = vmatprep.mubr.msk.bf16.mxu0 %vm13839_vm0, %v18655_v1  ;;  %v13248_v45 = vpop.eup %13247  ;;  %v1669_v32 = vadd.f32 1.0, %v13246_v40  ;;  %v11551_v40 = vmul.f32 -1.442695, %v1552_v24 }
 0x56a   : > { %12370 = vmatprep.subr.bf16.mxu0 %v18655_v1  ;;  %13261 = vrcp.f32 %v1666_v54  ;;  %v13250_v14 = vpop.eup %13249  ;;  %v1670_v59 = vadd.f32 1.0, %v13248_v45 }
 0x56b   : > { %13263 = vrcp.f32 %v1667_v53  ;;  %v13252_v38 = vpop.eup %13251  ;;  %v1553_v53 = vadd.f32 %v15436_v23, %v18706_v37 }
 0x56c   : > { %12355 = vmatmul.mubr.msk.bf16.vlgmr.msra.gmra.mrb[176].mxu1 %vm1871_vm1, %v4670_v61  ;;  %v1550_v61 = vadd.f32 %v15436_v23, %v18703_v2  ;;  %13265 = vrcp.f32 %v1668_v41  ;;  %v1672_v0 = vadd.f32 1.0, %v13252_v38  ;;  %v18707_v41 = vld [vmem:[#allocation60_spill] sm:$0xff] }
 0x56d   : > { %12365 = vmatpush3.bf16.msra.mxu1 %v5203_v5  ;;  %12366 = vmatprep.mubr.msk.bf16.mxu1 %vm13839_vm0, %v18655_v1  ;;  %13267 = vpow2.f32 %v11547_v55  ;;  %v1671_v5 = vadd.f32 1.0, %v13250_v14  ;;  %v1554_v45 = vadd.f32 %v15436_v23, %v18707_v41  ;;  %v11552_v38 = vmul.f32 -1.442695, %v1553_v53 }
 0x56e   : > { %12376 = vmatprep.subr.bf16.mxu1 %v18655_v1  ;;  %v11549_v58 = vmul.f32 -1.442695, %v1550_v61  ;;  %13269 = vpow2.f32 %v11548_v8  ;;  %v13254_v36 = vpop.eup %13253 }
 0x56f   : > { %13271 = vrcp.f32 %v1669_v32  ;;  %v13256_v54 = vpop.eup %13255  ;;  %v1673_v2 = vadd.f32 1.0, %v13254_v36  ;;  %v1555_v32 = vadd.f32 %v15436_v23, %v18709_v21 }
 0x570   : > { %13273 = vrcp.f32 %v1670_v59  ;;  %v15583_v55 = vpop.eup %13257  ;;  %v1674_v20 = vadd.f32 1.0, %v13256_v54 }
 0x571   : > { %13275 = vpow2.f32 %v11549_v58  ;;  %18708 = vst [vmem:[#allocation11_spill] sm:$0xff] %v15583_v55  ;;  %v13260_v8 = vpop.eup %13259  ;;  %v18711_v58 = vld [vmem:[#allocation63_spill] sm:$0xff]  ;;  %v11554_v53 = vmul.f32 -1.442695, %v1555_v32 }
 0x572   : > { %13277 = vpow2.f32 %v11550_v57  ;;  %v1556_v52 = vadd.f32 %v15436_v23, %v18711_v58  ;;  %v11553_v57 = vmul.f32 -1.442695, %v1554_v45  ;;  %v1675_v21 = vadd.f32 1.0, %v13260_v8 }
 0x573   : > { %13279 = vrcp.f32 %v1671_v5 }
 0x574   : > { %v15587_v59 = vpop.eup %13261  ;;  %13281 = vrcp.f32 %v1672_v0  ;;  %v11555_v3 = vmul.f32 -1.442695, %v1556_v52 }
 0x575   : > { %18710 = vst [vmem:[#allocation15_spill] sm:$0xff] %v15587_v59  ;;  %v15591_v37 = vpop.eup %13263  ;;  %13283 = vpow2.f32 %v11551_v40  ;;  %v18714_v40 = vld [vmem:[#allocation64_spill] sm:$0xff] }
 0x576   : > { %18712 = vst [vmem:[#allocation18_spill] sm:$0xff] %v15591_v37  ;;  %v15595_v41 = vpop.eup %13265  ;;  %13285 = vrcp.f32 %v1673_v2  ;;  %v1557_v45 = vadd.f32 %v15436_v23, %v18714_v40 }
 0x577   : > { %18713 = vst [vmem:[#allocation29_spill] sm:$0xff] %v15595_v41  ;;  %v13268_v0 = vpop.eup %13267  ;;  %13287 = vrcp.f32 %v1674_v20 }
 0x578   : > { %v13270_v10 = vpop.eup %13269  ;;  %13289 = vpow2.f32 %v11552_v38  ;;  %v1676_v38 = vadd.f32 1.0, %v13268_v0 }
 0x579   : > { %v3138_v61 = vpop.f32.mrb[116].mxu1  ;;  %13291 = vpow2.f32 %v11553_v57 }
 0x57a   : > { %v12176_v14 = vpop.f32.mrb[117].mxu1  ;;  %v3763_v36 = vmul.f32 %v15583_v55, %v3138_v61  ;;  %v15599_v55 = vpop.eup %13271  ;;  %13293 = vrcp.f32 %v1675_v21 }
 0x57b   : > { %v3141_v24 = vpop.f32.mrb[118].mxu1  ;;  %18715 = vst [vmem:[#allocation31_spill] sm:$0xff] %v15599_v55  ;;  %13295 = vpow2.f32 %v11554_v53 }
 0x57c   : > { %v3764_v5 = vmul.f32 %v15587_v59, %v3141_v24  ;;  %v12177_v54 = vpop.f32.mrb[119].mxu1  ;;  %v18716_v24 = vld [vmem:[#allocation66_spill] sm:$0xff]  ;;  %13297 = vpow2.f32 %v11555_v3  ;;  %v18718_v59 = vld [vmem:[#allocation67_spill] sm:$0xff] }
 0x57d   : > { %v3182_v14 = vpop.f32.mrb[80].mxu0  ;;  %v1558_v2 = vadd.f32 %v15436_v23, %v18716_v24  ;;  %v1677_v54 = vadd.f32 1.0, %v13270_v10  ;;  %v11556_v24 = vmul.f32 -1.442695, %v1557_v45  ;;  %13299 = vrcp.f32 %v1676_v38 }
 0x57e   : > { %v3794_v33 = vpack.c.bf16 %v3764_v5, %v3763_v36  ;;  %v12182_v58 = vpop.f32.mrb[81].mxu0  ;;  %v3765_v8 = vmul.f32 %v15591_v37, %v3182_v14  ;;  %v15606_v36 = vpop.eup %13273 }
 0x57f   : > { %v3185_v61 = vpop.f32.mrb[82].mxu0  ;;  %18717 = vst [vmem:[#allocation32_spill] sm:$0xff] %v15606_v36  ;;  %v13276_v5 = vpop.eup %13275  ;;  %13301 = vrcp.f32 %v1677_v54 }
 0x580   : > { %3810 = vst.msk [vmem:[#allocation3 + $0x8] sm:$0xff] %vm1871_vm1, %v3794_v33  ;;  %v3766_v20 = vmul.f32 %v15595_v41, %v3185_v61  ;;  %v12183_v32 = vpop.f32.mrb[83].mxu0  ;;  %v13278_v40 = vpop.eup %13277  ;;  %v1559_v33 = vadd.f32 %v15436_v23, %v18718_v59  ;;  %v11557_v61 = vmul.f32 -1.442695, %v1558_v2  ;;  %v1678_v3 = vadd.f32 1.0, %v13276_v5 }
 0x581   : > { %v3226_v52 = vpop.f32.mrb[120].mxu1  ;;  %v15610_v37 = vpop.eup %13279  ;;  %v18720_v32 = vld [vmem:[#allocation69_spill] sm:$0xff]  ;;  %13303 = vpow2.f32 %v11556_v24 }
 0x582   : > { %v3795_v58 = vpack.c.bf16 %v3766_v20, %v3765_v8  ;;  %v12188_v57 = vpop.f32.mrb[121].mxu1  ;;  %18719 = vst [vmem:[#allocation34_spill] sm:$0xff] %v15610_v37  ;;  %v1560_v21 = vadd.f32 %v15436_v23, %v18720_v32  ;;  %v3767_v10 = vmul.f32 %v15599_v55, %v3226_v52  ;;  %v15617_v8 = vpop.eup %13281  ;;  %v1679_v20 = vadd.f32 1.0, %v13278_v40 }
 0x583   : > { %v3229_v14 = vpop.f32.mrb[122].mxu1  ;;  %18721 = vst [vmem:[#allocation35_spill] sm:$0xff] %v15617_v8  ;;  %v13284_v59 = vpop.eup %13283  ;;  %v11558_v32 = vmul.f32 -1.442695, %v1559_v33  ;;  %13305 = vpow2.f32 %v11557_v61 }
 0x584   : > { %3811 = vst.msk [vmem:[#allocation3 + $0x10] sm:$0xff] %vm1871_vm1, %v3795_v58  ;;  %v3768_v0 = vmul.f32 %v15606_v36, %v3229_v14  ;;  %v12189_v53 = vpop.f32.mrb[123].mxu1  ;;  %v15619_v41 = vpop.eup %13285  ;;  %v11559_v52 = vmul.f32 -1.442695, %v1560_v21  ;;  %13307 = vrcp.f32 %v1678_v3  ;;  %v1680_v40 = vadd.f32 1.0, %v13284_v59  ;;  %v18758_v36 = vld [vmem:[#allocation85_spill] sm:$0xff] }
 0x585   : > { %v3270_v45 = vpop.f32.mrb[84].mxu0  ;;  %18722 = vst [vmem:[#allocation37_spill] sm:$0xff] %v15619_v41  ;;  %v15621_v15 = vpop.eup %13287  ;;  %13309 = vrcp.f32 %v1679_v20 }
 0x586   : > { %v3796_v57 = vpack.c.bf16 %v3768_v0, %v3767_v10  ;;  %v12194_v2 = vpop.f32.mrb[85].mxu0  ;;  %18723 = vst [vmem:[#allocation38_spill] sm:$0xff] %v15621_v15  ;;  %v3769_v38 = vmul.f32 %v15610_v37, %v3270_v45  ;;  %v13290_v54 = vpop.eup %13289  ;;  %13311 = vpow2.f32 %v11558_v32  ;;  %v18757_v37 = vld [vmem:[#allocation84_spill] sm:$0xff] }
 0x587   : > { %v3273_v58 = vpop.f32.mrb[86].mxu0  ;;  %v13292_v0 = vpop.eup %13291  ;;  %v1681_v2 = vadd.f32 1.0, %v13290_v54  ;;  %13313 = vpow2.f32 %v11559_v52 }
 0x588   : > { %3812 = vst.msk [vmem:[#allocation3 + $0x18] sm:$0xff] %vm1871_vm1, %v3796_v57  ;;  %v3770_v5 = vmul.f32 %v15617_v8, %v3273_v58  ;;  %v12195_v14 = vpop.f32.mrb[87].mxu0  ;;  %v15626_v53 = vpop.eup %13293  ;;  %13315 = vrcp.f32 %v1680_v40  ;;  %v1682_v58 = vadd.f32 1.0, %v13292_v0 }
 0x589   : > { %v3314_v10 = vpop.f32.mrb[124].mxu1  ;;  %18724 = vst [vmem:[#allocation40_spill] sm:$0xff] %v15626_v53  ;;  %v13296_v21 = vpop.eup %13295  ;;  %13317 = vrcp.f32 %v1681_v2 }
 0x58a   : > { %v3797_v24 = vpack.c.bf16 %v3770_v5, %v3769_v38  ;;  %v12200_v33 = vpop.f32.mrb[125].mxu1  ;;  %v3771_v45 = vmul.f32 %v15619_v41, %v3314_v10  ;;  %v13298_v59 = vpop.eup %13297  ;;  %v1683_v52 = vadd.f32 1.0, %v13296_v21  ;;  %13319 = vrcp.f32 %v1682_v58 }
 0x58b   : > { %v3317_v61 = vpop.f32.mrb[126].mxu1  ;;  %v15631_v14 = vpop.eup %13299  ;;  %v1684_v40 = vadd.f32 1.0, %v13298_v59 }
 0x58c   : > { %3813 = vst.msk [vmem:[#allocation3 + $0x20] sm:$0xff] %vm1871_vm1, %v3797_v24  ;;  %v3772_v57 = vmul.f32 %v15621_v15, %v3317_v61  ;;  %v12201_v3 = vpop.f32.mrb[127].mxu1  ;;  %18725 = vst [vmem:[#allocation41_spill] sm:$0xff] %v15631_v14  ;;  %v15633_v33 = vpop.eup %13301  ;;  %13321 = vrcp.f32 %v1683_v52 }
 0x58d   : > { %v3358_v20 = vpop.f32.mrb[88].mxu0  ;;  %18726 = vst [vmem:[#allocation43_spill] sm:$0xff] %v15633_v33  ;;  %v13304_v61 = vpop.eup %13303  ;;  %13323 = vrcp.f32 %v1684_v40 }
 0x58e   : > { %v3798_v38 = vpack.c.bf16 %v3772_v57, %v3771_v45  ;;  %v12206_v5 = vpop.f32.mrb[89].mxu0  ;;  %v3773_v54 = vmul.f32 %v15626_v53, %v3358_v20  ;;  %v13306_v45 = vpop.eup %13305  ;;  %v1685_v21 = vadd.f32 1.0, %v13304_v61 }
 0x58f   : > { %v3361_v32 = vpop.f32.mrb[90].mxu0  ;;  %v15638_v5 = vpop.eup %13307  ;;  %v1686_v59 = vadd.f32 1.0, %v13306_v45 }
 0x590   : > { %3814 = vst.msk [vmem:[#allocation3 + $0x28] sm:$0xff] %vm1871_vm1, %v3798_v38  ;;  %v3774_v10 = vmul.f32 %v15631_v14, %v3361_v32  ;;  %v12207_v24 = vpop.f32.mrb[91].mxu0  ;;  %18727 = vst [vmem:[#allocation44_spill] sm:$0xff] %v15638_v5  ;;  %v15640_v15 = vpop.eup %13309  ;;  %13325 = vrcp.f32 %v1685_v21 }
 0x591   : > { %v3402_v0 = vpop.f32.mrb[128].mxu1  ;;  %18728 = vst [vmem:[#allocation46_spill] sm:$0xff] %v15640_v15  ;;  %v13312_v58 = vpop.eup %13311  ;;  %13327 = vrcp.f32 %v1686_v59 }
 0x592   : > { %v3799_v57 = vpack.c.bf16 %v3774_v10, %v3773_v54  ;;  %v12212_v3 = vpop.f32.mrb[129].mxu1  ;;  %v3775_v2 = vmul.f32 %v15633_v33, %v3402_v0  ;;  %v13314_v54 = vpop.eup %13313  ;;  %v1687_v52 = vadd.f32 1.0, %v13312_v58 }
 0x593   : > { %v3405_v41 = vpop.f32.mrb[130].mxu1  ;;  %v15645_v3 = vpop.eup %13315 }
 0x594   : > { %3815 = vst.msk [vmem:[#allocation3 + $0x30] sm:$0xff] %vm1871_vm1, %v3799_v57  ;;  %v3776_v20 = vmul.f32 %v15638_v5, %v3405_v41  ;;  %v12213_v38 = vpop.f32.mrb[131].mxu1  ;;  %18729 = vst [vmem:[#allocation48_spill] sm:$0xff] %v15645_v3  ;;  %v1688_v57 = vadd.f32 1.0, %v13314_v54  ;;  %v15650_v45 = vpop.eup %13317  ;;  %13329 = vrcp.f32 %v1687_v52 }
 0x595   : > { %v3446_v32 = vpop.f32.mrb[92].mxu0  ;;  %18730 = vst [vmem:[#allocation51_spill] sm:$0xff] %v15650_v45 }
 0x596   : > { %v3800_v10 = vpack.c.bf16 %v3776_v20, %v3775_v2  ;;  %v12218_v24 = vpop.f32.mrb[93].mxu0  ;;  %v3777_v61 = vmul.f32 %v15640_v15, %v3446_v32  ;;  %v15652_v20 = vpop.eup %13319  ;;  %13331 = vrcp.f32 %v1688_v57 }
 0x597   : > { %v3449_v53 = vpop.f32.mrb[94].mxu0  ;;  %18731 = vst [vmem:[#allocation52_spill] sm:$0xff] %v15652_v20  ;;  %v15657_v59 = vpop.eup %13321 }
 0x598   : > { %3816 = vst.msk [vmem:[#allocation3 + $0x38] sm:$0xff] %vm1871_vm1, %v3800_v10  ;;  %v3778_v0 = vmul.f32 %v15645_v3, %v3449_v53  ;;  %v12219_v41 = vpop.f32.mrb[95].mxu0  ;;  %18732 = vst [vmem:[#allocation54_spill] sm:$0xff] %v15657_v59 }
 0x599   : > { %v3490_v40 = vpop.f32.mrb[132].mxu1  ;;  %v15659_v41 = vpop.eup %13323 }
 0x59a   : > { %v3801_v38 = vpack.c.bf16 %v3778_v0, %v3777_v61  ;;  %v12224_v2 = vpop.f32.mrb[133].mxu1  ;;  %v3779_v21 = vmul.f32 %v15650_v45, %v3490_v40  ;;  %18733 = vst [vmem:[#allocation55_spill] sm:$0xff] %v15659_v41  ;;  %v18734_v0 = vld [vmem:[#allocation70_spill] sm:$0xff]  ;;  %v15668_v45 = vpop.eup %13325 }
 0x59b   : > { %v3493_v24 = vpop.f32.mrb[134].mxu1  ;;  %v1561_v2 = vadd.f32 %v15436_v23, %v18734_v0  ;;  %18736 = vst [vmem:[#allocation57_spill] sm:$0xff] %v15668_v45 }
 0x59c   : > { %3817 = vst.msk [vmem:[#allocation3 + $0x40] sm:$0xff] %vm1871_vm1, %v3801_v38  ;;  %v3780_v58 = vmul.f32 %v15652_v20, %v3493_v24  ;;  %v12225_v32 = vpop.f32.mrb[135].mxu1  ;;  %v18735_v24 = vld [vmem:[#allocation72_spill] sm:$0xff] }
 0x59d   : > { %v3534_v53 = vpop.f32.mrb[96].mxu0  ;;  %v1562_v57 = vadd.f32 %v15436_v23, %v18735_v24  ;;  %v11560_v15 = vmul.f32 -1.442695, %v1561_v2 }
 0x59e   : > { %v3802_v54 = vpack.c.bf16 %v3780_v58, %v3779_v21  ;;  %v12230_v10 = vpop.f32.mrb[97].mxu0  ;;  %v3781_v52 = vmul.f32 %v15657_v59, %v3534_v53 }
 0x59f   : > { %v3537_v61 = vpop.f32.mrb[98].mxu0  ;;  %v15670_v10 = vpop.eup %13327  ;;  %v11561_v0 = vmul.f32 -1.442695, %v1562_v57  ;;  %13333 = vpow2.f32 %v11560_v15 }
 0x5a0   : > { %3818 = vst.msk [vmem:[#allocation3 + $0x48] sm:$0xff] %vm1871_vm1, %v3802_v54  ;;  %v3782_v40 = vmul.f32 %v15659_v41, %v3537_v61  ;;  %v12231_v38 = vpop.f32.mrb[99].mxu0  ;;  %18737 = vst [vmem:[#allocation58_spill] sm:$0xff] %v15670_v10  ;;  %v15675_v59 = vpop.eup %13329 }
 0x5a1   : > { %v3578_v32 = vpop.f32.mrb[136].mxu1  ;;  %18738 = vst [vmem:[#allocation60_spill] sm:$0xff] %v15675_v59  ;;  %v15677_v3 = vpop.eup %13331  ;;  %13335 = vpow2.f32 %v11561_v0 }
 0x5a2   : > { %v3803_v21 = vpack.c.bf16 %v3782_v40, %v3781_v52  ;;  %v12236_v58 = vpop.f32.mrb[137].mxu1  ;;  %v3783_v54 = vmul.f32 %v15668_v45, %v3578_v32  ;;  %18739 = vst [vmem:[#allocation61_spill] sm:$0xff] %v15677_v3 }
 0x5a3   : > { %v3581_v20 = vpop.f32.mrb[138].mxu1 }
 0x5a4   : > { %3819 = vst.msk [vmem:[#allocation3 + $0x50] sm:$0xff] %vm1871_vm1, %v3803_v21  ;;  %v3784_v53 = vmul.f32 %v15670_v10, %v3581_v20  ;;  %v12237_v61 = vpop.f32.mrb[139].mxu1  ;;  %v18755_v10 = vld [vmem:[#allocation82_spill] sm:$0xff] }
 0x5a5   : > { %v3622_v38 = vpop.f32.mrb[100].mxu0 }
 0x5a6   : > { %v3804_v24 = vpack.c.bf16 %v3784_v53, %v3783_v54  ;;  %v12242_v41 = vpop.f32.mrb[101].mxu0  ;;  %v3785_v2 = vmul.f32 %v15675_v59, %v3622_v38  ;;  %v18745_v59 = vld [vmem:[#allocation78_spill] sm:$0xff] }
 0x5a7   : > { %v3625_v52 = vpop.f32.mrb[102].mxu0 }
 0x5a8   : > { %3820 = vst.msk [vmem:[#allocation3 + $0x58] sm:$0xff] %vm1871_vm1, %v3804_v24  ;;  %v3786_v40 = vmul.f32 %v15677_v3, %v3625_v52  ;;  %v12243_v32 = vpop.f32.mrb[103].mxu0  ;;  %v18751_v3 = vld [vmem:[#allocation49_spill] sm:$0xff] }
 0x5a9   : > { %v13334_v57 = vpop.eup %13333 }
 0x5aa   : > { %v3805_v20 = vpack.c.bf16 %v3786_v40, %v3785_v2  ;;  %v1689_v58 = vadd.f32 1.0, %v13334_v57  ;;  %v18742_v40 = vld [vmem:[#allocation73_spill] sm:$0xff] }
 0x5ab   : > { %v13336_v21 = vpop.eup %13335  ;;  %v1563_v32 = vadd.f32 %v15436_v23, %v18742_v40 }
 0x5ac   : > { %3821 = vst.msk [vmem:[#allocation3 + $0x60] sm:$0xff] %vm1871_vm1, %v3805_v20  ;;  %v1690_v54 = vadd.f32 1.0, %v13336_v21  ;;  %13337 = vrcp.f32 %v1689_v58  ;;  %v18743_v20 = vld [vmem:[#allocation75_spill] sm:$0xff]  ;;  %v18744_v58 = vld [vmem:[#allocation76_spill] sm:$0xff] }
 0x5ad   : > { %v1564_v57 = vadd.f32 %v15436_v23, %v18743_v20  ;;  %v11562_v21 = vmul.f32 -1.442695, %v1563_v32 }
 0x5ae   : > { %13339 = vrcp.f32 %v1690_v54  ;;  %v1565_v54 = vadd.f32 %v15436_v23, %v18744_v58 }
 0x5af   : > { %13341 = vpow2.f32 %v11562_v21 }
 0x5b6   : > { %v15683_v53 = vpop.eup %13337 }
 0x5b7   : > { %18740 = vst [vmem:[#allocation63_spill] sm:$0xff] %v15683_v53 }
 0x5b8   : > { %v15685_v61 = vpop.eup %13339 }
 0x5b9   : > { %18741 = vst [vmem:[#allocation64_spill] sm:$0xff] %v15685_v61 }
 0x5c2   : > { %v3666_v41 = vpop.f32.mrb[140].mxu1 }
 0x5c3   : > { %v12248_v15 = vpop.f32.mrb[141].mxu1  ;;  %v3787_v24 = vmul.f32 %v15683_v53, %v3666_v41  ;;  %v1566_v41 = vadd.f32 %v15436_v23, %v18745_v59 }
 0x5c4   : > { %v3669_v38 = vpop.f32.mrb[142].mxu1  ;;  %v11563_v15 = vmul.f32 -1.442695, %v1564_v57 }
 0x5c5   : > { %v3788_v0 = vmul.f32 %v15685_v61, %v3669_v38  ;;  %v12249_v52 = vpop.f32.mrb[143].mxu1  ;;  %v11564_v38 = vmul.f32 -1.442695, %v1565_v54 }
 0x5c6   : > { %13343 = vpow2.f32 %v11563_v15 }
 0x5c7   : > { %v3806_v2 = vpack.c.bf16 %v3788_v0, %v3787_v24  ;;  %v11565_v24 = vmul.f32 -1.442695, %v1566_v41  ;;  %13345 = vpow2.f32 %v11564_v38  ;;  %v13342_v0 = vpop.eup %13341 }
 0x5c9   : > { %3822 = vst.msk [vmem:[#allocation3 + $0x68] sm:$0xff] %vm1871_vm1, %v3806_v2  ;;  %13347 = vpow2.f32 %v11565_v24  ;;  %v1691_v2 = vadd.f32 1.0, %v13342_v0 }
 0x5cb   : > { %13349 = vrcp.f32 %v1691_v2 }
 0x5d0   : > { %v13344_v52 = vpop.eup %13343 }
 0x5d1   : > { %v13346_v40 = vpop.eup %13345  ;;  %v1692_v53 = vadd.f32 1.0, %v13344_v52 }
 0x5d2   : > { %v1693_v32 = vadd.f32 1.0, %v13346_v40 }
 0x5d3   : > { %v13348_v20 = vpop.eup %13347  ;;  %13351 = vrcp.f32 %v1692_v53 }
 0x5d4   : > { %v1694_v58 = vadd.f32 1.0, %v13348_v20  ;;  %13353 = vrcp.f32 %v1693_v32 }
 0x5d5   : > { %v15698_v23 = vpop.eup %13349 }
 0x5d6   : > { %13355 = vrcp.f32 %v1694_v58  ;;  %18746 = vst [vmem:[#allocation66_spill] sm:$0xff] %v15698_v23 }
 0x5dd   : > { %v15700_v21 = vpop.eup %13351 }
 0x5de   : > { %18747 = vst [vmem:[#allocation67_spill] sm:$0xff] %v15700_v21  ;;  %v15704_v0 = vpop.eup %13353 }
 0x5df   : > { %18748 = vst [vmem:[#allocation69_spill] sm:$0xff] %v15704_v0 }
 0x5e0   : > { %v15706_v2 = vpop.eup %13355 }
 0x5e1   : > { %18749 = vst [vmem:[#allocation70_spill] sm:$0xff] %v15706_v2 }
 0x5fb   : > { %v3710_v57 = vpop.f32.mrb[104].mxu0 }
 0x5fc   : > { %v12254_v59 = vpop.f32.mrb[105].mxu0  ;;  %v3789_v15 = vmul.f32 %v15698_v23, %v3710_v57 }
 0x5fd   : > { %v3713_v54 = vpop.f32.mrb[106].mxu0 }
 0x5fe   : > { %v3790_v41 = vmul.f32 %v15700_v21, %v3713_v54  ;;  %v12255_v38 = vpop.f32.mrb[107].mxu0  ;;  %v18750_v21 = vld [vmem:[#allocation47_spill] sm:$0xff] }
 0x5ff   : > { %v3754_v24 = vpop.f32.mrb[144].mxu1 }
 0x600   : > { %v3807_v52 = vpack.c.bf16 %v3790_v41, %v3789_v15  ;;  %v12260_v53 = vpop.f32.mrb[145].mxu1  ;;  %v3791_v20 = vmul.f32 %v15704_v0, %v3754_v24 }
 0x601   : > { %v3757_v40 = vpop.f32.mrb[146].mxu1 }
 0x602   : > { %3823 = vst.msk [vmem:[#allocation3 + $0x70] sm:$0xff] %vm1871_vm1, %v3807_v52  ;;  %v3792_v32 = vmul.f32 %v15706_v2, %v3757_v40  ;;  %v12261_v58 = vpop.f32.mrb[147].mxu1 }
 0x603   : > { %v3919_v59 = vpop.f32.mrb[108].mxu0 }
 0x604   : > { %v3808_v57 = vpack.c.bf16 %v3792_v32, %v3791_v20  ;;  %v4721_v23 = vmul.f32 0.17677669, %v3919_v59  ;;  %v12266_v54 = vpop.f32.mrb[109].mxu0  ;;  %v18752_v32 = vld [vmem:[#allocation79_spill] sm:$0xff] }
 0x605   : > { %v3922_v38 = vpop.f32.mrb[110].mxu0 }
 0x606   : > { %3824 = vst.msk [vmem:[#allocation3 + $0x78] sm:$0xff] %vm1871_vm1, %v3808_v57  ;;  %v15713_v15 = vadd.f32 %v18750_v21, %v4721_v23  ;;  %v4722_v41 = vmul.f32 0.17677669, %v3922_v38  ;;  %v12267_v53 = vpop.f32.mrb[111].mxu0  ;;  %v18753_v38 = vld [vmem:[#allocation81_spill] sm:$0xff]  ;;  %v18764_v21 = vld [vmem:[#allocation91_spill] sm:$0xff] }
 0x607   : > { %v3972_v61 = vpop.f32.mrb[148].mxu1 }
 0x608   : > { %v15716_v52 = vadd.f32 %v18751_v3, %v4722_v41  ;;  %v4723_v24 = vmul.f32 0.17677669, %v3972_v61  ;;  %v12272_v0 = vpop.f32.mrb[149].mxu1  ;;  %v4785_v40 = vsel %vm2688_vm2, %v15713_v15, -inf }
 0x609   : > { %4786 = vmax.xlane.f32.xlu0 %v4785_v40  ;;  %v3975_v20 = vpop.f32.mrb[150].mxu1 }
 0x60a   : > { %v15721_v58 = vadd.f32 %v18752_v32, %v4723_v24  ;;  %v4724_v59 = vmul.f32 0.17677669, %v3975_v20  ;;  %v12273_v57 = vpop.f32.mrb[151].mxu1  ;;  %v4788_v23 = vsel %vm2688_vm2, %v15716_v52, -inf  ;;  %v18754_v20 = vld [vmem:[#allocation80_spill] sm:$0xff] }
 0x60b   : > { %4789 = vmax.xlane.f32.xlu1 %v4788_v23  ;;  %v4025_v54 = vpop.f32.mrb[112].mxu0  ;;  %v18762_v32 = vld [vmem:[#allocation88_spill] sm:$0xff] }
 0x60c   : > { %v15726_v41 = vadd.f32 %v18753_v38, %v4724_v59  ;;  %v4725_v61 = vmul.f32 0.17677669, %v4025_v54  ;;  %v12278_v0 = vpop.f32.mrb[113].mxu0  ;;  %v4791_v53 = vsel %vm2688_vm2, %v15721_v58, -inf }
 0x60d   : > { %4792 = vmax.xlane.f32.xlu0 %v4791_v53  ;;  %v4028_v40 = vpop.f32.mrb[114].mxu0 }
 0x60e   : > { %v4726_v2 = vmul.f32 0.17677669, %v4028_v40  ;;  %v12279_v24 = vpop.f32.mrb[115].mxu0  ;;  %v15731_v57 = vadd.f32 %v18754_v20, %v4725_v61  ;;  %v4794_v59 = vsel %vm2688_vm2, %v15726_v41, -inf }
 0x60f   : > { %v4078_v45 = vpop.f32.mrb[152].mxu1  ;;  %v18756_v24 = vld [vmem:[#allocation83_spill] sm:$0xff] }
 0x610   : > { %v15734_v33 = vadd.f32 %v18755_v10, %v4726_v2  ;;  %v4727_v23 = vmul.f32 0.17677669, %v4078_v45  ;;  %v12284_v5 = vpop.f32.mrb[153].mxu1  ;;  %v4797_v8 = vsel %vm2688_vm2, %v15731_v57, -inf  ;;  %v18760_v10 = vld [vmem:[#allocation87_spill] sm:$0xff] }
 0x611   : > { %4795 = vmax.xlane.f32.xlu0 %v4794_v59  ;;  %v4081_v54 = vpop.f32.mrb[154].mxu1 }
 0x612   : > { %v4728_v0 = vmul.f32 0.17677669, %v4081_v54  ;;  %v12285_v14 = vpop.f32.mrb[155].mxu1  ;;  %v4800_v53 = vsel %vm2688_vm2, %v15734_v33, -inf  ;;  %v15741_v61 = vadd.f32 %v18756_v24, %v4727_v23  ;;  %v18759_v24 = vld [vmem:[#allocation86_spill] sm:$0xff] }
 0x613   : > { %4801 = vmax.xlane.f32.xlu1 %v4800_v53  ;;  %v4131_v40 = vpop.f32.mrb[116].mxu0 }
 0x614   : > { %v15744_v2 = vadd.f32 %v18757_v37, %v4728_v0  ;;  %v4729_v45 = vmul.f32 0.17677669, %v4131_v40  ;;  %v12290_v5 = vpop.f32.mrb[117].mxu0  ;;  %v4803_v37 = vsel %vm2688_vm2, %v15741_v61, -inf }
 0x615   : > { %4798 = vmax.xlane.f32.xlu0 %v4797_v8  ;;  %v4134_v59 = vpop.f32.mrb[118].mxu0 }
 0x616   : > { %v4730_v54 = vmul.f32 0.17677669, %v4134_v59  ;;  %v12291_v14 = vpop.f32.mrb[119].mxu0  ;;  %v4806_v55 = vsel %vm2688_vm2, %v15744_v2, -inf  ;;  %v15751_v23 = vadd.f32 %v18758_v36, %v4729_v45  ;;  %v18761_v36 = vld [vmem:[#allocation89_spill] sm:$0xff] }
 0x617   : > { %4807 = vmax.xlane.f32.xlu1 %v4806_v55  ;;  %v4184_v53 = vpop.f32.mrb[156].mxu1 }
 0x618   : > { %v15754_v0 = vadd.f32 %v18759_v24, %v4730_v54  ;;  %v4731_v40 = vmul.f32 0.17677669, %v4184_v53  ;;  %v12296_v5 = vpop.f32.mrb[157].mxu1  ;;  %v4809_v24 = vsel %vm2688_vm2, %v15751_v23, -inf }
 0x619   : > { %4804 = vmax.xlane.f32.xlu0 %v4803_v37  ;;  %v4187_v8 = vpop.f32.mrb[158].mxu1 }
 0x61a   : > { %v4732_v59 = vmul.f32 0.17677669, %v4187_v8  ;;  %v12297_v14 = vpop.f32.mrb[159].mxu1  ;;  %v4812_v20 = vsel %vm2688_vm2, %v15754_v0, -inf  ;;  %v15761_v45 = vadd.f32 %v18760_v10, %v4731_v40  ;;  %v18763_v10 = vld [vmem:[#allocation90_spill] sm:$0xff] }
 0x61b   : > { %4813 = vmax.xlane.f32.xlu1 %v4812_v20  ;;  %v4237_v55 = vpop.f32.mrb[120].mxu0 }
 0x61c   : > { %v15764_v54 = vadd.f32 %v18761_v36, %v4732_v59  ;;  %v4733_v53 = vmul.f32 0.17677669, %v4237_v55  ;;  %v12302_v5 = vpop.f32.mrb[121].mxu0  ;;  %v4815_v36 = vsel %vm2688_vm2, %v15761_v45, -inf }
 0x61d   : > { %4810 = vmax.xlane.f32.xlu0 %v4809_v24  ;;  %v4240_v37 = vpop.f32.mrb[122].mxu0 }
 0x61e   : > { %v4734_v8 = vmul.f32 0.17677669, %v4240_v37  ;;  %v12303_v14 = vpop.f32.mrb[123].mxu0  ;;  %v4818_v38 = vsel %vm2688_vm2, %v15764_v54, -inf  ;;  %v15771_v40 = vadd.f32 %v18762_v32, %v4733_v53  ;;  %v18765_v32 = vld [vmem:[#allocation93_spill] sm:$0xff] }
 0x61f   : > { %4819 = vmax.xlane.f32.xlu1 %v4818_v38  ;;  %v4290_v20 = vpop.f32.mrb[160].mxu1 }
 0x620   : > { %v15774_v59 = vadd.f32 %v18763_v10, %v4734_v8  ;;  %v4735_v55 = vmul.f32 0.17677669, %v4290_v20  ;;  %v12308_v5 = vpop.f32.mrb[161].mxu1  ;;  %v4821_v10 = vsel %vm2688_vm2, %v15771_v40, -inf }
 0x621   : > { %4816 = vmax.xlane.f32.xlu0 %v4815_v36  ;;  %v4293_v24 = vpop.f32.mrb[162].mxu1 }
 0x622   : > { %v4736_v37 = vmul.f32 0.17677669, %v4293_v24  ;;  %v12309_v14 = vpop.f32.mrb[163].mxu1  ;;  %v4824_v3 = vsel %vm2688_vm2, %v15774_v59, -inf  ;;  %v15781_v53 = vadd.f32 %v18764_v21, %v4735_v55  ;;  %v18767_v21 = vld [vmem:[#allocation94_spill] sm:$0xff] }
 0x623   : > { %4825 = vmax.xlane.f32.xlu1 %v4824_v3  ;;  %v4343_v38 = vpop.f32.mrb[124].mxu0 }
 0x624   : > { %v15784_v8 = vadd.f32 %v18765_v32, %v4736_v37  ;;  %v4737_v20 = vmul.f32 0.17677669, %v4343_v38  ;;  %v12314_v5 = vpop.f32.mrb[125].mxu0  ;;  %v4827_v32 = vsel %vm2688_vm2, %v15781_v53, -inf }
 0x625   : > { %4822 = vmax.xlane.f32.xlu0 %v4821_v10  ;;  %v4346_v36 = vpop.f32.mrb[126].mxu0 }
 0x626   : > { %v4738_v24 = vmul.f32 0.17677669, %v4346_v36  ;;  %v12315_v14 = vpop.f32.mrb[127].mxu0  ;;  %v4830_v34 = vsel %vm2688_vm2, %v15784_v8, -inf  ;;  %v15791_v55 = vadd.f32 %v18766_v62, %v4737_v20  ;;  %v18769_v62 = vld [vmem:[#allocation97_spill] sm:$0xff] }
 0x627   : > { %4831 = vmax.xlane.f32.xlu1 %v4830_v34  ;;  %v4396_v3 = vpop.f32.mrb[164].mxu1 }
 0x628   : > { %v15794_v37 = vadd.f32 %v18767_v21, %v4738_v24  ;;  %v4739_v38 = vmul.f32 0.17677669, %v4396_v3  ;;  %v12320_v5 = vpop.f32.mrb[165].mxu1  ;;  %v4833_v21 = vsel %vm2688_vm2, %v15791_v55, -inf }
 0x629   : > { %4828 = vmax.xlane.f32.xlu0 %v4827_v32  ;;  %v4399_v10 = vpop.f32.mrb[166].mxu1 }
 0x62a   : > { %v4740_v36 = vmul.f32 0.17677669, %v4399_v10  ;;  %v12321_v14 = vpop.f32.mrb[167].mxu1  ;;  %v4836_v39 = vsel %vm2688_vm2, %v15794_v37, -inf  ;;  %v15801_v20 = vadd.f32 %v18768_v19, %v4739_v38  ;;  %v18771_v19 = vld [vmem:[#allocation98_spill] sm:$0xff] }
 0x62b   : > { %4837 = vmax.xlane.f32.xlu1 %v4836_v39  ;;  %v4449_v34 = vpop.f32.mrb[128].mxu0 }
 0x62c   : > { %v15804_v24 = vadd.f32 %v18769_v62, %v4740_v36  ;;  %v4741_v3 = vmul.f32 0.17677669, %v4449_v34  ;;  %v12326_v5 = vpop.f32.mrb[129].mxu0  ;;  %v4839_v62 = vsel %vm2688_vm2, %v15801_v20, -inf }
 0x62d   : > { %4834 = vmax.xlane.f32.xlu0 %v4833_v21  ;;  %v4452_v32 = vpop.f32.mrb[130].mxu0 }
 0x62e   : > { %v4742_v10 = vmul.f32 0.17677669, %v4452_v32  ;;  %v12327_v14 = vpop.f32.mrb[131].mxu0  ;;  %v4842_v49 = vsel %vm2688_vm2, %v15804_v24, -inf  ;;  %v15811_v38 = vadd.f32 %v18770_v4, %v4741_v3  ;;  %v18773_v4 = vld [vmem:[#allocation101_spill] sm:$0xff] }
 0x62f   : > { %4843 = vmax.xlane.f32.xlu1 %v4842_v49  ;;  %v4502_v39 = vpop.f32.mrb[168].mxu1 }
 0x630   : > { %v15814_v36 = vadd.f32 %v18771_v19, %v4742_v10  ;;  %v4743_v34 = vmul.f32 0.17677669, %v4502_v39  ;;  %v12332_v5 = vpop.f32.mrb[169].mxu1  ;;  %v4845_v19 = vsel %vm2688_vm2, %v15811_v38, -inf }
 0x631   : > { %4840 = vmax.xlane.f32.xlu0 %v4839_v62  ;;  %v4505_v21 = vpop.f32.mrb[170].mxu1 }
 0x632   : > { %v4744_v32 = vmul.f32 0.17677669, %v4505_v21  ;;  %v12333_v14 = vpop.f32.mrb[171].mxu1  ;;  %v4848_v50 = vsel %vm2688_vm2, %v15814_v36, -inf  ;;  %v15821_v3 = vadd.f32 %v18772_v9, %v4743_v34  ;;  %v18775_v9 = vld [vmem:[#allocation102_spill] sm:$0xff] }
 0x633   : > { %4849 = vmax.xlane.f32.xlu1 %v4848_v50  ;;  %v4555_v49 = vpop.f32.mrb[132].mxu0 }
 0x634   : > { %v15824_v10 = vadd.f32 %v18773_v4, %v4744_v32  ;;  %v4745_v39 = vmul.f32 0.17677669, %v4555_v49  ;;  %v12338_v5 = vpop.f32.mrb[133].mxu0  ;;  %v4851_v4 = vsel %vm2688_vm2, %v15821_v3, -inf }
 0x635   : > { %4846 = vmax.xlane.f32.xlu0 %v4845_v19  ;;  %v4558_v62 = vpop.f32.mrb[134].mxu0 }
 0x636   : > { %v4746_v21 = vmul.f32 0.17677669, %v4558_v62  ;;  %v12339_v14 = vpop.f32.mrb[135].mxu0  ;;  %v4854_v13 = vsel %vm2688_vm2, %v15824_v10, -inf  ;;  %v15831_v34 = vadd.f32 %v18774_v63, %v4745_v39  ;;  %v18777_v63 = vld [vmem:[#allocation104_spill] sm:$0xff] }
 0x637   : > { %4855 = vmax.xlane.f32.xlu1 %v4854_v13  ;;  %v4608_v50 = vpop.f32.mrb[172].mxu1 }
 0x638   : > { %v15834_v32 = vadd.f32 %v18775_v9, %v4746_v21  ;;  %v4747_v49 = vmul.f32 0.17677669, %v4608_v50  ;;  %v12344_v5 = vpop.f32.mrb[173].mxu1  ;;  %v4857_v9 = vsel %vm2688_vm2, %v15831_v34, -inf }
 0x639   : > { %4852 = vmax.xlane.f32.xlu0 %v4851_v4  ;;  %v4611_v19 = vpop.f32.mrb[174].mxu1 }
 0x63a   : > { %v4748_v62 = vmul.f32 0.17677669, %v4611_v19  ;;  %v12345_v14 = vpop.f32.mrb[175].mxu1  ;;  %v4860_v43 = vsel %vm2688_vm2, %v15834_v32, -inf  ;;  %v15841_v39 = vadd.f32 %v18776_v56, %v4747_v49 }
 0x63b   : > { %4861 = vmax.xlane.f32.xlu1 %v4860_v43  ;;  %v4661_v13 = vpop.f32.mrb[136].mxu0 }
 0x63c   : > { %v15844_v21 = vadd.f32 %v18777_v63, %v4748_v62  ;;  %v4749_v50 = vmul.f32 0.17677669, %v4661_v13  ;;  %v12350_v5 = vpop.f32.mrb[137].mxu0  ;;  %v4863_v62 = vsel %vm2688_vm2, %v15841_v39, -inf  ;;  %v18779_v63 = vld [vmem:[#allocation107_spill] sm:$0xff] }
 0x63d   : > { %4858 = vmax.xlane.f32.xlu0 %v4857_v9  ;;  %v4664_v4 = vpop.f32.mrb[138].mxu0 }
 0x63e   : > { %v12351_v19 = vpop.f32.mrb[139].mxu0  ;;  %v4866_v14 = vsel %vm2688_vm2, %v15844_v21, -inf  ;;  %v15851_v28 = vadd.f32 %v18778_v6, %v4749_v50  ;;  %v18780_v50 = vld [vmem:[#allocation106_spill] sm:$0xff] }
 0x63f   : > { %4867 = vmax.xlane.f32.xlu1 %v4866_v14  ;;  %v4714_v43 = vpop.f32.mrb[176].mxu1 }
 0x640   : > { %v4751_v49 = vmul.f32 0.17677669, %v4714_v43  ;;  %v12356_v56 = vpop.f32.mrb[177].mxu1  ;;  %v4869_v19 = vsel %vm2688_vm2, %v15851_v28, -inf }
 0x641   : > { %4864 = vmax.xlane.f32.xlu0 %v4863_v62  ;;  %v4717_v13 = vpop.f32.mrb[178].mxu1  ;;  %v4750_v56 = vmul.f32 0.17677669, %v4664_v4  ;;  %v15869_v62 = vpop.permute.xlu1 %5298 }
 0x642   : > { %v12357_v5 = vpop.f32.mrb[179].mxu1  ;;  %v15856_v9 = vadd.f32 %v18779_v63, %v4751_v49  ;;  %v4752_v49 = vmul.f32 0.17677669, %v4717_v13  ;;  %18781 = vst [vmem:[#allocation72_spill] sm:$0xff] %v15869_v62  ;;  %v15880_v4 = vpop.permute.xlu0 %5250 }
 0x643   : > { %v15867_v43 = vadd.f32 %v18780_v50, %v4750_v56  ;;  %v18782_v5 = vld [vmem:[#allocation108_spill] sm:$0xff] }
 0x644   : > { %v4875_v14 = vsel %vm2688_vm2, %v15856_v9, -inf  ;;  %v15872_v63 = vadd.f32 %v18782_v5, %v4752_v49 }
 0x645   : > { %4870 = vmax.xlane.f32.xlu0 %v4869_v19  ;;  %v4872_v19 = vsel %vm2688_vm2, %v15867_v43, -inf }
 0x646   : > { %v15884_v13 = vpop.permute.xlu0 %5346 }
 0x647   : > { %18785 = vst [vmem:[#allocation76_spill] sm:$0xff] %v15884_v13 }
 0x649   : > { %4876 = vmax.xlane.f32.xlu0 %v4875_v14  ;;  %v15876_v14 = vpop.permute.xlu1 %5394 }
 0x64a   : > { %18783 = vst [vmem:[#allocation73_spill] sm:$0xff] %v15876_v14  ;;  %v15888_v49 = vpop.permute.xlu0 %5442 }
 0x64b   : > { %18787 = vst [vmem:[#allocation109_spill] sm:$0xff] %v15888_v49 }
 0x64d   : > { %v15882_v56 = vpop.permute.xlu1 %5490 }
 0x64e   : > { %18784 = vst [vmem:[#allocation75_spill] sm:$0xff] %v15882_v56 }
 0x650   : > { %5874 = vrot.lane.b32.xlu1 %v18685_v46, %s13840_s14  ;;  %v4878_v46 = vsel %vm2688_vm2, %v15872_v63, -inf }
 0x651   : > { %v15886_v50 = vpop.permute.xlu1 %5586 }
 0x652   : > { %18786 = vst [vmem:[#allocation78_spill] sm:$0xff] %v15886_v50 }
 0x655   : > { %v15890_v5 = vpop.permute.xlu1 %5634 }
 0x656   : > { %18788 = vst [vmem:[#allocation110_spill] sm:$0xff] %v15890_v5 }
 0x65f   : > { %5826 = vrot.lane.b32.xlu0 %v18681_v22, %s13840_s14  ;;  %v15892_v22 = vpop.permute.xlu0 %5538 }
 0x660   : > { %18789 = vst [vmem:[#allocation111_spill] sm:$0xff] %v15892_v22 }
 0x663   : > { %v15896_v6 = vpop.permute.xlu0 %5730 }
 0x664   : > { %18791 = vst [vmem:[#allocation113_spill] sm:$0xff] %v15896_v6 }
 0x674   : > { %4873 = vmax.xlane.f32.xlu1 %v4872_v19  ;;  %v15894_v19 = vpop.permute.xlu1 %5682 }
 0x675   : > { %18790 = vst [vmem:[#allocation112_spill] sm:$0xff] %v15894_v19 }
 0x678   : > { %4879 = vmax.xlane.f32.xlu1 %v4878_v46  ;;  %v15898_v14 = vpop.permute.xlu1 %5778 }
 0x679   : > { %18792 = vst [vmem:[#allocation114_spill] sm:$0xff] %v15898_v14 }
 0x696   : > { %v4787_v46 = vpop.xlane.xlu0 %4786 }
 0x697   : > { %v4881_v62 = vsub.f32 %v15713_v15, %v4787_v46 }
 0x698   : > { %v4790_v56 = vpop.xlane.xlu1 %4789 }
 0x699   : > { %v4913_v47 = vmul.f32 1.442695, %v4881_v62  ;;  %v4882_v13 = vsub.f32 %v15716_v52, %v4790_v56 }
 0x69a   : > { %v4793_v50 = vpop.xlane.xlu0 %4792 }
 0x69b   : > { %13357 = vpow2.f32 %v4913_v47  ;;  %v4915_v49 = vmul.f32 1.442695, %v4882_v13  ;;  %v4883_v5 = vsub.f32 %v15721_v58, %v4793_v50 }
 0x69d   : > { %13359 = vpow2.f32 %v4915_v49  ;;  %v4917_v22 = vmul.f32 1.442695, %v4883_v5 }
 0x69e   : > { %v4796_v44 = vpop.xlane.xlu0 %4795 }
 0x69f   : > { %13361 = vpow2.f32 %v4917_v22  ;;  %v4884_v6 = vsub.f32 %v15726_v41, %v4796_v44 }
 0x6a0   : > { %v4802_v19 = vpop.xlane.xlu1 %4801 }
 0x6a1   : > { %v4919_v14 = vmul.f32 1.442695, %v4884_v6  ;;  %v4886_v1 = vsub.f32 %v15734_v33, %v4802_v19 }
 0x6a2   : > { %v4799_v15 = vpop.xlane.xlu0 %4798 }
 0x6a3   : > { %13363 = vpow2.f32 %v4919_v14  ;;  %v4923_v62 = vmul.f32 1.442695, %v4886_v1  ;;  %v4885_v52 = vsub.f32 %v15731_v57, %v4799_v15 }
 0x6a4   : > { %v4808_v56 = vpop.xlane.xlu1 %4807 }
 0x6a5   : > { %v15906_v47 = vpop.eup %13357  ;;  %13365 = vpow2.f32 %v4923_v62  ;;  %v4921_v58 = vmul.f32 1.442695, %v4885_v52  ;;  %v4888_v50 = vsub.f32 %v15744_v2, %v4808_v56 }
 0x6a6   : > { %v4805_v5 = vpop.xlane.xlu0 %4804  ;;  %v4977_v44 = vsel %vm2688_vm2, %v15906_v47, 0.0 }
 0x6a7   : > { %v15911_v22 = vpop.eup %13359  ;;  %13367 = vpow2.f32 %v4921_v58  ;;  %v4927_v6 = vmul.f32 1.442695, %v4888_v50  ;;  %v4887_v33 = vsub.f32 %v15741_v61, %v4805_v5  ;;  %4978 = vadd.xlane.f32.xlu0 %v4977_v44 }
 0x6a8   : > { %v4814_v1 = vpop.xlane.xlu1 %4813  ;;  %v4980_v41 = vsel %vm2688_vm2, %v15911_v22, 0.0 }
 0x6a9   : > { %v15916_v57 = vpop.eup %13361  ;;  %13369 = vpow2.f32 %v4927_v6  ;;  %v4925_v14 = vmul.f32 1.442695, %v4887_v33  ;;  %v4890_v2 = vsub.f32 %v15754_v0, %v4814_v1  ;;  %4981 = vadd.xlane.f32.xlu1 %v4980_v41 }
 0x6aa   : > { %v4811_v13 = vpop.xlane.xlu0 %4810  ;;  %v4983_v49 = vsel %vm2688_vm2, %v15916_v57, 0.0 }
 0x6ab   : > { %13371 = vpow2.f32 %v4925_v14  ;;  %v4931_v19 = vmul.f32 1.442695, %v4890_v2  ;;  %v4889_v61 = vsub.f32 %v15751_v23, %v4811_v13  ;;  %4984 = vadd.xlane.f32.xlu0 %v4983_v49 }
 0x6ac   : > { %v4820_v46 = vpop.xlane.xlu1 %4819 }
 0x6ad   : > { %v15922_v15 = vpop.eup %13363  ;;  %13373 = vpow2.f32 %v4931_v19  ;;  %v4929_v62 = vmul.f32 1.442695, %v4889_v61  ;;  %v4892_v52 = vsub.f32 %v15764_v54, %v4820_v46 }
 0x6ae   : > { %v4817_v56 = vpop.xlane.xlu0 %4816  ;;  %v4986_v0 = vsel %vm2688_vm2, %v15922_v15, 0.0 }
 0x6af   : > { %v15927_v58 = vpop.eup %13365  ;;  %13375 = vpow2.f32 %v4929_v62  ;;  %v4935_v50 = vmul.f32 1.442695, %v4892_v52  ;;  %v4891_v5 = vsub.f32 %v15761_v45, %v4817_v56  ;;  %4987 = vadd.xlane.f32.xlu1 %v4986_v0 }
 0x6b0   : > { %v4826_v23 = vpop.xlane.xlu1 %4825  ;;  %v4992_v54 = vsel %vm2688_vm2, %v15927_v58, 0.0 }
 0x6b1   : > { %v15930_v44 = vpop.eup %13367  ;;  %13377 = vpow2.f32 %v4935_v50  ;;  %v4933_v6 = vmul.f32 1.442695, %v4891_v5  ;;  %v4894_v33 = vsub.f32 %v15774_v59, %v4826_v23 }
 0x6b2   : > { %v4823_v1 = vpop.xlane.xlu0 %4822  ;;  %v4989_v41 = vsel %vm2688_vm2, %v15930_v44, 0.0 }
 0x6b3   : > { %v15937_v14 = vpop.eup %13369  ;;  %13379 = vpow2.f32 %v4933_v6  ;;  %v4939_v2 = vmul.f32 1.442695, %v4894_v33  ;;  %v4893_v45 = vsub.f32 %v15771_v40, %v4823_v1  ;;  %4993 = vadd.xlane.f32.xlu1 %v4992_v54  ;;  %4990 = vadd.xlane.f32.xlu0 %v4989_v41 }
 0x6b4   : > { %v4832_v13 = vpop.xlane.xlu1 %4831  ;;  %v4998_v46 = vsel %vm2688_vm2, %v15937_v14, 0.0 }
 0x6b5   : > { %v15940_v49 = vpop.eup %13371  ;;  %13381 = vpow2.f32 %v4939_v2  ;;  %v4937_v59 = vmul.f32 1.442695, %v4893_v45  ;;  %v4896_v19 = vsub.f32 %v15784_v8, %v4832_v13 }
 0x6b6   : > { %v4829_v61 = vpop.xlane.xlu0 %4828  ;;  %v4995_v62 = vsel %vm2688_vm2, %v15940_v49, 0.0 }
 0x6b7   : > { %v15947_v52 = vpop.eup %13373  ;;  %13383 = vpow2.f32 %v4937_v59  ;;  %v4943_v40 = vmul.f32 1.442695, %v4896_v19  ;;  %v4895_v56 = vsub.f32 %v15781_v53, %v4829_v61  ;;  %4999 = vadd.xlane.f32.xlu1 %v4998_v46  ;;  %4996 = vadd.xlane.f32.xlu0 %v4995_v62 }
 0x6b8   : > { %v4838_v0 = vpop.xlane.xlu1 %4837  ;;  %v5004_v23 = vsel %vm2688_vm2, %v15947_v52, 0.0 }
 0x6b9   : > { %v15950_v50 = vpop.eup %13375  ;;  %13385 = vpow2.f32 %v4943_v40  ;;  %v4941_v8 = vmul.f32 1.442695, %v4895_v56  ;;  %v4898_v41 = vsub.f32 %v15794_v37, %v4838_v0 }
 0x6ba   : > { %v4835_v5 = vpop.xlane.xlu0 %4834  ;;  %v5001_v6 = vsel %vm2688_vm2, %v15950_v50, 0.0 }
 0x6bb   : > { %v15956_v33 = vpop.eup %13377  ;;  %13387 = vpow2.f32 %v4941_v8  ;;  %v4897_v1 = vsub.f32 %v15791_v55, %v4835_v5  ;;  %5005 = vadd.xlane.f32.xlu1 %v5004_v23  ;;  %5002 = vadd.xlane.f32.xlu0 %v5001_v6  ;;  %v4947_v40 = vmul.f32 1.442695, %v4898_v41 }
 0x6bc   : > { %v4844_v53 = vpop.xlane.xlu1 %4843  ;;  %v5010_v59 = vsel %vm2688_vm2, %v15956_v33, 0.0 }
 0x6bd   : > { %v15959_v54 = vpop.eup %13379  ;;  %v4945_v2 = vmul.f32 1.442695, %v4897_v1  ;;  %v4900_v45 = vsub.f32 %v15804_v24, %v4844_v53 }
 0x6be   : > { %v4841_v13 = vpop.xlane.xlu0 %4840  ;;  %v5007_v19 = vsel %vm2688_vm2, %v15959_v54, 0.0 }
 0x6bf   : > { %v15967_v61 = vpop.eup %13381  ;;  %13389 = vpow2.f32 %v4945_v2  ;;  %v4951_v55 = vmul.f32 1.442695, %v4900_v45  ;;  %v4899_v46 = vsub.f32 %v15801_v20, %v4841_v13  ;;  %5011 = vadd.xlane.f32.xlu1 %v5010_v59  ;;  %5008 = vadd.xlane.f32.xlu0 %v5007_v19 }
 0x6c0   : > { %v4850_v62 = vpop.xlane.xlu1 %4849  ;;  %v5016_v0 = vsel %vm2688_vm2, %v15967_v61, 0.0 }
 0x6c1   : > { %v15970_v37 = vpop.eup %13383  ;;  %13391 = vpow2.f32 %v4951_v55  ;;  %v4949_v24 = vmul.f32 1.442695, %v4899_v46  ;;  %v4902_v1 = vsub.f32 %v15814_v36, %v4850_v62 }
 0x6c2   : > { %v4847_v56 = vpop.xlane.xlu0 %4846  ;;  %v5013_v8 = vsel %vm2688_vm2, %v15970_v37, 0.0 }
 0x6c3   : > { %v15976_v5 = vpop.eup %13385  ;;  %13393 = vpow2.f32 %v4949_v24  ;;  %v4901_v20 = vsub.f32 %v15811_v38, %v4847_v56  ;;  %5017 = vadd.xlane.f32.xlu1 %v5016_v0  ;;  %5014 = vadd.xlane.f32.xlu0 %v5013_v8  ;;  %v4955_v36 = vmul.f32 1.442695, %v4902_v1 }
 0x6c4   : > { %v4856_v23 = vpop.xlane.xlu1 %4855  ;;  %13395 = vpow2.f32 %v4947_v40  ;;  %v5022_v45 = vsel %vm2688_vm2, %v15976_v5, 0.0 }
 0x6c5   : > { %v15979_v6 = vpop.eup %13387  ;;  %v4953_v53 = vmul.f32 1.442695, %v4901_v20  ;;  %v4904_v41 = vsub.f32 %v15824_v10, %v4856_v23 }
 0x6c6   : > { %v4853_v2 = vpop.xlane.xlu0 %4852  ;;  %v5019_v13 = vsel %vm2688_vm2, %v15979_v6, 0.0 }
 0x6c7   : > { %13397 = vpow2.f32 %v4953_v53  ;;  %v4959_v38 = vmul.f32 1.442695, %v4904_v41  ;;  %v4903_v59 = vsub.f32 %v15821_v3, %v4853_v2  ;;  %5023 = vadd.xlane.f32.xlu1 %v5022_v45  ;;  %5020 = vadd.xlane.f32.xlu0 %v5019_v13 }
 0x6c8   : > { %v4862_v19 = vpop.xlane.xlu1 %4861 }
 0x6c9   : > { %v15988_v55 = vpop.eup %13389  ;;  %13399 = vpow2.f32 %v4959_v38  ;;  %v4957_v46 = vmul.f32 1.442695, %v4903_v59  ;;  %v4906_v0 = vsub.f32 %v15834_v32, %v4862_v19 }
 0x6ca   : > { %v4859_v10 = vpop.xlane.xlu0 %4858  ;;  %v5025_v62 = vsel %vm2688_vm2, %v15988_v55, 0.0 }
 0x6cb   : > { %v15992_v40 = vpop.eup %13391  ;;  %13401 = vpow2.f32 %v4957_v46  ;;  %v4905_v24 = vsub.f32 %v15831_v34, %v4859_v10  ;;  %5026 = vadd.xlane.f32.xlu1 %v5025_v62  ;;  %v4963_v32 = vmul.f32 1.442695, %v4906_v0 }
 0x6cc   : > { %v4868_v56 = vpop.xlane.xlu1 %4867  ;;  %13403 = vpow2.f32 %v4955_v36  ;;  %v5034_v1 = vsel %vm2688_vm2, %v15992_v40, 0.0 }
 0x6cd   : > { %v15995_v3 = vpop.eup %13393  ;;  %v4961_v8 = vmul.f32 1.442695, %v4905_v24  ;;  %v4908_v20 = vsub.f32 %v15844_v21, %v4868_v56 }
 0x6ce   : > { %v4865_v23 = vpop.xlane.xlu0 %4864  ;;  %v5031_v53 = vsel %vm2688_vm2, %v15995_v3, 0.0  ;;  %v16003_v41 = vpop.eup %13395 }
 0x6cf   : > { %13405 = vpow2.f32 %v4961_v8  ;;  %v4967_v34 = vmul.f32 1.442695, %v4908_v20  ;;  %v4907_v2 = vsub.f32 %v15841_v39, %v4865_v23  ;;  %5035 = vadd.xlane.f32.xlu1 %v5034_v1  ;;  %5032 = vadd.xlane.f32.xlu0 %v5031_v53  ;;  %v5028_v38 = vsel %vm2688_vm2, %v16003_v41, 0.0 }
 0x6d1   : > { %v16006_v45 = vpop.eup %13397  ;;  %13407 = vpow2.f32 %v4967_v34  ;;  %v4965_v21 = vmul.f32 1.442695, %v4907_v2 }
 0x6d2   : > { %v4871_v13 = vpop.xlane.xlu0 %4870  ;;  %v5037_v59 = vsel %vm2688_vm2, %v16006_v45, 0.0 }
 0x6d3   : > { %v16012_v19 = vpop.eup %13399  ;;  %13409 = vpow2.f32 %v4965_v21  ;;  %v4909_v36 = vsub.f32 %v15851_v28, %v4871_v13  ;;  %5029 = vadd.xlane.f32.xlu0 %v5028_v38  ;;  %5038 = vadd.xlane.f32.xlu1 %v5037_v59 }
 0x6d4   : > { %13411 = vpow2.f32 %v4963_v32  ;;  %v5046_v62 = vsel %vm2688_vm2, %v16012_v19, 0.0 }
 0x6d5   : > { %v16015_v39 = vpop.eup %13401  ;;  %v4969_v46 = vmul.f32 1.442695, %v4909_v36  ;;  %v16052_v36 = vpop.permute.xlu1 %5874 }
 0x6d6   : > { %v4877_v10 = vpop.xlane.xlu0 %4876  ;;  %v5043_v24 = vsel %vm2688_vm2, %v16015_v39, 0.0  ;;  %v16021_v56 = vpop.eup %13403 }
 0x6d7   : > { %13413 = vpow2.f32 %v4969_v46  ;;  %v4911_v0 = vsub.f32 %v15856_v9, %v4877_v10  ;;  %5047 = vadd.xlane.f32.xlu1 %v5046_v62  ;;  %5044 = vadd.xlane.f32.xlu0 %v5043_v24  ;;  %v5040_v20 = vsel %vm2688_vm2, %v16021_v56, 0.0 }
 0x6d9   : > { %v16024_v28 = vpop.eup %13405  ;;  %v4973_v8 = vmul.f32 1.442695, %v4911_v0 }
 0x6da   : > { %v5049_v23 = vsel %vm2688_vm2, %v16024_v28, 0.0 }
 0x6db   : > { %v16030_v1 = vpop.eup %13407  ;;  %13415 = vpow2.f32 %v4973_v8  ;;  %5041 = vadd.xlane.f32.xlu0 %v5040_v20  ;;  %5050 = vadd.xlane.f32.xlu1 %v5049_v23 }
 0x6dc   : > { %v5058_v9 = vsel %vm2688_vm2, %v16030_v1, 0.0 }
 0x6dd   : > { %v16032_v53 = vpop.eup %13409 }
 0x6de   : > { %v5055_v34 = vsel %vm2688_vm2, %v16032_v53, 0.0  ;;  %v16038_v2 = vpop.eup %13411 }
 0x6df   : > { %5059 = vadd.xlane.f32.xlu1 %v5058_v9  ;;  %5056 = vadd.xlane.f32.xlu0 %v5055_v34  ;;  %v5052_v21 = vsel %vm2688_vm2, %v16038_v2, 0.0 }
 0x6e1   : > { %v16040_v32 = vpop.eup %13413 }
 0x6e2   : > { %v5061_v13 = vsel %vm2688_vm2, %v16040_v32, 0.0 }
 0x6e3   : > { %5053 = vadd.xlane.f32.xlu0 %v5052_v21  ;;  %5062 = vadd.xlane.f32.xlu1 %v5061_v13 }
 0x6e5   : > { %v16046_v38 = vpop.eup %13415 }
 0x6e6   : > { %v5067_v59 = vsel %vm2688_vm2, %v16046_v38, 0.0 }
 0x6e7   : > { %5068 = vadd.xlane.f32.xlu0 %v5067_v59 }
 0x6f4   : > { %6283 = vrot.lane.b32.xlu1 %v14519_v35, %s13841_s24 }
 0x701   : > { %v4874_v46 = vpop.xlane.xlu1 %4873 }
 0x702   : > { %v4910_v10 = vsub.f32 %v15867_v43, %v4874_v46 }
 0x704   : > { %v4971_v62 = vmul.f32 1.442695, %v4910_v10 }
 0x705   : > { %v4880_v24 = vpop.xlane.xlu1 %4879 }
 0x706   : > { %13417 = vpow2.f32 %v4971_v62  ;;  %v4912_v0 = vsub.f32 %v15872_v63, %v4880_v24  ;;  %v16072_v63 = vpop.permute.xlu0 %5826 }
 0x708   : > { %v4975_v8 = vmul.f32 1.442695, %v4912_v0 }
 0x70a   : > { %13419 = vpow2.f32 %v4975_v8 }
 0x710   : > { %v16056_v20 = vpop.eup %13417 }
 0x711   : > { %v5064_v23 = vsel %vm2688_vm2, %v16056_v20, 0.0 }
 0x712   : > { %5065 = vadd.xlane.f32.xlu0 %v5064_v23 }
 0x714   : > { %v16060_v9 = vpop.eup %13419 }
 0x715   : > { %v5070_v34 = vsel %vm2688_vm2, %v16060_v9, 0.0 }
 0x718   : > { %5071 = vadd.xlane.f32.xlu1 %v5070_v34 }
 0x728   : > { %6230 = vrot.lane.b32.xlu0 %v14510_v17, %s13841_s24 }
 0x729   : > { %6336 = vrot.lane.b32.xlu1 %v14532_v31, %s13841_s24 }
 0x72c   : > { %6227 = vrot.lane.b32.xlu0 %v14508_v26, %s13841_s24 }
 0x72d   : > { %6389 = vrot.lane.b32.xlu1 %v14541_v18, %s13841_s24 }
 0x730   : > { %6280 = vrot.lane.b32.xlu0 %v14517_v51, %s13841_s24 }
 0x731   : > { %6442 = vrot.lane.b32.xlu1 %v18657_v42, %s13841_s24 }
 0x734   : > { %6333 = vrot.lane.b32.xlu0 %v14530_v60, %s13841_s24  ;;  %v4979_v43 = vpop.xlane.xlu0 %4978 }
 0x735   : > { %13421 = vrcp.f32 %v4979_v43  ;;  %6495 = vrot.lane.b32.xlu1 %v18660_v16, %s13841_s24 }
 0x736   : > { %v4982_v21 = vpop.xlane.xlu1 %4981 }
 0x737   : > { %13423 = vrcp.f32 %v4982_v21 }
 0x738   : > { %6386 = vrot.lane.b32.xlu0 %v14539_v27, %s13841_s24  ;;  %v4985_v13 = vpop.xlane.xlu0 %4984 }
 0x739   : > { %6548 = vrot.lane.b32.xlu1 %v18663_v25, %s13841_s24  ;;  %13425 = vrcp.f32 %v4985_v13 }
 0x73c   : > { %v4988_v59 = vpop.xlane.xlu1 %4987  ;;  %6439 = vrot.lane.b32.xlu0 %v14549_v12, %s13841_s24 }
 0x73d   : > { %13427 = vrcp.f32 %v4988_v59  ;;  %6601 = vrot.lane.b32.xlu1 %v18666_v30, %s13841_s24 }
 0x73f   : > { %v13422_v46 = vpop.eup %13421 }
 0x740   : > { %v4994_v10 = vpop.xlane.xlu1 %4993  ;;  %6492 = vrot.lane.b32.xlu0 %v14558_v11, %s13841_s24  ;;  %v4991_v62 = vpop.xlane.xlu0 %4990  ;;  %v5105_v0 = vmul.f32 %v13422_v46, %v15906_v47  ;;  %v18793_v47 = vmov 0.0  }
 0x741   : > { %v13424_v24 = vpop.eup %13423  ;;  %13429 = vrcp.f32 %v4994_v10  ;;  %6654 = vrot.lane.b32.xlu1 %v18668_v48, %s13841_s24  ;;  %v18794_v10 = vld [vmem:[#allocation13_spill] sm:$0xff] }
 0x742   : > { %v5106_v8 = vmul.f32 %v13424_v24, %v15911_v22  ;;  %13431 = vrcp.f32 %v4991_v62  ;;  %v18795_v24 = vld [vmem:[#allocation22_spill] sm:$0xff] }
 0x743   : > { %v13426_v21 = vpop.eup %13425 }
 0x744   : > { %v5000_v23 = vpop.xlane.xlu1 %4999  ;;  %6545 = vrot.lane.b32.xlu0 %v14568_v29, %s13841_s24  ;;  %v4997_v34 = vpop.xlane.xlu0 %4996  ;;  %v5137_v43 = vpack.c.bf16 %v5106_v8, %v5105_v0  ;;  %v5107_v22 = vmul.f32 %v13426_v21, %v15916_v57  ;;  %v18797_v21 = vld [vmem:[#allocation72_spill] sm:$0xff] }
 0x745   : > { %13433 = vrcp.f32 %v5000_v23  ;;  %6707 = vrot.lane.b32.xlu1 %v18670_v7, %s13841_s24 }
 0x746   : > { %13435 = vrcp.f32 %v4997_v34  ;;  %12361 = vmatmul.mubr.msk.bf16.vlgmr.msra.gmra.mrb[140].mxu0 %vm2688_vm2, %v5137_v43 }
 0x747   : > { %v13428_v13 = vpop.eup %13427  ;;  %12371 = vmatpush3.bf16.msra.mxu0 %v15880_v4  ;;  %12372 = vmatprep.mubr.msk.bf16.mxu0 %vm13839_vm0, %v18793_v47 }
 0x748   : > { %v5108_v59 = vmul.f32 %v13428_v13, %v15922_v15  ;;  %v5006_v46 = vpop.xlane.xlu1 %5005  ;;  %6598 = vrot.lane.b32.xlu0 %v18794_v10, %s13841_s24  ;;  %v5003_v62 = vpop.xlane.xlu0 %5002  ;;  %12382 = vmatprep.subr.bf16.mxu0 %v18793_v47  ;;  %v18796_v15 = vld [vmem:[#allocation17_spill] sm:$0xff]  ;;  %v18798_v13 = vld [vmem:[#allocation12_spill] sm:$0xff] }
 0x749   : > { %13437 = vrcp.f32 %v5006_v46  ;;  %6760 = vrot.lane.b32.xlu1 %v18795_v24, %s13841_s24 }
 0x74a   : > { %13439 = vrcp.f32 %v5003_v62  ;;  %v5138_v4 = vpack.c.bf16 %v5108_v59, %v5107_v22 }
 0x74b   : > { %v13430_v0 = vpop.eup %13429 }
 0x74c   : > { %v13432_v8 = vpop.eup %13431  ;;  %v5110_v23 = vmul.f32 %v13430_v0, %v15927_v58  ;;  %v5012_v57 = vpop.xlane.xlu1 %5011  ;;  %6651 = vrot.lane.b32.xlu0 %v18796_v15, %s13841_s24  ;;  %12367 = vmatmul.mubr.msk.bf16.vlgmr.msra.gmra.mrb[180].mxu1 %vm2688_vm2, %v5138_v4 }
 0x74d   : > { %v5009_v34 = vpop.xlane.xlu0 %5008  ;;  %v5109_v43 = vmul.f32 %v13432_v8, %v15930_v44  ;;  %13441 = vrcp.f32 %v5012_v57  ;;  %12377 = vmatpush3.bf16.msra.mxu1 %v18797_v21  ;;  %6813 = vrot.lane.b32.xlu1 %v18798_v13, %s13841_s24  ;;  %v18799_v44 = vld [vmem:[#allocation19_spill] sm:$0xff]  ;;  %v18800_v8 = vld [vmem:[#allocation16_spill] sm:$0xff]  ;;  %v18802_v21 = vld [vmem:[#allocation21_spill] sm:$0xff] }
 0x74e   : > { %13443 = vrcp.f32 %v5009_v34  ;;  %12378 = vmatprep.mubr.msk.bf16.mxu1 %vm13839_vm0, %v18793_v47  ;;  %12388 = vmatprep.subr.bf16.mxu1 %v18793_v47  ;;  %v18801_v57 = vld [vmem:[#allocation76_spill] sm:$0xff] }
 0x74f   : > { %v13434_v58 = vpop.eup %13433  ;;  %v5139_v22 = vpack.c.bf16 %v5110_v23, %v5109_v43 }
 0x750   : > { %v13436_v59 = vpop.eup %13435  ;;  %v5112_v46 = vmul.f32 %v13434_v58, %v15937_v14  ;;  %v5018_v62 = vpop.xlane.xlu1 %5017  ;;  %6704 = vrot.lane.b32.xlu0 %v18799_v44, %s13841_s24 }
 0x751   : > { %v5015_v4 = vpop.xlane.xlu0 %5014  ;;  %v5111_v0 = vmul.f32 %v13436_v59, %v15940_v49  ;;  %13445 = vrcp.f32 %v5018_v62  ;;  %12373 = vmatmul.mubr.msk.bf16.vlgmr.msra.gmra.mrb[144].mxu0 %vm2688_vm2, %v5139_v22  ;;  %6866 = vrot.lane.b32.xlu1 %v18800_v8, %s13841_s24  ;;  %v18803_v59 = vld [vmem:[#allocation24_spill] sm:$0xff]  ;;  %v18804_v62 = vld [vmem:[#allocation73_spill] sm:$0xff] }
 0x752   : > { %12383 = vmatpush3.bf16.msra.mxu0 %v18801_v57  ;;  %13447 = vrcp.f32 %v5015_v4  ;;  %12384 = vmatprep.mubr.msk.bf16.mxu0 %vm13839_vm0, %v18793_v47  ;;  %v18805_v57 = vld [vmem:[#allocation10_spill] sm:$0xff] }
 0x753   : > { %v13438_v14 = vpop.eup %13437  ;;  %v5140_v23 = vpack.c.bf16 %v5112_v46, %v5111_v0  ;;  %12394 = vmatprep.subr.bf16.mxu0 %v18793_v47 }
 0x754   : > { %v13440_v34 = vpop.eup %13439  ;;  %v5114_v43 = vmul.f32 %v13438_v14, %v15947_v52  ;;  %v5024_v49 = vpop.xlane.xlu1 %5023  ;;  %6757 = vrot.lane.b32.xlu0 %v18802_v21, %s13841_s24 }
 0x755   : > { %v5021_v58 = vpop.xlane.xlu0 %5020  ;;  %v5113_v22 = vmul.f32 %v13440_v34, %v15950_v50  ;;  %13449 = vrcp.f32 %v5024_v49  ;;  %12379 = vmatmul.mubr.msk.bf16.vlgmr.msra.gmra.mrb[184].mxu1 %vm2688_vm2, %v5140_v23  ;;  %6919 = vrot.lane.b32.xlu1 %v18803_v59, %s13841_s24  ;;  %v18806_v23 = vld [vmem:[#allocation26_spill] sm:$0xff]  ;;  %v18807_v34 = vld [vmem:[#allocation109_spill] sm:$0xff]  ;;  %v18891_v59 = vld [vmem:[#allocation100_spill] sm:$0xff] }
 0x756   : > { %12389 = vmatpush3.bf16.msra.mxu1 %v18804_v62  ;;  %13451 = vrcp.f32 %v5021_v58  ;;  %12390 = vmatprep.mubr.msk.bf16.mxu1 %vm13839_vm0, %v18793_v47 }
 0x757   : > { %v13442_v52 = vpop.eup %13441  ;;  %v5141_v46 = vpack.c.bf16 %v5114_v43, %v5113_v22  ;;  %12400 = vmatprep.subr.bf16.mxu1 %v18793_v47 }
 0x758   : > { %v13444_v4 = vpop.eup %13443  ;;  %v5116_v0 = vmul.f32 %v13442_v52, %v15956_v33  ;;  %v5027_v50 = vpop.xlane.xlu1 %5026  ;;  %6810 = vrot.lane.b32.xlu0 %v18805_v57, %s13841_s24 }
 0x759   : > { %v5115_v14 = vmul.f32 %v13444_v4, %v15959_v54  ;;  %12385 = vmatmul.mubr.msk.bf16.vlgmr.msra.gmra.mrb[148].mxu0 %vm2688_vm2, %v5141_v46  ;;  %6972 = vrot.lane.b32.xlu1 %v18806_v23, %s13841_s24  ;;  %v18808_v54 = vld [vmem:[#allocation14_spill] sm:$0xff]  ;;  %v18809_v46 = vld [vmem:[#allocation28_spill] sm:$0xff]  ;;  %v18810_v4 = vld [vmem:[#allocation75_spill] sm:$0xff] }
 0x75a   : > { %12395 = vmatpush3.bf16.msra.mxu0 %v18807_v34  ;;  %12396 = vmatprep.mubr.msk.bf16.mxu0 %vm13839_vm0, %v18793_v47 }
 0x75b   : > { %v13446_v43 = vpop.eup %13445  ;;  %v5142_v49 = vpack.c.bf16 %v5116_v0, %v5115_v14  ;;  %12406 = vmatprep.subr.bf16.mxu0 %v18793_v47 }
 0x75c   : > { %v13448_v33 = vpop.eup %13447  ;;  %v5118_v58 = vmul.f32 %v13446_v43, %v15967_v61  ;;  %v5036_v22 = vpop.xlane.xlu1 %5035  ;;  %6863 = vrot.lane.b32.xlu0 %v18808_v54, %s13841_s24  ;;  %v18811_v43 = vld [vmem:[#allocation23_spill] sm:$0xff] }
 0x75d   : > { %v5033_v62 = vpop.xlane.xlu0 %5032  ;;  %v5117_v52 = vmul.f32 %v13448_v33, %v15970_v37  ;;  %13453 = vrcp.f32 %v5036_v22  ;;  %12391 = vmatmul.mubr.msk.bf16.vlgmr.msra.gmra.mrb[188].mxu1 %vm2688_vm2, %v5142_v49  ;;  %7025 = vrot.lane.b32.xlu1 %v18809_v46, %s13841_s24  ;;  %v18812_v22 = vld [vmem:[#allocation27_spill] sm:$0xff] }
 0x75e   : > { %12401 = vmatpush3.bf16.msra.mxu1 %v18810_v4  ;;  %13455 = vrcp.f32 %v5033_v62  ;;  %12402 = vmatprep.mubr.msk.bf16.mxu1 %vm13839_vm0, %v18793_v47  ;;  %v18813_v62 = vld [vmem:[#allocation111_spill] sm:$0xff]  ;;  %v18816_v4 = vld [vmem:[#allocation78_spill] sm:$0xff] }
 0x75f   : > { %v13450_v61 = vpop.eup %13449  ;;  %v5143_v0 = vpack.c.bf16 %v5118_v58, %v5117_v52  ;;  %12412 = vmatprep.subr.bf16.mxu1 %v18793_v47  ;;  %13457 = vrcp.f32 %v5027_v50  ;;  %v18814_v58 = vld [vmem:[#allocation25_spill] sm:$0xff] }
 0x760   : > { %v13452_v14 = vpop.eup %13451  ;;  %v5120_v34 = vmul.f32 %v13450_v61, %v15976_v5  ;;  %v5039_v37 = vpop.xlane.xlu1 %5038  ;;  %6916 = vrot.lane.b32.xlu0 %v18811_v43, %s13841_s24 }
 0x761   : > { %v5030_v49 = vpop.xlane.xlu0 %5029  ;;  %v5119_v33 = vmul.f32 %v13452_v14, %v15979_v6  ;;  %12397 = vmatmul.mubr.msk.bf16.vlgmr.msra.gmra.mrb[152].mxu0 %vm2688_vm2, %v5143_v0  ;;  %7022 = vrot.lane.b32.xlu1 %v18812_v22, %s13841_s24  ;;  %v18815_v6 = vld [vmem:[#allocation33_spill] sm:$0xff]  ;;  %v18884_v22 = vld [vmem:[#allocation95_spill] sm:$0xff] }
 0x762   : > { %12407 = vmatpush3.bf16.msra.mxu0 %v18813_v62  ;;  %13459 = vrcp.f32 %v5030_v49  ;;  %12408 = vmatprep.mubr.msk.bf16.mxu0 %vm13839_vm0, %v18793_v47  ;;  %v18817_v49 = vld [vmem:[#allocation30_spill] sm:$0xff] }
 0x763   : > { %v5144_v5 = vpack.c.bf16 %v5120_v34, %v5119_v33  ;;  %12418 = vmatprep.subr.bf16.mxu0 %v18793_v47 }
 0x764   : > { %v5048_v50 = vpop.xlane.xlu1 %5047  ;;  %6969 = vrot.lane.b32.xlu0 %v18814_v58, %s13841_s24  ;;  %v18819_v58 = vld [vmem:[#allocation36_spill] sm:$0xff] }
 0x765   : > { %v5045_v52 = vpop.xlane.xlu0 %5044  ;;  %13461 = vrcp.f32 %v5048_v50  ;;  %12403 = vmatmul.mubr.msk.bf16.vlgmr.msra.gmra.mrb[192].mxu1 %vm2688_vm2, %v5144_v5  ;;  %7555 = vrot.lane.b32.xlu1 %v18815_v6, %s13841_s24  ;;  %v18818_v5 = vld [vmem:[#allocation39_spill] sm:$0xff] }
 0x766   : > { %12413 = vmatpush3.bf16.msra.mxu1 %v18816_v4  ;;  %13463 = vrcp.f32 %v5045_v52  ;;  %12414 = vmatprep.mubr.msk.bf16.mxu1 %vm13839_vm0, %v18793_v47 }
 0x767   : > { %v13454_v61 = vpop.eup %13453  ;;  %12424 = vmatprep.subr.bf16.mxu1 %v18793_v47  ;;  %13465 = vrcp.f32 %v5039_v37 }
 0x768   : > { %v13456_v0 = vpop.eup %13455  ;;  %v5124_v14 = vmul.f32 %v13454_v61, %v15992_v40  ;;  %v5051_v34 = vpop.xlane.xlu1 %5050  ;;  %7507 = vrot.lane.b32.xlu0 %v18817_v49, %s13841_s24 }
 0x769   : > { %v5042_v33 = vpop.xlane.xlu0 %5041  ;;  %v5123_v62 = vmul.f32 %v13456_v0, %v15995_v3  ;;  %7651 = vrot.lane.b32.xlu1 %v18818_v5, %s13841_s24  ;;  %v13458_v50 = vpop.eup %13457  ;;  %v18820_v3 = vld [vmem:[#allocation45_spill] sm:$0xff]  ;;  %v18821_v0 = vld [vmem:[#allocation112_spill] sm:$0xff] }
 0x76a   : > { %13467 = vrcp.f32 %v5042_v33  ;;  %v5121_v37 = vmul.f32 %v13458_v50, %v15988_v55  ;;  %v18883_v5 = vld [vmem:[#allocation92_spill] sm:$0xff] }
 0x76b   : > { %v5146_v52 = vpack.c.bf16 %v5124_v14, %v5123_v62 }
 0x76c   : > { %v13460_v4 = vpop.eup %13459  ;;  %v5060_v6 = vpop.xlane.xlu1 %5059  ;;  %7603 = vrot.lane.b32.xlu0 %v18819_v58, %s13841_s24 }
 0x76d   : > { %v5057_v40 = vpop.xlane.xlu0 %5056  ;;  %v5122_v61 = vmul.f32 %v13460_v4, %v16003_v41  ;;  %13469 = vrcp.f32 %v5060_v6  ;;  %12415 = vmatmul.mubr.msk.bf16.vlgmr.msra.gmra.mrb[196].mxu1 %vm2688_vm2, %v5146_v52  ;;  %7747 = vrot.lane.b32.xlu1 %v18820_v3, %s13841_s24  ;;  %v18822_v41 = vld [vmem:[#allocation42_spill] sm:$0xff]  ;;  %v18823_v52 = vld [vmem:[#allocation53_spill] sm:$0xff] }
 0x76e   : > { %12425 = vmatpush3.bf16.msra.mxu1 %v18821_v0  ;;  %13471 = vrcp.f32 %v5057_v40  ;;  %12426 = vmatprep.mubr.msk.bf16.mxu1 %vm13839_vm0, %v18793_v47  ;;  %v18824_v40 = vld [vmem:[#allocation110_spill] sm:$0xff]  ;;  %v18826_v0 = vld [vmem:[#allocation59_spill] sm:$0xff] }
 0x76f   : > { %v13462_v14 = vpop.eup %13461  ;;  %v5145_v33 = vpack.c.bf16 %v5122_v61, %v5121_v37  ;;  %12436 = vmatprep.subr.bf16.mxu1 %v18793_v47  ;;  %13473 = vrcp.f32 %v5051_v34  ;;  %v18825_v37 = vld [vmem:[#allocation50_spill] sm:$0xff] }
 0x770   : > { %v13464_v62 = vpop.eup %13463  ;;  %v5128_v55 = vmul.f32 %v13462_v14, %v16012_v19  ;;  %7699 = vrot.lane.b32.xlu0 %v18822_v41, %s13841_s24  ;;  %v18827_v14 = vld [vmem:[#allocation114_spill] sm:$0xff] }
 0x771   : > { %v5054_v6 = vpop.xlane.xlu0 %5053  ;;  %v5127_v50 = vmul.f32 %v13464_v62, %v16015_v39  ;;  %12409 = vmatmul.mubr.msk.bf16.vlgmr.msra.gmra.mrb[156].mxu0 %vm2688_vm2, %v5145_v33  ;;  %7843 = vrot.lane.b32.xlu1 %v18823_v52, %s13841_s24  ;;  %v13466_v4 = vpop.eup %13465 }
 0x772   : > { %12419 = vmatpush3.bf16.msra.mxu0 %v18824_v40  ;;  %13475 = vrcp.f32 %v5054_v6  ;;  %12420 = vmatprep.mubr.msk.bf16.mxu0 %vm13839_vm0, %v18793_v47  ;;  %v5125_v39 = vmul.f32 %v13466_v4, %v16006_v45  ;;  %v18828_v45 = vld [vmem:[#allocation56_spill] sm:$0xff]  ;;  %v18830_v40 = vld [vmem:[#allocation113_spill] sm:$0xff] }
 0x773   : > { %v5148_v19 = vpack.c.bf16 %v5128_v55, %v5127_v50  ;;  %12430 = vmatprep.subr.bf16.mxu0 %v18793_v47  ;;  %v18829_v50 = vld [vmem:[#allocation62_spill] sm:$0xff] }
 0x774   : > { %v13468_v34 = vpop.eup %13467  ;;  %7795 = vrot.lane.b32.xlu0 %v18825_v37, %s13841_s24 }
 0x775   : > { %v5126_v61 = vmul.f32 %v13468_v34, %v16021_v56  ;;  %12427 = vmatmul.mubr.msk.bf16.vlgmr.msra.gmra.mrb[200].mxu1 %vm2688_vm2, %v5148_v19  ;;  %7939 = vrot.lane.b32.xlu1 %v18826_v0, %s13841_s24  ;;  %v18831_v34 = vld [vmem:[#allocation68_spill] sm:$0xff]  ;;  %v18876_v0 = vld [vmem:[#allocation87_spill] sm:$0xff] }
 0x776   : > { %12437 = vmatpush3.bf16.msra.mxu1 %v18827_v14  ;;  %12438 = vmatprep.mubr.msk.bf16.mxu1 %vm13839_vm0, %v18793_v47 }
 0x777   : > { %v13470_v33 = vpop.eup %13469  ;;  %v5147_v62 = vpack.c.bf16 %v5126_v61, %v5125_v39  ;;  %12448 = vmatprep.subr.bf16.mxu1 %v18793_v47  ;;  %v18832_v61 = vld [vmem:[#allocation65_spill] sm:$0xff] }
 0x778   : > { %v13472_v55 = vpop.eup %13471  ;;  %v5132_v6 = vmul.f32 %v13470_v33, %v16030_v1  ;;  %7891 = vrot.lane.b32.xlu0 %v18828_v45, %s13841_s24  ;;  %v18833_v33 = vld [vmem:[#allocation71_spill] sm:$0xff] }
 0x779   : > { %v5131_v56 = vmul.f32 %v13472_v55, %v16032_v53  ;;  %12421 = vmatmul.mubr.msk.bf16.vlgmr.msra.gmra.mrb[160].mxu0 %vm2688_vm2, %v5147_v62  ;;  %7987 = vrot.lane.b32.xlu1 %v18829_v50, %s13841_s24  ;;  %v13474_v4 = vpop.eup %13473 }
 0x77a   : > { %12431 = vmatpush3.bf16.msra.mxu0 %v18830_v40  ;;  %12432 = vmatprep.mubr.msk.bf16.mxu0 %vm13839_vm0, %v18793_v47  ;;  %v5129_v53 = vmul.f32 %v13474_v4, %v16024_v28  ;;  %v5063_v28 = vpop.xlane.xlu1 %5062 }
 0x77b   : > { %v5150_v19 = vpack.c.bf16 %v5132_v6, %v5131_v56  ;;  %12442 = vmatprep.subr.bf16.mxu0 %v18793_v47  ;;  %13477 = vrcp.f32 %v5063_v28 }
 0x77c   : > { %v13476_v1 = vpop.eup %13475  ;;  %8083 = vrot.lane.b32.xlu0 %v18831_v34, %s13841_s24 }
 0x77d   : > { %v5130_v39 = vmul.f32 %v13476_v1, %v16038_v2  ;;  %12439 = vmatmul.mubr.msk.bf16.vlgmr.msra.gmra.mrb[204].mxu1 %vm2688_vm2, %v5150_v19  ;;  %8035 = vrot.lane.b32.xlu1 %v18832_v61, %s13841_s24  ;;  %v5069_v2 = vpop.xlane.xlu0 %5068 }
 0x77e   : > { %12449 = vmatpush3.bf16.msra.mxu1 %v16052_v36  ;;  %12450 = vmatprep.mubr.msk.bf16.mxu1 %vm13839_vm0, %v18793_v47  ;;  %v6284_v62 = vpop.permute.xlu1 %6283 }
 0x77f   : > { %v5149_v14 = vpack.c.bf16 %v5130_v39, %v5129_v53  ;;  %12460 = vmatprep.subr.bf16.mxu1 %v18793_v47 }
 0x781   : > { %12433 = vmatmul.mubr.msk.bf16.vlgmr.msra.gmra.mrb[164].mxu0 %vm2688_vm2, %v5149_v14  ;;  %8131 = vrot.lane.b32.xlu1 %v18833_v33, %s13841_s24 }
 0x782   : > { %12443 = vmatpush3.bf16.msra.mxu0 %v16072_v63  ;;  %12444 = vmatprep.mubr.msk.bf16.mxu0 %vm13839_vm0, %v18793_v47 }
 0x783   : > { %12454 = vmatprep.subr.bf16.mxu0 %v18793_v47 }
 0x785   : > { %v13478_v4 = vpop.eup %13477 }
 0x786   : > { %v5133_v63 = vmul.f32 %v13478_v4, %v16040_v32 }
 0x79f   : > { %v5066_v36 = vpop.xlane.xlu0 %5065 }
 0x7a0   : > { %13479 = vrcp.f32 %v5066_v36 }
 0x7a1   : > { %13481 = vrcp.f32 %v5069_v2 }
 0x7a3   : > { %v6231_v55 = vpop.permute.xlu0 %6230 }
 0x7a4   : > { %v6236_v28 = vsel %vm1871_vm1, %v6231_v55, 0 }
 0x7a5   : > { %v5072_v6 = vpop.xlane.xlu1 %5071 }
 0x7a6   : > { %13483 = vrcp.f32 %v5072_v6 }
 0x7a7   : > { %v6228_v56 = vpop.permute.xlu0 %6227 }
 0x7a9   : > { %v6337_v40 = vpop.permute.xlu1 %6336 }
 0x7aa   : > { %v13480_v19 = vpop.eup %13479 }
 0x7ab   : > { %v5134_v1 = vmul.f32 %v13480_v19, %v16056_v20  ;;  %v6281_v53 = vpop.permute.xlu0 %6280  ;;  %v13482_v33 = vpop.eup %13481 }
 0x7ac   : > { %v5135_v6 = vmul.f32 %v13482_v33, %v16046_v38 }
 0x7ad   : > { %v6390_v39 = vpop.permute.xlu1 %6389  ;;  %v5151_v14 = vpack.c.bf16 %v5134_v1, %v5133_v63  ;;  %v6289_v63 = vsel %vm1871_vm1, %v6284_v62, 0  ;;  %v6342_v1 = vsel %vm1871_vm1, %v6337_v40, 0 }
 0x7ae   : > { %v6395_v62 = vsel %vm1871_vm1, %v6390_v39, 0 }
 0x7af   : > { %12445 = vmatmul.mubr.msk.bf16.vlgmr.msra.gmra.mrb[168].mxu0 %vm2688_vm2, %v5151_v14  ;;  %v6334_v36 = vpop.permute.xlu0 %6333 }
 0x7b0   : > { %v13484_v2 = vpop.eup %13483  ;;  %12455 = vmatpush3.bf16.xpose.msra.mxu0 %v6236_v28  ;;  %12456 = vmatprep.mubr.msk.bf16.mxu0 %vm13839_vm0, %v18793_v47 }
 0x7b1   : > { %v5136_v32 = vmul.f32 %v13484_v2, %v16060_v9  ;;  %v6443_v4 = vpop.permute.xlu1 %6442  ;;  %12466 = vmatprep.subr.bf16.mxu0 %v18793_v47 }
 0x7b3   : > { %v6387_v20 = vpop.permute.xlu0 %6386  ;;  %v5152_v19 = vpack.c.bf16 %v5136_v32, %v5135_v6 }
 0x7b5   : > { %v6496_v55 = vpop.permute.xlu1 %6495  ;;  %12451 = vmatmul.mubr.msk.bf16.vlgmr.msra.gmra.mrb[208].mxu1 %vm2688_vm2, %v5152_v19 }
 0x7b6   : > { %12461 = vmatpush3.bf16.xpose.msra.mxu1 %v6289_v63  ;;  %12462 = vmatprep.mubr.msk.bf16.mxu1 %vm13839_vm0, %v18793_v47 }
 0x7b7   : > { %12457 = vmatmul.mubr.msk.bf16.vlgmr.msra.gmra.mrb[172].mxu0 %vm1871_vm1, %v6228_v56  ;;  %v6440_v38 = vpop.permute.xlu0 %6439  ;;  %12472 = vmatprep.subr.bf16.mxu1 %v18793_v47  ;;  %v6448_v56 = vsel %vm1871_vm1, %v6443_v4, 0 }
 0x7b8   : > { %12467 = vmatpush3.bf16.xpose.msra.mxu0 %v6342_v1  ;;  %12468 = vmatprep.mubr.msk.bf16.mxu0 %vm13839_vm0, %v18793_v47 }
 0x7b9   : > { %v6549_v9 = vpop.permute.xlu1 %6548  ;;  %12478 = vmatprep.subr.bf16.mxu0 %v18793_v47 }
 0x7bb   : > { %v6493_v33 = vpop.permute.xlu0 %6492 }
 0x7bd   : > { %v6602_v14 = vpop.permute.xlu1 %6601  ;;  %12463 = vmatmul.mubr.msk.bf16.vlgmr.msra.gmra.mrb[212].mxu1 %vm1871_vm1, %v6281_v53  ;;  %v6501_v53 = vsel %vm1871_vm1, %v6496_v55, 0 }
 0x7be   : > { %12473 = vmatpush3.bf16.xpose.msra.mxu1 %v6395_v62  ;;  %12474 = vmatprep.mubr.msk.bf16.mxu1 %vm13839_vm0, %v18793_v47 }
 0x7bf   : > { %12469 = vmatmul.mubr.msk.bf16.vlgmr.msra.gmra.mrb[176].mxu0 %vm1871_vm1, %v6334_v36  ;;  %v6546_v40 = vpop.permute.xlu0 %6545  ;;  %12484 = vmatprep.subr.bf16.mxu1 %v18793_v47  ;;  %v6554_v36 = vsel %vm1871_vm1, %v6549_v9, 0 }
 0x7c0   : > { %12479 = vmatpush3.bf16.xpose.msra.mxu0 %v6448_v56  ;;  %12480 = vmatprep.mubr.msk.bf16.mxu0 %vm13839_vm0, %v18793_v47 }
 0x7c1   : > { %v6655_v28 = vpop.permute.xlu1 %6654  ;;  %12490 = vmatprep.subr.bf16.mxu0 %v18793_v47 }
 0x7c2   : > { %v6660_v19 = vsel %vm1871_vm1, %v6655_v28, 0 }
 0x7c3   : > { %v6599_v39 = vpop.permute.xlu0 %6598 }
 0x7c5   : > { %v6708_v2 = vpop.permute.xlu1 %6707  ;;  %12475 = vmatmul.mubr.msk.bf16.vlgmr.msra.gmra.mrb[216].mxu1 %vm1871_vm1, %v6387_v20  ;;  %v6607_v20 = vsel %vm1871_vm1, %v6602_v14, 0 }
 0x7c6   : > { %12485 = vmatpush3.bf16.xpose.msra.mxu1 %v6501_v53  ;;  %12486 = vmatprep.mubr.msk.bf16.mxu1 %vm13839_vm0, %v18793_v47  ;;  %v6713_v1 = vsel %vm1871_vm1, %v6708_v2, 0 }
 0x7c7   : > { %12481 = vmatmul.mubr.msk.bf16.vlgmr.msra.gmra.mrb[180].mxu0 %vm1871_vm1, %v6440_v38  ;;  %v6652_v6 = vpop.permute.xlu0 %6651  ;;  %12496 = vmatprep.subr.bf16.mxu1 %v18793_v47 }
 0x7c8   : > { %12491 = vmatpush3.bf16.xpose.msra.mxu0 %v6554_v36  ;;  %12492 = vmatprep.mubr.msk.bf16.mxu0 %vm13839_vm0, %v18793_v47 }
 0x7c9   : > { %12502 = vmatprep.subr.bf16.mxu0 %v18793_v47  ;;  %v6761_v32 = vpop.permute.xlu1 %6760 }
 0x7ca   : > { %v6766_v38 = vsel %vm1871_vm1, %v6761_v32, 0 }
 0x7cb   : > { %v6705_v4 = vpop.permute.xlu0 %6704 }
 0x7cd   : > { %12487 = vmatmul.mubr.msk.bf16.vlgmr.msra.gmra.mrb[220].mxu1 %vm1871_vm1, %v6493_v33  ;;  %v6814_v63 = vpop.permute.xlu1 %6813 }
 0x7ce   : > { %12497 = vmatpush3.bf16.xpose.msra.mxu1 %v6607_v20  ;;  %12498 = vmatprep.mubr.msk.bf16.mxu1 %vm13839_vm0, %v18793_v47  ;;  %v6819_v62 = vsel %vm1871_vm1, %v6814_v63, 0 }
 0x7cf   : > { %12493 = vmatmul.mubr.msk.bf16.vlgmr.msra.gmra.mrb[184].mxu0 %vm1871_vm1, %v6546_v40  ;;  %12508 = vmatprep.subr.bf16.mxu1 %v18793_v47  ;;  %v6758_v55 = vpop.permute.xlu0 %6757 }
 0x7d0   : > { %12503 = vmatpush3.bf16.xpose.msra.mxu0 %v6660_v19  ;;  %12504 = vmatprep.mubr.msk.bf16.mxu0 %vm13839_vm0, %v18793_v47 }
 0x7d1   : > { %12514 = vmatprep.subr.bf16.mxu0 %v18793_v47  ;;  %v6867_v9 = vpop.permute.xlu1 %6866 }
 0x7d2   : > { %v6872_v40 = vsel %vm1871_vm1, %v6867_v9, 0 }
 0x7d3   : > { %v6811_v33 = vpop.permute.xlu0 %6810 }
 0x7d5   : > { %12499 = vmatmul.mubr.msk.bf16.vlgmr.msra.gmra.mrb[224].mxu1 %vm1871_vm1, %v6599_v39  ;;  %v6920_v14 = vpop.permute.xlu1 %6919 }
 0x7d6   : > { %12509 = vmatpush3.bf16.xpose.msra.mxu1 %v6713_v1  ;;  %12510 = vmatprep.mubr.msk.bf16.mxu1 %vm13839_vm0, %v18793_v47  ;;  %v6925_v53 = vsel %vm1871_vm1, %v6920_v14, 0 }
 0x7d7   : > { %12505 = vmatmul.mubr.msk.bf16.vlgmr.msra.gmra.mrb[188].mxu0 %vm1871_vm1, %v6652_v6  ;;  %12520 = vmatprep.subr.bf16.mxu1 %v18793_v47  ;;  %v6864_v56 = vpop.permute.xlu0 %6863 }
 0x7d8   : > { %12515 = vmatpush3.bf16.xpose.msra.mxu0 %v6766_v38  ;;  %12516 = vmatprep.mubr.msk.bf16.mxu0 %vm13839_vm0, %v18793_v47 }
 0x7d9   : > { %12526 = vmatprep.subr.bf16.mxu0 %v18793_v47  ;;  %v6973_v28 = vpop.permute.xlu1 %6972 }
 0x7da   : > { %v6978_v2 = vsel %vm1871_vm1, %v6973_v28, 0 }
 0x7db   : > { %v6917_v39 = vpop.permute.xlu0 %6916 }
 0x7dd   : > { %12511 = vmatmul.mubr.msk.bf16.vlgmr.msra.gmra.mrb[228].mxu1 %vm1871_vm1, %v6705_v4  ;;  %v7026_v36 = vpop.permute.xlu1 %7025 }
 0x7de   : > { %12521 = vmatpush3.bf16.xpose.msra.mxu1 %v6819_v62  ;;  %12522 = vmatprep.mubr.msk.bf16.mxu1 %vm13839_vm0, %v18793_v47  ;;  %v7031_v32 = vsel %vm1871_vm1, %v7026_v36, 0 }
 0x7df   : > { %12517 = vmatmul.mubr.msk.bf16.vlgmr.msra.gmra.mrb[192].mxu0 %vm1871_vm1, %v6758_v55  ;;  %12532 = vmatprep.subr.bf16.mxu1 %v18793_v47  ;;  %v6970_v6 = vpop.permute.xlu0 %6969 }
 0x7e0   : > { %12527 = vmatpush3.bf16.xpose.msra.mxu0 %v6872_v40  ;;  %12528 = vmatprep.mubr.msk.bf16.mxu0 %vm13839_vm0, %v18793_v47 }
 0x7e1   : > { %12538 = vmatprep.subr.bf16.mxu0 %v18793_v47  ;;  %v7023_v4 = vpop.permute.xlu1 %7022 }
 0x7e3   : > { %v7508_v20 = vpop.permute.xlu0 %7507 }
 0x7e5   : > { %12523 = vmatmul.mubr.msk.bf16.vlgmr.msra.gmra.mrb[232].mxu1 %vm1871_vm1, %v6811_v33  ;;  %v7556_v19 = vpop.permute.xlu1 %7555 }
 0x7e6   : > { %12533 = vmatpush3.bf16.xpose.msra.mxu1 %v6925_v53  ;;  %12534 = vmatprep.mubr.msk.bf16.mxu1 %vm13839_vm0, %v18793_v47 }
 0x7e7   : > { %12529 = vmatmul.mubr.msk.bf16.vlgmr.msra.gmra.mrb[196].mxu0 %vm1871_vm1, %v6864_v56  ;;  %12544 = vmatprep.subr.bf16.mxu1 %v18793_v47 }
 0x7e8   : > { %12539 = vmatpush3.bf16.xpose.msra.mxu0 %v6978_v2  ;;  %12540 = vmatprep.mubr.msk.bf16.mxu0 %vm13839_vm0, %v18793_v47 }
 0x7e9   : > { %12550 = vmatprep.subr.bf16.mxu0 %v18793_v47 }
 0x7ed   : > { %12535 = vmatmul.mubr.msk.bf16.vlgmr.msra.gmra.mrb[236].mxu1 %vm1871_vm1, %v6917_v39 }
 0x7ee   : > { %12545 = vmatpush3.bf16.xpose.msra.mxu1 %v7031_v32  ;;  %12546 = vmatprep.mubr.msk.bf16.mxu1 %vm13839_vm0, %v18793_v47 }
 0x7ef   : > { %12541 = vmatmul.mubr.msk.bf16.vlgmr.msra.gmra.mrb[200].mxu0 %vm1871_vm1, %v6970_v6  ;;  %12556 = vmatprep.subr.bf16.mxu1 %v18793_v47 }
 0x7f0   : > { %12551 = vmatpush3.bf16.msra.mxu0 %v7508_v20  ;;  %12552 = vmatprep.mubr.msk.bf16.mxu0 %vm13839_vm0, %v18793_v47 }
 0x7f1   : > { %12562 = vmatprep.subr.bf16.mxu0 %v18793_v47 }
 0x7f5   : > { %12547 = vmatmul.mubr.msk.bf16.vlgmr.msra.gmra.mrb[240].mxu1 %vm1871_vm1, %v7023_v4 }
 0x7f6   : > { %12557 = vmatpush3.bf16.msra.mxu1 %v7556_v19  ;;  %12558 = vmatprep.mubr.msk.bf16.mxu1 %vm13839_vm0, %v18793_v47 }
 0x7f7   : > { %12568 = vmatprep.subr.bf16.mxu1 %v18793_v47 }
 0x819   : > { %v16346_v63 = vpop.f32.mrb[140].mxu0 }
 0x81a   : > { %18834 = vst [vmem:[#allocation72_spill] sm:$0xff] %v16346_v63  ;;  %v12362_v55 = vpop.f32.mrb[141].mxu0  ;;  %v18871_v63 = vld [vmem:[#allocation80_spill] sm:$0xff] }
 0x81b   : > { %v16348_v1 = vpop.f32.mrb[142].mxu0 }
 0x81c   : > { %18835 = vst [vmem:[#allocation76_spill] sm:$0xff] %v16348_v1  ;;  %v12363_v38 = vpop.f32.mrb[143].mxu0 }
 0x81f   : > { %v16350_v9 = vpop.f32.mrb[180].mxu1 }
 0x820   : > { %18836 = vst [vmem:[#allocation73_spill] sm:$0xff] %v16350_v9  ;;  %v12368_v33 = vpop.f32.mrb[181].mxu1 }
 0x821   : > { %v16352_v62 = vpop.f32.mrb[182].mxu1 }
 0x822   : > { %18837 = vst [vmem:[#allocation109_spill] sm:$0xff] %v16352_v62  ;;  %v12369_v14 = vpop.f32.mrb[183].mxu1 }
 0x824   : > { %v16354_v56 = vpop.f32.mrb[144].mxu0 }
 0x825   : > { %18838 = vst [vmem:[#allocation75_spill] sm:$0xff] %v16354_v56  ;;  %v12374_v40 = vpop.f32.mrb[145].mxu0 }
 0x826   : > { %v16356_v28 = vpop.f32.mrb[146].mxu0 }
 0x827   : > { %18839 = vst [vmem:[#allocation111_spill] sm:$0xff] %v16356_v28  ;;  %v12375_v39 = vpop.f32.mrb[147].mxu0 }
 0x828   : > { %v16358_v53 = vpop.f32.mrb[184].mxu1 }
 0x829   : > { %18840 = vst [vmem:[#allocation78_spill] sm:$0xff] %v16358_v53  ;;  %v12380_v2 = vpop.f32.mrb[185].mxu1 }
 0x82a   : > { %v16360_v36 = vpop.f32.mrb[186].mxu1 }
 0x82b   : > { %18841 = vst [vmem:[#allocation112_spill] sm:$0xff] %v16360_v36  ;;  %v12381_v6 = vpop.f32.mrb[187].mxu1 }
 0x82c   : > { %v16362_v32 = vpop.f32.mrb[148].mxu0 }
 0x82d   : > { %18842 = vst [vmem:[#allocation110_spill] sm:$0xff] %v16362_v32  ;;  %v12386_v4 = vpop.f32.mrb[149].mxu0 }
 0x82e   : > { %v16364_v20 = vpop.f32.mrb[150].mxu0 }
 0x82f   : > { %18843 = vst [vmem:[#allocation114_spill] sm:$0xff] %v16364_v20  ;;  %v12387_v19 = vpop.f32.mrb[151].mxu0 }
 0x830   : > { %v16366_v55 = vpop.f32.mrb[188].mxu1 }
 0x831   : > { %18844 = vst [vmem:[#allocation113_spill] sm:$0xff] %v16366_v55  ;;  %v12392_v38 = vpop.f32.mrb[189].mxu1 }
 0x832   : > { %v16368_v33 = vpop.f32.mrb[190].mxu1 }
 0x833   : > { %18845 = vst [vmem:[#allocation115_spill] sm:$0xff] %v16368_v33  ;;  %v12393_v14 = vpop.f32.mrb[191].mxu1 }
 0x834   : > { %v16370_v40 = vpop.f32.mrb[152].mxu0 }
 0x835   : > { %18846 = vst [vmem:[#allocation116_spill] sm:$0xff] %v16370_v40  ;;  %v12398_v39 = vpop.f32.mrb[153].mxu0 }
 0x836   : > { %v16372_v53 = vpop.f32.mrb[154].mxu0 }
 0x837   : > { %18847 = vst [vmem:[#allocation117_spill] sm:$0xff] %v16372_v53  ;;  %v12399_v2 = vpop.f32.mrb[155].mxu0 }
 0x838   : > { %v16374_v36 = vpop.f32.mrb[192].mxu1 }
 0x839   : > { %18848 = vst [vmem:[#allocation118_spill] sm:$0xff] %v16374_v36  ;;  %v12404_v6 = vpop.f32.mrb[193].mxu1 }
 0x83a   : > { %v16376_v32 = vpop.f32.mrb[194].mxu1 }
 0x83b   : > { %18849 = vst [vmem:[#allocation119_spill] sm:$0xff] %v16376_v32  ;;  %v12405_v4 = vpop.f32.mrb[195].mxu1 }
 0x840   : > { %v16378_v20 = vpop.f32.mrb[196].mxu1 }
 0x841   : > { %18850 = vst [vmem:[#allocation120_spill] sm:$0xff] %v16378_v20  ;;  %v12416_v19 = vpop.f32.mrb[197].mxu1 }
 0x842   : > { %v16380_v55 = vpop.f32.mrb[198].mxu1 }
 0x843   : > { %18851 = vst [vmem:[#allocation121_spill] sm:$0xff] %v16380_v55  ;;  %v12417_v38 = vpop.f32.mrb[199].mxu1 }
 0x844   : > { %v16382_v33 = vpop.f32.mrb[156].mxu0 }
 0x845   : > { %18852 = vst [vmem:[#allocation122_spill] sm:$0xff] %v16382_v33  ;;  %v12410_v14 = vpop.f32.mrb[157].mxu0 }
 0x846   : > { %v16384_v40 = vpop.f32.mrb[158].mxu0 }
 0x847   : > { %18853 = vst [vmem:[#allocation123_spill] sm:$0xff] %v16384_v40  ;;  %v12411_v39 = vpop.f32.mrb[159].mxu0 }
 0x848   : > { %v16386_v53 = vpop.f32.mrb[200].mxu1 }
 0x849   : > { %18854 = vst [vmem:[#allocation124_spill] sm:$0xff] %v16386_v53  ;;  %v12428_v2 = vpop.f32.mrb[201].mxu1 }
 0x84a   : > { %v16388_v36 = vpop.f32.mrb[202].mxu1 }
 0x84b   : > { %18855 = vst [vmem:[#allocation125_spill] sm:$0xff] %v16388_v36  ;;  %v12429_v6 = vpop.f32.mrb[203].mxu1 }
 0x84c   : > { %v16390_v32 = vpop.f32.mrb[160].mxu0 }
 0x84d   : > { %18856 = vst [vmem:[#allocation126_spill] sm:$0xff] %v16390_v32  ;;  %v12422_v4 = vpop.f32.mrb[161].mxu0 }
 0x84e   : > { %v16392_v20 = vpop.f32.mrb[162].mxu0 }
 0x84f   : > { %18857 = vst [vmem:[#allocation127_spill] sm:$0xff] %v16392_v20  ;;  %v12423_v19 = vpop.f32.mrb[163].mxu0 }
 0x850   : > { %v16394_v55 = vpop.f32.mrb[204].mxu1 }
 0x851   : > { %18858 = vst [vmem:[#allocation128_spill] sm:$0xff] %v16394_v55  ;;  %v12440_v38 = vpop.f32.mrb[205].mxu1 }
 0x852   : > { %v16396_v33 = vpop.f32.mrb[206].mxu1 }
 0x853   : > { %18859 = vst [vmem:[#allocation129_spill] sm:$0xff] %v16396_v33  ;;  %v12441_v14 = vpop.f32.mrb[207].mxu1 }
 0x854   : > { %v16398_v40 = vpop.f32.mrb[164].mxu0 }
 0x855   : > { %18860 = vst [vmem:[#allocation130_spill] sm:$0xff] %v16398_v40  ;;  %v12434_v39 = vpop.f32.mrb[165].mxu0 }
 0x856   : > { %v16400_v53 = vpop.f32.mrb[166].mxu0  ;;  %v18866_v39 = vld [vmem:[#allocation47_spill] sm:$0xff] }
 0x857   : > { %18861 = vst [vmem:[#allocation131_spill] sm:$0xff] %v16400_v53  ;;  %v12435_v2 = vpop.f32.mrb[167].mxu0 }
 0x882   : > { %v16402_v36 = vpop.f32.mrb[168].mxu0 }
 0x883   : > { %18862 = vst [vmem:[#allocation132_spill] sm:$0xff] %v16402_v36  ;;  %v12446_v6 = vpop.f32.mrb[169].mxu0  ;;  %v18867_v36 = vld [vmem:[#allocation49_spill] sm:$0xff] }
 0x884   : > { %v16404_v32 = vpop.f32.mrb[170].mxu0 }
 0x885   : > { %18863 = vst [vmem:[#allocation133_spill] sm:$0xff] %v16404_v32  ;;  %v12447_v4 = vpop.f32.mrb[171].mxu0 }
 0x888   : > { %v16406_v20 = vpop.f32.mrb[208].mxu1 }
 0x889   : > { %18864 = vst [vmem:[#allocation134_spill] sm:$0xff] %v16406_v20  ;;  %v12452_v19 = vpop.f32.mrb[209].mxu1 }
 0x88a   : > { %v16408_v55 = vpop.f32.mrb[210].mxu1  ;;  %v6272_v38 = vpop.f32.mrb[172].mxu0 }
 0x88b   : > { %18865 = vst [vmem:[#allocation135_spill] sm:$0xff] %v16408_v55  ;;  %v7074_v33 = vmul.f32 0.17677669, %v6272_v38  ;;  %v12453_v14 = vpop.f32.mrb[211].mxu1  ;;  %v12458_v28 = vpop.f32.mrb[173].mxu0 }
 0x88c   : > { %v6275_v40 = vpop.f32.mrb[174].mxu0 }
 0x88d   : > { %v16411_v56 = vadd.f32 %v18866_v39, %v7074_v33  ;;  %v7075_v2 = vmul.f32 0.17677669, %v6275_v40  ;;  %v12459_v53 = vpop.f32.mrb[175].mxu0  ;;  %v18868_v33 = vld [vmem:[#allocation79_spill] sm:$0xff] }
 0x88f   : > { %v16414_v6 = vadd.f32 %v18867_v36, %v7075_v2  ;;  %v7138_v4 = vsel %vm2688_vm2, %v16411_v56, -inf  ;;  %v18869_v36 = vld [vmem:[#allocation81_spill] sm:$0xff] }
 0x890   : > { %7139 = vmax.xlane.f32.xlu0 %v7138_v4  ;;  %v6325_v19 = vpop.f32.mrb[212].mxu1 }
 0x891   : > { %v7076_v20 = vmul.f32 0.17677669, %v6325_v19  ;;  %v12464_v55 = vpop.f32.mrb[213].mxu1  ;;  %v7141_v38 = vsel %vm2688_vm2, %v16414_v6, -inf }
 0x892   : > { %7142 = vmax.xlane.f32.xlu1 %v7141_v38  ;;  %v6328_v28 = vpop.f32.mrb[214].mxu1  ;;  %v6378_v14 = vpop.f32.mrb[176].mxu0  ;;  %v18870_v38 = vld [vmem:[#allocation82_spill] sm:$0xff] }
 0x893   : > { %v16421_v32 = vadd.f32 %v18868_v33, %v7076_v20  ;;  %v7077_v53 = vmul.f32 0.17677669, %v6328_v28  ;;  %v12465_v40 = vpop.f32.mrb[215].mxu1  ;;  %v12470_v2 = vpop.f32.mrb[177].mxu0  ;;  %v7078_v9 = vmul.f32 0.17677669, %v6378_v14 }
 0x894   : > { %v6381_v62 = vpop.f32.mrb[178].mxu0 }
 0x895   : > { %v16424_v39 = vadd.f32 %v18869_v36, %v7077_v53  ;;  %v7079_v4 = vmul.f32 0.17677669, %v6381_v62  ;;  %v12471_v19 = vpop.f32.mrb[179].mxu0  ;;  %v7144_v55 = vsel %vm2688_vm2, %v16421_v32, -inf  ;;  %v16432_v20 = vadd.f32 %v18871_v63, %v7078_v9  ;;  %v18872_v63 = vld [vmem:[#allocation83_spill] sm:$0xff] }
 0x896   : > { %7145 = vmax.xlane.f32.xlu0 %v7144_v55 }
 0x897   : > { %v16429_v1 = vadd.f32 %v18870_v38, %v7079_v4  ;;  %v7147_v14 = vsel %vm2688_vm2, %v16424_v39, -inf  ;;  %v7150_v9 = vsel %vm2688_vm2, %v16432_v20, -inf }
 0x898   : > { %v6431_v28 = vpop.f32.mrb[216].mxu1 }
 0x899   : > { %v7080_v40 = vmul.f32 0.17677669, %v6431_v28  ;;  %v12476_v2 = vpop.f32.mrb[217].mxu1  ;;  %v7153_v62 = vsel %vm2688_vm2, %v16429_v1, -inf }
 0x89a   : > { %7148 = vmax.xlane.f32.xlu0 %v7147_v14  ;;  %7154 = vmax.xlane.f32.xlu1 %v7153_v62  ;;  %v6434_v53 = vpop.f32.mrb[218].mxu1  ;;  %v6484_v19 = vpop.f32.mrb[180].mxu0  ;;  %v18873_v2 = vld [vmem:[#allocation84_spill] sm:$0xff]  ;;  %v18874_v14 = vld [vmem:[#allocation86_spill] sm:$0xff] }
 0x89b   : > { %v7081_v55 = vmul.f32 0.17677669, %v6434_v53  ;;  %v12477_v36 = vpop.f32.mrb[219].mxu1  ;;  %v12482_v4 = vpop.f32.mrb[181].mxu0  ;;  %v16441_v28 = vadd.f32 %v18872_v63, %v7080_v40  ;;  %v7082_v61 = vmul.f32 0.17677669, %v6484_v19 }
 0x89c   : > { %v6487_v38 = vpop.f32.mrb[182].mxu0  ;;  %v18875_v4 = vld [vmem:[#allocation85_spill] sm:$0xff] }
 0x89d   : > { %v16444_v33 = vadd.f32 %v18873_v2, %v7081_v55  ;;  %v7083_v34 = vmul.f32 0.17677669, %v6487_v38  ;;  %v12483_v50 = vpop.f32.mrb[183].mxu0  ;;  %v16452_v45 = vadd.f32 %v18875_v4, %v7082_v61  ;;  %v7156_v55 = vsel %vm2688_vm2, %v16441_v28, -inf }
 0x89e   : > { %7151 = vmax.xlane.f32.xlu0 %v7150_v9 }
 0x89f   : > { %v16447_v62 = vadd.f32 %v18874_v14, %v7083_v34  ;;  %v7159_v36 = vsel %vm2688_vm2, %v16444_v33, -inf }
 0x8a0   : > { %7160 = vmax.xlane.f32.xlu1 %v7159_v36  ;;  %v6537_v53 = vpop.f32.mrb[220].mxu1 }
 0x8a1   : > { %v7084_v40 = vmul.f32 0.17677669, %v6537_v53  ;;  %v12488_v63 = vpop.f32.mrb[221].mxu1  ;;  %v7165_v14 = vsel %vm2688_vm2, %v16447_v62, -inf  ;;  %v18877_v53 = vld [vmem:[#allocation89_spill] sm:$0xff] }
 0x8a2   : > { %7157 = vmax.xlane.f32.xlu0 %v7156_v55  ;;  %v6540_v38 = vpop.f32.mrb[222].mxu1  ;;  %v6590_v50 = vpop.f32.mrb[184].mxu0  ;;  %v7162_v55 = vsel %vm2688_vm2, %v16452_v45, -inf }
 0x8a3   : > { %v7085_v19 = vmul.f32 0.17677669, %v6540_v38  ;;  %v12489_v9 = vpop.f32.mrb[223].mxu1  ;;  %v12494_v34 = vpop.f32.mrb[185].mxu0  ;;  %v7086_v2 = vmul.f32 0.17677669, %v6590_v50  ;;  %v16459_v61 = vadd.f32 %v18876_v0, %v7084_v40 }
 0x8a4   : > { %7166 = vmax.xlane.f32.xlu1 %v7165_v14  ;;  %v6593_v36 = vpop.f32.mrb[186].mxu0  ;;  %v18878_v38 = vld [vmem:[#allocation90_spill] sm:$0xff]  ;;  %v18879_v14 = vld [vmem:[#allocation88_spill] sm:$0xff] }
 0x8a5   : > { %v16462_v63 = vadd.f32 %v18877_v53, %v7085_v19  ;;  %v7087_v4 = vmul.f32 0.17677669, %v6593_v36  ;;  %v12495_v37 = vpop.f32.mrb[187].mxu0  ;;  %v16472_v34 = vadd.f32 %v18879_v14, %v7086_v2 }
 0x8a6   : > { %7163 = vmax.xlane.f32.xlu0 %v7162_v55  ;;  %v7168_v37 = vsel %vm2688_vm2, %v16459_v61, -inf }
 0x8a7   : > { %v16467_v9 = vadd.f32 %v18878_v38, %v7087_v4  ;;  %v7171_v50 = vsel %vm2688_vm2, %v16462_v63, -inf  ;;  %v7174_v2 = vsel %vm2688_vm2, %v16472_v34, -inf }
 0x8a8   : > { %7172 = vmax.xlane.f32.xlu1 %v7171_v50  ;;  %v6643_v40 = vpop.f32.mrb[224].mxu1  ;;  %v18880_v50 = vld [vmem:[#allocation91_spill] sm:$0xff] }
 0x8a9   : > { %v7088_v0 = vmul.f32 0.17677669, %v6643_v40  ;;  %v12500_v19 = vpop.f32.mrb[225].mxu1  ;;  %v7177_v38 = vsel %vm2688_vm2, %v16467_v9, -inf }
 0x8aa   : > { %7169 = vmax.xlane.f32.xlu0 %v7168_v37  ;;  %v6646_v36 = vpop.f32.mrb[226].mxu1  ;;  %v6696_v53 = vpop.f32.mrb[188].mxu0  ;;  %v18881_v19 = vld [vmem:[#allocation93_spill] sm:$0xff] }
 0x8ab   : > { %v7089_v55 = vmul.f32 0.17677669, %v6646_v36  ;;  %v12501_v52 = vpop.f32.mrb[227].mxu1  ;;  %v12506_v4 = vpop.f32.mrb[189].mxu0  ;;  %v16481_v40 = vadd.f32 %v18880_v50, %v7088_v0  ;;  %v7090_v37 = vmul.f32 0.17677669, %v6696_v53 }
 0x8ac   : > { %7178 = vmax.xlane.f32.xlu1 %v7177_v38  ;;  %v6699_v41 = vpop.f32.mrb[190].mxu0  ;;  %v18882_v52 = vld [vmem:[#allocation94_spill] sm:$0xff] }
 0x8ad   : > { %v16484_v14 = vadd.f32 %v18881_v19, %v7089_v55  ;;  %v7091_v3 = vmul.f32 0.17677669, %v6699_v41  ;;  %v12507_v58 = vpop.f32.mrb[191].mxu0  ;;  %v16492_v49 = vadd.f32 %v18883_v5, %v7090_v37  ;;  %v7180_v55 = vsel %vm2688_vm2, %v16481_v40, -inf }
 0x8ae   : > { %7175 = vmax.xlane.f32.xlu0 %v7174_v2 }
 0x8af   : > { %v16487_v36 = vadd.f32 %v18882_v52, %v7091_v3  ;;  %v7183_v38 = vsel %vm2688_vm2, %v16484_v14, -inf }
 0x8b0   : > { %7184 = vmax.xlane.f32.xlu1 %v7183_v38  ;;  %v6749_v4 = vpop.f32.mrb[228].mxu1 }
 0x8b1   : > { %v7092_v0 = vmul.f32 0.17677669, %v6749_v4  ;;  %v12512_v50 = vpop.f32.mrb[229].mxu1  ;;  %v7189_v52 = vsel %vm2688_vm2, %v16487_v36, -inf  ;;  %v18885_v4 = vld [vmem:[#allocation97_spill] sm:$0xff] }
 0x8b2   : > { %7181 = vmax.xlane.f32.xlu0 %v7180_v55  ;;  %v6752_v41 = vpop.f32.mrb[230].mxu1  ;;  %v6802_v58 = vpop.f32.mrb[192].mxu0  ;;  %v7186_v55 = vsel %vm2688_vm2, %v16492_v49, -inf }
 0x8b3   : > { %v7093_v53 = vmul.f32 0.17677669, %v6752_v41  ;;  %v12513_v2 = vpop.f32.mrb[231].mxu1  ;;  %v12518_v3 = vpop.f32.mrb[193].mxu0  ;;  %v7094_v19 = vmul.f32 0.17677669, %v6802_v58  ;;  %v16499_v37 = vadd.f32 %v18884_v22, %v7092_v0 }
 0x8b4   : > { %7190 = vmax.xlane.f32.xlu1 %v7189_v52  ;;  %v6805_v38 = vpop.f32.mrb[194].mxu0  ;;  %v18886_v41 = vld [vmem:[#allocation98_spill] sm:$0xff]  ;;  %v18887_v52 = vld [vmem:[#allocation96_spill] sm:$0xff] }
 0x8b5   : > { %v16502_v50 = vadd.f32 %v18885_v4, %v7093_v53  ;;  %v7095_v5 = vmul.f32 0.17677669, %v6805_v38  ;;  %v12519_v43 = vpop.f32.mrb[195].mxu0  ;;  %v16512_v3 = vadd.f32 %v18887_v52, %v7094_v19 }
 0x8b6   : > { %7187 = vmax.xlane.f32.xlu0 %v7186_v55  ;;  %v7192_v43 = vsel %vm2688_vm2, %v16499_v37, -inf }
 0x8b7   : > { %v16507_v2 = vadd.f32 %v18886_v41, %v7095_v5  ;;  %v7195_v58 = vsel %vm2688_vm2, %v16502_v50, -inf  ;;  %v7198_v19 = vsel %vm2688_vm2, %v16512_v3, -inf }
 0x8b8   : > { %7196 = vmax.xlane.f32.xlu1 %v7195_v58  ;;  %v6855_v0 = vpop.f32.mrb[232].mxu1  ;;  %v18888_v58 = vld [vmem:[#allocation99_spill] sm:$0xff] }
 0x8b9   : > { %v7096_v22 = vmul.f32 0.17677669, %v6855_v0  ;;  %v12524_v53 = vpop.f32.mrb[233].mxu1  ;;  %v7201_v41 = vsel %vm2688_vm2, %v16507_v2, -inf }
 0x8ba   : > { %7193 = vmax.xlane.f32.xlu0 %v7192_v43  ;;  %v6858_v38 = vpop.f32.mrb[234].mxu1  ;;  %v6908_v4 = vpop.f32.mrb[196].mxu0  ;;  %v18889_v53 = vld [vmem:[#allocation101_spill] sm:$0xff] }
 0x8bb   : > { %v7097_v55 = vmul.f32 0.17677669, %v6858_v38  ;;  %v12525_v46 = vpop.f32.mrb[235].mxu1  ;;  %v12530_v5 = vpop.f32.mrb[197].mxu0  ;;  %v16521_v0 = vadd.f32 %v18888_v58, %v7096_v22  ;;  %v7098_v43 = vmul.f32 0.17677669, %v6908_v4 }
 0x8bc   : > { %7202 = vmax.xlane.f32.xlu1 %v7201_v41  ;;  %v6911_v54 = vpop.f32.mrb[198].mxu0  ;;  %v18890_v46 = vld [vmem:[#allocation102_spill] sm:$0xff] }
 0x8bd   : > { %v16524_v52 = vadd.f32 %v18889_v53, %v7097_v55  ;;  %v7099_v23 = vmul.f32 0.17677669, %v6911_v54  ;;  %v12531_v57 = vpop.f32.mrb[199].mxu0  ;;  %v16532_v21 = vadd.f32 %v18891_v59, %v7098_v43  ;;  %v7204_v55 = vsel %vm2688_vm2, %v16521_v0, -inf  ;;  %v18892_v53 = vld [vmem:[#allocation103_spill] sm:$0xff]  ;;  %v18893_v43 = vld [vmem:[#allocation104_spill] sm:$0xff] }
 0x8be   : > { %7199 = vmax.xlane.f32.xlu0 %v7198_v19 }
 0x8bf   : > { %v16527_v38 = vadd.f32 %v18890_v46, %v7099_v23  ;;  %v7207_v41 = vsel %vm2688_vm2, %v16524_v52, -inf }
 0x8c0   : > { %7208 = vmax.xlane.f32.xlu1 %v7207_v41  ;;  %v6961_v5 = vpop.f32.mrb[236].mxu1 }
 0x8c1   : > { %v7100_v22 = vmul.f32 0.17677669, %v6961_v5  ;;  %v12536_v58 = vpop.f32.mrb[237].mxu1  ;;  %v7213_v46 = vsel %vm2688_vm2, %v16527_v38, -inf }
 0x8c2   : > { %7205 = vmax.xlane.f32.xlu0 %v7204_v55  ;;  %v6964_v54 = vpop.f32.mrb[238].mxu1  ;;  %v7014_v57 = vpop.f32.mrb[200].mxu0  ;;  %v7210_v55 = vsel %vm2688_vm2, %v16532_v21, -inf }
 0x8c3   : > { %v7101_v4 = vmul.f32 0.17677669, %v6964_v54  ;;  %v12537_v19 = vpop.f32.mrb[239].mxu1  ;;  %v12542_v23 = vpop.f32.mrb[201].mxu0  ;;  %v16539_v8 = vadd.f32 %v18892_v53, %v7100_v22  ;;  %v7102_v58 = vmul.f32 0.17677669, %v7014_v57 }
 0x8c4   : > { %7214 = vmax.xlane.f32.xlu1 %v7213_v46  ;;  %v7017_v41 = vpop.f32.mrb[202].mxu0  ;;  %v18894_v23 = vld [vmem:[#allocation105_spill] sm:$0xff] }
 0x8c5   : > { %v16542_v5 = vadd.f32 %v18893_v43, %v7101_v4  ;;  %v12543_v59 = vpop.f32.mrb[203].mxu0  ;;  %v16549_v46 = vadd.f32 %v18894_v23, %v7102_v58  ;;  %v7216_v4 = vsel %vm2688_vm2, %v16539_v8, -inf  ;;  %v18895_v43 = vld [vmem:[#allocation107_spill] sm:$0xff]  ;;  %v18896_v58 = vld [vmem:[#allocation77_spill] sm:$0xff]  ;;  %v18900_v23 = vld [vmem:[#allocation108_spill] sm:$0xff] }
 0x8c6   : > { %7211 = vmax.xlane.f32.xlu0 %v7210_v55 }
 0x8c7   : > { %v7219_v54 = vsel %vm2688_vm2, %v16542_v5, -inf  ;;  %v7222_v55 = vsel %vm2688_vm2, %v16549_v46, -inf }
 0x8c8   : > { %7220 = vmax.xlane.f32.xlu1 %v7219_v54  ;;  %v7067_v19 = vpop.f32.mrb[240].mxu1 }
 0x8c9   : > { %v7104_v44 = vmul.f32 0.17677669, %v7067_v19  ;;  %v12548_v22 = vpop.f32.mrb[241].mxu1  ;;  %v18897_v19 = vld [vmem:[#allocation74_spill] sm:$0xff] }
 0x8ca   : > { %7217 = vmax.xlane.f32.xlu0 %v7216_v4  ;;  %v7070_v57 = vpop.f32.mrb[242].mxu1  ;;  %v7103_v22 = vmul.f32 0.17677669, %v7017_v41  ;;  %v16564_v4 = vpop.permute.xlu1 %7651 }
 0x8cb   : > { %v12549_v59 = vpop.f32.mrb[243].mxu1  ;;  %v16554_v53 = vadd.f32 %v18895_v43, %v7104_v44  ;;  %18898 = vst [vmem:[#allocation136_spill] sm:$0xff] %v16564_v4  ;;  %v7105_v43 = vmul.f32 0.17677669, %v7070_v57 }
 0x8cc   : > { %v18899_v59 = vld [vmem:[#allocation106_spill] sm:$0xff] }
 0x8cd   : > { %v7228_v54 = vsel %vm2688_vm2, %v16554_v53, -inf  ;;  %v16567_v44 = vadd.f32 %v18899_v59, %v7103_v22  ;;  %v16570_v13 = vadd.f32 %v18900_v23, %v7105_v43 }
 0x8ce   : > { %7223 = vmax.xlane.f32.xlu0 %v7222_v55 }
 0x8cf   : > { %v7225_v55 = vsel %vm2688_vm2, %v16567_v44, -inf }
 0x8d2   : > { %7229 = vmax.xlane.f32.xlu0 %v7228_v54  ;;  %v16574_v54 = vpop.permute.xlu1 %7747 }
 0x8d3   : > { %18901 = vst [vmem:[#allocation137_spill] sm:$0xff] %v16574_v54 }
 0x8d6   : > { %v16580_v41 = vpop.permute.xlu1 %7843 }
 0x8d7   : > { %18902 = vst [vmem:[#allocation138_spill] sm:$0xff] %v16580_v41 }
 0x8d9   : > { %8227 = vrot.lane.b32.xlu1 %v18896_v58, %s13841_s24  ;;  %v7231_v58 = vsel %vm2688_vm2, %v16570_v13, -inf }
 0x8da   : > { %v16584_v57 = vpop.permute.xlu1 %7939 }
 0x8db   : > { %18904 = vst [vmem:[#allocation140_spill] sm:$0xff] %v16584_v57 }
 0x8de   : > { %v16588_v23 = vpop.permute.xlu1 %7987 }
 0x8df   : > { %18906 = vst [vmem:[#allocation142_spill] sm:$0xff] %v16588_v23 }
 0x8e2   : > { %v16592_v54 = vpop.permute.xlu1 %8035 }
 0x8e3   : > { %18908 = vst [vmem:[#allocation144_spill] sm:$0xff] %v16592_v54 }
 0x8e6   : > { %v16596_v4 = vpop.permute.xlu1 %8131 }
 0x8e7   : > { %18910 = vst [vmem:[#allocation146_spill] sm:$0xff] %v16596_v4 }
 0x8e8   : > { %8179 = vrot.lane.b32.xlu0 %v18897_v19, %s13841_s24  ;;  %v16578_v19 = vpop.permute.xlu0 %7603 }
 0x8ec   : > { %v16582_v22 = vpop.permute.xlu0 %7699 }
 0x8ed   : > { %18903 = vst [vmem:[#allocation139_spill] sm:$0xff] %v16582_v22 }
 0x8f0   : > { %v16586_v43 = vpop.permute.xlu0 %7795 }
 0x8f1   : > { %18905 = vst [vmem:[#allocation141_spill] sm:$0xff] %v16586_v43 }
 0x8f4   : > { %v16590_v59 = vpop.permute.xlu0 %7891 }
 0x8f5   : > { %18907 = vst [vmem:[#allocation143_spill] sm:$0xff] %v16590_v59 }
 0x8fd   : > { %7226 = vmax.xlane.f32.xlu1 %v7225_v55  ;;  %v16594_v55 = vpop.permute.xlu0 %8083 }
 0x8fe   : > { %18909 = vst [vmem:[#allocation145_spill] sm:$0xff] %v16594_v55 }
 0x901   : > { %7232 = vmax.xlane.f32.xlu1 %v7231_v58 }
 0x91d   : > { %v7140_v15 = vpop.xlane.xlu0 %7139 }
 0x91e   : > { %v7234_v58 = vsub.f32 %v16411_v56, %v7140_v15 }
 0x91f   : > { %v7143_v41 = vpop.xlane.xlu1 %7142 }
 0x920   : > { %v7266_v24 = vmul.f32 1.442695, %v7234_v58  ;;  %v7235_v22 = vsub.f32 %v16414_v6, %v7143_v41 }
 0x922   : > { %13485 = vpow2.f32 %v7266_v24  ;;  %v7268_v57 = vmul.f32 1.442695, %v7235_v22 }
 0x923   : > { %v7146_v43 = vpop.xlane.xlu0 %7145 }
 0x924   : > { %13487 = vpow2.f32 %v7268_v57  ;;  %v7236_v23 = vsub.f32 %v16421_v32, %v7146_v43 }
 0x926   : > { %v7270_v59 = vmul.f32 1.442695, %v7236_v23 }
 0x927   : > { %v7155_v10 = vpop.xlane.xlu1 %7154  ;;  %v7149_v54 = vpop.xlane.xlu0 %7148 }
 0x928   : > { %13489 = vpow2.f32 %v7270_v59  ;;  %v7239_v55 = vsub.f32 %v16429_v1, %v7155_v10  ;;  %v7237_v4 = vsub.f32 %v16424_v39, %v7149_v54 }
 0x92a   : > { %v7272_v7 = vmul.f32 1.442695, %v7237_v4  ;;  %v7276_v15 = vmul.f32 1.442695, %v7239_v55 }
 0x92b   : > { %v7152_v56 = vpop.xlane.xlu0 %7151 }
 0x92c   : > { %v16603_v58 = vpop.eup %13485  ;;  %v7238_v24 = vsub.f32 %v16432_v20, %v7152_v56  ;;  %13491 = vpow2.f32 %v7272_v7 }
 0x92d   : > { %v7161_v6 = vpop.xlane.xlu1 %7160  ;;  %v7330_v32 = vsel %vm2688_vm2, %v16603_v58, 0.0  ;;  %13493 = vpow2.f32 %v7276_v15 }
 0x92e   : > { %v16608_v23 = vpop.eup %13487  ;;  %v7274_v41 = vmul.f32 1.442695, %v7238_v24  ;;  %v7241_v59 = vsub.f32 %v16444_v33, %v7161_v6  ;;  %7331 = vadd.xlane.f32.xlu0 %v7330_v32 }
 0x92f   : > { %v7158_v10 = vpop.xlane.xlu0 %7157  ;;  %v7333_v1 = vsel %vm2688_vm2, %v16608_v23, 0.0 }
 0x930   : > { %13495 = vpow2.f32 %v7274_v41  ;;  %v7280_v39 = vmul.f32 1.442695, %v7241_v59  ;;  %v7240_v20 = vsub.f32 %v16441_v28, %v7158_v10  ;;  %7334 = vadd.xlane.f32.xlu1 %v7333_v1 }
 0x931   : > { %v7167_v7 = vpop.xlane.xlu1 %7166 }
 0x932   : > { %v16614_v4 = vpop.eup %13489  ;;  %v7278_v54 = vmul.f32 1.442695, %v7240_v20  ;;  %v7243_v22 = vsub.f32 %v16447_v62, %v7167_v7  ;;  %13497 = vpow2.f32 %v7280_v39 }
 0x933   : > { %v7164_v57 = vpop.xlane.xlu0 %7163  ;;  %v7336_v33 = vsel %vm2688_vm2, %v16614_v4, 0.0 }
 0x934   : > { %13499 = vpow2.f32 %v7278_v54  ;;  %v7284_v43 = vmul.f32 1.442695, %v7243_v22  ;;  %v7242_v55 = vsub.f32 %v16452_v45, %v7164_v57  ;;  %7337 = vadd.xlane.f32.xlu0 %v7336_v33 }
 0x935   : > { %v7173_v15 = vpop.xlane.xlu1 %7172 }
 0x936   : > { %v7282_v56 = vmul.f32 1.442695, %v7242_v55  ;;  %v7245_v28 = vsub.f32 %v16462_v63, %v7173_v15  ;;  %v16621_v24 = vpop.eup %13491  ;;  %13501 = vpow2.f32 %v7284_v43 }
 0x937   : > { %v7170_v6 = vpop.xlane.xlu0 %7169  ;;  %v7339_v41 = vsel %vm2688_vm2, %v16621_v24, 0.0  ;;  %v16626_v59 = vpop.eup %13493 }
 0x938   : > { %13503 = vpow2.f32 %v7282_v56  ;;  %v7288_v62 = vmul.f32 1.442695, %v7245_v28  ;;  %v7244_v32 = vsub.f32 %v16459_v61, %v7170_v6  ;;  %7340 = vadd.xlane.f32.xlu1 %v7339_v41  ;;  %v7345_v54 = vsel %vm2688_vm2, %v16626_v59, 0.0 }
 0x939   : > { %v7179_v45 = vpop.xlane.xlu1 %7178 }
 0x93a   : > { %v16628_v10 = vpop.eup %13495  ;;  %v7286_v1 = vmul.f32 1.442695, %v7244_v32  ;;  %v7247_v63 = vsub.f32 %v16467_v9, %v7179_v45  ;;  %13505 = vpow2.f32 %v7288_v62 }
 0x93b   : > { %v7176_v39 = vpop.xlane.xlu0 %7175  ;;  %v7342_v20 = vsel %vm2688_vm2, %v16628_v10, 0.0 }
 0x93c   : > { %13507 = vpow2.f32 %v7286_v1  ;;  %v7292_v7 = vmul.f32 1.442695, %v7247_v63  ;;  %v7246_v61 = vsub.f32 %v16472_v34, %v7176_v39  ;;  %7343 = vadd.xlane.f32.xlu0 %v7342_v20  ;;  %v16636_v22 = vpop.eup %13497  ;;  %7346 = vadd.xlane.f32.xlu1 %v7345_v54 }
 0x93d   : > { %v7185_v57 = vpop.xlane.xlu1 %7184  ;;  %v7351_v28 = vsel %vm2688_vm2, %v16636_v22, 0.0 }
 0x93e   : > { %v16638_v33 = vpop.eup %13499  ;;  %v7290_v9 = vmul.f32 1.442695, %v7246_v61  ;;  %v7249_v43 = vsub.f32 %v16484_v14, %v7185_v57  ;;  %13509 = vpow2.f32 %v7292_v7 }
 0x93f   : > { %v7182_v55 = vpop.xlane.xlu0 %7181  ;;  %v7348_v15 = vsel %vm2688_vm2, %v16638_v33, 0.0 }
 0x940   : > { %13511 = vpow2.f32 %v7290_v9  ;;  %v7296_v34 = vmul.f32 1.442695, %v7249_v43  ;;  %v7248_v56 = vsub.f32 %v16481_v40, %v7182_v55  ;;  %7349 = vadd.xlane.f32.xlu0 %v7348_v15  ;;  %v16646_v6 = vpop.eup %13501  ;;  %7352 = vadd.xlane.f32.xlu1 %v7351_v28 }
 0x941   : > { %v7191_v62 = vpop.xlane.xlu1 %7190  ;;  %v7357_v40 = vsel %vm2688_vm2, %v16646_v6, 0.0 }
 0x942   : > { %v16648_v32 = vpop.eup %13503  ;;  %v7294_v14 = vmul.f32 1.442695, %v7248_v56  ;;  %13513 = vpow2.f32 %v7296_v34  ;;  %v7251_v7 = vsub.f32 %v16487_v36, %v7191_v62 }
 0x943   : > { %v7188_v41 = vpop.xlane.xlu0 %7187  ;;  %v7354_v45 = vsel %vm2688_vm2, %v16648_v32, 0.0 }
 0x944   : > { %13515 = vpow2.f32 %v7294_v14  ;;  %v7250_v1 = vsub.f32 %v16492_v49, %v7188_v41  ;;  %7355 = vadd.xlane.f32.xlu0 %v7354_v45  ;;  %v16655_v63 = vpop.eup %13505  ;;  %7358 = vadd.xlane.f32.xlu1 %v7357_v40  ;;  %v7300_v56 = vmul.f32 1.442695, %v7251_v7 }
 0x945   : > { %v7197_v39 = vpop.xlane.xlu1 %7196  ;;  %v7363_v55 = vsel %vm2688_vm2, %v16655_v63, 0.0 }
 0x946   : > { %v16657_v20 = vpop.eup %13507  ;;  %v7298_v61 = vmul.f32 1.442695, %v7250_v1  ;;  %v7253_v54 = vsub.f32 %v16502_v50, %v7197_v39 }
 0x947   : > { %v7194_v57 = vpop.xlane.xlu0 %7193  ;;  %v7360_v9 = vsel %vm2688_vm2, %v16657_v20, 0.0 }
 0x948   : > { %13517 = vpow2.f32 %v7298_v61  ;;  %v7304_v49 = vmul.f32 1.442695, %v7253_v54  ;;  %v7252_v43 = vsub.f32 %v16499_v37, %v7194_v57  ;;  %7361 = vadd.xlane.f32.xlu0 %v7360_v9  ;;  %v16666_v15 = vpop.eup %13509  ;;  %7364 = vadd.xlane.f32.xlu1 %v7363_v55 }
 0x949   : > { %v7203_v34 = vpop.xlane.xlu1 %7202  ;;  %v7369_v14 = vsel %vm2688_vm2, %v16666_v15, 0.0 }
 0x94a   : > { %v16668_v36 = vpop.eup %13511  ;;  %v7302_v50 = vmul.f32 1.442695, %v7252_v43  ;;  %13519 = vpow2.f32 %v7304_v49  ;;  %v7255_v40 = vsub.f32 %v16507_v2, %v7203_v34 }
 0x94b   : > { %v7200_v28 = vpop.xlane.xlu0 %7199  ;;  %v7366_v62 = vsel %vm2688_vm2, %v16668_v36, 0.0 }
 0x94c   : > { %13521 = vpow2.f32 %v7302_v50  ;;  %v7254_v37 = vsub.f32 %v16512_v3, %v7200_v28  ;;  %7367 = vadd.xlane.f32.xlu0 %v7366_v62  ;;  %v16675_v41 = vpop.eup %13513  ;;  %7370 = vadd.xlane.f32.xlu1 %v7369_v14  ;;  %v7308_v2 = vmul.f32 1.442695, %v7255_v40 }
 0x94d   : > { %v7209_v45 = vpop.xlane.xlu1 %7208  ;;  %13523 = vpow2.f32 %v7300_v56  ;;  %v7375_v9 = vsel %vm2688_vm2, %v16675_v41, 0.0 }
 0x94e   : > { %v16677_v1 = vpop.eup %13515  ;;  %v7306_v39 = vmul.f32 1.442695, %v7254_v37  ;;  %v7257_v7 = vsub.f32 %v16524_v52, %v7209_v45 }
 0x94f   : > { %v7206_v61 = vpop.xlane.xlu0 %7205  ;;  %v7372_v3 = vsel %vm2688_vm2, %v16677_v1, 0.0 }
 0x950   : > { %13525 = vpow2.f32 %v7306_v39  ;;  %v7312_v54 = vmul.f32 1.442695, %v7257_v7  ;;  %v7256_v57 = vsub.f32 %v16521_v0, %v7206_v61  ;;  %7373 = vadd.xlane.f32.xlu0 %v7372_v3  ;;  %7376 = vadd.xlane.f32.xlu1 %v7375_v9 }
 0x951   : > { %v7215_v49 = vpop.xlane.xlu1 %7214 }
 0x952   : > { %v16686_v43 = vpop.eup %13517  ;;  %v7310_v55 = vmul.f32 1.442695, %v7256_v57  ;;  %13527 = vpow2.f32 %v7312_v54  ;;  %v7259_v62 = vsub.f32 %v16527_v38, %v7215_v49 }
 0x953   : > { %v7212_v52 = vpop.xlane.xlu0 %7211  ;;  %v7378_v34 = vsel %vm2688_vm2, %v16686_v43, 0.0 }
 0x954   : > { %13529 = vpow2.f32 %v7310_v55  ;;  %v7258_v56 = vsub.f32 %v16532_v21, %v7212_v52  ;;  %v16691_v50 = vpop.eup %13519  ;;  %7379 = vadd.xlane.f32.xlu1 %v7378_v34  ;;  %v7316_v38 = vmul.f32 1.442695, %v7259_v62 }
 0x955   : > { %v7221_v0 = vpop.xlane.xlu1 %7220  ;;  %13531 = vpow2.f32 %v7308_v2  ;;  %v7387_v61 = vsel %vm2688_vm2, %v16691_v50, 0.0 }
 0x956   : > { %v16693_v28 = vpop.eup %13521  ;;  %v7314_v37 = vmul.f32 1.442695, %v7258_v56  ;;  %v7261_v14 = vsub.f32 %v16542_v5, %v7221_v0 }
 0x957   : > { %v7218_v45 = vpop.xlane.xlu0 %7217  ;;  %v7384_v40 = vsel %vm2688_vm2, %v16693_v28, 0.0  ;;  %v16699_v39 = vpop.eup %13523 }
 0x958   : > { %13533 = vpow2.f32 %v7314_v37  ;;  %v7320_v21 = vmul.f32 1.442695, %v7261_v14  ;;  %v7260_v7 = vsub.f32 %v16539_v8, %v7218_v45  ;;  %7385 = vadd.xlane.f32.xlu0 %v7384_v40  ;;  %7388 = vadd.xlane.f32.xlu1 %v7387_v61  ;;  %v7381_v57 = vsel %vm2688_vm2, %v16699_v39, 0.0 }
 0x95a   : > { %v16704_v3 = vpop.eup %13525  ;;  %v7318_v54 = vmul.f32 1.442695, %v7260_v7  ;;  %13535 = vpow2.f32 %v7320_v21 }
 0x95b   : > { %v7224_v5 = vpop.xlane.xlu0 %7223  ;;  %v7390_v9 = vsel %vm2688_vm2, %v16704_v3, 0.0 }
 0x95c   : > { %13537 = vpow2.f32 %v7318_v54  ;;  %v7262_v8 = vsub.f32 %v16549_v46, %v7224_v5  ;;  %7382 = vadd.xlane.f32.xlu0 %v7381_v57  ;;  %v16711_v49 = vpop.eup %13527  ;;  %7391 = vadd.xlane.f32.xlu1 %v7390_v9 }
 0x95d   : > { %13539 = vpow2.f32 %v7316_v38  ;;  %v7399_v46 = vsel %vm2688_vm2, %v16711_v49, 0.0 }
 0x95e   : > { %v16713_v2 = vpop.eup %13529  ;;  %v7322_v55 = vmul.f32 1.442695, %v7262_v8  ;;  %v16750_v8 = vpop.permute.xlu1 %8227 }
 0x95f   : > { %v7230_v52 = vpop.xlane.xlu0 %7229  ;;  %v7396_v34 = vsel %vm2688_vm2, %v16713_v2, 0.0  ;;  %v16717_v56 = vpop.eup %13531 }
 0x960   : > { %13541 = vpow2.f32 %v7322_v55  ;;  %v7264_v0 = vsub.f32 %v16554_v53, %v7230_v52  ;;  %7397 = vadd.xlane.f32.xlu0 %v7396_v34  ;;  %7400 = vadd.xlane.f32.xlu1 %v7399_v46  ;;  %v7393_v14 = vsel %vm2688_vm2, %v16717_v56, 0.0 }
 0x962   : > { %v16722_v62 = vpop.eup %13533  ;;  %v7326_v37 = vmul.f32 1.442695, %v7264_v0 }
 0x963   : > { %v7402_v45 = vsel %vm2688_vm2, %v16722_v62, 0.0 }
 0x964   : > { %13543 = vpow2.f32 %v7326_v37  ;;  %7394 = vadd.xlane.f32.xlu0 %v7393_v14  ;;  %v16728_v40 = vpop.eup %13535  ;;  %7403 = vadd.xlane.f32.xlu1 %v7402_v45 }
 0x965   : > { %v7411_v61 = vsel %vm2688_vm2, %v16728_v40, 0.0 }
 0x966   : > { %v16730_v53 = vpop.eup %13537 }
 0x967   : > { %v7408_v21 = vsel %vm2688_vm2, %v16730_v53, 0.0  ;;  %v16734_v7 = vpop.eup %13539 }
 0x968   : > { %7409 = vadd.xlane.f32.xlu0 %v7408_v21  ;;  %7412 = vadd.xlane.f32.xlu1 %v7411_v61  ;;  %v7405_v54 = vsel %vm2688_vm2, %v16734_v7, 0.0 }
 0x96a   : > { %v16738_v38 = vpop.eup %13541 }
 0x96b   : > { %v7414_v5 = vsel %vm2688_vm2, %v16738_v38, 0.0 }
 0x96c   : > { %7406 = vadd.xlane.f32.xlu0 %v7405_v54  ;;  %7415 = vadd.xlane.f32.xlu1 %v7414_v5  ;;  %v18913_v5 = vld [vmem:[#allocation22_spill] sm:$0xff] }
 0x96e   : > { %v16744_v57 = vpop.eup %13543 }
 0x96f   : > { %v7420_v9 = vsel %vm2688_vm2, %v16744_v57, 0.0 }
 0x970   : > { %7421 = vadd.xlane.f32.xlu0 %v7420_v9 }
 0x97d   : > { %8604 = vrot.lane.b32.xlu1 %v14519_v35, %s13842_s26 }
 0x98a   : > { %v7227_v55 = vpop.xlane.xlu1 %7226 }
 0x98b   : > { %v7263_v52 = vsub.f32 %v16567_v44, %v7227_v55 }
 0x98d   : > { %v7324_v34 = vmul.f32 1.442695, %v7263_v52 }
 0x98e   : > { %v7233_v0 = vpop.xlane.xlu1 %7232 }
 0x98f   : > { %13545 = vpow2.f32 %v7324_v34  ;;  %v7265_v46 = vsub.f32 %v16570_v13, %v7233_v0  ;;  %v16768_v13 = vpop.permute.xlu0 %8179  ;;  %v18914_v0 = vld [vmem:[#allocation17_spill] sm:$0xff] }
 0x991   : > { %v7328_v37 = vmul.f32 1.442695, %v7265_v46 }
 0x993   : > { %13547 = vpow2.f32 %v7328_v37 }
 0x999   : > { %v16754_v14 = vpop.eup %13545 }
 0x99a   : > { %v7417_v45 = vsel %vm2688_vm2, %v16754_v14, 0.0 }
 0x99b   : > { %7418 = vadd.xlane.f32.xlu0 %v7417_v45  ;;  %v18916_v45 = vld [vmem:[#allocation12_spill] sm:$0xff] }
 0x99d   : > { %v16758_v21 = vpop.eup %13547 }
 0x99e   : > { %v7423_v35 = vsel %vm2688_vm2, %v16758_v21, 0.0 }
 0x9a1   : > { %7424 = vadd.xlane.f32.xlu1 %v7423_v35 }
 0x9b1   : > { %8551 = vrot.lane.b32.xlu0 %v14510_v17, %s13842_s26 }
 0x9b2   : > { %8657 = vrot.lane.b32.xlu1 %v14532_v31, %s13842_s26 }
 0x9b5   : > { %8548 = vrot.lane.b32.xlu0 %v14508_v26, %s13842_s26 }
 0x9b6   : > { %8710 = vrot.lane.b32.xlu1 %v14541_v18, %s13842_s26 }
 0x9b9   : > { %8601 = vrot.lane.b32.xlu0 %v14517_v51, %s13842_s26 }
 0x9ba   : > { %8763 = vrot.lane.b32.xlu1 %v18657_v42, %s13842_s26 }
 0x9bb   : > { %v7332_v44 = vpop.xlane.xlu0 %7331 }
 0x9bc   : > { %13549 = vrcp.f32 %v7332_v44 }
 0x9bd   : > { %v7335_v17 = vpop.xlane.xlu1 %7334  ;;  %8654 = vrot.lane.b32.xlu0 %v14530_v60, %s13842_s26 }
 0x9be   : > { %13551 = vrcp.f32 %v7335_v17  ;;  %8816 = vrot.lane.b32.xlu1 %v18660_v16, %s13842_s26  ;;  %v18917_v17 = vld [vmem:[#allocation19_spill] sm:$0xff] }
 0x9c1   : > { %8707 = vrot.lane.b32.xlu0 %v14539_v27, %s13842_s26  ;;  %v7338_v26 = vpop.xlane.xlu0 %7337 }
 0x9c2   : > { %8869 = vrot.lane.b32.xlu1 %v18663_v25, %s13842_s26  ;;  %13553 = vrcp.f32 %v7338_v26 }
 0x9c5   : > { %8760 = vrot.lane.b32.xlu0 %v14549_v12, %s13842_s26  ;;  %v7341_v31 = vpop.xlane.xlu1 %7340 }
 0x9c6   : > { %v13550_v51 = vpop.eup %13549  ;;  %13555 = vrcp.f32 %v7341_v31  ;;  %8922 = vrot.lane.b32.xlu1 %v18666_v30, %s13842_s26 }
 0x9c7   : > { %v7458_v18 = vmul.f32 %v13550_v51, %v16603_v58  ;;  %v18911_v58 = vld [vmem:[#allocation20_spill] sm:$0xff] }
 0x9c8   : > { %v13552_v60 = vpop.eup %13551 }
 0x9c9   : > { %v7459_v42 = vmul.f32 %v13552_v60, %v16608_v23  ;;  %8813 = vrot.lane.b32.xlu0 %v14558_v11, %s13842_s26  ;;  %v7344_v27 = vpop.xlane.xlu0 %7343  ;;  %v7347_v16 = vpop.xlane.xlu1 %7346  ;;  %v18918_v60 = vld [vmem:[#allocation139_spill] sm:$0xff] }
 0x9ca   : > { %13557 = vrcp.f32 %v7344_v27  ;;  %8975 = vrot.lane.b32.xlu1 %v18668_v48, %s13842_s26 }
 0x9cb   : > { %13559 = vrcp.f32 %v7347_v16  ;;  %v7490_v12 = vpack.c.bf16 %v7459_v42, %v7458_v18  ;;  %v18919_v18 = vld [vmem:[#allocation16_spill] sm:$0xff]  ;;  %v18920_v16 = vld [vmem:[#allocation21_spill] sm:$0xff] }
 0x9cc   : > { %v13554_v11 = vpop.eup %13553 }
 0x9cd   : > { %8866 = vrot.lane.b32.xlu0 %v14568_v29, %s13842_s26  ;;  %12553 = vmatmul.mubr.msk.bf16.vlgmr.msra.gmra.mrb[204].mxu0 %vm2688_vm2, %v7490_v12  ;;  %v7350_v25 = vpop.xlane.xlu0 %7349  ;;  %v7353_v30 = vpop.xlane.xlu1 %7352  ;;  %v18912_v29 = vld [vmem:[#allocation13_spill] sm:$0xff]  ;;  %v7460_v61 = vmul.f32 %v13554_v11, %v16614_v4 }
 0x9ce   : > { %12563 = vmatpush3.bf16.msra.mxu0 %v16578_v19  ;;  %13561 = vrcp.f32 %v7350_v25  ;;  %12564 = vmatprep.mubr.msk.bf16.mxu0 %vm13839_vm0, %v18793_v47  ;;  %v18921_v11 = vld [vmem:[#allocation137_spill] sm:$0xff] }
 0x9cf   : > { %13563 = vrcp.f32 %v7353_v30  ;;  %9028 = vrot.lane.b32.xlu1 %v18911_v58, %s13842_s26  ;;  %12574 = vmatprep.subr.bf16.mxu0 %v18793_v47  ;;  %v18922_v58 = vld [vmem:[#allocation24_spill] sm:$0xff] }
 0x9d0   : > { %v13556_v48 = vpop.eup %13555 }
 0x9d1   : > { %8919 = vrot.lane.b32.xlu0 %v18912_v29, %s13842_s26  ;;  %v7356_v23 = vpop.xlane.xlu0 %7355  ;;  %v7461_v19 = vmul.f32 %v13556_v48, %v16621_v24  ;;  %v7359_v54 = vpop.xlane.xlu1 %7358  ;;  %v18915_v24 = vld [vmem:[#allocation136_spill] sm:$0xff] }
 0x9d2   : > { %13565 = vrcp.f32 %v7356_v23  ;;  %v18923_v23 = vld [vmem:[#allocation10_spill] sm:$0xff] }
 0x9d3   : > { %13567 = vrcp.f32 %v7359_v54  ;;  %9081 = vrot.lane.b32.xlu1 %v18913_v5, %s13842_s26  ;;  %v7491_v55 = vpack.c.bf16 %v7461_v19, %v7460_v61  ;;  %v18924_v54 = vld [vmem:[#allocation141_spill] sm:$0xff]  ;;  %v18925_v5 = vld [vmem:[#allocation26_spill] sm:$0xff] }
 0x9d4   : > { %v13558_v9 = vpop.eup %13557 }
 0x9d5   : > { %v13560_v52 = vpop.eup %13559  ;;  %v7462_v34 = vmul.f32 %v13558_v9, %v16628_v10  ;;  %8972 = vrot.lane.b32.xlu0 %v18914_v0, %s13842_s26  ;;  %v7362_v46 = vpop.xlane.xlu0 %7361  ;;  %12559 = vmatmul.mubr.msk.bf16.vlgmr.msra.gmra.mrb[244].mxu1 %vm2688_vm2, %v7491_v55 }
 0x9d6   : > { %v7463_v37 = vmul.f32 %v13560_v52, %v16626_v59  ;;  %v7365_v4 = vpop.xlane.xlu1 %7364  ;;  %13569 = vrcp.f32 %v7362_v46  ;;  %12569 = vmatpush3.bf16.msra.mxu1 %v18915_v24  ;;  %12570 = vmatprep.mubr.msk.bf16.mxu1 %vm13839_vm0, %v18793_v47 }
 0x9d7   : > { %13571 = vrcp.f32 %v7365_v4  ;;  %9134 = vrot.lane.b32.xlu1 %v18916_v45, %s13842_s26  ;;  %12580 = vmatprep.subr.bf16.mxu1 %v18793_v47  ;;  %v18928_v4 = vld [vmem:[#allocation28_spill] sm:$0xff] }
 0x9d8   : > { %v13562_v35 = vpop.eup %13561  ;;  %v7492_v44 = vpack.c.bf16 %v7463_v37, %v7462_v34  ;;  %v18927_v37 = vld [vmem:[#allocation138_spill] sm:$0xff] }
 0x9d9   : > { %v13564_v10 = vpop.eup %13563  ;;  %v7464_v59 = vmul.f32 %v13562_v35, %v16638_v33  ;;  %9025 = vrot.lane.b32.xlu0 %v18917_v17, %s13842_s26  ;;  %v7368_v26 = vpop.xlane.xlu0 %7367  ;;  %v18929_v35 = vld [vmem:[#allocation23_spill] sm:$0xff] }
 0x9da   : > { %v7465_v51 = vmul.f32 %v13564_v10, %v16636_v22  ;;  %v7371_v31 = vpop.xlane.xlu1 %7370  ;;  %12565 = vmatmul.mubr.msk.bf16.vlgmr.msra.gmra.mrb[208].mxu0 %vm2688_vm2, %v7492_v44  ;;  %13573 = vrcp.f32 %v7368_v26  ;;  %v18930_v17 = vld [vmem:[#allocation143_spill] sm:$0xff] }
 0x9db   : > { %13575 = vrcp.f32 %v7371_v31  ;;  %12575 = vmatpush3.bf16.msra.mxu0 %v18918_v60  ;;  %9187 = vrot.lane.b32.xlu1 %v18919_v18, %s13842_s26  ;;  %v18931_v26 = vld [vmem:[#allocation27_spill] sm:$0xff]  ;;  %v18933_v60 = vld [vmem:[#allocation140_spill] sm:$0xff]  ;;  %v18934_v18 = vld [vmem:[#allocation33_spill] sm:$0xff] }
 0x9dc   : > { %v13566_v42 = vpop.eup %13565  ;;  %v7493_v27 = vpack.c.bf16 %v7465_v51, %v7464_v59  ;;  %12576 = vmatprep.mubr.msk.bf16.mxu0 %vm13839_vm0, %v18793_v47  ;;  %12586 = vmatprep.subr.bf16.mxu0 %v18793_v47 }
 0x9dd   : > { %v13568_v33 = vpop.eup %13567  ;;  %v7466_v22 = vmul.f32 %v13566_v42, %v16648_v32  ;;  %9078 = vrot.lane.b32.xlu0 %v18920_v16, %s13842_s26  ;;  %v7374_v12 = vpop.xlane.xlu0 %7373 }
 0x9de   : > { %v7467_v25 = vmul.f32 %v13568_v33, %v16646_v6  ;;  %v7377_v30 = vpop.xlane.xlu1 %7376  ;;  %12571 = vmatmul.mubr.msk.bf16.vlgmr.msra.gmra.mrb[248].mxu1 %vm2688_vm2, %v7493_v27  ;;  %13577 = vrcp.f32 %v7374_v12 }
 0x9df   : > { %13579 = vrcp.f32 %v7377_v30  ;;  %12581 = vmatpush3.bf16.msra.mxu1 %v18921_v11  ;;  %9240 = vrot.lane.b32.xlu1 %v18922_v58, %s13842_s26  ;;  %v18936_v11 = vld [vmem:[#allocation39_spill] sm:$0xff] }
 0x9e0   : > { %v13570_v48 = vpop.eup %13569  ;;  %v7494_v29 = vpack.c.bf16 %v7467_v25, %v7466_v22  ;;  %12582 = vmatprep.mubr.msk.bf16.mxu1 %vm13839_vm0, %v18793_v47  ;;  %12592 = vmatprep.subr.bf16.mxu1 %v18793_v47  ;;  %v18935_v22 = vld [vmem:[#allocation30_spill] sm:$0xff] }
 0x9e1   : > { %v13572_v32 = vpop.eup %13571  ;;  %v7468_v6 = vmul.f32 %v13570_v48, %v16657_v20  ;;  %9131 = vrot.lane.b32.xlu0 %v18923_v23, %s13842_s26 }
 0x9e2   : > { %v7469_v61 = vmul.f32 %v13572_v32, %v16655_v63  ;;  %v7380_v19 = vpop.xlane.xlu1 %7379  ;;  %12577 = vmatmul.mubr.msk.bf16.vlgmr.msra.gmra.mrb[212].mxu0 %vm2688_vm2, %v7494_v29  ;;  %v18926_v63 = vld [vmem:[#allocation14_spill] sm:$0xff] }
 0x9e3   : > { %12587 = vmatpush3.bf16.msra.mxu0 %v18924_v54  ;;  %9293 = vrot.lane.b32.xlu1 %v18925_v5, %s13842_s26  ;;  %v18940_v5 = vld [vmem:[#allocation42_spill] sm:$0xff] }
 0x9e4   : > { %v13574_v9 = vpop.eup %13573  ;;  %v7495_v55 = vpack.c.bf16 %v7469_v61, %v7468_v6  ;;  %12588 = vmatprep.mubr.msk.bf16.mxu0 %vm13839_vm0, %v18793_v47  ;;  %12598 = vmatprep.subr.bf16.mxu0 %v18793_v47  ;;  %v18939_v61 = vld [vmem:[#allocation45_spill] sm:$0xff] }
 0x9e5   : > { %v13576_v20 = vpop.eup %13575  ;;  %v7470_v52 = vmul.f32 %v13574_v9, %v16668_v36  ;;  %9184 = vrot.lane.b32.xlu0 %v18926_v63, %s13842_s26  ;;  %v7386_v34 = vpop.xlane.xlu0 %7385  ;;  %v18942_v63 = vld [vmem:[#allocation53_spill] sm:$0xff] }
 0x9e6   : > { %v7471_v0 = vmul.f32 %v13576_v20, %v16666_v15  ;;  %v7389_v46 = vpop.xlane.xlu1 %7388  ;;  %12583 = vmatmul.mubr.msk.bf16.vlgmr.msra.gmra.mrb[252].mxu1 %vm2688_vm2, %v7495_v55  ;;  %13581 = vrcp.f32 %v7386_v34 }
 0x9e7   : > { %13583 = vrcp.f32 %v7389_v46  ;;  %12593 = vmatpush3.bf16.msra.mxu1 %v18927_v37  ;;  %9346 = vrot.lane.b32.xlu1 %v18928_v4, %s13842_s26  ;;  %v18943_v37 = vld [vmem:[#allocation50_spill] sm:$0xff]  ;;  %v18945_v4 = vld [vmem:[#allocation59_spill] sm:$0xff] }
 0x9e8   : > { %v13578_v24 = vpop.eup %13577  ;;  %13585 = vrcp.f32 %v7380_v19  ;;  %v7496_v45 = vpack.c.bf16 %v7471_v0, %v7470_v52  ;;  %12594 = vmatprep.mubr.msk.bf16.mxu1 %vm13839_vm0, %v18793_v47  ;;  %12604 = vmatprep.subr.bf16.mxu1 %v18793_v47  ;;  %v18941_v52 = vld [vmem:[#allocation142_spill] sm:$0xff] }
 0x9e9   : > { %v13580_v36 = vpop.eup %13579  ;;  %v7472_v15 = vmul.f32 %v13578_v24, %v16677_v1  ;;  %9237 = vrot.lane.b32.xlu0 %v18929_v35, %s13842_s26  ;;  %v7383_v44 = vpop.xlane.xlu0 %7382  ;;  %v18932_v1 = vld [vmem:[#allocation25_spill] sm:$0xff] }
 0x9ea   : > { %v7473_v10 = vmul.f32 %v13580_v36, %v16675_v41  ;;  %v7392_v59 = vpop.xlane.xlu1 %7391  ;;  %12589 = vmatmul.mubr.msk.bf16.vlgmr.msra.gmra.mrb[216].mxu0 %vm2688_vm2, %v7496_v45  ;;  %13587 = vrcp.f32 %v7383_v44  ;;  %v18946_v36 = vld [vmem:[#allocation56_spill] sm:$0xff]  ;;  %v18947_v44 = vld [vmem:[#allocation145_spill] sm:$0xff] }
 0x9eb   : > { %12599 = vmatpush3.bf16.msra.mxu0 %v18930_v17  ;;  %9343 = vrot.lane.b32.xlu1 %v18931_v26, %s13842_s26 }
 0x9ec   : > { %v7497_v51 = vpack.c.bf16 %v7473_v10, %v7472_v15  ;;  %12600 = vmatprep.mubr.msk.bf16.mxu0 %vm13839_vm0, %v18793_v47  ;;  %12610 = vmatprep.subr.bf16.mxu0 %v18793_v47  ;;  %v18948_v10 = vld [vmem:[#allocation62_spill] sm:$0xff] }
 0x9ed   : > { %9290 = vrot.lane.b32.xlu0 %v18932_v1, %s13842_s26  ;;  %v7398_v31 = vpop.xlane.xlu0 %7397 }
 0x9ee   : > { %v7401_v41 = vpop.xlane.xlu1 %7400  ;;  %12595 = vmatmul.mubr.msk.bf16.vlgmr.msra.gmra.mrb[0].mxu1 %vm2688_vm2, %v7497_v51  ;;  %13589 = vrcp.f32 %v7398_v31  ;;  %v18949_v51 = vld [vmem:[#allocation68_spill] sm:$0xff]  ;;  %v18954_v31 = vld [vmem:[#allocation77_spill] sm:$0xff] }
 0x9ef   : > { %13591 = vrcp.f32 %v7401_v41  ;;  %12605 = vmatpush3.bf16.msra.mxu1 %v18933_v60  ;;  %9876 = vrot.lane.b32.xlu1 %v18934_v18, %s13842_s26  ;;  %v18955_v41 = vld [vmem:[#allocation9_spill] sm:$0xff] }
 0x9f0   : > { %v13582_v42 = vpop.eup %13581  ;;  %13593 = vrcp.f32 %v7392_v59  ;;  %12606 = vmatprep.mubr.msk.bf16.mxu1 %vm13839_vm0, %v18793_v47  ;;  %12616 = vmatprep.subr.bf16.mxu1 %v18793_v47 }
 0x9f1   : > { %v13584_v27 = vpop.eup %13583  ;;  %v7476_v33 = vmul.f32 %v13582_v42, %v16693_v28  ;;  %9828 = vrot.lane.b32.xlu0 %v18935_v22, %s13842_s26  ;;  %v7395_v16 = vpop.xlane.xlu0 %7394  ;;  %v18937_v28 = vld [vmem:[#allocation36_spill] sm:$0xff] }
 0x9f2   : > { %v13586_v12 = vpop.eup %13585  ;;  %v7477_v25 = vmul.f32 %v13584_v27, %v16691_v50  ;;  %v7404_v30 = vpop.xlane.xlu1 %7403  ;;  %13595 = vrcp.f32 %v7395_v16  ;;  %v18938_v50 = vld [vmem:[#allocation144_spill] sm:$0xff] }
 0x9f3   : > { %9972 = vrot.lane.b32.xlu1 %v18936_v11, %s13842_s26  ;;  %v7474_v29 = vmul.f32 %v13586_v12, %v16686_v43 }
 0x9f4   : > { %v13588_v58 = vpop.eup %13587  ;;  %v7499_v48 = vpack.c.bf16 %v7477_v25, %v7476_v33 }
 0x9f5   : > { %v7475_v32 = vmul.f32 %v13588_v58, %v16699_v39  ;;  %9924 = vrot.lane.b32.xlu0 %v18937_v28, %s13842_s26  ;;  %v7410_v6 = vpop.xlane.xlu0 %7409 }
 0x9f6   : > { %v7413_v23 = vpop.xlane.xlu1 %7412  ;;  %12607 = vmatmul.mubr.msk.bf16.vlgmr.msra.gmra.mrb[4].mxu1 %vm2688_vm2, %v7499_v48  ;;  %13597 = vrcp.f32 %v7410_v6 }
 0x9f7   : > { %13599 = vrcp.f32 %v7413_v23  ;;  %12617 = vmatpush3.bf16.msra.mxu1 %v18938_v50  ;;  %10068 = vrot.lane.b32.xlu1 %v18939_v61, %s13842_s26  ;;  %v7498_v19 = vpack.c.bf16 %v7475_v32, %v7474_v29 }
 0x9f8   : > { %v13590_v54 = vpop.eup %13589  ;;  %13601 = vrcp.f32 %v7404_v30  ;;  %12618 = vmatprep.mubr.msk.bf16.mxu1 %vm13839_vm0, %v18793_v47  ;;  %12628 = vmatprep.subr.bf16.mxu1 %v18793_v47 }
 0x9f9   : > { %v13592_v43 = vpop.eup %13591  ;;  %v7480_v39 = vmul.f32 %v13590_v54, %v16713_v2  ;;  %10020 = vrot.lane.b32.xlu0 %v18940_v5, %s13842_s26  ;;  %12601 = vmatmul.mubr.msk.bf16.vlgmr.msra.gmra.mrb[220].mxu0 %vm2688_vm2, %v7498_v19  ;;  %v7407_v9 = vpop.xlane.xlu0 %7406 }
 0x9fa   : > { %v13594_v55 = vpop.eup %13593  ;;  %v7481_v20 = vmul.f32 %v13592_v43, %v16711_v49  ;;  %12611 = vmatpush3.bf16.msra.mxu0 %v18941_v52  ;;  %13603 = vrcp.f32 %v7407_v9  ;;  %12612 = vmatprep.mubr.msk.bf16.mxu0 %vm13839_vm0, %v18793_v47  ;;  %v18944_v49 = vld [vmem:[#allocation146_spill] sm:$0xff]  ;;  %v7416_v60 = vpop.xlane.xlu1 %7415 }
 0x9fb   : > { %10164 = vrot.lane.b32.xlu1 %v18942_v63, %s13842_s26  ;;  %12622 = vmatprep.subr.bf16.mxu0 %v18793_v47  ;;  %v7478_v0 = vmul.f32 %v13594_v55, %v16704_v3  ;;  %13605 = vrcp.f32 %v7416_v60 }
 0x9fc   : > { %v13596_v2 = vpop.eup %13595  ;;  %v7501_v34 = vpack.c.bf16 %v7481_v20, %v7480_v39 }
 0x9fd   : > { %v7479_v46 = vmul.f32 %v13596_v2, %v16717_v56  ;;  %10116 = vrot.lane.b32.xlu0 %v18943_v37, %s13842_s26  ;;  %v7422_v18 = vpop.xlane.xlu0 %7421 }
 0x9fe   : > { %12619 = vmatmul.mubr.msk.bf16.vlgmr.msra.gmra.mrb[8].mxu1 %vm2688_vm2, %v7501_v34  ;;  %v8605_v42 = vpop.permute.xlu1 %8604 }
 0x9ff   : > { %12629 = vmatpush3.bf16.msra.mxu1 %v18944_v49  ;;  %10260 = vrot.lane.b32.xlu1 %v18945_v4, %s13842_s26  ;;  %v7500_v24 = vpack.c.bf16 %v7479_v46, %v7478_v0  ;;  %v8610_v54 = vsel %vm1871_vm1, %v8605_v42, 0 }
 0xa00   : > { %v13598_v45 = vpop.eup %13597  ;;  %12630 = vmatprep.mubr.msk.bf16.mxu1 %vm13839_vm0, %v18793_v47  ;;  %12640 = vmatprep.subr.bf16.mxu1 %v18793_v47 }
 0xa01   : > { %v13600_v3 = vpop.eup %13599  ;;  %v7484_v56 = vmul.f32 %v13598_v45, %v16730_v53  ;;  %10212 = vrot.lane.b32.xlu0 %v18946_v36, %s13842_s26  ;;  %12613 = vmatmul.mubr.msk.bf16.vlgmr.msra.gmra.mrb[224].mxu0 %vm2688_vm2, %v7500_v24 }
 0xa02   : > { %v13602_v15 = vpop.eup %13601  ;;  %v7485_v35 = vmul.f32 %v13600_v3, %v16728_v40  ;;  %12623 = vmatpush3.bf16.msra.mxu0 %v18947_v44  ;;  %12624 = vmatprep.mubr.msk.bf16.mxu0 %vm13839_vm0, %v18793_v47  ;;  %v18950_v40 = vld [vmem:[#allocation65_spill] sm:$0xff] }
 0xa03   : > { %10308 = vrot.lane.b32.xlu1 %v18948_v10, %s13842_s26  ;;  %12634 = vmatprep.subr.bf16.mxu0 %v18793_v47  ;;  %v7482_v17 = vmul.f32 %v13602_v15, %v16722_v62  ;;  %v18951_v62 = vld [vmem:[#allocation74_spill] sm:$0xff] }
 0xa04   : > { %v13604_v59 = vpop.eup %13603  ;;  %v7503_v53 = vpack.c.bf16 %v7485_v35, %v7484_v56 }
 0xa05   : > { %v7483_v26 = vmul.f32 %v13604_v59, %v16734_v7  ;;  %10404 = vrot.lane.b32.xlu0 %v18949_v51, %s13842_s26  ;;  %v18952_v7 = vld [vmem:[#allocation71_spill] sm:$0xff]  ;;  %v13606_v16 = vpop.eup %13605 }
 0xa06   : > { %12631 = vmatmul.mubr.msk.bf16.vlgmr.msra.gmra.mrb[12].mxu1 %vm2688_vm2, %v7503_v53  ;;  %v7486_v30 = vmul.f32 %v13606_v16, %v16738_v38 }
 0xa07   : > { %12641 = vmatpush3.bf16.msra.mxu1 %v16750_v8  ;;  %10356 = vrot.lane.b32.xlu1 %v18950_v40, %s13842_s26  ;;  %v7502_v1 = vpack.c.bf16 %v7483_v26, %v7482_v17  ;;  %v18953_v8 = vld [vmem:[#allocation8_spill] sm:$0xff] }
 0xa08   : > { %12642 = vmatprep.mubr.msk.bf16.mxu1 %vm13839_vm0, %v18793_v47  ;;  %12652 = vmatprep.subr.bf16.mxu1 %v18793_v47 }
 0xa09   : > { %10500 = vrot.lane.b32.xlu0 %v18951_v62, %s13842_s26  ;;  %12625 = vmatmul.mubr.msk.bf16.vlgmr.msra.gmra.mrb[228].mxu0 %vm2688_vm2, %v7502_v1 }
 0xa0a   : > { %12635 = vmatpush3.bf16.msra.mxu0 %v16768_v13  ;;  %12636 = vmatprep.mubr.msk.bf16.mxu0 %vm13839_vm0, %v18793_v47 }
 0xa0b   : > { %10452 = vrot.lane.b32.xlu1 %v18952_v7, %s13842_s26  ;;  %12646 = vmatprep.subr.bf16.mxu0 %v18793_v47 }
 0xa0d   : > { %5953 = vrot.lane.b32.xlu0 %v18953_v8, %s13840_s14 }
 0xa0f   : > { %10548 = vrot.lane.b32.xlu1 %v18954_v31, %s13842_s26 }
 0xa13   : > { %5955 = vrot.lane.b32.xlu1 %v18955_v41, %s13840_s14 }
 0xa28   : > { %v7419_v13 = vpop.xlane.xlu0 %7418 }
 0xa29   : > { %13607 = vrcp.f32 %v7419_v13 }
 0xa2a   : > { %13609 = vrcp.f32 %v7422_v18 }
 0xa2c   : > { %v8552_v27 = vpop.permute.xlu0 %8551 }
 0xa2d   : > { %v8557_v28 = vsel %vm1871_vm1, %v8552_v27, 0 }
 0xa2e   : > { %v7425_v33 = vpop.xlane.xlu1 %7424 }
 0xa2f   : > { %13611 = vrcp.f32 %v7425_v33 }
 0xa30   : > { %v8549_v22 = vpop.permute.xlu0 %8548 }
 0xa32   : > { %v8658_v25 = vpop.permute.xlu1 %8657 }
 0xa33   : > { %v13608_v12 = vpop.eup %13607  ;;  %v8663_v39 = vsel %vm1871_vm1, %v8658_v25, 0 }
 0xa34   : > { %v7487_v11 = vmul.f32 %v13608_v12, %v16754_v14  ;;  %v8602_v58 = vpop.permute.xlu0 %8601  ;;  %v13610_v32 = vpop.eup %13609 }
 0xa35   : > { %v7488_v38 = vmul.f32 %v13610_v32, %v16744_v57 }
 0xa36   : > { %v7504_v48 = vpack.c.bf16 %v7487_v11, %v7486_v30  ;;  %v8711_v29 = vpop.permute.xlu1 %8710 }
 0xa37   : > { %v8716_v9 = vsel %vm1871_vm1, %v8711_v29, 0 }
 0xa38   : > { %12637 = vmatmul.mubr.msk.bf16.vlgmr.msra.gmra.mrb[232].mxu0 %vm2688_vm2, %v7504_v48  ;;  %v8655_v6 = vpop.permute.xlu0 %8654 }
 0xa39   : > { %12647 = vmatpush3.bf16.xpose.msra.mxu0 %v8557_v28  ;;  %12648 = vmatprep.mubr.msk.bf16.mxu0 %vm13839_vm0, %v18793_v47  ;;  %v13612_v23 = vpop.eup %13611 }
 0xa3a   : > { %12658 = vmatprep.subr.bf16.mxu0 %v18793_v47  ;;  %v7489_v14 = vmul.f32 %v13612_v23, %v16758_v21  ;;  %v8764_v50 = vpop.permute.xlu1 %8763 }
 0xa3b   : > { %v8769_v20 = vsel %vm1871_vm1, %v8764_v50, 0  ;;  %v18959_v50 = vld [vmem:[#allocation76_spill] sm:$0xff] }
 0xa3c   : > { %v8708_v61 = vpop.permute.xlu0 %8707  ;;  %v7505_v19 = vpack.c.bf16 %v7489_v14, %v7488_v38  ;;  %v18957_v38 = vld [vmem:[#allocation72_spill] sm:$0xff] }
 0xa3e   : > { %v8817_v43 = vpop.permute.xlu1 %8816  ;;  %12643 = vmatmul.mubr.msk.bf16.vlgmr.msra.gmra.mrb[16].mxu1 %vm2688_vm2, %v7505_v19  ;;  %v18994_v19 = vld [vmem:[#allocation49_spill] sm:$0xff] }
 0xa3f   : > { %12653 = vmatpush3.bf16.xpose.msra.mxu1 %v8610_v54  ;;  %12654 = vmatprep.mubr.msk.bf16.mxu1 %vm13839_vm0, %v18793_v47  ;;  %v8822_v34 = vsel %vm1871_vm1, %v8817_v43, 0 }
 0xa40   : > { %12649 = vmatmul.mubr.msk.bf16.vlgmr.msra.gmra.mrb[236].mxu0 %vm1871_vm1, %v8549_v22  ;;  %v8761_v5 = vpop.permute.xlu0 %8760  ;;  %12664 = vmatprep.subr.bf16.mxu1 %v18793_v47 }
 0xa41   : > { %12659 = vmatpush3.bf16.xpose.msra.mxu0 %v8663_v39  ;;  %12660 = vmatprep.mubr.msk.bf16.mxu0 %vm13839_vm0, %v18793_v47 }
 0xa42   : > { %v8870_v57 = vpop.permute.xlu1 %8869  ;;  %12670 = vmatprep.subr.bf16.mxu0 %v18793_v47 }
 0xa43   : > { %v8875_v46 = vsel %vm1871_vm1, %v8870_v57, 0 }
 0xa44   : > { %v8814_v21 = vpop.permute.xlu0 %8813 }
 0xa46   : > { %v8923_v55 = vpop.permute.xlu1 %8922  ;;  %12655 = vmatmul.mubr.msk.bf16.vlgmr.msra.gmra.mrb[20].mxu1 %vm1871_vm1, %v8602_v58 }
 0xa47   : > { %12665 = vmatpush3.bf16.xpose.msra.mxu1 %v8716_v9  ;;  %12666 = vmatprep.mubr.msk.bf16.mxu1 %vm13839_vm0, %v18793_v47  ;;  %v8928_v24 = vsel %vm1871_vm1, %v8923_v55, 0 }
 0xa48   : > { %12661 = vmatmul.mubr.msk.bf16.vlgmr.msra.gmra.mrb[240].mxu0 %vm1871_vm1, %v8655_v6  ;;  %v8867_v52 = vpop.permute.xlu0 %8866  ;;  %12676 = vmatprep.subr.bf16.mxu1 %v18793_v47 }
 0xa49   : > { %12671 = vmatpush3.bf16.xpose.msra.mxu0 %v8769_v20  ;;  %12672 = vmatprep.mubr.msk.bf16.mxu0 %vm13839_vm0, %v18793_v47 }
 0xa4a   : > { %v8976_v63 = vpop.permute.xlu1 %8975  ;;  %12682 = vmatprep.subr.bf16.mxu0 %v18793_v47 }
 0xa4b   : > { %v8981_v3 = vsel %vm1871_vm1, %v8976_v63, 0 }
 0xa4c   : > { %v8920_v2 = vpop.permute.xlu0 %8919 }
 0xa4e   : > { %v9029_v0 = vpop.permute.xlu1 %9028  ;;  %12667 = vmatmul.mubr.msk.bf16.vlgmr.msra.gmra.mrb[24].mxu1 %vm1871_vm1, %v8708_v61 }
 0xa4f   : > { %12677 = vmatpush3.bf16.xpose.msra.mxu1 %v8822_v34  ;;  %12678 = vmatprep.mubr.msk.bf16.mxu1 %vm13839_vm0, %v18793_v47  ;;  %v9034_v35 = vsel %vm1871_vm1, %v9029_v0, 0 }
 0xa50   : > { %12673 = vmatmul.mubr.msk.bf16.vlgmr.msra.gmra.mrb[244].mxu0 %vm1871_vm1, %v8761_v5  ;;  %v8973_v37 = vpop.permute.xlu0 %8972  ;;  %12688 = vmatprep.subr.bf16.mxu1 %v18793_v47 }
 0xa51   : > { %12683 = vmatpush3.bf16.xpose.msra.mxu0 %v8875_v46  ;;  %12684 = vmatprep.mubr.msk.bf16.mxu0 %vm13839_vm0, %v18793_v47 }
 0xa52   : > { %v9082_v49 = vpop.permute.xlu1 %9081  ;;  %12694 = vmatprep.subr.bf16.mxu0 %v18793_v47 }
 0xa53   : > { %v9087_v10 = vsel %vm1871_vm1, %v9082_v49, 0 }
 0xa54   : > { %v9026_v4 = vpop.permute.xlu0 %9025 }
 0xa56   : > { %v9135_v45 = vpop.permute.xlu1 %9134  ;;  %12679 = vmatmul.mubr.msk.bf16.vlgmr.msra.gmra.mrb[28].mxu1 %vm1871_vm1, %v8814_v21 }
 0xa57   : > { %12689 = vmatpush3.bf16.xpose.msra.mxu1 %v8928_v24  ;;  %12690 = vmatprep.mubr.msk.bf16.mxu1 %vm13839_vm0, %v18793_v47  ;;  %v9140_v26 = vsel %vm1871_vm1, %v9135_v45, 0 }
 0xa58   : > { %12685 = vmatmul.mubr.msk.bf16.vlgmr.msra.gmra.mrb[248].mxu0 %vm1871_vm1, %v8867_v52  ;;  %v9079_v56 = vpop.permute.xlu0 %9078  ;;  %12700 = vmatprep.subr.bf16.mxu1 %v18793_v47 }
 0xa59   : > { %12695 = vmatpush3.bf16.xpose.msra.mxu0 %v8981_v3  ;;  %12696 = vmatprep.mubr.msk.bf16.mxu0 %vm13839_vm0, %v18793_v47 }
 0xa5a   : > { %v9188_v36 = vpop.permute.xlu1 %9187  ;;  %12706 = vmatprep.subr.bf16.mxu0 %v18793_v47 }
 0xa5b   : > { %v9193_v40 = vsel %vm1871_vm1, %v9188_v36, 0 }
 0xa5c   : > { %v9132_v15 = vpop.permute.xlu0 %9131 }
 0xa5e   : > { %v9241_v44 = vpop.permute.xlu1 %9240  ;;  %12691 = vmatmul.mubr.msk.bf16.vlgmr.msra.gmra.mrb[32].mxu1 %vm1871_vm1, %v8920_v2 }
 0xa5f   : > { %12701 = vmatpush3.bf16.xpose.msra.mxu1 %v9034_v35  ;;  %12702 = vmatprep.mubr.msk.bf16.mxu1 %vm13839_vm0, %v18793_v47  ;;  %v9246_v31 = vsel %vm1871_vm1, %v9241_v44, 0 }
 0xa60   : > { %12697 = vmatmul.mubr.msk.bf16.vlgmr.msra.gmra.mrb[252].mxu0 %vm1871_vm1, %v8973_v37  ;;  %v9185_v59 = vpop.permute.xlu0 %9184  ;;  %12712 = vmatprep.subr.bf16.mxu1 %v18793_v47 }
 0xa61   : > { %12707 = vmatpush3.bf16.xpose.msra.mxu0 %v9087_v10  ;;  %12708 = vmatprep.mubr.msk.bf16.mxu0 %vm13839_vm0, %v18793_v47 }
 0xa62   : > { %v9294_v53 = vpop.permute.xlu1 %9293  ;;  %12718 = vmatprep.subr.bf16.mxu0 %v18793_v47 }
 0xa63   : > { %v9299_v18 = vsel %vm1871_vm1, %v9294_v53, 0 }
 0xa64   : > { %v9238_v17 = vpop.permute.xlu0 %9237 }
 0xa66   : > { %v9347_v51 = vpop.permute.xlu1 %9346  ;;  %12703 = vmatmul.mubr.msk.bf16.vlgmr.msra.gmra.mrb[36].mxu1 %vm1871_vm1, %v9026_v4 }
 0xa67   : > { %12713 = vmatpush3.bf16.xpose.msra.mxu1 %v9140_v26  ;;  %12714 = vmatprep.mubr.msk.bf16.mxu1 %vm13839_vm0, %v18793_v47  ;;  %v9352_v33 = vsel %vm1871_vm1, %v9347_v51, 0 }
 0xa68   : > { %12709 = vmatmul.mubr.msk.bf16.vlgmr.msra.gmra.mrb[0].mxu0 %vm1871_vm1, %v9079_v56  ;;  %v9291_v1 = vpop.permute.xlu0 %9290  ;;  %12724 = vmatprep.subr.bf16.mxu1 %v18793_v47 }
 0xa69   : > { %12719 = vmatpush3.bf16.xpose.msra.mxu0 %v9193_v40  ;;  %12720 = vmatprep.mubr.msk.bf16.mxu0 %vm13839_vm0, %v18793_v47 }
 0xa6a   : > { %v9344_v62 = vpop.permute.xlu1 %9343  ;;  %12730 = vmatprep.subr.bf16.mxu0 %v18793_v47 }
 0xa6c   : > { %v9829_v7 = vpop.permute.xlu0 %9828 }
 0xa6e   : > { %v9877_v60 = vpop.permute.xlu1 %9876  ;;  %12715 = vmatmul.mubr.msk.bf16.vlgmr.msra.gmra.mrb[40].mxu1 %vm1871_vm1, %v9132_v15 }
 0xa6f   : > { %12725 = vmatpush3.bf16.xpose.msra.mxu1 %v9246_v31  ;;  %12726 = vmatprep.mubr.msk.bf16.mxu1 %vm13839_vm0, %v18793_v47 }
 0xa70   : > { %12721 = vmatmul.mubr.msk.bf16.vlgmr.msra.gmra.mrb[4].mxu0 %vm1871_vm1, %v9185_v59  ;;  %v17033_v13 = vpop.permute.xlu0 %9924  ;;  %12736 = vmatprep.subr.bf16.mxu1 %v18793_v47 }
 0xa71   : > { %12731 = vmatpush3.bf16.xpose.msra.mxu0 %v9299_v18  ;;  %12732 = vmatprep.mubr.msk.bf16.mxu0 %vm13839_vm0, %v18793_v47 }
 0xa72   : > { %v17040_v42 = vpop.permute.xlu1 %9972  ;;  %12742 = vmatprep.subr.bf16.mxu0 %v18793_v47 }
 0xa74   : > { %v17043_v27 = vpop.permute.xlu0 %10020 }
 0xa76   : > { %v17046_v22 = vpop.permute.xlu1 %10068  ;;  %12727 = vmatmul.mubr.msk.bf16.vlgmr.msra.gmra.mrb[44].mxu1 %vm1871_vm1, %v9238_v17 }
 0xa77   : > { %12737 = vmatpush3.bf16.xpose.msra.mxu1 %v9352_v33  ;;  %12738 = vmatprep.mubr.msk.bf16.mxu1 %vm13839_vm0, %v18793_v47 }
 0xa78   : > { %12733 = vmatmul.mubr.msk.bf16.vlgmr.msra.gmra.mrb[8].mxu0 %vm1871_vm1, %v9291_v1  ;;  %v17050_v16 = vpop.permute.xlu0 %10116  ;;  %12748 = vmatprep.subr.bf16.mxu1 %v18793_v47 }
 0xa79   : > { %12743 = vmatpush3.bf16.msra.mxu0 %v9829_v7  ;;  %12744 = vmatprep.mubr.msk.bf16.mxu0 %vm13839_vm0, %v18793_v47 }
 0xa7a   : > { %v17057_v12 = vpop.permute.xlu1 %10164  ;;  %12754 = vmatprep.subr.bf16.mxu0 %v18793_v47 }
 0xa7c   : > { %v17060_v25 = vpop.permute.xlu0 %10212 }
 0xa7e   : > { %v17062_v30 = vpop.permute.xlu1 %10260  ;;  %12739 = vmatmul.mubr.msk.bf16.vlgmr.msra.gmra.mrb[48].mxu1 %vm1871_vm1, %v9344_v62 }
 0xa7f   : > { %12749 = vmatpush3.bf16.msra.mxu1 %v9877_v60  ;;  %12750 = vmatprep.mubr.msk.bf16.mxu1 %vm13839_vm0, %v18793_v47 }
 0xa80   : > { %12760 = vmatprep.subr.bf16.mxu1 %v18793_v47  ;;  %v17070_v58 = vpop.permute.xlu0 %10404 }
 0xa82   : > { %v17068_v11 = vpop.permute.xlu1 %10308 }
 0xa84   : > { %v17074_v29 = vpop.permute.xlu0 %10500 }
 0xa85   : > { %18956 = vst [vmem:[#allocation20_spill] sm:$0xff] %v17074_v29 }
 0xa86   : > { %v17072_v48 = vpop.permute.xlu1 %10356 }
 0xa88   : > { %v5954_v6 = vpop.permute.xlu0 %5953 }
 0xa89   : > { %v17081_v14 = vmul.f32 %v5954_v6, %v18957_v38 }
 0xa8a   : > { %v17076_v32 = vpop.permute.xlu1 %10452 }
 0xa8b   : > { %18958 = vst [vmem:[#allocation13_spill] sm:$0xff] %v17081_v14 }
 0xa8e   : > { %v17078_v28 = vpop.permute.xlu1 %10548 }
 0xa92   : > { %v5956_v23 = vpop.permute.xlu1 %5955 }
 0xa93   : > { %v17084_v61 = vmul.f32 %v5956_v23, %v18959_v50 }
 0xa95   : > { %18960 = vst [vmem:[#allocation22_spill] sm:$0xff] %v17084_v61 }
 0xaa0   : > { %v17088_v54 = vpop.f32.mrb[204].mxu0 }
 0xaa1   : > { %18961 = vst [vmem:[#allocation17_spill] sm:$0xff] %v17088_v54  ;;  %v12554_v43 = vpop.f32.mrb[205].mxu0 }
 0xaa2   : > { %v17090_v39 = vpop.f32.mrb[206].mxu0 }
 0xaa3   : > { %18962 = vst [vmem:[#allocation136_spill] sm:$0xff] %v17090_v39  ;;  %v12555_v5 = vpop.f32.mrb[207].mxu0 }
 0xaa8   : > { %v17092_v57 = vpop.f32.mrb[244].mxu1 }
 0xaa9   : > { %18963 = vst [vmem:[#allocation12_spill] sm:$0xff] %v17092_v57  ;;  %v12560_v21 = vpop.f32.mrb[245].mxu1 }
 0xaaa   : > { %v17094_v9 = vpop.f32.mrb[246].mxu1 }
 0xaab   : > { %18964 = vst [vmem:[#allocation19_spill] sm:$0xff] %v17094_v9  ;;  %v12561_v55 = vpop.f32.mrb[247].mxu1 }
 0xaad   : > { %v17096_v20 = vpop.f32.mrb[208].mxu0 }
 0xaae   : > { %18965 = vst [vmem:[#allocation139_spill] sm:$0xff] %v17096_v20  ;;  %v12566_v52 = vpop.f32.mrb[209].mxu0 }
 0xaaf   : > { %v17098_v63 = vpop.f32.mrb[210].mxu0 }
 0xab0   : > { %18966 = vst [vmem:[#allocation16_spill] sm:$0xff] %v17098_v63  ;;  %v12567_v2 = vpop.f32.mrb[211].mxu0 }
 0xab1   : > { %v17100_v34 = vpop.f32.mrb[248].mxu1 }
 0xab2   : > { %18967 = vst [vmem:[#allocation21_spill] sm:$0xff] %v17100_v34  ;;  %v12572_v0 = vpop.f32.mrb[249].mxu1  ;;  %v19019_v34 = vld [vmem:[#allocation103_spill] sm:$0xff] }
 0xab3   : > { %v17102_v46 = vpop.f32.mrb[250].mxu1 }
 0xab4   : > { %18968 = vst [vmem:[#allocation137_spill] sm:$0xff] %v17102_v46  ;;  %v12573_v37 = vpop.f32.mrb[251].mxu1 }
 0xab5   : > { %v17104_v49 = vpop.f32.mrb[212].mxu0 }
 0xab6   : > { %18969 = vst [vmem:[#allocation24_spill] sm:$0xff] %v17104_v49  ;;  %v12578_v4 = vpop.f32.mrb[213].mxu0 }
 0xab7   : > { %v17106_v24 = vpop.f32.mrb[214].mxu0 }
 0xab8   : > { %18970 = vst [vmem:[#allocation10_spill] sm:$0xff] %v17106_v24  ;;  %v12579_v45 = vpop.f32.mrb[215].mxu0 }
 0xab9   : > { %v17108_v3 = vpop.f32.mrb[252].mxu1 }
 0xaba   : > { %18971 = vst [vmem:[#allocation141_spill] sm:$0xff] %v17108_v3  ;;  %v12584_v56 = vpop.f32.mrb[253].mxu1 }
 0xabb   : > { %v17110_v36 = vpop.f32.mrb[254].mxu1 }
 0xabc   : > { %18972 = vst [vmem:[#allocation26_spill] sm:$0xff] %v17110_v36  ;;  %v12585_v15 = vpop.f32.mrb[255].mxu1 }
 0xabd   : > { %v17112_v35 = vpop.f32.mrb[216].mxu0 }
 0xabe   : > { %18973 = vst [vmem:[#allocation14_spill] sm:$0xff] %v17112_v35  ;;  %v12590_v44 = vpop.f32.mrb[217].mxu0 }
 0xabf   : > { %v17114_v10 = vpop.f32.mrb[218].mxu0 }
 0xac0   : > { %18974 = vst [vmem:[#allocation138_spill] sm:$0xff] %v17114_v10  ;;  %v12591_v59 = vpop.f32.mrb[219].mxu0 }
 0xac1   : > { %v17116_v53 = vpop.f32.mrb[0].mxu1 }
 0xac2   : > { %18975 = vst [vmem:[#allocation28_spill] sm:$0xff] %v17116_v53  ;;  %v12596_v17 = vpop.f32.mrb[1].mxu1 }
 0xac3   : > { %v17118_v26 = vpop.f32.mrb[2].mxu1 }
 0xac4   : > { %18976 = vst [vmem:[#allocation23_spill] sm:$0xff] %v17118_v26  ;;  %v12597_v51 = vpop.f32.mrb[3].mxu1 }
 0xac9   : > { %v17120_v40 = vpop.f32.mrb[4].mxu1 }
 0xaca   : > { %18977 = vst [vmem:[#allocation143_spill] sm:$0xff] %v17120_v40  ;;  %v12608_v1 = vpop.f32.mrb[5].mxu1 }
 0xacb   : > { %v17122_v62 = vpop.f32.mrb[6].mxu1 }
 0xacc   : > { %18978 = vst [vmem:[#allocation27_spill] sm:$0xff] %v17122_v62  ;;  %v12609_v7 = vpop.f32.mrb[7].mxu1  ;;  %v17124_v31 = vpop.f32.mrb[220].mxu0 }
 0xacd   : > { %18979 = vst [vmem:[#allocation25_spill] sm:$0xff] %v17124_v31  ;;  %v12602_v60 = vpop.f32.mrb[221].mxu0 }
 0xace   : > { %v17126_v18 = vpop.f32.mrb[222].mxu0 }
 0xacf   : > { %18980 = vst [vmem:[#allocation140_spill] sm:$0xff] %v17126_v18  ;;  %v12603_v33 = vpop.f32.mrb[223].mxu0 }
 0xad1   : > { %v17128_v6 = vpop.f32.mrb[8].mxu1 }
 0xad2   : > { %18981 = vst [vmem:[#allocation33_spill] sm:$0xff] %v17128_v6  ;;  %v12620_v23 = vpop.f32.mrb[9].mxu1 }
 0xad3   : > { %v17130_v38 = vpop.f32.mrb[10].mxu1 }
 0xad4   : > { %18982 = vst [vmem:[#allocation30_spill] sm:$0xff] %v17130_v38  ;;  %v12621_v50 = vpop.f32.mrb[11].mxu1  ;;  %v17132_v43 = vpop.f32.mrb[224].mxu0  ;;  %v18999_v38 = vld [vmem:[#allocation83_spill] sm:$0xff] }
 0xad5   : > { %18983 = vst [vmem:[#allocation39_spill] sm:$0xff] %v17132_v43  ;;  %v12614_v5 = vpop.f32.mrb[225].mxu0 }
 0xad6   : > { %v17134_v21 = vpop.f32.mrb[226].mxu0 }
 0xad7   : > { %18984 = vst [vmem:[#allocation36_spill] sm:$0xff] %v17134_v21  ;;  %v12615_v55 = vpop.f32.mrb[227].mxu0 }
 0xad9   : > { %v17136_v52 = vpop.f32.mrb[12].mxu1 }
 0xada   : > { %18985 = vst [vmem:[#allocation144_spill] sm:$0xff] %v17136_v52  ;;  %v12632_v2 = vpop.f32.mrb[13].mxu1 }
 0xadb   : > { %v17138_v0 = vpop.f32.mrb[14].mxu1  ;;  %v18993_v2 = vld [vmem:[#allocation47_spill] sm:$0xff] }
 0xadc   : > { %18986 = vst [vmem:[#allocation45_spill] sm:$0xff] %v17138_v0  ;;  %v12633_v37 = vpop.f32.mrb[15].mxu1  ;;  %v17140_v4 = vpop.f32.mrb[228].mxu0  ;;  %v18996_v0 = vld [vmem:[#allocation81_spill] sm:$0xff] }
 0xadd   : > { %18987 = vst [vmem:[#allocation42_spill] sm:$0xff] %v17140_v4  ;;  %v12626_v45 = vpop.f32.mrb[229].mxu0 }
 0xade   : > { %v17142_v56 = vpop.f32.mrb[230].mxu0 }
 0xadf   : > { %18988 = vst [vmem:[#allocation142_spill] sm:$0xff] %v17142_v56  ;;  %v12627_v15 = vpop.f32.mrb[231].mxu0 }
 0xb0b   : > { %v17144_v44 = vpop.f32.mrb[232].mxu0 }
 0xb0c   : > { %18989 = vst [vmem:[#allocation53_spill] sm:$0xff] %v17144_v44  ;;  %v12638_v59 = vpop.f32.mrb[233].mxu0 }
 0xb0d   : > { %v17146_v17 = vpop.f32.mrb[234].mxu0 }
 0xb0e   : > { %18990 = vst [vmem:[#allocation50_spill] sm:$0xff] %v17146_v17  ;;  %v12639_v51 = vpop.f32.mrb[235].mxu0 }
 0xb11   : > { %v17148_v1 = vpop.f32.mrb[16].mxu1 }
 0xb12   : > { %18991 = vst [vmem:[#allocation146_spill] sm:$0xff] %v17148_v1  ;;  %v12644_v7 = vpop.f32.mrb[17].mxu1 }
 0xb13   : > { %v8593_v60 = vpop.f32.mrb[236].mxu0  ;;  %v17150_v33 = vpop.f32.mrb[18].mxu1 }
 0xb14   : > { %18992 = vst [vmem:[#allocation59_spill] sm:$0xff] %v17150_v33  ;;  %v9395_v23 = vmul.f32 0.17677669, %v8593_v60  ;;  %v12650_v50 = vpop.f32.mrb[237].mxu0  ;;  %v12645_v5 = vpop.f32.mrb[19].mxu1 }
 0xb15   : > { %v8596_v55 = vpop.f32.mrb[238].mxu0 }
 0xb16   : > { %v17153_v37 = vadd.f32 %v18993_v2, %v9395_v23  ;;  %v9396_v45 = vmul.f32 0.17677669, %v8596_v55  ;;  %v12651_v15 = vpop.f32.mrb[239].mxu0  ;;  %v18995_v2 = vld [vmem:[#allocation79_spill] sm:$0xff] }
 0xb18   : > { %v17156_v59 = vadd.f32 %v18994_v19, %v9396_v45  ;;  %v9459_v51 = vsel %vm2688_vm2, %v17153_v37, -inf }
 0xb19   : > { %9460 = vmax.xlane.f32.xlu0 %v9459_v51  ;;  %v8646_v7 = vpop.f32.mrb[20].mxu1 }
 0xb1a   : > { %v9462_v33 = vsel %vm2688_vm2, %v17156_v59, -inf  ;;  %v9397_v60 = vmul.f32 0.17677669, %v8646_v7  ;;  %v12656_v50 = vpop.f32.mrb[21].mxu1 }
 0xb1b   : > { %9463 = vmax.xlane.f32.xlu1 %v9462_v33  ;;  %v8699_v5 = vpop.f32.mrb[240].mxu0  ;;  %v8649_v1 = vpop.f32.mrb[22].mxu1  ;;  %v18997_v50 = vld [vmem:[#allocation82_spill] sm:$0xff] }
 0xb1c   : > { %v12662_v23 = vpop.f32.mrb[241].mxu0  ;;  %v17163_v55 = vadd.f32 %v18995_v2, %v9397_v60  ;;  %v9398_v15 = vmul.f32 0.17677669, %v8649_v1  ;;  %v12657_v19 = vpop.f32.mrb[23].mxu1  ;;  %v9399_v52 = vmul.f32 0.17677669, %v8699_v5 }
 0xb1d   : > { %v8702_v45 = vpop.f32.mrb[242].mxu0  ;;  %v18998_v1 = vld [vmem:[#allocation80_spill] sm:$0xff] }
 0xb1e   : > { %v9400_v17 = vmul.f32 0.17677669, %v8702_v45  ;;  %v12663_v44 = vpop.f32.mrb[243].mxu0  ;;  %v17166_v51 = vadd.f32 %v18996_v0, %v9398_v15  ;;  %v9465_v7 = vsel %vm2688_vm2, %v17163_v55, -inf  ;;  %v17176_v2 = vadd.f32 %v18998_v1, %v9399_v52  ;;  %v19000_v52 = vld [vmem:[#allocation84_spill] sm:$0xff] }
 0xb1f   : > { %9466 = vmax.xlane.f32.xlu0 %v9465_v7 }
 0xb20   : > { %v17171_v33 = vadd.f32 %v18997_v50, %v9400_v17  ;;  %v9468_v0 = vsel %vm2688_vm2, %v17166_v51, -inf }
 0xb21   : > { %v8752_v23 = vpop.f32.mrb[24].mxu1 }
 0xb22   : > { %v9474_v60 = vsel %vm2688_vm2, %v17171_v33, -inf  ;;  %v9401_v19 = vmul.f32 0.17677669, %v8752_v23  ;;  %v12668_v44 = vpop.f32.mrb[25].mxu1 }
 0xb23   : > { %9475 = vmax.xlane.f32.xlu1 %v9474_v60  ;;  %v8805_v5 = vpop.f32.mrb[244].mxu0  ;;  %9469 = vmax.xlane.f32.xlu0 %v9468_v0  ;;  %v8755_v15 = vpop.f32.mrb[26].mxu1  ;;  %v9471_v44 = vsel %vm2688_vm2, %v17176_v2, -inf  ;;  %v19001_v60 = vld [vmem:[#allocation86_spill] sm:$0xff] }
 0xb24   : > { %v12674_v45 = vpop.f32.mrb[245].mxu0  ;;  %v9402_v17 = vmul.f32 0.17677669, %v8755_v15  ;;  %v12669_v50 = vpop.f32.mrb[27].mxu1  ;;  %v17181_v6 = vadd.f32 %v18999_v38, %v9401_v19  ;;  %v9403_v23 = vmul.f32 0.17677669, %v8805_v5 }
 0xb25   : > { %v8808_v7 = vpop.f32.mrb[246].mxu0 }
 0xb26   : > { %v9404_v56 = vmul.f32 0.17677669, %v8808_v7  ;;  %v12675_v4 = vpop.f32.mrb[247].mxu0  ;;  %v17184_v1 = vadd.f32 %v19000_v52, %v9402_v17  ;;  %v9477_v5 = vsel %vm2688_vm2, %v17181_v6, -inf }
 0xb27   : > { %9472 = vmax.xlane.f32.xlu0 %v9471_v44  ;;  %v19002_v4 = vld [vmem:[#allocation85_spill] sm:$0xff] }
 0xb28   : > { %v17189_v0 = vadd.f32 %v19001_v60, %v9404_v56  ;;  %v9480_v15 = vsel %vm2688_vm2, %v17184_v1, -inf  ;;  %v17194_v50 = vadd.f32 %v19002_v4, %v9403_v23  ;;  %v19003_v23 = vld [vmem:[#allocation87_spill] sm:$0xff] }
 0xb29   : > { %9481 = vmax.xlane.f32.xlu1 %v9480_v15  ;;  %v8858_v45 = vpop.f32.mrb[28].mxu1 }
 0xb2a   : > { %v9405_v38 = vmul.f32 0.17677669, %v8858_v45  ;;  %v12680_v19 = vpop.f32.mrb[29].mxu1  ;;  %v9486_v60 = vsel %vm2688_vm2, %v17189_v0, -inf  ;;  %v19004_v45 = vld [vmem:[#allocation89_spill] sm:$0xff] }
 0xb2b   : > { %v8911_v17 = vpop.f32.mrb[248].mxu0  ;;  %9478 = vmax.xlane.f32.xlu0 %v9477_v5  ;;  %v8861_v7 = vpop.f32.mrb[30].mxu1  ;;  %v9483_v5 = vsel %vm2688_vm2, %v17194_v50, -inf }
 0xb2c   : > { %v12686_v52 = vpop.f32.mrb[249].mxu0  ;;  %v9406_v44 = vmul.f32 0.17677669, %v8861_v7  ;;  %v12681_v56 = vpop.f32.mrb[31].mxu1  ;;  %v17201_v4 = vadd.f32 %v19003_v23, %v9405_v38  ;;  %v9407_v62 = vmul.f32 0.17677669, %v8911_v17 }
 0xb2d   : > { %v8914_v21 = vpop.f32.mrb[250].mxu0  ;;  %9487 = vmax.xlane.f32.xlu1 %v9486_v60  ;;  %v19005_v7 = vld [vmem:[#allocation90_spill] sm:$0xff] }
 0xb2e   : > { %v9408_v15 = vmul.f32 0.17677669, %v8914_v21  ;;  %v12687_v43 = vpop.f32.mrb[251].mxu0  ;;  %v17204_v19 = vadd.f32 %v19004_v45, %v9406_v44  ;;  %v9489_v17 = vsel %vm2688_vm2, %v17201_v4, -inf }
 0xb2f   : > { %9484 = vmax.xlane.f32.xlu0 %v9483_v5  ;;  %v19006_v43 = vld [vmem:[#allocation88_spill] sm:$0xff] }
 0xb30   : > { %v17209_v52 = vadd.f32 %v19005_v7, %v9408_v15  ;;  %v9492_v56 = vsel %vm2688_vm2, %v17204_v19, -inf  ;;  %v17214_v60 = vadd.f32 %v19006_v43, %v9407_v62  ;;  %v19007_v62 = vld [vmem:[#allocation91_spill] sm:$0xff] }
 0xb31   : > { %9493 = vmax.xlane.f32.xlu1 %v9492_v56  ;;  %v8964_v21 = vpop.f32.mrb[32].mxu1 }
 0xb32   : > { %v9409_v38 = vmul.f32 0.17677669, %v8964_v21  ;;  %v12692_v23 = vpop.f32.mrb[33].mxu1  ;;  %v9498_v7 = vsel %vm2688_vm2, %v17209_v52, -inf  ;;  %v19008_v21 = vld [vmem:[#allocation93_spill] sm:$0xff] }
 0xb33   : > { %v9017_v44 = vpop.f32.mrb[252].mxu0  ;;  %9490 = vmax.xlane.f32.xlu0 %v9489_v17  ;;  %v8967_v45 = vpop.f32.mrb[34].mxu1  ;;  %v9495_v17 = vsel %vm2688_vm2, %v17214_v60, -inf }
 0xb34   : > { %v12698_v5 = vpop.f32.mrb[253].mxu0  ;;  %v9410_v40 = vmul.f32 0.17677669, %v8967_v45  ;;  %v12693_v15 = vpop.f32.mrb[35].mxu1  ;;  %v17221_v43 = vadd.f32 %v19007_v62, %v9409_v38  ;;  %v9411_v26 = vmul.f32 0.17677669, %v9017_v44 }
 0xb35   : > { %v9020_v18 = vpop.f32.mrb[254].mxu0  ;;  %9499 = vmax.xlane.f32.xlu1 %v9498_v7  ;;  %v19009_v45 = vld [vmem:[#allocation94_spill] sm:$0xff] }
 0xb36   : > { %v9412_v56 = vmul.f32 0.17677669, %v9020_v18  ;;  %v12699_v31 = vpop.f32.mrb[255].mxu0  ;;  %v17224_v23 = vadd.f32 %v19008_v21, %v9410_v40  ;;  %v9501_v40 = vsel %vm2688_vm2, %v17221_v43, -inf }
 0xb37   : > { %9496 = vmax.xlane.f32.xlu0 %v9495_v17  ;;  %v19010_v31 = vld [vmem:[#allocation92_spill] sm:$0xff] }
 0xb38   : > { %v17229_v5 = vadd.f32 %v19009_v45, %v9412_v56  ;;  %v9504_v15 = vsel %vm2688_vm2, %v17224_v23, -inf  ;;  %v17234_v7 = vadd.f32 %v19010_v31, %v9411_v26  ;;  %v19011_v26 = vld [vmem:[#allocation95_spill] sm:$0xff] }
 0xb39   : > { %9505 = vmax.xlane.f32.xlu1 %v9504_v15  ;;  %v9070_v18 = vpop.f32.mrb[36].mxu1 }
 0xb3a   : > { %v9413_v38 = vmul.f32 0.17677669, %v9070_v18  ;;  %v12704_v62 = vpop.f32.mrb[37].mxu1  ;;  %v9510_v45 = vsel %vm2688_vm2, %v17229_v5, -inf  ;;  %v19012_v18 = vld [vmem:[#allocation97_spill] sm:$0xff] }
 0xb3b   : > { %v9123_v44 = vpop.f32.mrb[0].mxu0  ;;  %9502 = vmax.xlane.f32.xlu0 %v9501_v40  ;;  %v9073_v21 = vpop.f32.mrb[38].mxu1  ;;  %v9507_v40 = vsel %vm2688_vm2, %v17234_v7, -inf }
 0xb3c   : > { %v12710_v17 = vpop.f32.mrb[1].mxu0  ;;  %v9414_v53 = vmul.f32 0.17677669, %v9073_v21  ;;  %v12705_v56 = vpop.f32.mrb[39].mxu1  ;;  %v17241_v31 = vadd.f32 %v19011_v26, %v9413_v38  ;;  %v9415_v14 = vmul.f32 0.17677669, %v9123_v44 }
 0xb3d   : > { %v9126_v10 = vpop.f32.mrb[2].mxu0  ;;  %9511 = vmax.xlane.f32.xlu1 %v9510_v45  ;;  %v19013_v21 = vld [vmem:[#allocation98_spill] sm:$0xff] }
 0xb3e   : > { %v9416_v15 = vmul.f32 0.17677669, %v9126_v10  ;;  %v12711_v35 = vpop.f32.mrb[3].mxu0  ;;  %v17244_v62 = vadd.f32 %v19012_v18, %v9414_v53  ;;  %v9513_v53 = vsel %vm2688_vm2, %v17241_v31, -inf }
 0xb3f   : > { %9508 = vmax.xlane.f32.xlu0 %v9507_v40  ;;  %v19014_v35 = vld [vmem:[#allocation96_spill] sm:$0xff] }
 0xb40   : > { %v17249_v17 = vadd.f32 %v19013_v21, %v9416_v15  ;;  %v9516_v56 = vsel %vm2688_vm2, %v17244_v62, -inf  ;;  %v17254_v45 = vadd.f32 %v19014_v35, %v9415_v14  ;;  %v19015_v14 = vld [vmem:[#allocation99_spill] sm:$0xff] }
 0xb41   : > { %9517 = vmax.xlane.f32.xlu1 %v9516_v56  ;;  %v9176_v10 = vpop.f32.mrb[40].mxu1 }
 0xb42   : > { %v9417_v38 = vmul.f32 0.17677669, %v9176_v10  ;;  %v12716_v26 = vpop.f32.mrb[41].mxu1  ;;  %v9522_v21 = vsel %vm2688_vm2, %v17249_v17, -inf  ;;  %v19016_v10 = vld [vmem:[#allocation101_spill] sm:$0xff] }
 0xb43   : > { %v9229_v44 = vpop.f32.mrb[4].mxu0  ;;  %9514 = vmax.xlane.f32.xlu0 %v9513_v53  ;;  %v9179_v18 = vpop.f32.mrb[42].mxu1  ;;  %v9519_v53 = vsel %vm2688_vm2, %v17254_v45, -inf }
 0xb44   : > { %v12722_v40 = vpop.f32.mrb[5].mxu0  ;;  %v9418_v61 = vmul.f32 0.17677669, %v9179_v18  ;;  %v12717_v15 = vpop.f32.mrb[43].mxu1  ;;  %v17261_v35 = vadd.f32 %v19015_v14, %v9417_v38  ;;  %v9419_v24 = vmul.f32 0.17677669, %v9229_v44 }
 0xb45   : > { %v9232_v36 = vpop.f32.mrb[6].mxu0  ;;  %9523 = vmax.xlane.f32.xlu1 %v9522_v21  ;;  %v19017_v18 = vld [vmem:[#allocation102_spill] sm:$0xff] }
 0xb46   : > { %v9420_v56 = vmul.f32 0.17677669, %v9232_v36  ;;  %v12723_v3 = vpop.f32.mrb[7].mxu0  ;;  %v17264_v26 = vadd.f32 %v19016_v10, %v9418_v61  ;;  %v9525_v61 = vsel %vm2688_vm2, %v17261_v35, -inf }
 0xb47   : > { %9520 = vmax.xlane.f32.xlu0 %v9519_v53  ;;  %v19018_v3 = vld [vmem:[#allocation100_spill] sm:$0xff] }
 0xb48   : > { %v17269_v40 = vadd.f32 %v19017_v18, %v9420_v56  ;;  %v9528_v15 = vsel %vm2688_vm2, %v17264_v26, -inf  ;;  %v17274_v21 = vadd.f32 %v19018_v3, %v9419_v24 }
 0xb49   : > { %9529 = vmax.xlane.f32.xlu1 %v9528_v15  ;;  %v9282_v36 = vpop.f32.mrb[44].mxu1 }
 0xb4a   : > { %v9421_v38 = vmul.f32 0.17677669, %v9282_v36  ;;  %v12728_v14 = vpop.f32.mrb[45].mxu1  ;;  %v9534_v18 = vsel %vm2688_vm2, %v17269_v40, -inf  ;;  %v19020_v36 = vld [vmem:[#allocation104_spill] sm:$0xff] }
 0xb4b   : > { %v9335_v44 = vpop.f32.mrb[8].mxu0  ;;  %9526 = vmax.xlane.f32.xlu0 %v9525_v61  ;;  %v9285_v10 = vpop.f32.mrb[46].mxu1  ;;  %v9531_v61 = vsel %vm2688_vm2, %v17274_v21, -inf }
 0xb4c   : > { %v12734_v53 = vpop.f32.mrb[9].mxu0  ;;  %v9422_v49 = vmul.f32 0.17677669, %v9285_v10  ;;  %v12729_v56 = vpop.f32.mrb[47].mxu1  ;;  %v17281_v24 = vadd.f32 %v19019_v34, %v9421_v38  ;;  %v9423_v14 = vmul.f32 0.17677669, %v9335_v44 }
 0xb4d   : > { %v9338_v46 = vpop.f32.mrb[10].mxu0  ;;  %9535 = vmax.xlane.f32.xlu1 %v9534_v18  ;;  %v19021_v56 = vld [vmem:[#allocation105_spill] sm:$0xff]  ;;  %v19022_v44 = vld [vmem:[#allocation107_spill] sm:$0xff] }
 0xb4e   : > { %v12735_v15 = vpop.f32.mrb[11].mxu0  ;;  %v17284_v3 = vadd.f32 %v19020_v36, %v9422_v49  ;;  %v17291_v63 = vadd.f32 %v19021_v56, %v9423_v14  ;;  %v9537_v34 = vsel %vm2688_vm2, %v17281_v24, -inf  ;;  %v19023_v14 = vld [vmem:[#allocation15_spill] sm:$0xff]  ;;  %v9424_v56 = vmul.f32 0.17677669, %v9338_v46 }
 0xb4f   : > { %9532 = vmax.xlane.f32.xlu0 %v9531_v61 }
 0xb50   : > { %v9540_v10 = vsel %vm2688_vm2, %v17284_v3, -inf  ;;  %v9543_v61 = vsel %vm2688_vm2, %v17291_v63, -inf }
 0xb51   : > { %9541 = vmax.xlane.f32.xlu1 %v9540_v10  ;;  %v9388_v53 = vpop.f32.mrb[48].mxu1 }
 0xb52   : > { %v9425_v18 = vmul.f32 0.17677669, %v9388_v53  ;;  %v12740_v15 = vpop.f32.mrb[49].mxu1  ;;  %v19024_v53 = vld [vmem:[#allocation11_spill] sm:$0xff] }
 0xb53   : > { %9538 = vmax.xlane.f32.xlu0 %v9537_v34  ;;  %v9391_v49 = vpop.f32.mrb[50].mxu1  ;;  %v19025_v15 = vld [vmem:[#allocation106_spill] sm:$0xff] }
 0xb54   : > { %v12741_v38 = vpop.f32.mrb[51].mxu1  ;;  %v17296_v36 = vadd.f32 %v19022_v44, %v9425_v18  ;;  %v17307_v34 = vadd.f32 %v19025_v15, %v9424_v56  ;;  %v9426_v18 = vmul.f32 0.17677669, %v9391_v49 }
 0xb55   : > { %v19026_v38 = vld [vmem:[#allocation108_spill] sm:$0xff] }
 0xb56   : > { %v9549_v10 = vsel %vm2688_vm2, %v17296_v36, -inf  ;;  %v17310_v44 = vadd.f32 %v19026_v38, %v9426_v18 }
 0xb57   : > { %9544 = vmax.xlane.f32.xlu0 %v9543_v61  ;;  %v9546_v61 = vsel %vm2688_vm2, %v17307_v34, -inf }
 0xb5b   : > { %9550 = vmax.xlane.f32.xlu0 %v9549_v10  ;;  %v9552_v10 = vsel %vm2688_vm2, %v17310_v44, -inf }
 0xb62   : > { %5959 = vrot.lane.b32.xlu1 %v19023_v14, %s13840_s14 }
 0xb71   : > { %5957 = vrot.lane.b32.xlu0 %v19024_v53, %s13840_s14 }
 0xb86   : > { %9547 = vmax.xlane.f32.xlu1 %v9546_v61 }
 0xb8a   : > { %9553 = vmax.xlane.f32.xlu1 %v9552_v10 }
 0xba6   : > { %v9461_v20 = vpop.xlane.xlu0 %9460 }
 0xba7   : > { %v9555_v9 = vsub.f32 %v17153_v37, %v9461_v20 }
 0xba8   : > { %v9464_v57 = vpop.xlane.xlu1 %9463 }
 0xba9   : > { %v9587_v46 = vmul.f32 1.442695, %v9555_v9  ;;  %v9556_v56 = vsub.f32 %v17156_v59, %v9464_v57 }
 0xbab   : > { %13613 = vpow2.f32 %v9587_v46  ;;  %v9589_v49 = vmul.f32 1.442695, %v9556_v56 }
 0xbac   : > { %v9467_v15 = vpop.xlane.xlu0 %9466 }
 0xbad   : > { %13615 = vpow2.f32 %v9589_v49  ;;  %v9557_v18 = vsub.f32 %v17163_v55, %v9467_v15 }
 0xbaf   : > { %v9591_v38 = vmul.f32 1.442695, %v9557_v18 }
 0xbb0   : > { %v9476_v54 = vpop.xlane.xlu1 %9475  ;;  %v9470_v39 = vpop.xlane.xlu0 %9469 }
 0xbb1   : > { %v9560_v61 = vsub.f32 %v17171_v33, %v9476_v54  ;;  %13617 = vpow2.f32 %v9591_v38  ;;  %v9558_v10 = vsub.f32 %v17166_v51, %v9470_v39 }
 0xbb3   : > { %v9597_v29 = vmul.f32 1.442695, %v9560_v61  ;;  %v9593_v20 = vmul.f32 1.442695, %v9558_v10 }
 0xbb4   : > { %v9473_v9 = vpop.xlane.xlu0 %9472 }
 0xbb5   : > { %v17321_v37 = vpop.eup %13613  ;;  %13619 = vpow2.f32 %v9593_v20  ;;  %v9559_v57 = vsub.f32 %v17176_v2, %v9473_v9 }
 0xbb6   : > { %v9651_v59 = vsel %vm2688_vm2, %v17321_v37, 0.0  ;;  %v9482_v46 = vpop.xlane.xlu1 %9481  ;;  %13621 = vpow2.f32 %v9597_v29 }
 0xbb7   : > { %v17326_v55 = vpop.eup %13615  ;;  %9652 = vadd.xlane.f32.xlu0 %v9651_v59  ;;  %v9595_v54 = vmul.f32 1.442695, %v9559_v57  ;;  %v9562_v33 = vsub.f32 %v17184_v1, %v9482_v46 }
 0xbb8   : > { %v9654_v39 = vsel %vm2688_vm2, %v17326_v55, 0.0  ;;  %v9479_v51 = vpop.xlane.xlu0 %9478 }
 0xbb9   : > { %9655 = vadd.xlane.f32.xlu1 %v9654_v39  ;;  %13623 = vpow2.f32 %v9595_v54  ;;  %v9601_v56 = vmul.f32 1.442695, %v9562_v33  ;;  %v9561_v2 = vsub.f32 %v17181_v6, %v9479_v51 }
 0xbba   : > { %v9488_v49 = vpop.xlane.xlu1 %9487 }
 0xbbb   : > { %v17332_v15 = vpop.eup %13617  ;;  %13625 = vpow2.f32 %v9601_v56  ;;  %v9599_v18 = vmul.f32 1.442695, %v9561_v2  ;;  %v9564_v38 = vsub.f32 %v17189_v0, %v9488_v49 }
 0xbbc   : > { %v9485_v29 = vpop.xlane.xlu0 %9484  ;;  %v9657_v1 = vsel %vm2688_vm2, %v17332_v15, 0.0 }
 0xbbd   : > { %13627 = vpow2.f32 %v9599_v18  ;;  %v9605_v61 = vmul.f32 1.442695, %v9564_v38  ;;  %v9563_v10 = vsub.f32 %v17194_v50, %v9485_v29  ;;  %9658 = vadd.xlane.f32.xlu0 %v9657_v1 }
 0xbbe   : > { %v9494_v20 = vpop.xlane.xlu1 %9493 }
 0xbbf   : > { %v17338_v9 = vpop.eup %13619  ;;  %13629 = vpow2.f32 %v9605_v61  ;;  %v9603_v6 = vmul.f32 1.442695, %v9563_v10  ;;  %v9566_v57 = vsub.f32 %v17204_v19, %v9494_v20 }
 0xbc0   : > { %v9491_v59 = vpop.xlane.xlu0 %9490  ;;  %v9660_v0 = vsel %vm2688_vm2, %v17338_v9, 0.0  ;;  %v17343_v46 = vpop.eup %13621 }
 0xbc1   : > { %13631 = vpow2.f32 %v9603_v6  ;;  %v9609_v54 = vmul.f32 1.442695, %v9566_v57  ;;  %v9565_v33 = vsub.f32 %v17201_v4, %v9491_v59  ;;  %9661 = vadd.xlane.f32.xlu1 %v9660_v0  ;;  %v9666_v19 = vsel %vm2688_vm2, %v17343_v46, 0.0 }
 0xbc2   : > { %v9500_v50 = vpop.xlane.xlu1 %9499 }
 0xbc3   : > { %v17346_v39 = vpop.eup %13623  ;;  %13633 = vpow2.f32 %v9609_v54  ;;  %v9607_v51 = vmul.f32 1.442695, %v9565_v33  ;;  %v9568_v56 = vsub.f32 %v17209_v52, %v9500_v50 }
 0xbc4   : > { %v9497_v2 = vpop.xlane.xlu0 %9496  ;;  %v9663_v49 = vsel %vm2688_vm2, %v17346_v39, 0.0 }
 0xbc5   : > { %v17353_v18 = vpop.eup %13625  ;;  %13635 = vpow2.f32 %v9607_v51  ;;  %v9613_v38 = vmul.f32 1.442695, %v9568_v56  ;;  %v9567_v4 = vsub.f32 %v17214_v60, %v9497_v2  ;;  %9667 = vadd.xlane.f32.xlu1 %v9666_v19  ;;  %9664 = vadd.xlane.f32.xlu0 %v9663_v49 }
 0xbc6   : > { %v9506_v29 = vpop.xlane.xlu1 %9505  ;;  %v9672_v20 = vsel %vm2688_vm2, %v17353_v18, 0.0 }
 0xbc7   : > { %v17356_v1 = vpop.eup %13627  ;;  %13637 = vpow2.f32 %v9613_v38  ;;  %v9611_v52 = vmul.f32 1.442695, %v9567_v4  ;;  %v9570_v61 = vsub.f32 %v17224_v23, %v9506_v29 }
 0xbc8   : > { %v9503_v10 = vpop.xlane.xlu0 %9502  ;;  %v9669_v6 = vsel %vm2688_vm2, %v17356_v1, 0.0 }
 0xbc9   : > { %v17363_v57 = vpop.eup %13629  ;;  %13639 = vpow2.f32 %v9611_v52  ;;  %v9617_v60 = vmul.f32 1.442695, %v9570_v61  ;;  %v9569_v59 = vsub.f32 %v17221_v43, %v9503_v10  ;;  %9673 = vadd.xlane.f32.xlu1 %v9672_v20  ;;  %9670 = vadd.xlane.f32.xlu0 %v9669_v6 }
 0xbca   : > { %v9512_v0 = vpop.xlane.xlu1 %9511  ;;  %v9678_v50 = vsel %vm2688_vm2, %v17363_v57, 0.0 }
 0xbcb   : > { %v17366_v54 = vpop.eup %13631  ;;  %13641 = vpow2.f32 %v9617_v60  ;;  %v9615_v23 = vmul.f32 1.442695, %v9569_v59  ;;  %v9572_v49 = vsub.f32 %v17229_v5, %v9512_v0 }
 0xbcc   : > { %v9509_v33 = vpop.xlane.xlu0 %9508  ;;  %v9675_v51 = vsel %vm2688_vm2, %v17366_v54, 0.0 }
 0xbcd   : > { %v17372_v56 = vpop.eup %13633  ;;  %13643 = vpow2.f32 %v9615_v23  ;;  %v9571_v2 = vsub.f32 %v17234_v7, %v9509_v33  ;;  %9679 = vadd.xlane.f32.xlu1 %v9678_v50  ;;  %9676 = vadd.xlane.f32.xlu0 %v9675_v51  ;;  %v9621_v60 = vmul.f32 1.442695, %v9572_v49 }
 0xbce   : > { %v9518_v43 = vpop.xlane.xlu1 %9517  ;;  %v9684_v52 = vsel %vm2688_vm2, %v17372_v56, 0.0 }
 0xbcf   : > { %v17375_v19 = vpop.eup %13635  ;;  %v9619_v38 = vmul.f32 1.442695, %v9571_v2  ;;  %v9574_v4 = vsub.f32 %v17244_v62, %v9518_v43 }
 0xbd0   : > { %v9515_v29 = vpop.xlane.xlu0 %9514  ;;  %v9681_v61 = vsel %vm2688_vm2, %v17375_v19, 0.0 }
 0xbd1   : > { %v17383_v10 = vpop.eup %13637  ;;  %13645 = vpow2.f32 %v9619_v38  ;;  %v9625_v7 = vmul.f32 1.442695, %v9574_v4  ;;  %v9573_v20 = vsub.f32 %v17241_v31, %v9515_v29  ;;  %9685 = vadd.xlane.f32.xlu1 %v9684_v52  ;;  %9682 = vadd.xlane.f32.xlu0 %v9681_v61 }
 0xbd2   : > { %v9524_v6 = vpop.xlane.xlu1 %9523  ;;  %v9690_v0 = vsel %vm2688_vm2, %v17383_v10, 0.0 }
 0xbd3   : > { %v17386_v5 = vpop.eup %13639  ;;  %13647 = vpow2.f32 %v9625_v7  ;;  %v9623_v62 = vmul.f32 1.442695, %v9573_v20  ;;  %v9576_v2 = vsub.f32 %v17249_v17, %v9524_v6 }
 0xbd4   : > { %v9521_v59 = vpop.xlane.xlu0 %9520  ;;  %v9687_v23 = vsel %vm2688_vm2, %v17386_v5, 0.0 }
 0xbd5   : > { %v17392_v33 = vpop.eup %13641  ;;  %13649 = vpow2.f32 %v9623_v62  ;;  %v9575_v31 = vsub.f32 %v17254_v45, %v9521_v59  ;;  %9691 = vadd.xlane.f32.xlu1 %v9690_v0  ;;  %9688 = vadd.xlane.f32.xlu0 %v9687_v23  ;;  %v9629_v17 = vmul.f32 1.442695, %v9576_v2 }
 0xbd6   : > { %v9530_v50 = vpop.xlane.xlu1 %9529  ;;  %13651 = vpow2.f32 %v9621_v60  ;;  %v9696_v4 = vsel %vm2688_vm2, %v17392_v33, 0.0 }
 0xbd7   : > { %v17395_v51 = vpop.eup %13643  ;;  %v9627_v43 = vmul.f32 1.442695, %v9575_v31  ;;  %v9578_v49 = vsub.f32 %v17264_v26, %v9530_v50 }
 0xbd8   : > { %v9527_v38 = vpop.xlane.xlu0 %9526  ;;  %v9693_v29 = vsel %vm2688_vm2, %v17395_v51, 0.0 }
 0xbd9   : > { %13653 = vpow2.f32 %v9627_v43  ;;  %v9633_v45 = vmul.f32 1.442695, %v9578_v49  ;;  %v9577_v52 = vsub.f32 %v17261_v35, %v9527_v38  ;;  %9697 = vadd.xlane.f32.xlu1 %v9696_v4  ;;  %9694 = vadd.xlane.f32.xlu0 %v9693_v29 }
 0xbda   : > { %v9536_v61 = vpop.xlane.xlu1 %9535 }
 0xbdb   : > { %v17404_v7 = vpop.eup %13645  ;;  %13655 = vpow2.f32 %v9633_v45  ;;  %v9631_v20 = vmul.f32 1.442695, %v9577_v52  ;;  %v9580_v0 = vsub.f32 %v17269_v40, %v9536_v61 }
 0xbdc   : > { %v9533_v26 = vpop.xlane.xlu0 %9532  ;;  %v9699_v6 = vsel %vm2688_vm2, %v17404_v7, 0.0 }
 0xbdd   : > { %v17408_v60 = vpop.eup %13647  ;;  %13657 = vpow2.f32 %v9631_v20  ;;  %v9579_v62 = vsub.f32 %v17274_v21, %v9533_v26  ;;  %9700 = vadd.xlane.f32.xlu1 %v9699_v6  ;;  %v9637_v40 = vmul.f32 1.442695, %v9580_v0 }
 0xbde   : > { %v9542_v59 = vpop.xlane.xlu1 %9541  ;;  %13659 = vpow2.f32 %v9629_v17  ;;  %v9708_v2 = vsel %vm2688_vm2, %v17408_v60, 0.0 }
 0xbdf   : > { %v17411_v35 = vpop.eup %13649  ;;  %v9635_v23 = vmul.f32 1.442695, %v9579_v62  ;;  %v9582_v31 = vsub.f32 %v17284_v3, %v9542_v59 }
 0xbe0   : > { %v9539_v50 = vpop.xlane.xlu0 %9538  ;;  %v9705_v43 = vsel %vm2688_vm2, %v17411_v35, 0.0  ;;  %v17419_v49 = vpop.eup %13651 }
 0xbe1   : > { %13661 = vpow2.f32 %v9635_v23  ;;  %v9641_v21 = vmul.f32 1.442695, %v9582_v31  ;;  %v9581_v38 = vsub.f32 %v17281_v24, %v9539_v50  ;;  %9709 = vadd.xlane.f32.xlu1 %v9708_v2  ;;  %9706 = vadd.xlane.f32.xlu0 %v9705_v43  ;;  %v9702_v45 = vsel %vm2688_vm2, %v17419_v49, 0.0 }
 0xbe3   : > { %v17422_v4 = vpop.eup %13653  ;;  %13663 = vpow2.f32 %v9641_v21  ;;  %v9639_v3 = vmul.f32 1.442695, %v9581_v38  ;;  %v19027_v38 = vld [vmem:[#allocation109_spill] sm:$0xff] }
 0xbe4   : > { %v9545_v29 = vpop.xlane.xlu0 %9544  ;;  %v9711_v52 = vsel %vm2688_vm2, %v17422_v4, 0.0 }
 0xbe5   : > { %v17428_v61 = vpop.eup %13655  ;;  %13665 = vpow2.f32 %v9639_v3  ;;  %v9583_v17 = vsub.f32 %v17291_v63, %v9545_v29  ;;  %9703 = vadd.xlane.f32.xlu0 %v9702_v45  ;;  %9712 = vadd.xlane.f32.xlu1 %v9711_v52  ;;  %v5960_v63 = vpop.permute.xlu1 %5959 }
 0xbe6   : > { %13667 = vpow2.f32 %v9637_v40  ;;  %v9720_v6 = vsel %vm2688_vm2, %v17428_v61, 0.0  ;;  %v17449_v40 = vmul.f32 %v5960_v63, %v19027_v38 }
 0xbe7   : > { %v17431_v24 = vpop.eup %13657  ;;  %v9643_v20 = vmul.f32 1.442695, %v9583_v17 }
 0xbe8   : > { %v9551_v26 = vpop.xlane.xlu0 %9550  ;;  %v9717_v62 = vsel %vm2688_vm2, %v17431_v24, 0.0  ;;  %v17437_v59 = vpop.eup %13659 }
 0xbe9   : > { %13669 = vpow2.f32 %v9643_v20  ;;  %v9585_v0 = vsub.f32 %v17296_v36, %v9551_v26  ;;  %9721 = vadd.xlane.f32.xlu1 %v9720_v6  ;;  %9718 = vadd.xlane.f32.xlu0 %v9717_v62  ;;  %v9714_v2 = vsel %vm2688_vm2, %v17437_v59, 0.0  ;;  %v19028_v36 = vld [vmem:[#allocation73_spill] sm:$0xff] }
 0xbeb   : > { %v17440_v23 = vpop.eup %13661  ;;  %v9647_v31 = vmul.f32 1.442695, %v9585_v0 }
 0xbec   : > { %v5958_v50 = vpop.permute.xlu0 %5957  ;;  %v9723_v43 = vsel %vm2688_vm2, %v17440_v23, 0.0 }
 0xbed   : > { %v17446_v21 = vpop.eup %13663  ;;  %13671 = vpow2.f32 %v9647_v31  ;;  %v17452_v3 = vmul.f32 %v5958_v50, %v19028_v36  ;;  %9715 = vadd.xlane.f32.xlu0 %v9714_v2  ;;  %9724 = vadd.xlane.f32.xlu1 %v9723_v43 }
 0xbee   : > { %v9732_v52 = vsel %vm2688_vm2, %v17446_v21, 0.0 }
 0xbef   : > { %v17454_v29 = vpop.eup %13665  ;;  %v6082_v45 = vpack.c.bf16 %v17449_v40, %v17452_v3  ;;  %v19081_v3 = vld [vmem:[#allocation116_spill] sm:$0xff] }
 0xbf0   : > { %v9729_v17 = vsel %vm2688_vm2, %v17454_v29, 0.0  ;;  %v17462_v20 = vpop.eup %13667 }
 0xbf1   : > { %9733 = vadd.xlane.f32.xlu1 %v9732_v52  ;;  %9730 = vadd.xlane.f32.xlu0 %v9729_v17  ;;  %v9726_v6 = vsel %vm2688_vm2, %v17462_v20, 0.0 }
 0xbf3   : > { %v17464_v26 = vpop.eup %13669 }
 0xbf4   : > { %v9735_v62 = vsel %vm2688_vm2, %v17464_v26, 0.0 }
 0xbf5   : > { %9727 = vadd.xlane.f32.xlu0 %v9726_v6  ;;  %9736 = vadd.xlane.f32.xlu1 %v9735_v62 }
 0xbf7   : > { %v17470_v0 = vpop.eup %13671 }
 0xbf8   : > { %v9741_v63 = vsel %vm2688_vm2, %v17470_v0, 0.0 }
 0xbf9   : > { %9742 = vadd.xlane.f32.xlu0 %v9741_v63  ;;  %v19029_v63 = vld [vmem:[#allocation29_spill] sm:$0xff] }
 0xc06   : > { %8276 = vrot.lane.b32.xlu1 %v18955_v41, %s13841_s24 }
 0xc13   : > { %v9548_v31 = vpop.xlane.xlu1 %9547 }
 0xc14   : > { %v9584_v50 = vsub.f32 %v17307_v34, %v9548_v31  ;;  %v19030_v31 = vld [vmem:[#allocation18_spill] sm:$0xff] }
 0xc16   : > { %v9645_v2 = vmul.f32 1.442695, %v9584_v50  ;;  %v19031_v50 = vld [vmem:[#allocation32_spill] sm:$0xff] }
 0xc17   : > { %v9554_v43 = vpop.xlane.xlu1 %9553 }
 0xc18   : > { %13673 = vpow2.f32 %v9645_v2  ;;  %v9586_v38 = vsub.f32 %v17310_v44, %v9554_v43  ;;  %v19032_v2 = vld [vmem:[#allocation31_spill] sm:$0xff] }
 0xc1a   : > { %v9649_v36 = vmul.f32 1.442695, %v9586_v38 }
 0xc1c   : > { %13675 = vpow2.f32 %v9649_v36 }
 0xc22   : > { %v17478_v52 = vpop.eup %13673 }
 0xc23   : > { %v9738_v17 = vsel %vm2688_vm2, %v17478_v52, 0.0 }
 0xc24   : > { %9739 = vadd.xlane.f32.xlu0 %v9738_v17 }
 0xc26   : > { %v17482_v6 = vpop.eup %13675 }
 0xc27   : > { %v9744_v62 = vsel %vm2688_vm2, %v17482_v6, 0.0 }
 0xc2a   : > { %9745 = vadd.xlane.f32.xlu1 %v9744_v62 }
 0xc3a   : > { %8274 = vrot.lane.b32.xlu0 %v18953_v8, %s13841_s24 }
 0xc3b   : > { %8280 = vrot.lane.b32.xlu1 %v19023_v14, %s13841_s24 }
 0xc3e   : > { %8278 = vrot.lane.b32.xlu0 %v19024_v53, %s13841_s24 }
 0xc3f   : > { %10597 = vrot.lane.b32.xlu1 %v18955_v41, %s13842_s26 }
 0xc42   : > { %10595 = vrot.lane.b32.xlu0 %v18953_v8, %s13842_s26 }
 0xc43   : > { %10601 = vrot.lane.b32.xlu1 %v19023_v14, %s13842_s26 }
 0xc44   : > { %v9653_v34 = vpop.xlane.xlu0 %9652 }
 0xc45   : > { %13677 = vrcp.f32 %v9653_v34 }
 0xc46   : > { %v9656_v44 = vpop.xlane.xlu1 %9655  ;;  %10599 = vrot.lane.b32.xlu0 %v19024_v53, %s13842_s26 }
 0xc47   : > { %13679 = vrcp.f32 %v9656_v44  ;;  %5963 = vrot.lane.b32.xlu1 %v19029_v63, %s13840_s14 }
 0xc4a   : > { %5961 = vrot.lane.b32.xlu0 %v19030_v31, %s13840_s14  ;;  %v9659_v41 = vpop.xlane.xlu0 %9658 }
 0xc4b   : > { %5967 = vrot.lane.b32.xlu1 %v19031_v50, %s13840_s14  ;;  %13681 = vrcp.f32 %v9659_v41 }
 0xc4e   : > { %v9662_v14 = vpop.xlane.xlu1 %9661  ;;  %5965 = vrot.lane.b32.xlu0 %v19032_v2, %s13840_s14 }
 0xc4f   : > { %v13678_v8 = vpop.eup %13677  ;;  %13683 = vrcp.f32 %v9662_v14  ;;  %8284 = vrot.lane.b32.xlu1 %v19029_v63, %s13841_s24 }
 0xc50   : > { %v9779_v43 = vmul.f32 %v13678_v8, %v17321_v37 }
 0xc51   : > { %v13680_v53 = vpop.eup %13679 }
 0xc52   : > { %v9780_v38 = vmul.f32 %v13680_v53, %v17326_v55  ;;  %v9668_v36 = vpop.xlane.xlu1 %9667  ;;  %8282 = vrot.lane.b32.xlu0 %v19030_v31, %s13841_s24  ;;  %v9665_v17 = vpop.xlane.xlu0 %9664 }
 0xc53   : > { %13685 = vrcp.f32 %v9668_v36  ;;  %8288 = vrot.lane.b32.xlu1 %v19031_v50, %s13841_s24 }
 0xc54   : > { %v9811_v62 = vpack.c.bf16 %v9780_v38, %v9779_v43  ;;  %13687 = vrcp.f32 %v9665_v17 }
 0xc55   : > { %v13682_v55 = vpop.eup %13681 }
 0xc56   : > { %12745 = vmatmul.mubr.msk.bf16.vlgmr.msra.gmra.mrb[12].mxu0 %vm2688_vm2, %v9811_v62  ;;  %v9674_v34 = vpop.xlane.xlu1 %9673  ;;  %8286 = vrot.lane.b32.xlu0 %v19032_v2, %s13841_s24  ;;  %v9671_v37 = vpop.xlane.xlu0 %9670  ;;  %v9781_v41 = vmul.f32 %v13682_v55, %v17332_v15 }
 0xc57   : > { %12755 = vmatpush3.bf16.msra.mxu0 %v17033_v13  ;;  %13689 = vrcp.f32 %v9674_v34  ;;  %10605 = vrot.lane.b32.xlu1 %v19029_v63, %s13842_s26 }
 0xc58   : > { %12756 = vmatprep.mubr.msk.bf16.mxu0 %vm13839_vm0, %v18793_v47  ;;  %13691 = vrcp.f32 %v9671_v37  ;;  %12766 = vmatprep.subr.bf16.mxu0 %v18793_v47  ;;  %v19035_v37 = vld [vmem:[#allocation38_spill] sm:$0xff] }
 0xc59   : > { %v13684_v44 = vpop.eup %13683 }
 0xc5a   : > { %v9782_v8 = vmul.f32 %v13684_v44, %v17338_v9  ;;  %v9680_v14 = vpop.xlane.xlu1 %9679  ;;  %10603 = vrot.lane.b32.xlu0 %v19030_v31, %s13842_s26  ;;  %v9677_v13 = vpop.xlane.xlu0 %9676  ;;  %v19033_v31 = vld [vmem:[#allocation35_spill] sm:$0xff] }
 0xc5b   : > { %13693 = vrcp.f32 %v9680_v14  ;;  %10609 = vrot.lane.b32.xlu1 %v19031_v50, %s13842_s26 }
 0xc5c   : > { %v9812_v63 = vpack.c.bf16 %v9782_v8, %v9781_v41  ;;  %13695 = vrcp.f32 %v9677_v13  ;;  %v19036_v8 = vld [vmem:[#allocation37_spill] sm:$0xff] }
 0xc5d   : > { %v13686_v53 = vpop.eup %13685 }
 0xc5e   : > { %v13688_v43 = vpop.eup %13687  ;;  %v9784_v38 = vmul.f32 %v13686_v53, %v17343_v46  ;;  %v9686_v36 = vpop.xlane.xlu1 %9685  ;;  %10607 = vrot.lane.b32.xlu0 %v19032_v2, %s13842_s26  ;;  %12751 = vmatmul.mubr.msk.bf16.vlgmr.msra.gmra.mrb[52].mxu1 %vm2688_vm2, %v9812_v63 }
 0xc5f   : > { %v9683_v15 = vpop.xlane.xlu0 %9682  ;;  %v9783_v9 = vmul.f32 %v13688_v43, %v17346_v39  ;;  %13697 = vrcp.f32 %v9686_v36  ;;  %12761 = vmatpush3.bf16.msra.mxu1 %v17040_v42  ;;  %5971 = vrot.lane.b32.xlu1 %v19033_v31, %s13840_s14  ;;  %v19034_v39 = vld [vmem:[#allocation34_spill] sm:$0xff] }
 0xc60   : > { %13699 = vrcp.f32 %v9683_v15  ;;  %12762 = vmatprep.mubr.msk.bf16.mxu1 %vm13839_vm0, %v18793_v47  ;;  %12772 = vmatprep.subr.bf16.mxu1 %v18793_v47 }
 0xc61   : > { %v13690_v46 = vpop.eup %13689  ;;  %v9813_v50 = vpack.c.bf16 %v9784_v38, %v9783_v9 }
 0xc62   : > { %v13692_v2 = vpop.eup %13691  ;;  %v9786_v17 = vmul.f32 %v13690_v46, %v17353_v18  ;;  %v9692_v62 = vpop.xlane.xlu1 %9691  ;;  %5969 = vrot.lane.b32.xlu0 %v19034_v39, %s13840_s14 }
 0xc63   : > { %v9689_v34 = vpop.xlane.xlu0 %9688  ;;  %v9785_v42 = vmul.f32 %v13692_v2, %v17356_v1  ;;  %13701 = vrcp.f32 %v9692_v62  ;;  %12757 = vmatmul.mubr.msk.bf16.vlgmr.msra.gmra.mrb[16].mxu0 %vm2688_vm2, %v9813_v50  ;;  %5975 = vrot.lane.b32.xlu1 %v19035_v37, %s13840_s14 }
 0xc64   : > { %12767 = vmatpush3.bf16.msra.mxu0 %v17043_v27  ;;  %13703 = vrcp.f32 %v9689_v34  ;;  %12768 = vmatprep.mubr.msk.bf16.mxu0 %vm13839_vm0, %v18793_v47 }
 0xc65   : > { %v13694_v18 = vpop.eup %13693  ;;  %v9814_v55 = vpack.c.bf16 %v9786_v17, %v9785_v42  ;;  %12778 = vmatprep.subr.bf16.mxu0 %v18793_v47  ;;  %v19038_v42 = vld [vmem:[#allocation40_spill] sm:$0xff] }
 0xc66   : > { %v13696_v44 = vpop.eup %13695  ;;  %v9788_v41 = vmul.f32 %v13694_v18, %v17363_v57  ;;  %v9698_v1 = vpop.xlane.xlu1 %9697  ;;  %5973 = vrot.lane.b32.xlu0 %v19036_v8, %s13840_s14 }
 0xc67   : > { %v9695_v14 = vpop.xlane.xlu0 %9694  ;;  %v9787_v13 = vmul.f32 %v13696_v44, %v17366_v54  ;;  %13705 = vrcp.f32 %v9698_v1  ;;  %12763 = vmatmul.mubr.msk.bf16.vlgmr.msra.gmra.mrb[56].mxu1 %vm2688_vm2, %v9814_v55  ;;  %8292 = vrot.lane.b32.xlu1 %v19033_v31, %s13841_s24 }
 0xc68   : > { %12773 = vmatpush3.bf16.msra.mxu1 %v17046_v22  ;;  %13707 = vrcp.f32 %v9695_v14  ;;  %12774 = vmatprep.mubr.msk.bf16.mxu1 %vm13839_vm0, %v18793_v47 }
 0xc69   : > { %v13698_v27 = vpop.eup %13697  ;;  %v9815_v57 = vpack.c.bf16 %v9788_v41, %v9787_v13  ;;  %12784 = vmatprep.subr.bf16.mxu1 %v18793_v47 }
 0xc6a   : > { %v13700_v63 = vpop.eup %13699  ;;  %v9790_v53 = vmul.f32 %v13698_v27, %v17372_v56  ;;  %v9701_v54 = vpop.xlane.xlu1 %9700  ;;  %8290 = vrot.lane.b32.xlu0 %v19034_v39, %s13841_s24 }
 0xc6b   : > { %v9789_v43 = vmul.f32 %v13700_v63, %v17375_v19  ;;  %12769 = vmatmul.mubr.msk.bf16.vlgmr.msra.gmra.mrb[20].mxu0 %vm2688_vm2, %v9815_v57  ;;  %8296 = vrot.lane.b32.xlu1 %v19035_v37, %s13841_s24 }
 0xc6c   : > { %12779 = vmatpush3.bf16.msra.mxu0 %v17050_v16  ;;  %12780 = vmatprep.mubr.msk.bf16.mxu0 %vm13839_vm0, %v18793_v47 }
 0xc6d   : > { %v13702_v22 = vpop.eup %13701  ;;  %v9816_v38 = vpack.c.bf16 %v9790_v53, %v9789_v43  ;;  %12790 = vmatprep.subr.bf16.mxu0 %v18793_v47 }
 0xc6e   : > { %v13704_v56 = vpop.eup %13703  ;;  %v9792_v36 = vmul.f32 %v13702_v22, %v17383_v10  ;;  %v9710_v15 = vpop.xlane.xlu1 %9709  ;;  %8294 = vrot.lane.b32.xlu0 %v19036_v8, %s13841_s24 }
 0xc6f   : > { %v9707_v19 = vpop.xlane.xlu0 %9706  ;;  %v9791_v9 = vmul.f32 %v13704_v56, %v17386_v5  ;;  %13709 = vrcp.f32 %v9710_v15  ;;  %12775 = vmatmul.mubr.msk.bf16.vlgmr.msra.gmra.mrb[60].mxu1 %vm2688_vm2, %v9816_v38  ;;  %10613 = vrot.lane.b32.xlu1 %v19033_v31, %s13842_s26  ;;  %v19042_v15 = vld [vmem:[#allocation46_spill] sm:$0xff] }
 0xc70   : > { %12785 = vmatpush3.bf16.msra.mxu1 %v17057_v12  ;;  %13711 = vrcp.f32 %v9707_v19  ;;  %12786 = vmatprep.mubr.msk.bf16.mxu1 %vm13839_vm0, %v18793_v47  ;;  %v19045_v19 = vld [vmem:[#allocation51_spill] sm:$0xff] }
 0xc71   : > { %v13706_v16 = vpop.eup %13705  ;;  %v9817_v10 = vpack.c.bf16 %v9792_v36, %v9791_v9  ;;  %12796 = vmatprep.subr.bf16.mxu1 %v18793_v47  ;;  %13713 = vrcp.f32 %v9701_v54  ;;  %v19041_v36 = vld [vmem:[#allocation48_spill] sm:$0xff]  ;;  %v19048_v9 = vld [vmem:[#allocation58_spill] sm:$0xff] }
 0xc72   : > { %v13708_v46 = vpop.eup %13707  ;;  %v9794_v50 = vmul.f32 %v13706_v16, %v17392_v33  ;;  %v9713_v5 = vpop.xlane.xlu1 %9712  ;;  %10611 = vrot.lane.b32.xlu0 %v19034_v39, %s13842_s26 }
 0xc73   : > { %v9704_v2 = vpop.xlane.xlu0 %9703  ;;  %v9793_v31 = vmul.f32 %v13708_v46, %v17395_v51  ;;  %12781 = vmatmul.mubr.msk.bf16.vlgmr.msra.gmra.mrb[24].mxu0 %vm2688_vm2, %v9817_v10  ;;  %10617 = vrot.lane.b32.xlu1 %v19035_v37, %s13842_s26  ;;  %v19037_v51 = vld [vmem:[#allocation41_spill] sm:$0xff] }
 0xc74   : > { %12791 = vmatpush3.bf16.msra.mxu0 %v17060_v25  ;;  %13715 = vrcp.f32 %v9704_v2  ;;  %12792 = vmatprep.mubr.msk.bf16.mxu0 %vm13839_vm0, %v18793_v47  ;;  %v19049_v46 = vld [vmem:[#allocation57_spill] sm:$0xff] }
 0xc75   : > { %v9818_v12 = vpack.c.bf16 %v9794_v50, %v9793_v31  ;;  %12802 = vmatprep.subr.bf16.mxu0 %v18793_v47  ;;  %v19050_v31 = vld [vmem:[#allocation136_spill] sm:$0xff] }
 0xc76   : > { %v9722_v33 = vpop.xlane.xlu1 %9721  ;;  %10615 = vrot.lane.b32.xlu0 %v19036_v8, %s13842_s26  ;;  %v19040_v8 = vld [vmem:[#allocation43_spill] sm:$0xff] }
 0xc77   : > { %v9719_v17 = vpop.xlane.xlu0 %9718  ;;  %13717 = vrcp.f32 %v9722_v33  ;;  %12787 = vmatmul.mubr.msk.bf16.vlgmr.msra.gmra.mrb[64].mxu1 %vm2688_vm2, %v9818_v12  ;;  %5979 = vrot.lane.b32.xlu1 %v19037_v51, %s13840_s14  ;;  %v19051_v33 = vld [vmem:[#allocation17_spill] sm:$0xff] }
 0xc78   : > { %12797 = vmatpush3.bf16.msra.mxu1 %v17062_v30  ;;  %13719 = vrcp.f32 %v9719_v17  ;;  %12798 = vmatprep.mubr.msk.bf16.mxu1 %vm13839_vm0, %v18793_v47  ;;  %v19039_v30 = vld [vmem:[#allocation44_spill] sm:$0xff] }
 0xc79   : > { %v13710_v25 = vpop.eup %13709  ;;  %12808 = vmatprep.subr.bf16.mxu1 %v18793_v47  ;;  %13721 = vrcp.f32 %v9713_v5 }
 0xc7a   : > { %v13712_v62 = vpop.eup %13711  ;;  %v9798_v39 = vmul.f32 %v13710_v25, %v17408_v60  ;;  %v9725_v34 = vpop.xlane.xlu1 %9724  ;;  %5977 = vrot.lane.b32.xlu0 %v19038_v42, %s13840_s14 }
 0xc7b   : > { %v9716_v37 = vpop.xlane.xlu0 %9715  ;;  %v9797_v18 = vmul.f32 %v13712_v62, %v17411_v35  ;;  %5983 = vrot.lane.b32.xlu1 %v19039_v30, %s13840_s14  ;;  %v13714_v55 = vpop.eup %13713 }
 0xc7c   : > { %13723 = vrcp.f32 %v9716_v37  ;;  %v9795_v14 = vmul.f32 %v13714_v55, %v17404_v7  ;;  %v19052_v37 = vld [vmem:[#allocation12_spill] sm:$0xff] }
 0xc7d   : > { %v9820_v44 = vpack.c.bf16 %v9798_v39, %v9797_v18 }
 0xc7e   : > { %v13716_v41 = vpop.eup %13715  ;;  %v9734_v1 = vpop.xlane.xlu1 %9733  ;;  %5981 = vrot.lane.b32.xlu0 %v19040_v8, %s13840_s14 }
 0xc7f   : > { %v9731_v60 = vpop.xlane.xlu0 %9730  ;;  %v9796_v13 = vmul.f32 %v13716_v41, %v17419_v49  ;;  %13725 = vrcp.f32 %v9734_v1  ;;  %12799 = vmatmul.mubr.msk.bf16.vlgmr.msra.gmra.mrb[68].mxu1 %vm2688_vm2, %v9820_v44  ;;  %8300 = vrot.lane.b32.xlu1 %v19037_v51, %s13841_s24 }
 0xc80   : > { %12809 = vmatpush3.bf16.msra.mxu1 %v17072_v48  ;;  %13727 = vrcp.f32 %v9731_v60  ;;  %12810 = vmatprep.mubr.msk.bf16.mxu1 %vm13839_vm0, %v18793_v47 }
 0xc81   : > { %v13718_v35 = vpop.eup %13717  ;;  %v9819_v27 = vpack.c.bf16 %v9796_v13, %v9795_v14  ;;  %12820 = vmatprep.subr.bf16.mxu1 %v18793_v47  ;;  %13729 = vrcp.f32 %v9725_v34  ;;  %v19054_v14 = vld [vmem:[#allocation61_spill] sm:$0xff] }
 0xc82   : > { %v13720_v57 = vpop.eup %13719  ;;  %v9802_v7 = vmul.f32 %v13718_v35, %v17428_v61  ;;  %8298 = vrot.lane.b32.xlu0 %v19038_v42, %s13841_s24  ;;  %v9737_v16 = vpop.xlane.xlu1 %9736 }
 0xc83   : > { %v9728_v49 = vpop.xlane.xlu0 %9727  ;;  %v9801_v63 = vmul.f32 %v13720_v57, %v17431_v24  ;;  %12793 = vmatmul.mubr.msk.bf16.vlgmr.msra.gmra.mrb[28].mxu0 %vm2688_vm2, %v9819_v27  ;;  %8304 = vrot.lane.b32.xlu1 %v19039_v30, %s13841_s24  ;;  %v13722_v48 = vpop.eup %13721  ;;  %v19055_v27 = vld [vmem:[#allocation60_spill] sm:$0xff] }
 0xc84   : > { %12803 = vmatpush3.bf16.msra.mxu0 %v17068_v11  ;;  %13731 = vrcp.f32 %v9728_v49  ;;  %12804 = vmatprep.mubr.msk.bf16.mxu0 %vm13839_vm0, %v18793_v47  ;;  %v9799_v24 = vmul.f32 %v13722_v48, %v17422_v4  ;;  %v19056_v49 = vld [vmem:[#allocation64_spill] sm:$0xff] }
 0xc85   : > { %v9822_v61 = vpack.c.bf16 %v9802_v7, %v9801_v63  ;;  %12814 = vmatprep.subr.bf16.mxu0 %v18793_v47  ;;  %13733 = vrcp.f32 %v9737_v16 }
 0xc86   : > { %v13724_v53 = vpop.eup %13723  ;;  %8302 = vrot.lane.b32.xlu0 %v19040_v8, %s13841_s24  ;;  %v8277_v5 = vpop.permute.xlu1 %8276 }
 0xc87   : > { %v9800_v54 = vmul.f32 %v13724_v53, %v17437_v59  ;;  %12811 = vmatmul.mubr.msk.bf16.vlgmr.msra.gmra.mrb[72].mxu1 %vm2688_vm2, %v9822_v61  ;;  %10621 = vrot.lane.b32.xlu1 %v19037_v51, %s13842_s26  ;;  %v9743_v10 = vpop.xlane.xlu0 %9742  ;;  %v17707_v12 = vmul.f32 %v8277_v5, %v19050_v31  ;;  %v19057_v53 = vld [vmem:[#allocation63_spill] sm:$0xff] }
 0xc88   : > { %12821 = vmatpush3.bf16.msra.mxu1 %v17076_v32  ;;  %12822 = vmatprep.mubr.msk.bf16.mxu1 %vm13839_vm0, %v18793_v47 }
 0xc89   : > { %v13726_v11 = vpop.eup %13725  ;;  %v9821_v43 = vpack.c.bf16 %v9800_v54, %v9799_v24  ;;  %12832 = vmatprep.subr.bf16.mxu1 %v18793_v47  ;;  %v19058_v54 = vld [vmem:[#allocation75_spill] sm:$0xff] }
 0xc8a   : > { %v13728_v22 = vpop.eup %13727  ;;  %v9806_v38 = vmul.f32 %v13726_v11, %v17446_v21  ;;  %10619 = vrot.lane.b32.xlu0 %v19038_v42, %s13842_s26 }
 0xc8b   : > { %v9805_v4 = vmul.f32 %v13728_v22, %v17454_v29  ;;  %12805 = vmatmul.mubr.msk.bf16.vlgmr.msra.gmra.mrb[32].mxu0 %vm2688_vm2, %v9821_v43  ;;  %10625 = vrot.lane.b32.xlu1 %v19039_v30, %s13842_s26  ;;  %v13730_v32 = vpop.eup %13729  ;;  %v19053_v30 = vld [vmem:[#allocation19_spill] sm:$0xff] }
 0xc8c   : > { %12815 = vmatpush3.bf16.msra.mxu0 %v17070_v58  ;;  %12816 = vmatprep.mubr.msk.bf16.mxu0 %vm13839_vm0, %v18793_v47  ;;  %v9803_v29 = vmul.f32 %v13730_v32, %v17440_v23  ;;  %v19043_v23 = vld [vmem:[#allocation52_spill] sm:$0xff] }
 0xc8d   : > { %v9824_v59 = vpack.c.bf16 %v9806_v38, %v9805_v4  ;;  %12826 = vmatprep.subr.bf16.mxu0 %v18793_v47  ;;  %v19060_v4 = vld [vmem:[#allocation78_spill] sm:$0xff] }
 0xc8e   : > { %v13732_v21 = vpop.eup %13731  ;;  %10623 = vrot.lane.b32.xlu0 %v19040_v8, %s13842_s26 }
 0xc8f   : > { %v9804_v56 = vmul.f32 %v13732_v21, %v17462_v20  ;;  %12823 = vmatmul.mubr.msk.bf16.vlgmr.msra.gmra.mrb[76].mxu1 %vm2688_vm2, %v9824_v59  ;;  %5987 = vrot.lane.b32.xlu1 %v19041_v36, %s13840_s14  ;;  %v19044_v20 = vld [vmem:[#allocation20_spill] sm:$0xff]  ;;  %v13734_v39 = vpop.eup %13733 }
 0xc90   : > { %12833 = vmatpush3.bf16.msra.mxu1 %v17078_v28  ;;  %12834 = vmatprep.mubr.msk.bf16.mxu1 %vm13839_vm0, %v18793_v47  ;;  %v19047_v28 = vld [vmem:[#allocation54_spill] sm:$0xff]  ;;  %v9807_v44 = vmul.f32 %v13734_v39, %v17464_v26  ;;  %v19061_v59 = vld [vmem:[#allocation112_spill] sm:$0xff] }
 0xc91   : > { %v9823_v58 = vpack.c.bf16 %v9804_v56, %v9803_v29 }
 0xc92   : > { %5985 = vrot.lane.b32.xlu0 %v19042_v15, %s13840_s14 }
 0xc93   : > { %12817 = vmatmul.mubr.msk.bf16.vlgmr.msra.gmra.mrb[36].mxu0 %vm2688_vm2, %v9823_v58  ;;  %5991 = vrot.lane.b32.xlu1 %v19043_v23, %s13840_s14  ;;  %v19062_v58 = vld [vmem:[#allocation139_spill] sm:$0xff] }
 0xc94   : > { %12827 = vmatpush3.bf16.msra.mxu0 %v19044_v20  ;;  %12828 = vmatprep.mubr.msk.bf16.mxu0 %vm13839_vm0, %v18793_v47  ;;  %v19046_v47 = vld [vmem:[#allocation55_spill] sm:$0xff] }
 0xc96   : > { %5989 = vrot.lane.b32.xlu0 %v19045_v19, %s13840_s14 }
 0xc97   : > { %8308 = vrot.lane.b32.xlu1 %v19041_v36, %s13841_s24 }
 0xc9a   : > { %8306 = vrot.lane.b32.xlu0 %v19042_v15, %s13841_s24 }
 0xc9b   : > { %8312 = vrot.lane.b32.xlu1 %v19043_v23, %s13841_s24 }
 0xc9e   : > { %8310 = vrot.lane.b32.xlu0 %v19045_v19, %s13841_s24 }
 0xc9f   : > { %10629 = vrot.lane.b32.xlu1 %v19041_v36, %s13842_s26 }
 0xca2   : > { %10627 = vrot.lane.b32.xlu0 %v19042_v15, %s13842_s26 }
 0xca3   : > { %10633 = vrot.lane.b32.xlu1 %v19043_v23, %s13842_s26  ;;  %v19063_v23 = vld [vmem:[#allocation16_spill] sm:$0xff] }
 0xca6   : > { %10631 = vrot.lane.b32.xlu0 %v19045_v19, %s13842_s26 }
 0xca7   : > { %5995 = vrot.lane.b32.xlu1 %v19046_v47, %s13840_s14 }
 0xcaa   : > { %5993 = vrot.lane.b32.xlu0 %v19047_v28, %s13840_s14 }
 0xcab   : > { %5999 = vrot.lane.b32.xlu1 %v19048_v9, %s13840_s14 }
 0xcae   : > { %5997 = vrot.lane.b32.xlu0 %v19049_v46, %s13840_s14 }
 0xcaf   : > { %8316 = vrot.lane.b32.xlu1 %v19046_v47, %s13841_s24 }
 0xcb1   : > { %v9740_v50 = vpop.xlane.xlu0 %9739 }
 0xcb2   : > { %13735 = vrcp.f32 %v9740_v50  ;;  %8314 = vrot.lane.b32.xlu0 %v19047_v28, %s13841_s24 }
 0xcb3   : > { %8320 = vrot.lane.b32.xlu1 %v19048_v9, %s13841_s24  ;;  %13737 = vrcp.f32 %v9743_v10  ;;  %v19065_v10 = vld [vmem:[#allocation137_spill] sm:$0xff] }
 0xcb5   : > { %v8275_v2 = vpop.permute.xlu0 %8274 }
 0xcb6   : > { %v17710_v17 = vmul.f32 %v8275_v2, %v19051_v33  ;;  %8318 = vrot.lane.b32.xlu0 %v19049_v46, %s13841_s24  ;;  %v19066_v2 = vld [vmem:[#allocation67_spill] sm:$0xff] }
 0xcb7   : > { %10637 = vrot.lane.b32.xlu1 %v19046_v47, %s13842_s26  ;;  %v9746_v51 = vpop.xlane.xlu1 %9745 }
 0xcb8   : > { %v8402_v25 = vpack.c.bf16 %v17707_v12, %v17710_v17  ;;  %13739 = vrcp.f32 %v9746_v51  ;;  %v19067_v51 = vld [vmem:[#allocation66_spill] sm:$0xff]  ;;  %v19084_v17 = vld [vmem:[#allocation119_spill] sm:$0xff] }
 0xcb9   : > { %v8279_v62 = vpop.permute.xlu0 %8278 }
 0xcba   : > { %10635 = vrot.lane.b32.xlu0 %v19047_v28, %s13842_s26  ;;  %v17723_v18 = vmul.f32 %v8279_v62, %v19052_v37  ;;  %v19068_v62 = vld [vmem:[#allocation70_spill] sm:$0xff] }
 0xcbb   : > { %10641 = vrot.lane.b32.xlu1 %v19048_v9, %s13842_s26  ;;  %v8281_v34 = vpop.permute.xlu1 %8280  ;;  %v19064_v9 = vld [vmem:[#allocation21_spill] sm:$0xff] }
 0xcbc   : > { %v13736_v42 = vpop.eup %13735  ;;  %v17726_v55 = vmul.f32 %v8281_v34, %v19053_v30  ;;  %v19070_v30 = vld [vmem:[#allocation110_spill] sm:$0xff] }
 0xcbd   : > { %v9808_v41 = vmul.f32 %v13736_v42, %v17478_v52  ;;  %v17730_v1 = vpop.permute.xlu0 %10595  ;;  %v13738_v35 = vpop.eup %13737  ;;  %v19069_v42 = vld [vmem:[#allocation69_spill] sm:$0xff] }
 0xcbe   : > { %v8403_v8 = vpack.c.bf16 %v17726_v55, %v17723_v18  ;;  %10639 = vrot.lane.b32.xlu0 %v19049_v46, %s13842_s26  ;;  %v9809_v57 = vmul.f32 %v13738_v35, %v17470_v0  ;;  %v19083_v55 = vld [vmem:[#allocation118_spill] sm:$0xff] }
 0xcbf   : > { %v9825_v60 = vpack.c.bf16 %v9808_v41, %v9807_v44  ;;  %6003 = vrot.lane.b32.xlu1 %v19054_v14, %s13840_s14  ;;  %v17738_v13 = vpop.permute.xlu1 %10597  ;;  %v19071_v41 = vld [vmem:[#allocation114_spill] sm:$0xff] }
 0xcc1   : > { %12829 = vmatmul.mubr.msk.bf16.vlgmr.msra.gmra.mrb[40].mxu0 %vm2688_vm2, %v9825_v60  ;;  %v17741_v26 = vpop.permute.xlu0 %10599 }
 0xcc2   : > { %v13740_v52 = vpop.eup %13739  ;;  %6001 = vrot.lane.b32.xlu0 %v19055_v27, %s13840_s14 }
 0xcc3   : > { %v9810_v7 = vmul.f32 %v13740_v52, %v17482_v6  ;;  %6007 = vrot.lane.b32.xlu1 %v19056_v49, %s13840_s14  ;;  %v17749_v63 = vpop.permute.xlu1 %10601  ;;  %v19059_v6 = vld [vmem:[#allocation111_spill] sm:$0xff] }
 0xcc5   : > { %v9826_v48 = vpack.c.bf16 %v9810_v7, %v9809_v57  ;;  %v5962_v61 = vpop.permute.xlu0 %5961  ;;  %v19073_v7 = vld [vmem:[#allocation115_spill] sm:$0xff] }
 0xcc6   : > { %6005 = vrot.lane.b32.xlu0 %v19057_v53, %s13840_s14  ;;  %v17757_v0 = vmul.f32 %v5962_v61, %v19058_v54 }
 0xcc7   : > { %8324 = vrot.lane.b32.xlu1 %v19054_v14, %s13841_s24  ;;  %v5964_v24 = vpop.permute.xlu1 %5963  ;;  %12835 = vmatmul.mubr.msk.bf16.vlgmr.msra.gmra.mrb[80].mxu1 %vm2688_vm2, %v9826_v48 }
 0xcc8   : > { %v17760_v11 = vmul.f32 %v5964_v24, %v19059_v6  ;;  %v19074_v24 = vld [vmem:[#allocation24_spill] sm:$0xff]  ;;  %v19075_v6 = vld [vmem:[#allocation10_spill] sm:$0xff] }
 0xcc9   : > { %v5966_v43 = vpop.permute.xlu0 %5965 }
 0xcca   : > { %v6083_v22 = vpack.c.bf16 %v17760_v11, %v17757_v0  ;;  %8322 = vrot.lane.b32.xlu0 %v19055_v27, %s13841_s24  ;;  %v17769_v32 = vmul.f32 %v5966_v43, %v19060_v4  ;;  %v19086_v11 = vld [vmem:[#allocation138_spill] sm:$0xff] }
 0xccb   : > { %8328 = vrot.lane.b32.xlu1 %v19056_v49, %s13841_s24  ;;  %v5968_v38 = vpop.permute.xlu1 %5967 }
 0xccc   : > { %v17772_v21 = vmul.f32 %v5968_v38, %v19061_v59  ;;  %v19076_v59 = vld [vmem:[#allocation141_spill] sm:$0xff] }
 0xccd   : > { %v8283_v29 = vpop.permute.xlu0 %8282 }
 0xcce   : > { %v6084_v56 = vpack.c.bf16 %v17772_v21, %v17769_v32  ;;  %8326 = vrot.lane.b32.xlu0 %v19057_v53, %s13841_s24  ;;  %v17781_v15 = vmul.f32 %v8283_v29, %v19062_v58  ;;  %v19077_v29 = vld [vmem:[#allocation26_spill] sm:$0xff] }
 0xccf   : > { %10645 = vrot.lane.b32.xlu1 %v19054_v14, %s13842_s26  ;;  %v8285_v36 = vpop.permute.xlu1 %8284 }
 0xcd0   : > { %v17784_v20 = vmul.f32 %v8285_v36, %v19063_v23 }
 0xcd1   : > { %v8287_v19 = vpop.permute.xlu0 %8286 }
 0xcd2   : > { %v8404_v47 = vpack.c.bf16 %v17784_v20, %v17781_v15  ;;  %10643 = vrot.lane.b32.xlu0 %v19055_v27, %s13842_s26  ;;  %v8376_v16 = vmul.f32 %v8287_v19, %v19064_v9  ;;  %v19072_v27 = vld [vmem:[#allocation113_spill] sm:$0xff]  ;;  %v19078_v9 = vld [vmem:[#allocation22_spill] sm:$0xff] }
 0xcd3   : > { %10649 = vrot.lane.b32.xlu1 %v19056_v49, %s13842_s26  ;;  %v8289_v28 = vpop.permute.xlu1 %8288 }
 0xcd4   : > { %v8377_v46 = vmul.f32 %v8289_v28, %v19065_v10 }
 0xcd5   : > { %v17794_v50 = vpop.permute.xlu0 %10603 }
 0xcd6   : > { %v8405_v5 = vpack.c.bf16 %v8377_v46, %v8376_v16  ;;  %10647 = vrot.lane.b32.xlu0 %v19057_v53, %s13842_s26  ;;  %v19079_v16 = vld [vmem:[#allocation13_spill] sm:$0xff] }
 0xcd7   : > { %6011 = vrot.lane.b32.xlu1 %v19066_v2, %s13840_s14  ;;  %v17800_v31 = vpop.permute.xlu1 %10605  ;;  %v19080_v10 = vpack.c.bf16 %v19078_v9, %v19079_v16  ;;  %v13030_v9 = vld [vmem:[%s18337_s6 + $0x8] sm:$0xff]  }
 0xcd8   : > { %v19093_v16 = vld [vmem:[#allocation25_spill] sm:$0xff] }
 0xcd9   : > { %v17802_v33 = vpop.permute.xlu0 %10607 }
 0xcda   : > { %6009 = vrot.lane.b32.xlu0 %v19067_v51, %s13840_s14 }
 0xcdb   : > { %6015 = vrot.lane.b32.xlu1 %v19068_v62, %s13840_s14  ;;  %v17808_v39 = vpop.permute.xlu1 %10609 }
 0xcdd   : > { %v5970_v34 = vpop.permute.xlu0 %5969 }
 0xcde   : > { %6013 = vrot.lane.b32.xlu0 %v19069_v42, %s13840_s14  ;;  %v6057_v44 = vmul.f32 %v5970_v34, %v19070_v30  ;;  %v19085_v30 = vld [vmem:[#allocation14_spill] sm:$0xff] }
 0xcdf   : > { %8332 = vrot.lane.b32.xlu1 %v19066_v2, %s13841_s24  ;;  %v5972_v37 = vpop.permute.xlu1 %5971 }
 0xce0   : > { %v6058_v60 = vmul.f32 %v5972_v37, %v19071_v41 }
 0xce1   : > { %v5974_v14 = vpop.permute.xlu0 %5973 }
 0xce2   : > { %v6085_v35 = vpack.c.bf16 %v6058_v60, %v6057_v44  ;;  %8330 = vrot.lane.b32.xlu0 %v19067_v51, %s13841_s24  ;;  %v6059_v57 = vmul.f32 %v5974_v14, %v19072_v27  ;;  %v19087_v60 = vld [vmem:[#allocation28_spill] sm:$0xff] }
 0xce3   : > { %8336 = vrot.lane.b32.xlu1 %v19068_v62, %s13841_s24  ;;  %v5976_v52 = vpop.permute.xlu1 %5975 }
 0xce4   : > { %v6060_v49 = vmul.f32 %v5976_v52, %v19073_v7  ;;  %v19088_v52 = vld [vmem:[#allocation23_spill] sm:$0xff] }
 0xce5   : > { %v8291_v48 = vpop.permute.xlu0 %8290 }
 0xce6   : > { %v6086_v61 = vpack.c.bf16 %v6060_v49, %v6059_v57  ;;  %8334 = vrot.lane.b32.xlu0 %v19069_v42, %s13841_s24  ;;  %v8378_v54 = vmul.f32 %v8291_v48, %v19074_v24  ;;  %v19089_v48 = vld [vmem:[#allocation122_spill] sm:$0xff] }
 0xce7   : > { %10653 = vrot.lane.b32.xlu1 %v19066_v2, %s13842_s26  ;;  %v8293_v53 = vpop.permute.xlu1 %8292 }
 0xce8   : > { %v8379_v43 = vmul.f32 %v8293_v53, %v19075_v6  ;;  %v19090_v53 = vld [vmem:[#allocation123_spill] sm:$0xff] }
 0xce9   : > { %v8295_v38 = vpop.permute.xlu0 %8294 }
 0xcea   : > { %v8406_v4 = vpack.c.bf16 %v8379_v43, %v8378_v54  ;;  %10651 = vrot.lane.b32.xlu0 %v19067_v51, %s13842_s26  ;;  %v8380_v21 = vmul.f32 %v8295_v38, %v19076_v59  ;;  %v19082_v51 = vld [vmem:[#allocation117_spill] sm:$0xff]  ;;  %v13029_v54 = vld [vmem:[%s18337_s6] sm:$0xff]  }
 0xceb   : > { %10657 = vrot.lane.b32.xlu1 %v19068_v62, %s13842_s26  ;;  %v8297_v32 = vpop.permute.xlu1 %8296  ;;  %12838 = vmatprep.subr.bf16.mxu0 %v13029_v54  ;;  %v19092_v59 = vld [vmem:[#allocation121_spill] sm:$0xff] }
 0xcec   : > { %v8381_v36 = vmul.f32 %v8297_v32, %v19077_v29  ;;  %12839 = vmatpush3.bf16.msra.mxu0 %v13029_v54  ;;  %v19099_v54 = vld [vmem:[#allocation124_spill] sm:$0xff] }
 0xced   : > { %v17834_v58 = vpop.permute.xlu0 %10611  ;;  %12840 = vmatprep.subr.bf16.mxu0 %v13030_v9 }
 0xcee   : > { %v8407_v23 = vpack.c.bf16 %v8381_v36, %v8380_v21  ;;  %10655 = vrot.lane.b32.xlu0 %v19069_v42, %s13842_s26 }
 0xcef   : > { %v17838_v19 = vpop.permute.xlu1 %10613  ;;  %6115 = vrot.lane.b32.xlu1 %v6082_v45, %s13842_s26 }
 0xcf0   : > { %12841 = vmatpush3.bf16.msra.mxu0 %v13030_v9 }
 0xcf1   : > { %v17844_v28 = vpop.permute.xlu0 %10615 }
 0xcf2   : > { %6113 = vrot.lane.b32.xlu0 %v19080_v10, %s13842_s26 }
 0xcf3   : > { %v17850_v46 = vpop.permute.xlu1 %10617  ;;  %8436 = vrot.lane.b32.xlu1 %v8403_v8, %s13841_s24 }
 0xcf5   : > { %v5978_v2 = vpop.permute.xlu0 %5977 }
 0xcf6   : > { %8434 = vrot.lane.b32.xlu0 %v8402_v25, %s13841_s24  ;;  %v6061_v45 = vmul.f32 %v5978_v2, %v19081_v3  ;;  %v19094_v2 = vld [vmem:[#allocation140_spill] sm:$0xff] }
 0xcf7   : > { %v5980_v40 = vpop.permute.xlu1 %5979  ;;  %6119 = vrot.lane.b32.xlu1 %v6084_v56, %s13842_s26 }
 0xcf8   : > { %v6062_v62 = vmul.f32 %v5980_v40, %v19082_v51 }
 0xcf9   : > { %v5982_v34 = vpop.permute.xlu0 %5981 }
 0xcfa   : > { %v6087_v42 = vpack.c.bf16 %v6062_v62, %v6061_v45  ;;  %6117 = vrot.lane.b32.xlu0 %v6083_v22, %s13842_s26  ;;  %v6063_v12 = vmul.f32 %v5982_v34, %v19083_v55  ;;  %v13031_v62 = vld [vmem:[%s18337_s6 + $0x10] sm:$0xff]   ;;  %v19095_v34 = vld [vmem:[#allocation143_spill] sm:$0xff] }
 0xcfb   : > { %v5984_v18 = vpop.permute.xlu1 %5983  ;;  %8440 = vrot.lane.b32.xlu1 %v8405_v5, %s13841_s24  ;;  %12842 = vmatprep.subr.bf16.mxu0 %v13031_v62 }
 0xcfc   : > { %v6064_v25 = vmul.f32 %v5984_v18, %v19084_v17  ;;  %v19096_v18 = vld [vmem:[#allocation27_spill] sm:$0xff]  ;;  %12843 = vmatpush3.bf16.msra.mxu0 %v13031_v62  ;;  %v19103_v62 = vld [vmem:[#allocation33_spill] sm:$0xff] }
 0xcfd   : > { %v8299_v8 = vpop.permute.xlu0 %8298 }
 0xcfe   : > { %v6088_v56 = vpack.c.bf16 %v6064_v25, %v6063_v12  ;;  %8438 = vrot.lane.b32.xlu0 %v8404_v47, %s13841_s24  ;;  %v8382_v0 = vmul.f32 %v8299_v8, %v19085_v30  ;;  %v13032_v8 = vld [vmem:[%s18337_s6 + $0x18] sm:$0xff]  }
 0xcff   : > { %v8301_v37 = vpop.permute.xlu1 %8300  ;;  %6123 = vrot.lane.b32.xlu1 %v6086_v61, %s13842_s26  ;;  %12844 = vmatprep.subr.bf16.mxu0 %v13032_v8 }
 0xd00   : > { %v8383_v22 = vmul.f32 %v8301_v37, %v19086_v11  ;;  %12845 = vmatpush3.bf16.msra.mxu0 %v13032_v8  ;;  %v13033_v37 = vld [vmem:[%s18337_s6 + $0x20] sm:$0xff]   ;;  %v13034_v11 = vld [vmem:[%s18337_s6 + $0x28] sm:$0xff]  }
 0xd01   : > { %v8303_v44 = vpop.permute.xlu0 %8302  ;;  %12846 = vmatprep.subr.bf16.mxu0 %v13033_v37 }
 0xd02   : > { %v8408_v5 = vpack.c.bf16 %v8383_v22, %v8382_v0  ;;  %6121 = vrot.lane.b32.xlu0 %v6085_v35, %s13842_s26  ;;  %v8384_v14 = vmul.f32 %v8303_v44, %v19087_v60  ;;  %v19097_v44 = vld [vmem:[#allocation126_spill] sm:$0xff] }
 0xd03   : > { %v8305_v41 = vpop.permute.xlu1 %8304  ;;  %8444 = vrot.lane.b32.xlu1 %v8407_v23, %s13841_s24 }
 0xd04   : > { %v8385_v27 = vmul.f32 %v8305_v41, %v19088_v52  ;;  %12847 = vmatpush3.bf16.msra.mxu0 %v13033_v37  ;;  %v19098_v41 = vld [vmem:[#allocation127_spill] sm:$0xff] }
 0xd05   : > { %v17881_v15 = vpop.permute.xlu0 %10619  ;;  %12848 = vmatprep.subr.bf16.mxu0 %v13034_v11 }
 0xd06   : > { %v8409_v20 = vpack.c.bf16 %v8385_v27, %v8384_v14  ;;  %8442 = vrot.lane.b32.xlu0 %v8406_v4, %s13841_s24  ;;  %v19091_v4 = vld [vmem:[#allocation120_spill] sm:$0xff] }
 0xd07   : > { %v17884_v47 = vpop.permute.xlu1 %10621  ;;  %6127 = vrot.lane.b32.xlu1 %v6088_v56, %s13842_s26 }
 0xd08   : > { %12849 = vmatpush3.bf16.msra.mxu0 %v13034_v11 }
 0xd09   : > { %v17887_v57 = vpop.permute.xlu0 %10623 }
 0xd0a   : > { %6125 = vrot.lane.b32.xlu0 %v6087_v42, %s13842_s26 }
 0xd0b   : > { %v17890_v35 = vpop.permute.xlu1 %10625  ;;  %8448 = vrot.lane.b32.xlu1 %v8409_v20, %s13841_s24 }
 0xd0d   : > { %v5986_v7 = vpop.permute.xlu0 %5985 }
 0xd0e   : > { %8446 = vrot.lane.b32.xlu0 %v8408_v5, %s13841_s24  ;;  %v6065_v61 = vmul.f32 %v5986_v7, %v19089_v48 }
 0xd0f   : > { %v5988_v49 = vpop.permute.xlu1 %5987 }
 0xd10   : > { %v6066_v24 = vmul.f32 %v5988_v49, %v19090_v53 }
 0xd11   : > { %v5990_v6 = vpop.permute.xlu0 %5989 }
 0xd12   : > { %v6089_v43 = vpack.c.bf16 %v6066_v24, %v6065_v61  ;;  %v6067_v32 = vmul.f32 %v5990_v6, %v19091_v4  ;;  %v13035_v24 = vld [vmem:[%s18337_s6 + $0x30] sm:$0xff]  }
 0xd13   : > { %v5992_v38 = vpop.permute.xlu1 %5991  ;;  %12850 = vmatprep.subr.bf16.mxu0 %v13035_v24 }
 0xd14   : > { %v6068_v21 = vmul.f32 %v5992_v38, %v19092_v59  ;;  %6129 = vrot.lane.b32.xlu0 %v6089_v43, %s13842_s26  ;;  %v19100_v43 = vld [vmem:[#allocation125_spill] sm:$0xff]  ;;  %12851 = vmatpush3.bf16.msra.mxu0 %v13035_v24 }
 0xd15   : > { %v8307_v29 = vpop.permute.xlu0 %8306 }
 0xd16   : > { %v6090_v36 = vpack.c.bf16 %v6068_v21, %v6067_v32  ;;  %v8386_v10 = vmul.f32 %v8307_v29, %v19093_v16  ;;  %v19101_v21 = vld [vmem:[#allocation39_spill] sm:$0xff] }
 0xd17   : > { %v8309_v23 = vpop.permute.xlu1 %8308 }
 0xd18   : > { %v8387_v40 = vmul.f32 %v8309_v23, %v19094_v2  ;;  %6131 = vrot.lane.b32.xlu1 %v6090_v36, %s13842_s26  ;;  %v19102_v36 = vld [vmem:[#allocation36_spill] sm:$0xff] }
 0xd19   : > { %v8311_v3 = vpop.permute.xlu0 %8310 }
 0xd1a   : > { %v8410_v45 = vpack.c.bf16 %v8387_v40, %v8386_v10  ;;  %v17912_v42 = vmul.f32 %v8311_v3, %v19095_v34 }
 0xd1b   : > { %v8313_v51 = vpop.permute.xlu1 %8312 }
 0xd1c   : > { %v17915_v55 = vmul.f32 %v8313_v51, %v19096_v18  ;;  %v19104_v18 = vld [vmem:[#allocation30_spill] sm:$0xff] }
 0xd1d   : > { %v17917_v12 = vpop.permute.xlu0 %10627 }
 0xd1e   : > { %v8411_v17 = vpack.c.bf16 %v17915_v55, %v17912_v42 }
 0xd1f   : > { %v17921_v25 = vpop.permute.xlu1 %10629 }
 0xd21   : > { %v17926_v56 = vpop.permute.xlu0 %10631 }
 0xd23   : > { %v17931_v30 = vpop.permute.xlu1 %10633 }
 0xd25   : > { %v5994_v0 = vpop.permute.xlu0 %5993 }
 0xd26   : > { %v17937_v5 = vmul.f32 %v5994_v0, %v19097_v44 }
 0xd27   : > { %v5996_v22 = vpop.permute.xlu1 %5995 }
 0xd28   : > { %v17940_v60 = vmul.f32 %v5996_v22, %v19098_v41 }
 0xd29   : > { %v9868_v14 = vpop.f32.mrb[12].mxu0  ;;  %v5998_v52 = vpop.permute.xlu0 %5997 }
 0xd2a   : > { %v12746_v27 = vpop.f32.mrb[13].mxu0  ;;  %v6091_v20 = vpack.c.bf16 %v17940_v60, %v17937_v5  ;;  %v10691_v49 = vmul.f32 %v17730_v1, %v9868_v14  ;;  %v17950_v6 = vmul.f32 %v5998_v52, %v19099_v54 }
 0xd2b   : > { %v9871_v7 = vpop.f32.mrb[14].mxu0  ;;  %v6000_v48 = vpop.permute.xlu1 %5999 }
 0xd2c   : > { %v10692_v61 = vmul.f32 %v17738_v13, %v9871_v7  ;;  %v12747_v53 = vpop.f32.mrb[15].mxu0  ;;  %v17953_v38 = vmul.f32 %v6000_v48, %v19100_v43  ;;  %v13036_v13 = vld [vmem:[%s18337_s6 + $0x38] sm:$0xff]  }
 0xd2d   : > { %v8315_v32 = vpop.permute.xlu0 %8314  ;;  %12852 = vmatprep.subr.bf16.mxu0 %v13036_v13 }
 0xd2e   : > { %v10723_v4 = vpack.c.bf16 %v10692_v61, %v10691_v49  ;;  %v6092_v1 = vpack.c.bf16 %v17953_v38, %v17950_v6  ;;  %v17962_v29 = vmul.f32 %v8315_v32, %v19101_v21  ;;  %12853 = vmatpush3.bf16.msra.mxu0 %v13036_v13  ;;  %v19105_v21 = vld [vmem:[#allocation130_spill] sm:$0xff] }
 0xd2f   : > { %v8317_v59 = vpop.permute.xlu1 %8316 }
 0xd30   : > { %10755 = vrot.lane.b32.xlu0 %v10723_v4, %s13840_s14  ;;  %v17965_v23 = vmul.f32 %v8317_v59, %v19102_v36 }
 0xd31   : > { %v9916_v9 = vpop.f32.mrb[52].mxu1  ;;  %v8319_v16 = vpop.permute.xlu0 %8318 }
 0xd32   : > { %v8412_v10 = vpack.c.bf16 %v17965_v23, %v17962_v29  ;;  %v12752_v2 = vpop.f32.mrb[53].mxu1  ;;  %v10693_v51 = vmul.f32 %v17741_v26, %v9916_v9  ;;  %v17972_v34 = vmul.f32 %v8319_v16, %v19103_v62  ;;  %v19106_v9 = vld [vmem:[#allocation131_spill] sm:$0xff] }
 0xd33   : > { %v8321_v40 = vpop.permute.xlu1 %8320  ;;  %v9919_v3 = vpop.f32.mrb[54].mxu1 }
 0xd34   : > { %8450 = vrot.lane.b32.xlu0 %v8410_v45, %s13841_s24  ;;  %v17975_v8 = vmul.f32 %v8321_v40, %v19104_v18  ;;  %v10694_v37 = vmul.f32 %v17749_v63, %v9919_v3  ;;  %v12753_v0 = vpop.f32.mrb[55].mxu1  ;;  %v19107_v18 = vld [vmem:[#allocation128_spill] sm:$0xff] }
 0xd35   : > { %v17978_v11 = vpop.permute.xlu0 %10635  ;;  %v19108_v0 = vld [vmem:[#allocation129_spill] sm:$0xff] }
 0xd36   : > { %v8413_v22 = vpack.c.bf16 %v17975_v8, %v17972_v34  ;;  %v10724_v44 = vpack.c.bf16 %v10694_v37, %v10693_v51  ;;  %v9964_v41 = vpop.f32.mrb[16].mxu0 }
 0xd37   : > { %v12758_v14 = vpop.f32.mrb[17].mxu0  ;;  %v17982_v45 = vpop.permute.xlu1 %10637  ;;  %v10695_v52 = vmul.f32 %v17794_v50, %v9964_v41 }
 0xd38   : > { %v9967_v26 = vpop.f32.mrb[18].mxu0  ;;  %10757 = vrot.lane.b32.xlu1 %v10724_v44, %s13840_s14 }
 0xd39   : > { %v10696_v27 = vmul.f32 %v17800_v31, %v9967_v26  ;;  %v12759_v7 = vpop.f32.mrb[19].mxu0  ;;  %v17987_v63 = vpop.permute.xlu0 %10639 }
 0xd3a   : > { %v10012_v49 = vpop.f32.mrb[56].mxu1  ;;  %v19109_v7 = vld [vmem:[#allocation42_spill] sm:$0xff] }
 0xd3b   : > { %v10725_v48 = vpack.c.bf16 %v10696_v27, %v10695_v52  ;;  %v12764_v61 = vpop.f32.mrb[57].mxu1  ;;  %v17989_v53 = vpop.permute.xlu1 %10641  ;;  %v10697_v54 = vmul.f32 %v17802_v33, %v10012_v49 }
 0xd3c   : > { %v10015_v24 = vpop.f32.mrb[58].mxu1  ;;  %8452 = vrot.lane.b32.xlu1 %v8411_v17, %s13841_s24 }
 0xd3d   : > { %v10698_v50 = vmul.f32 %v17808_v39, %v10015_v24  ;;  %v12765_v43 = vpop.f32.mrb[59].mxu1  ;;  %10759 = vrot.lane.b32.xlu0 %v10725_v48, %s13840_s14  ;;  %v6002_v31 = vpop.permute.xlu0 %6001 }
 0xd3e   : > { %v10060_v4 = vpop.f32.mrb[20].mxu0  ;;  %v6073_v36 = vmul.f32 %v6002_v31, %v19105_v21 }
 0xd3f   : > { %v10726_v32 = vpack.c.bf16 %v10698_v50, %v10697_v54  ;;  %v12770_v59 = vpop.f32.mrb[21].mxu0  ;;  %v6004_v13 = vpop.permute.xlu1 %6003  ;;  %v10699_v42 = vmul.f32 %v17834_v58, %v10060_v4  ;;  %v19111_v4 = vld [vmem:[#allocation144_spill] sm:$0xff] }
 0xd40   : > { %v6074_v16 = vmul.f32 %v6004_v13, %v19106_v9  ;;  %v10063_v2 = vpop.f32.mrb[22].mxu0 }
 0xd41   : > { %v10700_v55 = vmul.f32 %v17838_v19, %v10063_v2  ;;  %v12771_v33 = vpop.f32.mrb[23].mxu0  ;;  %10761 = vrot.lane.b32.xlu1 %v10726_v32, %s13840_s14  ;;  %6133 = vrot.lane.b32.xlu0 %v6091_v20, %s13842_s26  ;;  %v6006_v39 = vpop.permute.xlu0 %6005  ;;  %v19112_v32 = vld [vmem:[#allocation45_spill] sm:$0xff] }
 0xd42   : > { %v6093_v17 = vpack.c.bf16 %v6074_v16, %v6073_v36  ;;  %v10108_v40 = vpop.f32.mrb[60].mxu1  ;;  %v6075_v37 = vmul.f32 %v6006_v39, %v19107_v18 }
 0xd43   : > { %v10727_v3 = vpack.c.bf16 %v10700_v55, %v10699_v42  ;;  %v12776_v51 = vpop.f32.mrb[61].mxu1  ;;  %v6008_v62 = vpop.permute.xlu1 %6007  ;;  %v10701_v19 = vmul.f32 %v17844_v28, %v10108_v40  ;;  %v19110_v28 = vld [vmem:[#allocation142_spill] sm:$0xff] }
 0xd44   : > { %v6076_v58 = vmul.f32 %v6008_v62, %v19108_v0  ;;  %v10111_v44 = vpop.f32.mrb[62].mxu1  ;;  %v19113_v51 = vld [vmem:[#allocation132_spill] sm:$0xff] }
 0xd45   : > { %v10702_v41 = vmul.f32 %v17850_v46, %v10111_v44  ;;  %v12777_v14 = vpop.f32.mrb[63].mxu1  ;;  %10763 = vrot.lane.b32.xlu0 %v10727_v3, %s13840_s14  ;;  %6135 = vrot.lane.b32.xlu1 %v6092_v1, %s13842_s26  ;;  %v8323_v5 = vpop.permute.xlu0 %8322 }
 0xd46   : > { %v6094_v60 = vpack.c.bf16 %v6076_v58, %v6075_v37  ;;  %v10156_v20 = vpop.f32.mrb[24].mxu0  ;;  %v18017_v49 = vmul.f32 %v8323_v5, %v19109_v7 }
 0xd47   : > { %v10728_v26 = vpack.c.bf16 %v10702_v41, %v10701_v19  ;;  %v12782_v52 = vpop.f32.mrb[25].mxu0  ;;  %v8325_v27 = vpop.permute.xlu1 %8324  ;;  %v10703_v61 = vmul.f32 %v17881_v15, %v10156_v20 }
 0xd48   : > { %v18020_v48 = vmul.f32 %v8325_v27, %v19110_v28  ;;  %v10159_v46 = vpop.f32.mrb[26].mxu0 }
 0xd49   : > { %v10704_v24 = vmul.f32 %v17884_v47, %v10159_v46  ;;  %v12783_v54 = vpop.f32.mrb[27].mxu0  ;;  %10765 = vrot.lane.b32.xlu1 %v10728_v26, %s13840_s14  ;;  %8454 = vrot.lane.b32.xlu0 %v8412_v10, %s13841_s24  ;;  %v8327_v6 = vpop.permute.xlu0 %8326  ;;  %v19116_v26 = vld [vmem:[#allocation135_spill] sm:$0xff] }
 0xd4a   : > { %v8414_v38 = vpack.c.bf16 %v18020_v48, %v18017_v49  ;;  %v10204_v1 = vpop.f32.mrb[64].mxu1  ;;  %v8396_v15 = vmul.f32 %v8327_v6, %v19111_v4 }
 0xd4b   : > { %v10729_v50 = vpack.c.bf16 %v10704_v24, %v10703_v61  ;;  %v12788_v43 = vpop.f32.mrb[65].mxu1  ;;  %v8329_v31 = vpop.permute.xlu1 %8328  ;;  %v10705_v13 = vmul.f32 %v17887_v57, %v10204_v1  ;;  %v19117_v1 = vld [vmem:[#allocation53_spill] sm:$0xff] }
 0xd4c   : > { %v8397_v47 = vmul.f32 %v8329_v31, %v19112_v32  ;;  %v10207_v59 = vpop.f32.mrb[66].mxu1  ;;  %v19118_v43 = vld [vmem:[#allocation50_spill] sm:$0xff] }
 0xd4d   : > { %v10706_v21 = vmul.f32 %v17890_v35, %v10207_v59  ;;  %v12789_v36 = vpop.f32.mrb[67].mxu1  ;;  %10767 = vrot.lane.b32.xlu0 %v10729_v50, %s13840_s14  ;;  %8456 = vrot.lane.b32.xlu1 %v8413_v22, %s13841_s24  ;;  %v18040_v29 = vpop.permute.xlu0 %10643 }
 0xd4e   : > { %v8415_v23 = vpack.c.bf16 %v8397_v47, %v8396_v15 }
 0xd4f   : > { %v10730_v10 = vpack.c.bf16 %v10706_v21, %v10705_v13  ;;  %v18042_v9 = vpop.permute.xlu1 %10645 }
 0xd51   : > { %10769 = vrot.lane.b32.xlu1 %v10730_v10, %s13840_s14  ;;  %6137 = vrot.lane.b32.xlu0 %v6093_v17, %s13842_s26  ;;  %v10648_v57 = vpop.permute.xlu0 %10647  ;;  %v19114_v17 = vld [vmem:[#allocation133_spill] sm:$0xff] }
 0xd52   : > { %v10300_v35 = vpop.f32.mrb[68].mxu1 }
 0xd53   : > { %v12800_v16 = vpop.f32.mrb[69].mxu1  ;;  %v10650_v2 = vpop.permute.xlu1 %10649  ;;  %v10709_v55 = vmul.f32 %v17926_v56, %v10300_v35  ;;  %v19120_v35 = vld [vmem:[#allocation59_spill] sm:$0xff] }
 0xd54   : > { %v10303_v42 = vpop.f32.mrb[70].mxu1 }
 0xd55   : > { %v10710_v34 = vmul.f32 %v17931_v30, %v10303_v42  ;;  %v12801_v8 = vpop.f32.mrb[71].mxu1  ;;  %6139 = vrot.lane.b32.xlu1 %v6094_v60, %s13842_s26  ;;  %v6010_v22 = vpop.permute.xlu0 %6009  ;;  %v19115_v60 = vld [vmem:[#allocation134_spill] sm:$0xff] }
 0xd56   : > { %v10252_v33 = vpop.f32.mrb[28].mxu0  ;;  %v6077_v62 = vmul.f32 %v6010_v22, %v19113_v51 }
 0xd57   : > { %v10732_v39 = vpack.c.bf16 %v10710_v34, %v10709_v55  ;;  %v12794_v40 = vpop.f32.mrb[29].mxu0  ;;  %v6012_v3 = vpop.permute.xlu1 %6011  ;;  %v10707_v0 = vmul.f32 %v17917_v12, %v10252_v33 }
 0xd58   : > { %v6078_v18 = vmul.f32 %v6012_v3, %v19114_v17  ;;  %v10255_v37 = vpop.f32.mrb[30].mxu0 }
 0xd59   : > { %v10708_v58 = vmul.f32 %v17921_v25, %v10255_v37  ;;  %v12795_v56 = vpop.f32.mrb[31].mxu0  ;;  %10773 = vrot.lane.b32.xlu1 %v10732_v39, %s13840_s14  ;;  %v6014_v30 = vpop.permute.xlu0 %6013 }
 0xd5a   : > { %v6095_v44 = vpack.c.bf16 %v6078_v18, %v6077_v62  ;;  %v10396_v19 = vpop.f32.mrb[72].mxu1  ;;  %v6079_v20 = vmul.f32 %v6014_v30, %v19115_v60 }
 0xd5b   : > { %v10731_v41 = vpack.c.bf16 %v10708_v58, %v10707_v0  ;;  %v12812_v14 = vpop.f32.mrb[73].mxu1  ;;  %v6016_v5 = vpop.permute.xlu1 %6015  ;;  %v10713_v7 = vmul.f32 %v17987_v63, %v10396_v19 }
 0xd5c   : > { %v6080_v52 = vmul.f32 %v6016_v5, %v19116_v26  ;;  %v10399_v27 = vpop.f32.mrb[74].mxu1 }
 0xd5d   : > { %v10714_v12 = vmul.f32 %v17989_v53, %v10399_v27  ;;  %v12813_v28 = vpop.f32.mrb[75].mxu1  ;;  %10771 = vrot.lane.b32.xlu0 %v10731_v41, %s13840_s14  ;;  %8460 = vrot.lane.b32.xlu1 %v8415_v23, %s13841_s24  ;;  %v8331_v25 = vpop.permute.xlu0 %8330  ;;  %v19119_v23 = vld [vmem:[#allocation146_spill] sm:$0xff] }
 0xd5e   : > { %v6096_v46 = vpack.c.bf16 %v6080_v52, %v6079_v20  ;;  %v10348_v61 = vpop.f32.mrb[32].mxu0  ;;  %v8398_v50 = vmul.f32 %v8331_v25, %v19117_v1  ;;  %v11102_v52 = vlaneseq }
 0xd5f   : > { %v10734_v24 = vpack.c.bf16 %v10714_v12, %v10713_v7  ;;  %v12806_v54 = vpop.f32.mrb[33].mxu0  ;;  %v8333_v6 = vpop.permute.xlu1 %8332  ;;  %v10711_v63 = vmul.f32 %v17978_v11, %v10348_v61 }
 0xd60   : > { %v8399_v31 = vmul.f32 %v8333_v6, %v19118_v43  ;;  %v10351_v4 = vpop.f32.mrb[34].mxu0  ;;  %v18108_v27 = vshrl.u32 %v11102_v52, 7 }
 0xd61   : > { %v10712_v53 = vmul.f32 %v17982_v45, %v10351_v4  ;;  %v12807_v15 = vpop.f32.mrb[35].mxu0  ;;  %8458 = vrot.lane.b32.xlu0 %v8414_v38, %s13841_s24  ;;  %10777 = vrot.lane.b32.xlu1 %v10734_v24, %s13840_s14  ;;  %v8335_v32 = vpop.permute.xlu0 %8334 }
 0xd62   : > { %v8416_v47 = vpack.c.bf16 %v8399_v31, %v8398_v50  ;;  %v10492_v59 = vpop.f32.mrb[76].mxu1  ;;  %v8400_v10 = vmul.f32 %v8335_v32, %v19119_v23  ;;  %v11104_v24 = vsub.s32 0, %v18108_v27  ;;  %v11115_v31 = vsub.s32 1, %v18108_v27 }
 0xd63   : > { %v10733_v13 = vpack.c.bf16 %v10712_v53, %v10711_v63  ;;  %v12824_v21 = vpop.f32.mrb[77].mxu1  ;;  %v8337_v36 = vpop.permute.xlu1 %8336  ;;  %v10717_v45 = vmul.f32 %v10648_v57, %v10492_v59  ;;  %v11126_v59 = vsub.s32 2, %v18108_v27 }
 0xd64   : > { %v8401_v11 = vmul.f32 %v8337_v36, %v19120_v35  ;;  %v10495_v16 = vpop.f32.mrb[78].mxu1  ;;  %v11137_v36 = vsub.s32 3, %v18108_v27  ;;  %v11148_v35 = vsub.s32 4, %v18108_v27 }
 0xd65   : > { %v10718_v42 = vmul.f32 %v10650_v2, %v10495_v16  ;;  %v12825_v55 = vpop.f32.mrb[79].mxu1  ;;  %10775 = vrot.lane.b32.xlu0 %v10733_v13, %s13840_s14  ;;  %6143 = vrot.lane.b32.xlu1 %v6096_v46, %s13842_s26  ;;  %v18073_v49 = vpop.permute.xlu0 %10651 }
 0xd66   : > { %v8417_v48 = vpack.c.bf16 %v8401_v11, %v8400_v10  ;;  %v10444_v38 = vpop.f32.mrb[36].mxu0 }
 0xd67   : > { %v10736_v34 = vpack.c.bf16 %v10718_v42, %v10717_v45  ;;  %v12818_v8 = vpop.f32.mrb[37].mxu0  ;;  %v18075_v22 = vpop.permute.xlu1 %10653  ;;  %v10715_v39 = vmul.f32 %v18040_v29, %v10444_v38  ;;  %v11159_v42 = vsub.s32 5, %v18108_v27  ;;  %v11170_v38 = vsub.s32 6, %v18108_v27 }
 0xd68   : > { %v10447_v33 = vpop.f32.mrb[38].mxu0 }
 0xd69   : > { %v10716_v40 = vmul.f32 %v18042_v9, %v10447_v33  ;;  %v12819_v57 = vpop.f32.mrb[39].mxu0  ;;  %6141 = vrot.lane.b32.xlu0 %v6095_v44, %s13842_s26  ;;  %10781 = vrot.lane.b32.xlu1 %v10736_v34, %s13840_s14  ;;  %v18081_v2 = vpop.permute.xlu0 %10655  ;;  %s11498_s26 = sshll.u32 %s13965_s25, 2  ;;  %s377_s25 = sand.u32 1, %s13811_s28  }
 0xd6a   : > { %s11488_s13 = sshll.u32 %s377_s25, 8 }
 0xd6b   : > { %v10735_v3 = vpack.c.bf16 %v10716_v40, %v10715_v39  ;;  %v18083_v51 = vpop.permute.xlu1 %10657  ;;  %v11181_v39 = vsub.s32 7, %v18108_v27 }
 0xd6d   : > { %10779 = vrot.lane.b32.xlu0 %v10735_v3, %s13840_s14  ;;  %8464 = vrot.lane.b32.xlu1 %v8417_v48, %s13841_s24  ;;  %v6114_v62 = vpop.permute.xlu0 %6113 }
 0xd6e   : > { %6162 = vst.msk [vmem:[#allocation3] sm:$0xff] %vm6161_vm3, %v6114_v62 }
 0xd6f   : > { %v6116_v29 = vpop.permute.xlu1 %6115 }
 0xd70   : > { %6163 = vst.msk [vmem:[#allocation3 + $0x8] sm:$0xff] %vm6161_vm3, %v6116_v29 }
 0xd71   : > { %8462 = vrot.lane.b32.xlu0 %v8416_v47, %s13841_s24  ;;  %v8435_v9 = vpop.permute.xlu0 %8434  ;;  %s11497_s24 = sshll.u32 %s13819_s30, 1 }
 0xd72   : > { %8483 = vst.msk [vmem:[#allocation3] sm:$0xff] %vm8482_vm4, %v8435_v9  ;;  %p405_p0 = scmp.lt.s32.totalorder %s11497_s24, 3 }
 0xd73   : > { %v8437_v17 = vpop.permute.xlu1 %8436 }
 0xd74   : > { %8484 = vst.msk [vmem:[#allocation3 + $0x8] sm:$0xff] %vm8482_vm4, %v8437_v17  ;;  %s19138_s24 = smov (!%p405_p0, %s11497_s24), 3 }
 0xd75   : > { %v6118_v18 = vpop.permute.xlu0 %6117  ;;  %s408_s17 = sadd.s32 %s11498_s26, %s19138_s24  ;;  %s18205_s24 = scalar_lea.vmem [#allocation4], %s11488_s13 }
 0xd76   : > { %6164 = vst.msk [vmem:[#allocation3 + $0x10] sm:$0xff] %vm6161_vm3, %v6118_v18  ;;  %s11499_s20 = sshll.u32 %s408_s17, 3  ;;  %s11710_s26 = sshll.u32 %s13819_s30, 5 }
 0xd77   : > { %v6120_v37 = vpop.permute.xlu1 %6119  ;;  %s18113_s16 = scalar_lea.vmem %s18333_s2, %s11499_s20  ;;  %s11706_s17 = sshll.u32 %s13823_s9, 6 }
 0xd78   : > { %6165 = vst.msk [vmem:[#allocation3 + $0x18] sm:$0xff] %vm6161_vm3, %v6120_v37  ;;  %v11100_v54 = vld [vmem:[%s18113_s16] sm:$0xff]  ;;  %s11356_s20 = sadd.s32 %s11710_s26, %s11706_s17  ;;  %s11359_s0 = sshll.u32 %s18205_s24, 4  ;;  %s18272_s0 = int_to_ptr.vmem [resolvable:$true] %s11359_s0 }
 0xd79   : > { %v8439_v0 = vpop.permute.xlu0 %8438  ;;  %v11105_v43 = vrot.slane %v11100_v54, %v11104_v24  ;;  %v11116_v47 = vrot.slane %v11100_v54, %v11115_v31  ;;  %v11127_v21 = vrot.slane %v11100_v54, %v11126_v59  ;;  %v11138_v10 = vrot.slane %v11100_v54, %v11137_v36  ;;  %s11707_s21 = sshll.u32 %s11356_s20, 7  ;;  %s13741_s22 = scalar_lea.vmem %s18272_s0, 4096 }
 0xd7a   : > { %8485 = vst.msk [vmem:[#allocation3 + $0x10] sm:$0xff] %vm8482_vm4, %v8439_v0  ;;  %v11149_v45 = vrot.slane %v11100_v54, %v11148_v35  ;;  %v11160_v48 = vrot.slane %v11100_v54, %v11159_v42  ;;  %v11171_v33 = vrot.slane %v11100_v54, %v11170_v38  ;;  %v11182_v3 = vrot.slane %v11100_v54, %v11181_v39  ;;  %p13742_p1 = scmp.ne.s32.totalorder %s18272_s0, %s13741_s22  ;;  %s13843_s13 = smov [#allocation4]  }
 0xd7b   : > { %v8441_v58 = vpop.permute.xlu1 %8440  ;;  %s13745_s26 = sshll.u32 %s13843_s13, 4  ;;  %s13746_s26 = int_to_ptr.vmem [resolvable:$false] %s13745_s26 }
 0xd7c   : > { %8486 = vst.msk [vmem:[#allocation3 + $0x18] sm:$0xff] %vm8482_vm4, %v8441_v58  ;;  %p13743_p2 = pnand %p13742_p1, %p13942_p3  ;;  %s13747_s17 = scalar_lea.vmem %s13746_s26, 8192 }
 0xd7d   : > { %v6122_v56 = vpop.permute.xlu0 %6121  ;;  %p13748_p5 = scmp.lt.s32.totalorder %s18272_s0, %s13746_s26  ;;  %p13749_p6 = scmp.lt.s32.totalorder %s13747_s17, %s13741_s22 }
 0xd7e   : > { %6166 = vst.msk [vmem:[#allocation3 + $0x20] sm:$0xff] %vm6161_vm3, %v6122_v56  ;;  %p13744_p4 = pneg %p13743_p2 }
 0xd7f   : > { %v6124_v30 = vpop.permute.xlu1 %6123  ;;  %p13750_p7 = por %p13749_p6, %p13748_p5 }
 0xd80   : > { %6167 = vst.msk [vmem:[#allocation3 + $0x28] sm:$0xff] %vm6161_vm3, %v6124_v30 }
 0xd81   : > { %v8443_v44 = vpop.permute.xlu0 %8442  ;;  %p13751_p9 = pnand %p13750_p7, %p13744_p4 }
 0xd82   : > { %8487 = vst.msk [vmem:[#allocation3 + $0x20] sm:$0xff] %vm8482_vm4, %v8443_v44 }
 0xd83   : > { %v8445_v19 = vpop.permute.xlu1 %8444 }
 0xd84   : > { %8488 = vst.msk [vmem:[#allocation3 + $0x28] sm:$0xff] %vm8482_vm4, %v8445_v19 }
 0xd85   : > { %v6126_v41 = vpop.permute.xlu0 %6125 }
 0xd86   : > { %6168 = vst.msk [vmem:[#allocation3 + $0x30] sm:$0xff] %vm6161_vm3, %v6126_v41 }
 0xd87   : > { %v6128_v14 = vpop.permute.xlu1 %6127 }
 0xd88   : > { %6169 = vst.msk [vmem:[#allocation3 + $0x38] sm:$0xff] %vm6161_vm3, %v6128_v14 }
 0xd89   : > { %v8447_v5 = vpop.permute.xlu0 %8446 }
 0xd8a   : > { %8489 = vst.msk [vmem:[#allocation3 + $0x30] sm:$0xff] %vm8482_vm4, %v8447_v5 }
 0xd8b   : > { %v8449_v60 = vpop.permute.xlu1 %8448 }
 0xd8c   : > { %8490 = vst.msk [vmem:[#allocation3 + $0x38] sm:$0xff] %vm8482_vm4, %v8449_v60 }
 0xd8d   : > { %v6130_v20 = vpop.permute.xlu0 %6129 }
 0xd8e   : > { %6170 = vst.msk [vmem:[#allocation3 + $0x40] sm:$0xff] %vm6161_vm3, %v6130_v20 }
 0xd8f   : > { %v6132_v26 = vpop.permute.xlu1 %6131 }
 0xd90   : > { %6171 = vst.msk [vmem:[#allocation3 + $0x48] sm:$0xff] %vm6161_vm3, %v6132_v26 }
 0xd94   : > { %v10540_v7 = vpop.f32.mrb[40].mxu0 }
 0xd95   : > { %v12830_v12 = vpop.f32.mrb[41].mxu0  ;;  %v10719_v25 = vmul.f32 %v18073_v49, %v10540_v7 }
 0xd96   : > { %v10543_v28 = vpop.f32.mrb[42].mxu0 }
 0xd97   : > { %v10720_v46 = vmul.f32 %v18075_v22, %v10543_v28  ;;  %v12831_v61 = vpop.f32.mrb[43].mxu0 }
 0xd99   : > { %v10737_v6 = vpack.c.bf16 %v10720_v46, %v10719_v25 }
 0xd9a   : > { %v10588_v1 = vpop.f32.mrb[80].mxu1 }
 0xd9b   : > { %v12836_v50 = vpop.f32.mrb[81].mxu1  ;;  %10783 = vrot.lane.b32.xlu0 %v10737_v6, %s13840_s14  ;;  %v10721_v63 = vmul.f32 %v18081_v2, %v10588_v1 }
 0xd9c   : > { %v10591_v4 = vpop.f32.mrb[82].mxu1 }
 0xd9d   : > { %v10722_v53 = vmul.f32 %v18083_v51, %v10591_v4  ;;  %v12837_v15 = vpop.f32.mrb[83].mxu1  ;;  %v11101_v51 = vld [vmem:[%s18113_s16 + $0x8] sm:$0xff]  ;;  %s18270_s16 = scalar_lea.hbm %s18339_s8, %s11707_s21 }
 0xd9e   : > { %v11193_v17 = vrot.slane %v11101_v51, %v11104_v24  ;;  %v11204_v58 = vrot.slane %v11101_v51, %v11115_v31  ;;  %v11215_v19 = vrot.slane %v11101_v51, %v11126_v59  ;;  %v11226_v5 = vrot.slane %v11101_v51, %v11137_v36 }
 0xd9f   : > { %v10738_v32 = vpack.c.bf16 %v10722_v53, %v10721_v63  ;;  %11107 = vbcast.lane.b32.xlu0 %v11105_v43, 256  ;;  %v11237_v26 = vrot.slane %v11101_v51, %v11148_v35  ;;  %v11248_v12 = vrot.slane %v11101_v51, %v11159_v42  ;;  %v11259_v46 = vrot.slane %v11101_v51, %v11170_v38  ;;  %v18197_v42 = vld [vmem:[%s18338_s7] ss:$0 sm:$0xff] }
 0xda0   : > { %v11270_v6 = vrot.slane %v11101_v51, %v11181_v39 }
 0xda1   : > { %10785 = vrot.lane.b32.xlu1 %v10738_v32, %s13840_s14  ;;  %s18279_s14 = scalar_lea.sflag [#allocation5], %s377_s25 }
 0xda2   : > { %v10756_v13 = vpop.permute.xlu0 %10755 }
 0xda3   : > { %10804 = vst.msk [vmem:[#allocation3] sm:$0xff] %vm10803_vm5, %v10756_v13  ;;  %11118 = vbcast.lane.b32.xlu0 %v11116_v47, 256 }
 0xda5   : > { %11111 = vbcast.lane.b32.xlu1 %v11105_v43, 264 }
 0xda6   : > { %v8451_v23 = vpop.permute.xlu0 %8450 }
 0xda7   : > { %8491 = vst.msk [vmem:[#allocation3 + $0x40] sm:$0xff] %vm8482_vm4, %v8451_v23  ;;  %11129 = vbcast.lane.b32.xlu0 %v11127_v21, 256 }
 0xda9   : > { %11122 = vbcast.lane.b32.xlu1 %v11116_v47, 264 }
 0xdaa   : > { %v10820_v11 = vld [vmem:[#allocation3] sm:$0xff]  ;;  %v10758_v16 = vpop.permute.xlu1 %10757 }
 0xdab   : > { %12854 = vmatprep.mubr.bf16.mxu0 %v10820_v11  ;;  %10805 = vst.msk [vmem:[#allocation3 + $0x8] sm:$0xff] %vm10803_vm5, %v10758_v16  ;;  %11140 = vbcast.lane.b32.xlu0 %v11138_v10, 256 }
 0xdad   : > { %11133 = vbcast.lane.b32.xlu1 %v11127_v21, 264 }
 0xdae   : > { %v8453_v55 = vpop.permute.xlu1 %8452 }
 0xdaf   : > { %8492 = vst.msk [vmem:[#allocation3 + $0x48] sm:$0xff] %vm8482_vm4, %v8453_v55  ;;  %v10760_v49 = vpop.permute.xlu0 %10759  ;;  %11151 = vbcast.lane.b32.xlu0 %v11149_v45, 256 }
 0xdb0   : > { %10806 = vst.msk [vmem:[#allocation3 + $0x10] sm:$0xff] %vm10803_vm5, %v10760_v49 }
 0xdb1   : > { %11144 = vbcast.lane.b32.xlu1 %v11138_v10, 264 }
 0xdb2   : > { %v10821_v34 = vld [vmem:[#allocation3 + $0x8] sm:$0xff] }
 0xdb3   : > { %v10762_v8 = vpop.permute.xlu1 %10761  ;;  %v6134_v22 = vpop.permute.xlu0 %6133  ;;  %12855 = vmatmul.mubr.bf16.vlgmr.msra.gmra.mrb[44].mxu0 %v10821_v34  ;;  %11162 = vbcast.lane.b32.xlu0 %v11160_v48, 256 }
 0xdb4   : > { %10807 = vst.msk [vmem:[#allocation3 + $0x18] sm:$0xff] %vm10803_vm5, %v10762_v8 }
 0xdb5   : > { %6172 = vst.msk [vmem:[#allocation3 + $0x50] sm:$0xff] %vm6161_vm3, %v6134_v22  ;;  %11155 = vbcast.lane.b32.xlu1 %v11149_v45, 264 }
 0xdb7   : > { %v6136_v40 = vpop.permute.xlu1 %6135  ;;  %v10764_v57 = vpop.permute.xlu0 %10763  ;;  %v10822_v2 = vld [vmem:[#allocation3 + $0x10] sm:$0xff]  ;;  %11173 = vbcast.lane.b32.xlu0 %v11171_v33, 256 }
 0xdb8   : > { %6173 = vst.msk [vmem:[#allocation3 + $0x58] sm:$0xff] %vm6161_vm3, %v6136_v40  ;;  %12858 = vmatprep.mubr.bf16.mxu0 %v10822_v2 }
 0xdb9   : > { %10808 = vst.msk [vmem:[#allocation3 + $0x20] sm:$0xff] %vm10803_vm5, %v10764_v57  ;;  %11166 = vbcast.lane.b32.xlu1 %v11160_v48, 264 }
 0xdbb   : > { %v10766_v62 = vpop.permute.xlu1 %10765  ;;  %v8455_v29 = vpop.permute.xlu0 %8454  ;;  %v10823_v9 = vld [vmem:[#allocation3 + $0x18] sm:$0xff]  ;;  %11184 = vbcast.lane.b32.xlu0 %v11182_v3, 256 }
 0xdbc   : > { %10809 = vst.msk [vmem:[#allocation3 + $0x28] sm:$0xff] %vm10803_vm5, %v10766_v62  ;;  %12859 = vmatmul.mubr.bf16.gmra.mrb[48].mxu0 %v10823_v9 }
 0xdbd   : > { %8493 = vst.msk [vmem:[#allocation3 + $0x50] sm:$0xff] %vm8482_vm4, %v8455_v29  ;;  %11177 = vbcast.lane.b32.xlu1 %v11171_v33, 264 }
 0xdbf   : > { %v8457_v18 = vpop.permute.xlu1 %8456  ;;  %v10768_v37 = vpop.permute.xlu0 %10767  ;;  %11195 = vbcast.lane.b32.xlu0 %v11193_v17, 256 }
 0xdc0   : > { %v10824_v0 = vld [vmem:[#allocation3 + $0x20] sm:$0xff]  ;;  %8494 = vst.msk [vmem:[#allocation3 + $0x58] sm:$0xff] %vm8482_vm4, %v8457_v18 }
 0xdc1   : > { %10810 = vst.msk [vmem:[#allocation3 + $0x30] sm:$0xff] %vm10803_vm5, %v10768_v37  ;;  %12862 = vmatprep.mubr.bf16.mxu0 %v10824_v0  ;;  %11188 = vbcast.lane.b32.xlu1 %v11182_v3, 264 }
 0xdc3   : > { %v10770_v56 = vpop.permute.xlu1 %10769  ;;  %v6138_v30 = vpop.permute.xlu0 %6137  ;;  %v10825_v44 = vld [vmem:[#allocation3 + $0x28] sm:$0xff]  ;;  %11206 = vbcast.lane.b32.xlu0 %v11204_v58, 256 }
 0xdc4   : > { %10811 = vst.msk [vmem:[#allocation3 + $0x38] sm:$0xff] %vm10803_vm5, %v10770_v56  ;;  %12863 = vmatmul.mubr.bf16.gmra.mrb[52].mxu0 %v10825_v44 }
 0xdc5   : > { %6174 = vst.msk [vmem:[#allocation3 + $0x60] sm:$0xff] %vm6161_vm3, %v6138_v30  ;;  %11199 = vbcast.lane.b32.xlu1 %v11193_v17, 264 }
 0xdc7   : > { %v6140_v41 = vpop.permute.xlu1 %6139  ;;  %11217 = vbcast.lane.b32.xlu0 %v11215_v19, 256 }
 0xdc8   : > { %v10826_v14 = vld [vmem:[#allocation3 + $0x30] sm:$0xff]  ;;  %6175 = vst.msk [vmem:[#allocation3 + $0x68] sm:$0xff] %vm6161_vm3, %v6140_v41 }
 0xdc9   : > { %12866 = vmatprep.mubr.bf16.mxu0 %v10826_v14  ;;  %11210 = vbcast.lane.b32.xlu1 %v11204_v58, 264 }
 0xdcb   : > { %v10774_v60 = vpop.permute.xlu1 %10773  ;;  %v10827_v20 = vld [vmem:[#allocation3 + $0x38] sm:$0xff]  ;;  %11228 = vbcast.lane.b32.xlu0 %v11226_v5, 256 }
 0xdcc   : > { %10813 = vst.msk [vmem:[#allocation3 + $0x48] sm:$0xff] %vm10803_vm5, %v10774_v60  ;;  %12867 = vmatmul.mubr.bf16.gmra.mrb[56].mxu0 %v10827_v20 }
 0xdcd   : > { %11221 = vbcast.lane.b32.xlu1 %v11215_v19, 264 }
 0xdcf   : > { %v8461_v52 = vpop.permute.xlu1 %8460  ;;  %v10772_v7 = vpop.permute.xlu0 %10771  ;;  %11239 = vbcast.lane.b32.xlu0 %v11237_v26, 256 }
 0xdd0   : > { %8496 = vst.msk [vmem:[#allocation3 + $0x68] sm:$0xff] %vm8482_vm4, %v8461_v52 }
 0xdd1   : > { %10812 = vst.msk [vmem:[#allocation3 + $0x40] sm:$0xff] %vm10803_vm5, %v10772_v7  ;;  %11232 = vbcast.lane.b32.xlu1 %v11226_v5, 264 }
 0xdd3   : > { %v10778_v28 = vpop.permute.xlu1 %10777  ;;  %v8459_v25 = vpop.permute.xlu0 %8458  ;;  %11250 = vbcast.lane.b32.xlu0 %v11248_v12, 256  ;;  %v10829_v1 = vld [vmem:[#allocation3 + $0x48] sm:$0xff] }
 0xdd4   : > { %10815 = vst.msk [vmem:[#allocation3 + $0x58] sm:$0xff] %vm10803_vm5, %v10778_v28 }
 0xdd5   : > { %8495 = vst.msk [vmem:[#allocation3 + $0x60] sm:$0xff] %vm8482_vm4, %v8459_v25  ;;  %11243 = vbcast.lane.b32.xlu1 %v11237_v26, 264 }
 0xdd7   : > { %v6144_v61 = vpop.permute.xlu1 %6143  ;;  %v10776_v24 = vpop.permute.xlu0 %10775  ;;  %11261 = vbcast.lane.b32.xlu0 %v11259_v46, 256 }
 0xdd8   : > { %v10828_v54 = vld [vmem:[#allocation3 + $0x40] sm:$0xff]  ;;  %6177 = vst.msk [vmem:[#allocation3 + $0x78] sm:$0xff] %vm6161_vm3, %v6144_v61 }
 0xdd9   : > { %10814 = vst.msk [vmem:[#allocation3 + $0x50] sm:$0xff] %vm10803_vm5, %v10776_v24  ;;  %12870 = vmatprep.mubr.bf16.mxu0 %v10828_v54  ;;  %11254 = vbcast.lane.b32.xlu1 %v11248_v12, 264 }
 0xdda   : > { %12871 = vmatmul.mubr.bf16.gmra.mrb[60].mxu0 %v10829_v1 }
 0xddb   : > { %v10782_v50 = vpop.permute.xlu1 %10781  ;;  %v6142_v43 = vpop.permute.xlu0 %6141  ;;  %11272 = vbcast.lane.b32.xlu0 %v11270_v6, 256  ;;  %v10831_v63 = vld [vmem:[#allocation3 + $0x58] sm:$0xff] }
 0xddc   : > { %10817 = vst.msk [vmem:[#allocation3 + $0x68] sm:$0xff] %vm10803_vm5, %v10782_v50 }
 0xddd   : > { %6176 = vst.msk [vmem:[#allocation3 + $0x70] sm:$0xff] %vm6161_vm3, %v6142_v43  ;;  %11265 = vbcast.lane.b32.xlu1 %v11259_v46, 264 }
 0xddf   : > { %v8465_v31 = vpop.permute.xlu1 %8464  ;;  %v10780_v4 = vpop.permute.xlu0 %10779 }
 0xde0   : > { %v10830_v27 = vld [vmem:[#allocation3 + $0x50] sm:$0xff]  ;;  %8498 = vst.msk [vmem:[#allocation3 + $0x78] sm:$0xff] %vm8482_vm4, %v8465_v31 }
 0xde1   : > { %10816 = vst.msk [vmem:[#allocation3 + $0x60] sm:$0xff] %vm10803_vm5, %v10780_v4  ;;  %12874 = vmatprep.mubr.bf16.mxu0 %v10830_v27  ;;  %11276 = vbcast.lane.b32.xlu1 %v11270_v6, 264 }
 0xde2   : > { %12875 = vmatmul.mubr.bf16.gmra.mrb[64].mxu0 %v10831_v63 }
 0xde3   : > { %v8463_v53 = vpop.permute.xlu0 %8462  ;;  %v10833_v32 = vld [vmem:[#allocation3 + $0x68] sm:$0xff] }
 0xde4   : > { %8497 = vst.msk [vmem:[#allocation3 + $0x70] sm:$0xff] %vm8482_vm4, %v8463_v53 }
 0xde8   : > { %v10832_v15 = vld [vmem:[#allocation3 + $0x60] sm:$0xff] }
 0xde9   : > { %12878 = vmatprep.mubr.bf16.mxu0 %v10832_v15 }
 0xdea   : > { %12879 = vmatmul.mubr.bf16.gmra.mrb[68].mxu0 %v10833_v32 }
 0xe0d   : > { %v10784_v47 = vpop.permute.xlu0 %10783 }
 0xe0e   : > { %10818 = vst.msk [vmem:[#allocation3 + $0x70] sm:$0xff] %vm10803_vm5, %v10784_v47 }
 0xe11   : > { %v11108_v36 = vpop.permute.xlu0 %11107 }
 0xe13   : > { %v10786_v59 = vpop.permute.xlu1 %10785 }
 0xe14   : > { %10819 = vst.msk [vmem:[#allocation3 + $0x78] sm:$0xff] %vm10803_vm5, %v10786_v59 }
 0xe15   : > { %v10834_v13 = vld [vmem:[#allocation3 + $0x70] sm:$0xff]  ;;  %v11119_v10 = vpop.permute.xlu0 %11118 }
 0xe16   : > { %12882 = vmatprep.mubr.bf16.mxu0 %v10834_v13 }
 0xe17   : > { %v11112_v23 = vpop.permute.xlu1 %11111 }
 0xe19   : > { %v11130_v11 = vpop.permute.xlu0 %11129 }
 0xe1b   : > { %v10835_v21 = vld [vmem:[#allocation3 + $0x78] sm:$0xff]  ;;  %v11123_v35 = vpop.permute.xlu1 %11122 }
 0xe1c   : > { %12883 = vmatmul.mubr.bf16.gmra.mrb[72].mxu0 %v10835_v21 }
 0xe1d   : > { %v11141_v45 = vpop.permute.xlu0 %11140 }
 0xe1f   : > { %v11134_v16 = vpop.permute.xlu1 %11133 }
 0xe21   : > { %v11152_v22 = vpop.permute.xlu0 %11151 }
 0xe23   : > { %v11145_v55 = vpop.permute.xlu1 %11144 }
 0xe25   : > { %v11163_v29 = vpop.permute.xlu0 %11162 }
 0xe27   : > { %v11156_v3 = vpop.permute.xlu1 %11155 }
 0xe29   : > { %v11174_v5 = vpop.permute.xlu0 %11173 }
 0xe2b   : > { %v11167_v37 = vpop.permute.xlu1 %11166 }
 0xe2d   : > { %v11185_v24 = vpop.permute.xlu0 %11184 }
 0xe2f   : > { %v11178_v20 = vpop.permute.xlu1 %11177 }
 0xe31   : > { %v11196_v31 = vpop.permute.xlu0 %11195 }
 0xe33   : > { %v11189_v50 = vpop.permute.xlu1 %11188 }
 0xe37   : > { %v11200_v53 = vpop.permute.xlu1 %11199 }
 0xe86   : > { %v12856_v49 = vpop.f32.mrb[44].mxu0 }
 0xe87   : > { %v11070_v48 = vadd.f32 %v12856_v49, %v18197_v42  ;;  %v10934_v38 = vpop.f32.mrb[45].mxu0 }
 0xe88   : > { %v11068_v34 = vadd.f32 %v18197_v42, %v10934_v38  ;;  %v12857_v8 = vpop.f32.mrb[46].mxu0 }
 0xe89   : > { %v11071_v33 = vadd.f32 %v12857_v8, %v18197_v42  ;;  %v11280_v39 = vmul.f32 %v11119_v10, %v11070_v48  ;;  %v10937_v40 = vpop.f32.mrb[47].mxu0  ;;  %v11207_v10 = vpop.permute.xlu0 %11206 }
 0xe8a   : > { %v11278_v57 = vmul.f32 %v11108_v36, %v11068_v34  ;;  %v11069_v2 = vadd.f32 %v18197_v42, %v10937_v40 }
 0xe8b   : > { %11312 = vst [vmem:[%s18205_s24 + $0x10] sm:$0xff] %v11280_v39  ;;  %v11281_v51 = vmul.f32 %v11123_v35, %v11071_v33 }
 0xe8c   : > { %11310 = vst [vmem:[%s18205_s24] sm:$0xff] %v11278_v57  ;;  %v11279_v62 = vmul.f32 %v11112_v23, %v11069_v2 }
 0xe8d   : > { %11313 = vst [vmem:[%s18205_s24 + $0x18] sm:$0xff] %v11281_v51 }
 0xe8e   : > { %11311 = vst [vmem:[%s18205_s24 + $0x8] sm:$0xff] %v11279_v62 }
 0xe8f   : > { %v12860_v9 = vpop.f32.mrb[48].mxu0 }
 0xe90   : > { %v11074_v17 = vadd.f32 %v12860_v9, %v18197_v42  ;;  %v10950_v18 = vpop.f32.mrb[49].mxu0 }
 0xe91   : > { %v11072_v0 = vadd.f32 %v18197_v42, %v10950_v18  ;;  %v12861_v58 = vpop.f32.mrb[50].mxu0 }
 0xe92   : > { %v11075_v56 = vadd.f32 %v12861_v58, %v18197_v42  ;;  %v11284_v30 = vmul.f32 %v11141_v45, %v11074_v17  ;;  %v10953_v44 = vpop.f32.mrb[51].mxu0 }
 0xe93   : > { %v11282_v19 = vmul.f32 %v11130_v11, %v11072_v0  ;;  %v11073_v41 = vadd.f32 %v18197_v42, %v10953_v44  ;;  %v11211_v11 = vpop.permute.xlu1 %11210 }
 0xe94   : > { %11316 = vst [vmem:[%s18205_s24 + $0x30] sm:$0xff] %v11284_v30  ;;  %v11285_v14 = vmul.f32 %v11145_v55, %v11075_v56 }
 0xe95   : > { %11314 = vst [vmem:[%s18205_s24 + $0x20] sm:$0xff] %v11282_v19  ;;  %v11283_v60 = vmul.f32 %v11134_v16, %v11073_v41  ;;  %v11218_v16 = vpop.permute.xlu0 %11217 }
 0xe96   : > { %11317 = vst [vmem:[%s18205_s24 + $0x38] sm:$0xff] %v11285_v14 }
 0xe97   : > { %11315 = vst [vmem:[%s18205_s24 + $0x28] sm:$0xff] %v11283_v60  ;;  %v12864_v26 = vpop.f32.mrb[52].mxu0  ;;  %v11222_v55 = vpop.permute.xlu1 %11221 }
 0xe98   : > { %v11078_v52 = vadd.f32 %v12864_v26, %v18197_v42  ;;  %v10966_v7 = vpop.f32.mrb[53].mxu0 }
 0xe99   : > { %v11076_v12 = vadd.f32 %v18197_v42, %v10966_v7  ;;  %v12865_v28 = vpop.f32.mrb[54].mxu0  ;;  %v11229_v57 = vpop.permute.xlu0 %11228 }
 0xe9a   : > { %v11079_v25 = vadd.f32 %v12865_v28, %v18197_v42  ;;  %v11288_v46 = vmul.f32 %v11163_v29, %v11078_v52  ;;  %v10969_v61 = vpop.f32.mrb[55].mxu0 }
 0xe9b   : > { %v11286_v54 = vmul.f32 %v11152_v22, %v11076_v12  ;;  %v11077_v6 = vadd.f32 %v18197_v42, %v10969_v61  ;;  %v11233_v51 = vpop.permute.xlu1 %11232 }
 0xe9c   : > { %11320 = vst [vmem:[%s18205_s24 + $0x50] sm:$0xff] %v11288_v46  ;;  %v11289_v1 = vmul.f32 %v11167_v37, %v11079_v25 }
 0xe9d   : > { %11318 = vst [vmem:[%s18205_s24 + $0x40] sm:$0xff] %v11286_v54  ;;  %v11287_v43 = vmul.f32 %v11156_v3, %v11077_v6  ;;  %v11240_v37 = vpop.permute.xlu0 %11239 }
 0xe9e   : > { %11321 = vst [vmem:[%s18205_s24 + $0x58] sm:$0xff] %v11289_v1 }
 0xe9f   : > { %11319 = vst [vmem:[%s18205_s24 + $0x48] sm:$0xff] %v11287_v43  ;;  %v12868_v4 = vpop.f32.mrb[56].mxu0  ;;  %v11244_v19 = vpop.permute.xlu1 %11243 }
 0xea0   : > { %v11082_v27 = vadd.f32 %v12868_v4, %v18197_v42  ;;  %v10982_v63 = vpop.f32.mrb[57].mxu0 }
 0xea1   : > { %v11080_v15 = vadd.f32 %v18197_v42, %v10982_v63  ;;  %v12869_v32 = vpop.f32.mrb[58].mxu0  ;;  %v11251_v60 = vpop.permute.xlu0 %11250 }
 0xea2   : > { %v11083_v47 = vadd.f32 %v12869_v32, %v18197_v42  ;;  %v11292_v59 = vmul.f32 %v11185_v24, %v11082_v27  ;;  %v10985_v13 = vpop.f32.mrb[59].mxu0 }
 0xea3   : > { %v11290_v21 = vmul.f32 %v11174_v5, %v11080_v15  ;;  %v11081_v36 = vadd.f32 %v18197_v42, %v10985_v13  ;;  %v11255_v12 = vpop.permute.xlu1 %11254 }
 0xea4   : > { %11324 = vst [vmem:[%s18205_s24 + $0x70] sm:$0xff] %v11292_v59  ;;  %v11293_v23 = vmul.f32 %v11189_v50, %v11083_v47 }
 0xea5   : > { %11322 = vst [vmem:[%s18205_s24 + $0x60] sm:$0xff] %v11290_v21  ;;  %v11291_v35 = vmul.f32 %v11178_v20, %v11081_v36  ;;  %v11262_v1 = vpop.permute.xlu0 %11261 }
 0xea6   : > { %11325 = vst [vmem:[%s18205_s24 + $0x78] sm:$0xff] %v11293_v23 }
 0xea7   : > { %11323 = vst [vmem:[%s18205_s24 + $0x68] sm:$0xff] %v11291_v35  ;;  %v11266_v50 = vpop.permute.xlu1 %11265 }
 0xeab   : > { %v11277_v15 = vpop.permute.xlu1 %11276 }
 0xead   : > { %v12872_v45 = vpop.f32.mrb[60].mxu0 }
 0xeae   : > { %v11086_v49 = vadd.f32 %v12872_v45, %v18197_v42  ;;  %v10998_v48 = vpop.f32.mrb[61].mxu0 }
 0xeaf   : > { %v11084_v38 = vadd.f32 %v18197_v42, %v10998_v48  ;;  %v12873_v34 = vpop.f32.mrb[62].mxu0 }
 0xeb0   : > { %v11087_v8 = vadd.f32 %v12873_v34, %v18197_v42  ;;  %v11296_v22 = vmul.f32 %v11207_v10, %v11086_v49  ;;  %v11001_v33 = vpop.f32.mrb[63].mxu0 }
 0xeb1   : > { %v11294_v39 = vmul.f32 %v11196_v31, %v11084_v38  ;;  %v11085_v40 = vadd.f32 %v18197_v42, %v11001_v33  ;;  %v11273_v31 = vpop.permute.xlu0 %11272 }
 0xeb2   : > { %11328 = vst [vmem:[%s18205_s24 + $0x90] sm:$0xff] %v11296_v22  ;;  %v11297_v2 = vmul.f32 %v11211_v11, %v11087_v8 }
 0xeb3   : > { %11326 = vst [vmem:[%s18205_s24 + $0x80] sm:$0xff] %v11294_v39  ;;  %v11295_v3 = vmul.f32 %v11200_v53, %v11085_v40 }
 0xeb4   : > { %11329 = vst [vmem:[%s18205_s24 + $0x98] sm:$0xff] %v11297_v2 }
 0xeb5   : > { %11327 = vst [vmem:[%s18205_s24 + $0x88] sm:$0xff] %v11295_v3  ;;  %v12876_v62 = vpop.f32.mrb[64].mxu0 }
 0xeb6   : > { %v11090_v29 = vadd.f32 %v12876_v62, %v18197_v42  ;;  %v11014_v9 = vpop.f32.mrb[65].mxu0 }
 0xeb7   : > { %v11088_v17 = vadd.f32 %v18197_v42, %v11014_v9  ;;  %v12877_v18 = vpop.f32.mrb[66].mxu0 }
 0xeb8   : > { %v11091_v0 = vadd.f32 %v12877_v18, %v18197_v42  ;;  %v11300_v58 = vmul.f32 %v11229_v57, %v11090_v29  ;;  %v11017_v56 = vpop.f32.mrb[67].mxu0 }
 0xeb9   : > { %v11298_v30 = vmul.f32 %v11218_v16, %v11088_v17  ;;  %v11089_v44 = vadd.f32 %v18197_v42, %v11017_v56 }
 0xeba   : > { %11332 = vst [vmem:[%s18205_s24 + $0xb0] sm:$0xff] %v11300_v58  ;;  %v11301_v41 = vmul.f32 %v11233_v51, %v11091_v0 }
 0xebb   : > { %11330 = vst [vmem:[%s18205_s24 + $0xa0] sm:$0xff] %v11298_v30  ;;  %v11299_v14 = vmul.f32 %v11222_v55, %v11089_v44 }
 0xebc   : > { %11333 = vst [vmem:[%s18205_s24 + $0xb8] sm:$0xff] %v11301_v41 }
 0xebd   : > { %11331 = vst [vmem:[%s18205_s24 + $0xa8] sm:$0xff] %v11299_v14  ;;  %v12880_v5 = vpop.f32.mrb[68].mxu0 }
 0xebe   : > { %v11094_v20 = vadd.f32 %v12880_v5, %v18197_v42  ;;  %v11030_v26 = vpop.f32.mrb[69].mxu0 }
 0xebf   : > { %v11092_v52 = vadd.f32 %v18197_v42, %v11030_v26  ;;  %v12881_v7 = vpop.f32.mrb[70].mxu0 }
 0xec0   : > { %v11095_v28 = vadd.f32 %v12881_v7, %v18197_v42  ;;  %v11304_v25 = vmul.f32 %v11251_v60, %v11094_v20  ;;  %v11033_v46 = vpop.f32.mrb[71].mxu0 }
 0xec1   : > { %v11302_v61 = vmul.f32 %v11240_v37, %v11092_v52  ;;  %v11093_v24 = vadd.f32 %v18197_v42, %v11033_v46 }
 0xec2   : > { %11336 = vst [vmem:[%s18205_s24 + $0xd0] sm:$0xff] %v11304_v25  ;;  %v11305_v54 = vmul.f32 %v11255_v12, %v11095_v28 }
 0xec3   : > { %11334 = vst [vmem:[%s18205_s24 + $0xc0] sm:$0xff] %v11302_v61  ;;  %v11303_v6 = vmul.f32 %v11244_v19, %v11093_v24 }
 0xec4   : > { %11337 = vst [vmem:[%s18205_s24 + $0xd8] sm:$0xff] %v11305_v54 }
 0xec5   : > { %11335 = vst [vmem:[%s18205_s24 + $0xc8] sm:$0xff] %v11303_v6 }
 0xeef   : > { %v12884_v43 = vpop.f32.mrb[72].mxu0 }
 0xef0   : > { %v11098_v4 = vadd.f32 %v12884_v43, %v18197_v42  ;;  %v11046_v27 = vpop.f32.mrb[73].mxu0 }
 0xef1   : > { %v11096_v63 = vadd.f32 %v18197_v42, %v11046_v27  ;;  %v12885_v53 = vpop.f32.mrb[74].mxu0 }
 0xef2   : > { %v11099_v32 = vadd.f32 %v12885_v53, %v18197_v42  ;;  %v11308_v47 = vmul.f32 %v11273_v31, %v11098_v4  ;;  %v11049_v59 = vpop.f32.mrb[75].mxu0 }
 0xef3   : > { %v11306_v13 = vmul.f32 %v11262_v1, %v11096_v63  ;;  %v11097_v21 = vadd.f32 %v18197_v42, %v11049_v59 }
 0xef4   : > { %11340 = vst [vmem:[%s18205_s24 + $0xf0] sm:$0xff] %v11308_v47  ;;  %v11309_v36 = vmul.f32 %v11277_v15, %v11099_v32 }
 0xef5   : > { %11338 = vst [vmem:[%s18205_s24 + $0xe0] sm:$0xff] %v11306_v13  ;;  %v11307_v23 = vmul.f32 %v11266_v50, %v11097_v21 }
 0xef6   : > { %11341 = vst [vmem:[%s18205_s24 + $0xf8] sm:$0xff] %v11309_v36 }
 0xef7   : > { %11339 = vst [vmem:[%s18205_s24 + $0xe8] sm:$0xff] %v11307_v23 }
 0xef8   : > { %13754 = shalt.err (!%p13751_p9)
}
 0xef9   : > { %s13755_s25 = scalar_lea.hbm %s18270_s16, 4096  ;;  %s13759_s21 = scalar_lea.hbm %s18339_s8, 16384 }
 0xefa   : > { %p13756_p10 = scmp.ne.s32.totalorder %s18270_s16, %s13755_s25  ;;  %p13760_p13 = scmp.lt.u32.totalorder %s18270_s16, %s18339_s8 }
 0xefb   : > { %p13761_p0 = scmp.lt.u32.totalorder %s13759_s21, %s13755_s25  ;;  %p13763_p2 = scmp.lt.u32.totalorder %s13755_s25, %s18270_s16 }
 0xefc   : > { %p13757_p11 = pnand %p13756_p10, %p13942_p3 }
 0xefd   : > { %p13762_p1 = por %p13761_p0, %p13760_p13 }
 0xefe   : > { %p13758_p12 = pneg %p13757_p11 }
 0xeff   : > { %p13764_p4 = por %p13763_p2, %p13762_p1 }
 0xf01   : > { %p13765_p5 = pnand %p13764_p4, %p13758_p12 }
 0xf03   : > { %13768 = shalt.err (!%p13765_p5)
}
 0xf04   : > { %s13844_s22 = smov 128   ;;  %s13845_s13 = smov 8  }
 0xf05   : > { %12902 = dma.vmem_to_hbm [thread:$0]  (%p13942_p3), %s18272_s0, 4096, %s18270_s16, %s18279_s14, %s13844_s22, %s13844_s22, %s13845_s13  }
 0xf06 PF: > { %p12908_p6 = scmp.ge.s32.totalorder %s13835_s12, 2  ;;  %s11374_s26 = sand.u32 1, %s13807_s27  }
 0xf07   : > { %s11375_s17 = scalar_lea.sflag [#allocation5], %s11374_s26 }
 0xf08   : > { %p12905_p7 = pnand %p12908_p6, %p13951_p8 }
 0xf0a   : > { %13802 = dma.done.wait (!%p12905_p7), %s11375_s17, 4096  }
 0xf0b   : > { %13804 = vsyncadd (!%p12905_p7), %s11375_s17, 4294963200  ;;  %s21_s12 = sadd.s32 1, %s13835_s12   ;;  %s19121_s18 = sld [smem:[#allocation7_spill]] }
 0xf0c   : > { %p18_p9 = scmp.ge.s32.totalorder %s21_s12, 6   ;;  %s19122_s27 = smov %s13811_s28 }
 0xf0d   : > { %s19123_s28 = smov %s13815_s29  ;;  %s19124_s29 = smov %s13960_s23 }
 0xf0e   : > { %s19125_s30 = smov %s13827_s10  ;;  %s19126_s9 = smov %s13831_s11 }
 0xf0f   : > { %s19127_s10 = smov %s19130_s15  ;;  %20 = sbr.rel (!%p18_p9) target bundleno = 7 (0x7), region = 93 }
 0xf11   : > { %s19128_s11 = smov %s19121_s18 }
 0xf16   :  { %11380 = vsyncpa [#allocation5], 1 }
 0xf17   :  { %11382 = vsyncpa [#allocation5 + $0x1], 1 }

</bundles_post_ra>
